<compile_context>
chip_gen: v7x
topology: tpu7x:2x2x1
jax: 0.10.0
libtpu: 0.0.40
codegen_flags: <defaults>
</compile_context>

<pallas_src>
import functools

import jax
import jax.numpy as jnp
from jax.experimental import pallas as pl
from jax.experimental.pallas import tpu as pltpu

EPS = 1e-5
NEG_SLOPE = 0.01                      # nn.LeakyReLU default
_VMEM_LIMIT = 64 * 1024 * 1024        # band tiles are sized to stay far below
_MAX_MM_ROWS = 1024                   # target matmul rows (M) per band


def _round_up(x, m):
    return ((x + m - 1) // m) * m


def _pick_tile_h(h, w, max_rows=_MAX_MM_ROWS):
    """Largest divisor of h with <= max_rows matmul rows per band, preferring
    sublane-aligned (tile_h*w % 8 == 0) choices (or a single full-height band)."""
    best, best_aligned = 1, None
    for d in range(1, h + 1):
        if h % d:
            continue
        if d * w > max_rows and d != 1:
            continue
        best = d
        if d == h or (d * w) % 8 == 0:
            best_aligned = d
    return best_aligned if best_aligned is not None else best


def _bn_scale_shift(s1, s2, count, gamma, beta):
    mean = s1 / count
    var = jnp.maximum(s2 / count - mean * mean, 0.0)   # biased var (training BN)
    scale = gamma * jax.lax.rsqrt(var + EPS)
    return scale, beta - mean * scale


# ----------------------------------------------------------------------------
# Kernel 1: per-tile partial column sums / sums-of-squares (BN0 statistics).
# Fully parallel grid; ragged last tile masked in-kernel (no padding copies).
# ----------------------------------------------------------------------------
def _colsum_kernel(x_ref, s1_ref, s2_ref, *, n_valid):
    rows = x_ref.shape[0]
    row0 = pl.program_id(0) * rows
    ridx = row0 + jax.lax.broadcasted_iota(jnp.int32, (rows, 1), 0)
    x = jnp.where(ridx < n_valid, x_ref[...].astype(jnp.float32), 0.0)
    s1_ref[0] = jnp.sum(x, axis=0, keepdims=True)
    s2_ref[0] = jnp.sum(x * x, axis=0, keepdims=True)


def channel_sums(x_nhwc, tile_rows=1024):
    """Per-channel sum / sum-of-squares over N*H*W via lane-dense partial sums."""
    c = x_nhwc.shape[-1]
    count = x_nhwc.size // c
    fold = 128 // c if (128 % c == 0 and count % max(128 // c, 1) == 0) else 1
    lanes = fold * c
    rows = x_nhwc.size // lanes
    flat = x_nhwc.reshape(rows, lanes)            # pure reshape, no copy
    tile_rows = max(8, min(tile_rows, _round_up(rows, 8)))
    n_tiles = pl.cdiv(rows, tile_rows)
    s1, s2 = pl.pallas_call(
        functools.partial(_colsum_kernel, n_valid=rows),
        out_shape=(jax.ShapeDtypeStruct((n_tiles, 1, lanes), jnp.float32),
                   jax.ShapeDtypeStruct((n_tiles, 1, lanes), jnp.float32)),
        grid=(n_tiles,),
        in_specs=[pl.BlockSpec((tile_rows, lanes), lambda t: (t, 0))],
        out_specs=(pl.BlockSpec((1, 1, lanes), lambda t: (t, 0, 0)),
                   pl.BlockSpec((1, 1, lanes), lambda t: (t, 0, 0))),
        compiler_params=pltpu.CompilerParams(
            dimension_semantics=("parallel",),
            vmem_limit_bytes=_VMEM_LIMIT),
    )(flat)
    s1 = s1.sum(axis=(0, 1)).reshape(fold, c).sum(axis=0)
    s2 = s2.sum(axis=(0, 1)).reshape(fold, c).sum(axis=0)
    return s1, s2, count


# ----------------------------------------------------------------------------
# Kernel 2: generic fused conv band pass.
#   load halo'd row band -> [BN affine + LeakyReLU prologue] -> k*k taps built
#   in VMEM -> accumulated MXU dots (bf16 in, f32 acc) ->
#   [per-band BN partial stats] and/or [BN affine + activation -> store].
# ----------------------------------------------------------------------------
def _conv_band_kernel(*refs, k, tile_h, w_out, in_affine, out_act, write_y,
                      stats, compute_dtype):
    it = iter(refs)
    body_ref = next(it)
    halo_ref = next(it)
    w_ref = next(it)
    if in_affine:
        isc_ref = next(it)
        ish_ref = next(it)
    if out_act is not None:
        osc_ref = next(it)
        osh_ref = next(it)
    y_ref = next(it) if write_y else None
    if stats:
        s1_ref = next(it)
        s2_ref = next(it)

    cin = body_ref.shape[-1]
    cout = w_ref.shape[-1]

    # (tile_h + k-1, W + k-1, Cin) window: band body + 2-row halo.
    window = jnp.concatenate([body_ref[0], halo_ref[0, 0]], axis=0)
    x = window.astype(jnp.float32)
    if in_affine:                                  # previous BN + LeakyReLU
        x = x * isc_ref[...] + ish_ref[...]
        x = jnp.where(x >= 0, x, NEG_SLOPE * x)
    xm = x.astype(compute_dtype)

    acc = jnp.zeros((tile_h * w_out, cout), jnp.float32)
    for kh in range(k):
        for kw in range(k):
            tap = xm[kh:kh + tile_h, kw:kw + w_out, :].reshape(
                tile_h * w_out, cin)
            acc = acc + jnp.dot(tap, w_ref[kh * k + kw],
                                preferred_element_type=jnp.float32)

    if stats:                                      # partial sums for next BN
        s1_ref[0, 0] = jnp.sum(acc, axis=0, keepdims=True)
        s2_ref[0, 0] = jnp.sum(acc * acc, axis=0, keepdims=True)
    if write_y:
        y = acc
        if out_act is not None:                    # fused BN + activation
            y = y * osc_ref[...] + osh_ref[...]
            if out_act == "leaky":
                y = jnp.where(y >= 0, y, NEG_SLOPE * y)
            else:
                y = jax.nn.sigmoid(y)
        y_ref[0] = y.astype(y_ref.dtype)


def conv_band_pass(x_pad, x_halo, weights, *, k, tile_h, w_out,
                   in_scale=None, in_shift=None,
                   out_scale=None, out_shift=None, out_act=None,
                   write_y=True, stats=False,
                   y_dtype=jnp.float32, compute_dtype=jnp.bfloat16):
    n, hpk, wpk, cin = x_pad.shape
    h_out = hpk - (k - 1)
    assert h_out % tile_h == 0, (h_out, tile_h)
    n_bands = h_out // tile_h
    cout = weights.shape[-1]
    in_affine = in_scale is not None

    in_specs = [
        pl.BlockSpec((1, tile_h, wpk, cin), lambda nn, hb: (nn, hb, 0, 0)),
        pl.BlockSpec((1, 1, k - 1, wpk, cin), lambda nn, hb: (nn, hb, 0, 0, 0)),
        # grid-invariant operands below (weights / scales) are small; Pallas
        # re-uses their blocks across the grid (constant index_map).
        pl.BlockSpec((k * k, cin, cout), lambda nn, hb: (0, 0, 0)),
    ]
    args = [x_pad, x_halo, weights.astype(compute_dtype)]
    if in_affine:
        in_specs.append(pl.BlockSpec((1, cin), lambda nn, hb: (0, 0)))
        in_specs.append(pl.BlockSpec((1, cin), lambda nn, hb: (0, 0)))
        args.append(in_scale.reshape(1, cin).astype(jnp.float32))
        args.append(in_shift.reshape(1, cin).astype(jnp.float32))
    if out_act is not None:
        in_specs.append(pl.BlockSpec((1, cout), lambda nn, hb: (0, 0)))
        in_specs.append(pl.BlockSpec((1, cout), lambda nn, hb: (0, 0)))
        args.append(out_scale.reshape(1, cout).astype(jnp.float32))
        args.append(out_shift.reshape(1, cout).astype(jnp.float32))

    out_shapes, out_specs = [], []
    if write_y:
        out_shapes.append(jax.ShapeDtypeStruct((n, h_out * w_out, cout), y_dtype))
        out_specs.append(
            pl.BlockSpec((1, tile_h * w_out, cout), lambda nn, hb: (nn, hb, 0)))
    if stats:
        for _ in range(2):
            out_shapes.append(
                jax.ShapeDtypeStruct((n, n_bands, 1, cout), jnp.float32))
            out_specs.append(
                pl.BlockSpec((1, 1, 1, cout), lambda nn, hb: (nn, hb, 0, 0)))

    return pl.pallas_call(
        functools.partial(_conv_band_kernel, k=k, tile_h=tile_h, w_out=w_out,
                          in_affine=in_affine, out_act=out_act,
                          write_y=write_y, stats=stats,
                          compute_dtype=compute_dtype),
        out_shape=tuple(out_shapes),
        grid=(n, n_bands),
        in_specs=in_specs,
        out_specs=tuple(out_specs),
        compiler_params=pltpu.CompilerParams(
            dimension_semantics=("parallel", "parallel"),
            vmem_limit_bytes=_VMEM_LIMIT),
    )(*args)


# ----------------------------------------------------------------------------
# Wrapper-side glue: halo extraction, fused-upsample weight packing.
# ----------------------------------------------------------------------------
def _split_body_halo(x_pad, tile_h, k):
    """Body = the padded tensor itself (blocked in tile_h rows); halo = the
    (k-1) extra rows each band needs, gathered into a tiny side array."""
    n, hp, wp, c = x_pad.shape
    n_bands = (hp - (k - 1)) // tile_h
    idx = (jnp.arange(n_bands)[:, None] * tile_h + tile_h
           + jnp.arange(k - 1)[None, :]).reshape(-1)
    halo = jnp.take(x_pad, idx, axis=1).reshape(n, n_bands, k - 1, wp, c)
    return x_pad, halo


# 2x nearest upsample + 3x3 reflect conv == 4 sub-pixel phases; phase (a,b)
# is a 2x2 conv with collapsed taps placed at rows/cols {a,a+1}x{b,b+1} of a
# shared 3x3 window on the edge-padded half-res tensor.
_PHASE_TAPS = {0: ((0,), (1, 2)), 1: ((0, 1), (2,))}


def _packed_phase_weights(w2_flat):
    """(9, cin, cout) conv weights -> (9, cin, 4*cout) packed phase weights."""
    cin, cout = w2_flat.shape[1], w2_flat.shape[2]
    w3 = w2_flat.reshape(3, 3, cin, cout).astype(jnp.float32)
    wp = jnp.zeros((3, 3, cin, 4, cout), jnp.float32)
    for a in (0, 1):
        for b in (0, 1):
            for rh in (0, 1):
                for rw in (0, 1):
                    blk = jnp.zeros((cin, cout), jnp.float32)
                    for dh in _PHASE_TAPS[a][rh]:
                        for dw in _PHASE_TAPS[b][rw]:
                            blk = blk + w3[dh, dw]
                    wp = wp.at[a + rh, b + rw, :, a * 2 + b, :].set(blk)
    return wp.reshape(9, cin, 4 * cout)


# ----------------------------------------------------------------------------
# Up.forward
# ----------------------------------------------------------------------------
def up_forward(params, x_nchw, skip_nchw, *, kernel_size, last=False,
               compute_dtype=jnp.bfloat16):
    k = kernel_size
    assert k % 2 == 1, "odd kernel sizes only (reflect 'same' padding)"
    pad = k // 2
    xcat = (jnp.concatenate([x_nchw, skip_nchw], axis=1)
            if skip_nchw is not None else x_nchw)
    x = jnp.transpose(xcat, (0, 2, 3, 1))                 # NCHW -> NHWC (glue)
    n, h, w, c0 = x.shape
    cout = params["w1"].shape[-1]

    # ---- BN0 batch stats; scale folded into w1.  BN0's shift and conv1's
    # bias are per-channel constants that training-mode BN1 cancels exactly.
    s0, q0, cnt0 = channel_sums(x)
    scale0, _ = _bn_scale_shift(s0, q0, cnt0,
                                params["bn0_gamma"], params["bn0_beta"])
    w1_eff = params["w1"].astype(jnp.float32) * scale0[None, :, None]

    # ---- conv1 (reflect pad) + BN1 stats; patches built in VMEM from a
    # halo'd row band (no HBM im2col).
    tile_h1 = _pick_tile_h(h, w)
    x_pad = jnp.pad(x, ((0, 0), (pad, pad), (pad, pad), (0, 0)),
                    mode="reflect").astype(compute_dtype)
    body1, halo1 = _split_body_halo(x_pad, tile_h1, k)
    y1, s1, q1 = conv_band_pass(body1, halo1, w1_eff, k=k, tile_h=tile_h1,
                                w_out=w, write_y=True, stats=True,
                                y_dtype=compute_dtype,
                                compute_dtype=compute_dtype)
    scale1, shift1 = _bn_scale_shift(s1.sum(axis=(0, 1, 2)),
                                     q1.sum(axis=(0, 1, 2)), n * h * w,
                                     params["bn1_gamma"], params["bn1_beta"])
    y1_img = y1.reshape(n, h, w, cout)

    # ---- conv2 with the 2x nearest upsample fused in (packed phases, k==3).
    if k == 3:
        w2p = _packed_phase_weights(params["w2"])          # (9, cout, 4*cout)
        src = jnp.pad(y1_img, ((0, 0), (1, 1), (1, 1), (0, 0)), mode="edge")
        h2, w2_, phases, k2 = h, w, 4, 3
    else:
        # TODO(synk): fused-upsample phase packing only derived for k == 3;
        # fall back to an explicit nearest upsample (one extra HBM pass).
        up = jnp.repeat(jnp.repeat(y1_img, 2, axis=1), 2, axis=2)
        w2p = params["w2"].astype(jnp.float32)
        src = jnp.pad(up, ((0, 0), (pad, pad), (pad, pad), (0, 0)),
                      mode="reflect")
        h2, w2_, phases, k2 = 2 * h, 2 * w, 1, k

    tile_h2 = _pick_tile_h(h2, w2_)
    body2, halo2 = _split_body_halo(src, tile_h2, k2)

    # pass 1: BN1 + LeakyReLU fused into the prologue, stats only -- the
    # full-resolution conv2 result is never written to HBM.
    s2p, q2p = conv_band_pass(body2, halo2, w2p, k=k2, tile_h=tile_h2,
                              w_out=w2_, in_scale=scale1, in_shift=shift1,
                              write_y=False, stats=True,
                              compute_dtype=compute_dtype)
    s2 = s2p.sum(axis=(0, 1, 2))
    q2 = q2p.sum(axis=(0, 1, 2))
    if phases > 1:
        s2 = s2.reshape(phases, cout).sum(axis=0)
        q2 = q2.reshape(phases, cout).sum(axis=0)
    scale2, shift2 = _bn_scale_shift(s2, q2, n * h2 * w2_ * phases,
                                     params["bn2_gamma"], params["bn2_beta"])

    # pass 2: recompute the (cheap, DMA-hidden) matmul, fuse BN2 + activation,
    # write only the final output.
    (y2,) = conv_band_pass(body2, halo2, w2p, k=k2, tile_h=tile_h2, w_out=w2_,
                           in_scale=scale1, in_shift=shift1,
                           out_scale=jnp.tile(scale2, phases),
                           out_shift=jnp.tile(shift2, phases),
                           out_act=("sigmoid" if last else "leaky"),
                           write_y=True, stats=False, y_dtype=jnp.float32,
                           compute_dtype=compute_dtype)

    # ---- sub-pixel phase interleave + NHWC->NCHW: one XLA transpose (glue).
    if phases > 1:
        out = y2.reshape(n, h, w, 2, 2, cout)
        out = jnp.transpose(out, (0, 5, 1, 3, 2, 4)).reshape(n, cout, 2*h, 2*w)
    else:
        out = jnp.transpose(y2.reshape(n, 2 * h, 2 * w, cout), (0, 3, 1, 2))
    return out


# ----------------------------------------------------------------------------
# Deterministic parameter init (shapes from Up.__init__, PyTorch default init)
# ----------------------------------------------------------------------------
def init_params(key, cin_total, cout, k):
    k0, k1, k2, k3 = jax.random.split(key, 4)

    def to_flat(w_oihw):  # (O, I, kh, kw) -> (kh*kw, I, O)
        return jnp.transpose(w_oihw, (2, 3, 1, 0)).reshape(
            k * k, w_oihw.shape[1], w_oihw.shape[0])

    b1 = 1.0 / (cin_total * k * k) ** 0.5
    w1 = jax.random.uniform(k0, (cout, cin_total, k, k), jnp.float32, -b1, b1)
    bias1 = jax.random.uniform(k1, (cout,), jnp.float32, -b1, b1)
    b2 = 1.0 / (cout * k * k) ** 0.5
    w2 = jax.random.uniform(k2, (cout, cout, k, k), jnp.float32, -b2, b2)
    bias2 = jax.random.uniform(k3, (cout,), jnp.float32, -b2, b2)

    return {
        "bn0_gamma": jnp.ones((cin_total,), jnp.float32),
        "bn0_beta": jnp.zeros((cin_total,), jnp.float32),
        # conv biases are used by the reference; the Pallas path drops them
        # legitimately (training-mode BN right after each conv cancels them).
        "w1": to_flat(w1), "b1": bias1,
        "bn1_gamma": jnp.ones((cout,), jnp.float32),
        "bn1_beta": jnp.zeros((cout,), jnp.float32),
        "w2": to_flat(w2), "b2": bias2,
        "bn2_gamma": jnp.ones((cout,), jnp.float32),
        "bn2_beta": jnp.zeros((cout,), jnp.float32),
    }


# ----------------------------------------------------------------------------
# Pure-JAX reference (faithful: separate BN passes, biases, explicit upsample)
# ----------------------------------------------------------------------------
def _ref_bn(x, gamma, beta):
    mean = jnp.mean(x, axis=(0, 1, 2), keepdims=True)
    var = jnp.mean(jnp.square(x - mean), axis=(0, 1, 2), keepdims=True)
    return (x - mean) / jnp.sqrt(var + EPS) * gamma + beta


def _ref_conv(x, w_flat, bias, k):
    pad = k // 2
    xp = jnp.pad(x, ((0, 0), (pad, pad), (pad, pad), (0, 0)), mode="reflect")
    w_hwio = w_flat.reshape(k, k, w_flat.shape[1], w_flat.shape[2])
    y = jax.lax.conv_general_dilated(
        xp, w_hwio, (1, 1), "VALID",
        dimension_numbers=("NHWC", "HWIO", "NHWC"),
        precision=jax.lax.Precision.HIGHEST)
    return y + bias


def ref_forward(params, x_nchw, skip_nchw, *, kernel_size, last=False):
    out = jnp.concatenate([x_nchw, skip_nchw], axis=1)
    out = jnp.transpose(out, (0, 2, 3, 1))
    out = _ref_bn(out, params["bn0_gamma"], params["bn0_beta"])
    out = _ref_conv(out, params["w1"], params["b1"], kernel_size)
    out = _ref_bn(out, params["bn1_gamma"], params["bn1_beta"])
    out = jnp.where(out >= 0, out, NEG_SLOPE * out)
    out = jnp.repeat(jnp.repeat(out, 2, axis=1), 2, axis=2)
    out = _ref_conv(out, params["w2"], params["b2"], kernel_size)
    out = _ref_bn(out, params["bn2_gamma"], params["bn2_beta"])
    out = jax.nn.sigmoid(out) if last else jnp.where(out >= 0, out,
                                                     NEG_SLOPE * out)
    return jnp.transpose(out, (0, 3, 1, 2))


# ----------------------------------------------------------------------------
if __name__ == "__main__":
    key = jax.random.PRNGKey(0)
    in_channels, skip_channels, out_channels, k = 4, 4, 8, 3
    N, H, W = 2, 16, 16

    kx, ks, kp = jax.random.split(key, 3)
    x = jax.random.normal(kx, (N, in_channels, H, W), jnp.float32)
    skip = jax.random.normal(ks, (N, skip_channels, H, W), jnp.float32)
    params = init_params(kp, in_channels + skip_channels, out_channels, k)

    ref = jax.block_until_ready(
        ref_forward(params, x, skip, kernel_size=k, last=False))

    # Strict structural check: the f32 compute path must match the reference.
    fwd32 = jax.jit(functools.partial(up_forward, kernel_size=k, last=False,
                                      compute_dtype=jnp.float32))
    out32 = jax.block_until_ready(fwd32(params, x, skip))
    assert out32.shape == (N, out_channels, 2 * H, 2 * W), out32.shape
    err32 = float(jnp.max(jnp.abs(out32 - ref)))
    assert jnp.allclose(out32, ref, atol=3e-3, rtol=3e-3), f"f32 max_err={err32}"

    # Default bf16-MXU path (halved HBM traffic, bf16 matmuls, f32 stats):
    # looser tolerance accounts for two chained bf16 convs + BN normalization.
    fwd16 = jax.jit(functools.partial(up_forward, kernel_size=k, last=False,
                                      compute_dtype=jnp.bfloat16))
    out16 = jax.block_until_ready(fwd16(params, x, skip))
    assert out16.shape == (N, out_channels, 2 * H, 2 * W), out16.shape
    err16 = float(jnp.max(jnp.abs(out16 - ref)))
    assert jnp.allclose(out16, ref, atol=3e-2, rtol=3e-2), f"bf16 max_err={err16}"

    print("KERNEL_OK")
</pallas_src>

<mosaic_0001>
module attributes {stable_mosaic.version = 11 : i64} {
  func.func @_colsum_kernel(%arg0: i32, %arg1: memref<32x128xf32, #tpu.memory_space<vmem>>, %arg2: memref<1x1x128xf32, #tpu.memory_space<vmem>>, %arg3: memref<1x1x128xf32, #tpu.memory_space<vmem>>) attributes {dimension_semantics = [#tpu.dimension_semantics<parallel>], iteration_bounds = array<i64: 1>, scalar_prefetch = 0 : i64, scratch_operands = 0 : i64, tpu.core_type = #tpu.core_type<tc>, window_params = [{transform_indices = @transform_0, window_bounds = array<i64: 32, 128>}, {transform_indices = @transform_1, window_bounds = array<i64: 1, 1, 128>}, {transform_indices = @transform_2, window_bounds = array<i64: 1, 1, 128>}]} {
    %c32_i32 = arith.constant 32 : i32
    %0 = arith.muli %arg0, %c32_i32 : i32
    %1 = tpu.iota {dimensions = array<i32: 0>} : vector<32x1xi32>
    %2 = vector.broadcast %0 : i32 to vector<32x1xi32>
    %3 = arith.addi %2, %1 : vector<32x1xi32>
    %c32_i32_0 = arith.constant 32 : i32
    %4 = vector.broadcast %c32_i32_0 : i32 to vector<32x1xi32>
    %5 = arith.cmpi slt, %3, %4 : vector<32x1xi32>
    %c0 = arith.constant 0 : index
    %c0_1 = arith.constant 0 : index
    %6 = vector.load %arg1[%c0, %c0_1] : memref<32x128xf32, #tpu.memory_space<vmem>>, vector<32x128xf32>
    %cst = arith.constant 0.000000e+00 : f32
    %7 = vector.shape_cast %5 : vector<32x1xi1> to vector<32x1xi1>
    %8 = vector.broadcast %7 : vector<32x1xi1> to vector<32x128xi1>
    %9 = vector.broadcast %cst : f32 to vector<32x128xf32>
    %10 = arith.select %8, %6, %9 : vector<32x128xi1>, vector<32x128xf32>
    %cst_2 = arith.constant dense<0.000000e+00> : vector<128xf32>
    %11 = vector.multi_reduction <add>, %10, %cst_2 [0] : vector<32x128xf32> to vector<128xf32>
    %12 = vector.shape_cast %11 : vector<128xf32> to vector<1x128xf32>
    %c0_3 = arith.constant 0 : index
    %c0_4 = arith.constant 0 : index
    %c0_5 = arith.constant 0 : index
    %13 = vector.load %arg2[%c0_3, %c0_4, %c0_5] : memref<1x1x128xf32, #tpu.memory_space<vmem>>, vector<1x1x128xf32>
    %14 = vector.shape_cast %13 : vector<1x1x128xf32> to vector<1x128xf32>
    %15 = vector.shape_cast %12 : vector<1x128xf32> to vector<1x1x128xf32>
    tpu.vector_store %arg2[%c0_3, %c0_4, %c0_5], %15 {strides = array<i32>} : memref<1x1x128xf32, #tpu.memory_space<vmem>>, vector<1x1x128xf32>,
    %16 = arith.mulf %10, %10 : vector<32x128xf32>
    %cst_6 = arith.constant dense<0.000000e+00> : vector<128xf32>
    %17 = vector.multi_reduction <add>, %16, %cst_6 [0] : vector<32x128xf32> to vector<128xf32>
    %18 = vector.shape_cast %17 : vector<128xf32> to vector<1x128xf32>
    %c0_7 = arith.constant 0 : index
    %c0_8 = arith.constant 0 : index
    %c0_9 = arith.constant 0 : index
    %19 = vector.load %arg3[%c0_7, %c0_8, %c0_9] : memref<1x1x128xf32, #tpu.memory_space<vmem>>, vector<1x1x128xf32>
    %20 = vector.shape_cast %19 : vector<1x1x128xf32> to vector<1x128xf32>
    %21 = vector.shape_cast %18 : vector<1x128xf32> to vector<1x1x128xf32>
    tpu.vector_store %arg3[%c0_7, %c0_8, %c0_9], %21 {strides = array<i32>} : memref<1x1x128xf32, #tpu.memory_space<vmem>>, vector<1x1x128xf32>,
    return
  }
  func.func @transform_0(%arg0: i32) -> (i32, i32) {
    %c0_i32 = arith.constant 0 : i32
    %c0_i32_0 = arith.constant 0 : i32
    return %arg0, %c0_i32 : i32, i32
  }
  func.func @transform_1(%arg0: i32) -> (i32, i32, i32) {
    %c0_i32 = arith.constant 0 : i32
    %c0_i32_0 = arith.constant 0 : i32
    %c0_i32_1 = arith.constant 0 : i32
    return %arg0, %c0_i32, %c0_i32_0 : i32, i32, i32
  }
  func.func @transform_2(%arg0: i32) -> (i32, i32, i32) {
    %c0_i32 = arith.constant 0 : i32
    %c0_i32_0 = arith.constant 0 : i32
    %c0_i32_1 = arith.constant 0 : i32
    return %arg0, %c0_i32, %c0_i32_0 : i32, i32, i32
  }
}

module attributes {stable_mosaic.version = 11 : i64} {
  func.func @_conv_band_kernel(%arg0: i32, %arg1: i32, %arg2: memref<1x16x18x8xf32, #tpu.memory_space<vmem>>, %arg3: memref<1x1x2x18x8xf32, #tpu.memory_space<vmem>>, %arg4: memref<9x8x8xf32, #tpu.memory_space<vmem>>, %arg5: memref<1x256x8xf32, #tpu.memory_space<vmem>>, %arg6: memref<1x1x1x8xf32, #tpu.memory_space<vmem>>, %arg7: memref<1x1x1x8xf32, #tpu.memory_space<vmem>>) attributes {dimension_semantics = [#tpu.dimension_semantics<parallel>, #tpu.dimension_semantics<parallel>], iteration_bounds = array<i64: 2, 1>, scalar_prefetch = 0 : i64, scratch_operands = 0 : i64, tpu.core_type = #tpu.core_type<tc>, window_params = [{transform_indices = @transform_0, window_bounds = array<i64: 1, 16, 18, 8>}, {transform_indices = @transform_1, window_bounds = array<i64: 1, 1, 2, 18, 8>}, {pipeline_mode = #tpu.pipeline_mode<synchronous>, transform_indices = @transform_2, window_bounds = array<i64: 9, 8, 8>}, {transform_indices = @transform_3, window_bounds = array<i64: 1, 256, 8>}, {transform_indices = @transform_4, window_bounds = array<i64: 1, 1, 1, 8>}, {transform_indices = @transform_5, window_bounds = array<i64: 1, 1, 1, 8>}]} {
    %c0 = arith.constant 0 : index
    %c0_0 = arith.constant 0 : index
    %c0_1 = arith.constant 0 : index
    %c0_2 = arith.constant 0 : index
    %0 = vector.load %arg2[%c0, %c0_0, %c0_1, %c0_2] : memref<1x16x18x8xf32, #tpu.memory_space<vmem>>, vector<1x16x18x8xf32>
    %1 = vector.shape_cast %0 : vector<1x16x18x8xf32> to vector<16x18x8xf32>
    %c0_3 = arith.constant 0 : index
    %c0_4 = arith.constant 0 : index
    %c0_5 = arith.constant 0 : index
    %c0_6 = arith.constant 0 : index
    %c0_7 = arith.constant 0 : index
    %2 = vector.load %arg3[%c0_3, %c0_4, %c0_5, %c0_6, %c0_7] : memref<1x1x2x18x8xf32, #tpu.memory_space<vmem>>, vector<1x1x2x18x8xf32>
    %3 = vector.shape_cast %2 : vector<1x1x2x18x8xf32> to vector<2x18x8xf32>
    %4 = tpu.concatenate %1, %3 in 0 : vector<16x18x8xf32>, vector<2x18x8xf32> -> vector<18x18x8xf32>
    %cst = arith.constant 0.000000e+00 : f32
    %5 = vector.broadcast %cst : f32 to vector<256x8xf32>
    %6 = vector.extract_strided_slice %4 {offsets = [0, 0, 0], sizes = [16, 16, 8], strides = [1, 1, 1]} : vector<18x18x8xf32> to vector<16x16x8xf32>
    %7 = vector.shape_cast %6 : vector<16x16x8xf32> to vector<256x8xf32>
    %c0_8 = arith.constant 0 : index
    %c0_9 = arith.constant 0 : index
    %c0_10 = arith.constant 0 : index
    %8 = vector.load %arg4[%c0_8, %c0_9, %c0_10] : memref<9x8x8xf32, #tpu.memory_space<vmem>>, vector<1x8x8xf32>
    %9 = vector.shape_cast %8 : vector<1x8x8xf32> to vector<8x8xf32>
    %cst_11 = arith.constant dense<0.000000e+00> : vector<256x8xf32>
    %10 = tpu.matmul %7, %9, %cst_11 {dimension_numbers = #tpu.dot_dimension_numbers<[1], [0], [0], [1], [0, 0, 1, 1], [], []>} : vector<256x8xf32>, vector<8x8xf32>, vector<256x8xf32> -> vector<256x8xf32>
    %11 = arith.addf %5, %10 : vector<256x8xf32>
    %12 = vector.extract_strided_slice %4 {offsets = [0, 1, 0], sizes = [16, 16, 8], strides = [1, 1, 1]} : vector<18x18x8xf32> to vector<16x16x8xf32>
    %13 = vector.shape_cast %12 : vector<16x16x8xf32> to vector<256x8xf32>
    %c1 = arith.constant 1 : index
    %c0_12 = arith.constant 0 : index
    %c0_13 = arith.constant 0 : index
    %14 = vector.load %arg4[%c1, %c0_12, %c0_13] : memref<9x8x8xf32, #tpu.memory_space<vmem>>, vector<1x8x8xf32>
    %15 = vector.shape_cast %14 : vector<1x8x8xf32> to vector<8x8xf32>
    %cst_14 = arith.constant dense<0.000000e+00> : vector<256x8xf32>
    %16 = tpu.matmul %13, %15, %cst_14 {dimension_numbers = #tpu.dot_dimension_numbers<[1], [0], [0], [1], [0, 0, 1, 1], [], []>} : vector<256x8xf32>, vector<8x8xf32>, vector<256x8xf32> -> vector<256x8xf32>
    %17 = arith.addf %11, %16 : vector<256x8xf32>
    %18 = vector.extract_strided_slice %4 {offsets = [0, 2, 0], sizes = [16, 16, 8], strides = [1, 1, 1]} : vector<18x18x8xf32> to vector<16x16x8xf32>
    %19 = vector.shape_cast %18 : vector<16x16x8xf32> to vector<256x8xf32>
    %c2 = arith.constant 2 : index
    %c0_15 = arith.constant 0 : index
    %c0_16 = arith.constant 0 : index
    %20 = vector.load %arg4[%c2, %c0_15, %c0_16] : memref<9x8x8xf32, #tpu.memory_space<vmem>>, vector<1x8x8xf32>
    %21 = vector.shape_cast %20 : vector<1x8x8xf32> to vector<8x8xf32>
    %cst_17 = arith.constant dense<0.000000e+00> : vector<256x8xf32>
    %22 = tpu.matmul %19, %21, %cst_17 {dimension_numbers = #tpu.dot_dimension_numbers<[1], [0], [0], [1], [0, 0, 1, 1], [], []>} : vector<256x8xf32>, vector<8x8xf32>, vector<256x8xf32> -> vector<256x8xf32>
    %23 = arith.addf %17, %22 : vector<256x8xf32>
    %24 = vector.extract_strided_slice %4 {offsets = [1, 0, 0], sizes = [16, 16, 8], strides = [1, 1, 1]} : vector<18x18x8xf32> to vector<16x16x8xf32>
    %25 = vector.shape_cast %24 : vector<16x16x8xf32> to vector<256x8xf32>
    %c3 = arith.constant 3 : index
    %c0_18 = arith.constant 0 : index
    %c0_19 = arith.constant 0 : index
    %26 = vector.load %arg4[%c3, %c0_18, %c0_19] : memref<9x8x8xf32, #tpu.memory_space<vmem>>, vector<1x8x8xf32>
    %27 = vector.shape_cast %26 : vector<1x8x8xf32> to vector<8x8xf32>
    %cst_20 = arith.constant dense<0.000000e+00> : vector<256x8xf32>
    %28 = tpu.matmul %25, %27, %cst_20 {dimension_numbers = #tpu.dot_dimension_numbers<[1], [0], [0], [1], [0, 0, 1, 1], [], []>} : vector<256x8xf32>, vector<8x8xf32>, vector<256x8xf32> -> vector<256x8xf32>
    %29 = arith.addf %23, %28 : vector<256x8xf32>
    %30 = vector.extract_strided_slice %4 {offsets = [1, 1, 0], sizes = [16, 16, 8], strides = [1, 1, 1]} : vector<18x18x8xf32> to vector<16x16x8xf32>
    %31 = vector.shape_cast %30 : vector<16x16x8xf32> to vector<256x8xf32>
    %c4 = arith.constant 4 : index
    %c0_21 = arith.constant 0 : index
    %c0_22 = arith.constant 0 : index
    %32 = vector.load %arg4[%c4, %c0_21, %c0_22] : memref<9x8x8xf32, #tpu.memory_space<vmem>>, vector<1x8x8xf32>
    %33 = vector.shape_cast %32 : vector<1x8x8xf32> to vector<8x8xf32>
    %cst_23 = arith.constant dense<0.000000e+00> : vector<256x8xf32>
    %34 = tpu.matmul %31, %33, %cst_23 {dimension_numbers = #tpu.dot_dimension_numbers<[1], [0], [0], [1], [0, 0, 1, 1], [], []>} : vector<256x8xf32>, vector<8x8xf32>, vector<256x8xf32> -> vector<256x8xf32>
    %35 = arith.addf %29, %34 : vector<256x8xf32>
    %36 = vector.extract_strided_slice %4 {offsets = [1, 2, 0], sizes = [16, 16, 8], strides = [1, 1, 1]} : vector<18x18x8xf32> to vector<16x16x8xf32>
    %37 = vector.shape_cast %36 : vector<16x16x8xf32> to vector<256x8xf32>
    %c5 = arith.constant 5 : index
    %c0_24 = arith.constant 0 : index
    %c0_25 = arith.constant 0 : index
    %38 = vector.load %arg4[%c5, %c0_24, %c0_25] : memref<9x8x8xf32, #tpu.memory_space<vmem>>, vector<1x8x8xf32>
    %39 = vector.shape_cast %38 : vector<1x8x8xf32> to vector<8x8xf32>
    %cst_26 = arith.constant dense<0.000000e+00> : vector<256x8xf32>
    %40 = tpu.matmul %37, %39, %cst_26 {dimension_numbers = #tpu.dot_dimension_numbers<[1], [0], [0], [1], [0, 0, 1, 1], [], []>} : vector<256x8xf32>, vector<8x8xf32>, vector<256x8xf32> -> vector<256x8xf32>
    %41 = arith.addf %35, %40 : vector<256x8xf32>
    %42 = vector.extract_strided_slice %4 {offsets = [2, 0, 0], sizes = [16, 16, 8], strides = [1, 1, 1]} : vector<18x18x8xf32> to vector<16x16x8xf32>
    %43 = vector.shape_cast %42 : vector<16x16x8xf32> to vector<256x8xf32>
    %c6 = arith.constant 6 : index
    %c0_27 = arith.constant 0 : index
    %c0_28 = arith.constant 0 : index
    %44 = vector.load %arg4[%c6, %c0_27, %c0_28] : memref<9x8x8xf32, #tpu.memory_space<vmem>>, vector<1x8x8xf32>
    %45 = vector.shape_cast %44 : vector<1x8x8xf32> to vector<8x8xf32>
    %cst_29 = arith.constant dense<0.000000e+00> : vector<256x8xf32>
    %46 = tpu.matmul %43, %45, %cst_29 {dimension_numbers = #tpu.dot_dimension_numbers<[1], [0], [0], [1], [0, 0, 1, 1], [], []>} : vector<256x8xf32>, vector<8x8xf32>, vector<256x8xf32> -> vector<256x8xf32>
    %47 = arith.addf %41, %46 : vector<256x8xf32>
    %48 = vector.extract_strided_slice %4 {offsets = [2, 1, 0], sizes = [16, 16, 8], strides = [1, 1, 1]} : vector<18x18x8xf32> to vector<16x16x8xf32>
    %49 = vector.shape_cast %48 : vector<16x16x8xf32> to vector<256x8xf32>
    %c7 = arith.constant 7 : index
    %c0_30 = arith.constant 0 : index
    %c0_31 = arith.constant 0 : index
    %50 = vector.load %arg4[%c7, %c0_30, %c0_31] : memref<9x8x8xf32, #tpu.memory_space<vmem>>, vector<1x8x8xf32>
    %51 = vector.shape_cast %50 : vector<1x8x8xf32> to vector<8x8xf32>
    %cst_32 = arith.constant dense<0.000000e+00> : vector<256x8xf32>
    %52 = tpu.matmul %49, %51, %cst_32 {dimension_numbers = #tpu.dot_dimension_numbers<[1], [0], [0], [1], [0, 0, 1, 1], [], []>} : vector<256x8xf32>, vector<8x8xf32>, vector<256x8xf32> -> vector<256x8xf32>
    %53 = arith.addf %47, %52 : vector<256x8xf32>
    %54 = vector.extract_strided_slice %4 {offsets = [2, 2, 0], sizes = [16, 16, 8], strides = [1, 1, 1]} : vector<18x18x8xf32> to vector<16x16x8xf32>
    %55 = vector.shape_cast %54 : vector<16x16x8xf32> to vector<256x8xf32>
    %c8 = arith.constant 8 : index
    %c0_33 = arith.constant 0 : index
    %c0_34 = arith.constant 0 : index
    %56 = vector.load %arg4[%c8, %c0_33, %c0_34] : memref<9x8x8xf32, #tpu.memory_space<vmem>>, vector<1x8x8xf32>
    %57 = vector.shape_cast %56 : vector<1x8x8xf32> to vector<8x8xf32>
    %cst_35 = arith.constant dense<0.000000e+00> : vector<256x8xf32>
    %58 = tpu.matmul %55, %57, %cst_35 {dimension_numbers = #tpu.dot_dimension_numbers<[1], [0], [0], [1], [0, 0, 1, 1], [], []>} : vector<256x8xf32>, vector<8x8xf32>, vector<256x8xf32> -> vector<256x8xf32>
    %59 = arith.addf %53, %58 : vector<256x8xf32>
    %cst_36 = arith.constant dense<0.000000e+00> : vector<8xf32>
    %60 = vector.multi_reduction <add>, %59, %cst_36 [0] : vector<256x8xf32> to vector<8xf32>
    %61 = vector.shape_cast %60 : vector<8xf32> to vector<1x8xf32>
    %c0_37 = arith.constant 0 : index
    %c0_38 = arith.constant 0 : index
    %c0_39 = arith.constant 0 : index
    %c0_40 = arith.constant 0 : index
    %62 = vector.load %arg6[%c0_37, %c0_38, %c0_39, %c0_40] : memref<1x1x1x8xf32, #tpu.memory_space<vmem>>, vector<1x1x1x8xf32>
    %63 = vector.shape_cast %62 : vector<1x1x1x8xf32> to vector<1x8xf32>
    %64 = vector.shape_cast %61 : vector<1x8xf32> to vector<1x1x1x8xf32>
    tpu.vector_store %arg6[%c0_37, %c0_38, %c0_39, %c0_40], %64 {strides = array<i32>} : memref<1x1x1x8xf32, #tpu.memory_space<vmem>>, vector<1x1x1x8xf32>,
    %65 = arith.mulf %59, %59 : vector<256x8xf32>
    %cst_41 = arith.constant dense<0.000000e+00> : vector<8xf32>
    %66 = vector.multi_reduction <add>, %65, %cst_41 [0] : vector<256x8xf32> to vector<8xf32>
    %67 = vector.shape_cast %66 : vector<8xf32> to vector<1x8xf32>
    %c0_42 = arith.constant 0 : index
    %c0_43 = arith.constant 0 : index
    %c0_44 = arith.constant 0 : index
    %c0_45 = arith.constant 0 : index
    %68 = vector.load %arg7[%c0_42, %c0_43, %c0_44, %c0_45] : memref<1x1x1x8xf32, #tpu.memory_space<vmem>>, vector<1x1x1x8xf32>
    %69 = vector.shape_cast %68 : vector<1x1x1x8xf32> to vector<1x8xf32>
    %70 = vector.shape_cast %67 : vector<1x8xf32> to vector<1x1x1x8xf32>
    tpu.vector_store %arg7[%c0_42, %c0_43, %c0_44, %c0_45], %70 {strides = array<i32>} : memref<1x1x1x8xf32, #tpu.memory_space<vmem>>, vector<1x1x1x8xf32>,
    %c0_46 = arith.constant 0 : index
    %c0_47 = arith.constant 0 : index
    %c0_48 = arith.constant 0 : index
    %71 = vector.load %arg5[%c0_46, %c0_47, %c0_48] : memref<1x256x8xf32, #tpu.memory_space<vmem>>, vector<1x256x8xf32>
    %72 = vector.shape_cast %71 : vector<1x256x8xf32> to vector<256x8xf32>
    %73 = vector.shape_cast %59 : vector<256x8xf32> to vector<1x256x8xf32>
    tpu.vector_store %arg5[%c0_46, %c0_47, %c0_48], %73 {strides = array<i32>} : memref<1x256x8xf32, #tpu.memory_space<vmem>>, vector<1x256x8xf32>,
    return
  }
  func.func @transform_0(%arg0: i32, %arg1: i32) -> (i32, i32, i32, i32) {
    %c0_i32 = arith.constant 0 : i32
    %c0_i32_0 = arith.constant 0 : i32
    %c0_i32_1 = arith.constant 0 : i32
    return %arg0, %arg1, %c0_i32, %c0_i32_0 : i32, i32, i32, i32
  }
  func.func @transform_1(%arg0: i32, %arg1: i32) -> (i32, i32, i32, i32, i32) {
    %c0_i32 = arith.constant 0 : i32
    %c0_i32_0 = arith.constant 0 : i32
    %c0_i32_1 = arith.constant 0 : i32
    %c0_i32_2 = arith.constant 0 : i32
    return %arg0, %arg1, %c0_i32, %c0_i32_0, %c0_i32_1 : i32, i32, i32, i32, i32
  }
  func.func @transform_2(%arg0: i32, %arg1: i32) -> (i32, i32, i32) {
    %c0_i32 = arith.constant 0 : i32
    %c0_i32_0 = arith.constant 0 : i32
    %c0_i32_1 = arith.constant 0 : i32
    %c0_i32_2 = arith.constant 0 : i32
    return %c0_i32, %c0_i32_0, %c0_i32_1 : i32, i32, i32
  }
  func.func @transform_3(%arg0: i32, %arg1: i32) -> (i32, i32, i32) {
    %c0_i32 = arith.constant 0 : i32
    %c0_i32_0 = arith.constant 0 : i32
    return %arg0, %arg1, %c0_i32 : i32, i32, i32
  }
  func.func @transform_4(%arg0: i32, %arg1: i32) -> (i32, i32, i32, i32) {
    %c0_i32 = arith.constant 0 : i32
    %c0_i32_0 = arith.constant 0 : i32
    %c0_i32_1 = arith.constant 0 : i32
    return %arg0, %arg1, %c0_i32, %c0_i32_0 : i32, i32, i32, i32
  }
  func.func @transform_5(%arg0: i32, %arg1: i32) -> (i32, i32, i32, i32) {
    %c0_i32 = arith.constant 0 : i32
    %c0_i32_0 = arith.constant 0 : i32
    %c0_i32_1 = arith.constant 0 : i32
    return %arg0, %arg1, %c0_i32, %c0_i32_0 : i32, i32, i32, i32
  }
}

module attributes {stable_mosaic.version = 11 : i64} {
  func.func @_conv_band_kernel(%arg0: i32, %arg1: i32, %arg2: memref<1x16x18x8xf32, #tpu.memory_space<vmem>>, %arg3: memref<1x1x2x18x8xf32, #tpu.memory_space<vmem>>, %arg4: memref<9x8x32xf32, #tpu.memory_space<vmem>>, %arg5: memref<1x8xf32, #tpu.memory_space<vmem>>, %arg6: memref<1x8xf32, #tpu.memory_space<vmem>>, %arg7: memref<1x1x1x32xf32, #tpu.memory_space<vmem>>, %arg8: memref<1x1x1x32xf32, #tpu.memory_space<vmem>>) attributes {dimension_semantics = [#tpu.dimension_semantics<parallel>, #tpu.dimension_semantics<parallel>], iteration_bounds = array<i64: 2, 1>, scalar_prefetch = 0 : i64, scratch_operands = 0 : i64, tpu.core_type = #tpu.core_type<tc>, window_params = [{transform_indices = @transform_0, window_bounds = array<i64: 1, 16, 18, 8>}, {transform_indices = @transform_1, window_bounds = array<i64: 1, 1, 2, 18, 8>}, {pipeline_mode = #tpu.pipeline_mode<synchronous>, transform_indices = @transform_2, window_bounds = array<i64: 9, 8, 32>}, {pipeline_mode = #tpu.pipeline_mode<synchronous>, transform_indices = @transform_3, window_bounds = array<i64: 1, 8>}, {pipeline_mode = #tpu.pipeline_mode<synchronous>, transform_indices = @transform_4, window_bounds = array<i64: 1, 8>}, {transform_indices = @transform_5, window_bounds = array<i64: 1, 1, 1, 32>}, {transform_indices = @transform_6, window_bounds = array<i64: 1, 1, 1, 32>}]} {
    %c0 = arith.constant 0 : index
    %c0_0 = arith.constant 0 : index
    %c0_1 = arith.constant 0 : index
    %c0_2 = arith.constant 0 : index
    %0 = vector.load %arg2[%c0, %c0_0, %c0_1, %c0_2] : memref<1x16x18x8xf32, #tpu.memory_space<vmem>>, vector<1x16x18x8xf32>
    %1 = vector.shape_cast %0 : vector<1x16x18x8xf32> to vector<16x18x8xf32>
    %c0_3 = arith.constant 0 : index
    %c0_4 = arith.constant 0 : index
    %c0_5 = arith.constant 0 : index
    %c0_6 = arith.constant 0 : index
    %c0_7 = arith.constant 0 : index
    %2 = vector.load %arg3[%c0_3, %c0_4, %c0_5, %c0_6, %c0_7] : memref<1x1x2x18x8xf32, #tpu.memory_space<vmem>>, vector<1x1x2x18x8xf32>
    %3 = vector.shape_cast %2 : vector<1x1x2x18x8xf32> to vector<2x18x8xf32>
    %4 = tpu.concatenate %1, %3 in 0 : vector<16x18x8xf32>, vector<2x18x8xf32> -> vector<18x18x8xf32>
    %c0_8 = arith.constant 0 : index
    %c0_9 = arith.constant 0 : index
    %5 = vector.load %arg5[%c0_8, %c0_9] : memref<1x8xf32, #tpu.memory_space<vmem>>, vector<1x8xf32>
    %6 = vector.shape_cast %5 : vector<1x8xf32> to vector<1x1x8xf32>
    %7 = vector.broadcast %6 : vector<1x1x8xf32> to vector<18x18x8xf32>
    %8 = arith.mulf %4, %7 : vector<18x18x8xf32>
    %c0_10 = arith.constant 0 : index
    %c0_11 = arith.constant 0 : index
    %9 = vector.load %arg6[%c0_10, %c0_11] : memref<1x8xf32, #tpu.memory_space<vmem>>, vector<1x8xf32>
    %10 = vector.shape_cast %9 : vector<1x8xf32> to vector<1x1x8xf32>
    %11 = vector.broadcast %10 : vector<1x1x8xf32> to vector<18x18x8xf32>
    %12 = arith.addf %8, %11 : vector<18x18x8xf32>
    %cst = arith.constant 0.000000e+00 : f32
    %13 = vector.broadcast %cst : f32 to vector<18x18x8xf32>
    %14 = arith.cmpf oge, %12, %13 : vector<18x18x8xf32>
    %cst_12 = arith.constant 0.00999999977 : f32
    %15 = vector.broadcast %cst_12 : f32 to vector<18x18x8xf32>
    %16 = arith.mulf %15, %12 : vector<18x18x8xf32>
    %17 = arith.select %14, %12, %16 : vector<18x18x8xi1>, vector<18x18x8xf32>
    %cst_13 = arith.constant 0.000000e+00 : f32
    %18 = vector.broadcast %cst_13 : f32 to vector<256x32xf32>
    %19 = vector.extract_strided_slice %17 {offsets = [0, 0, 0], sizes = [16, 16, 8], strides = [1, 1, 1]} : vector<18x18x8xf32> to vector<16x16x8xf32>
    %20 = vector.shape_cast %19 : vector<16x16x8xf32> to vector<256x8xf32>
    %c0_14 = arith.constant 0 : index
    %c0_15 = arith.constant 0 : index
    %c0_16 = arith.constant 0 : index
    %21 = vector.load %arg4[%c0_14, %c0_15, %c0_16] : memref<9x8x32xf32, #tpu.memory_space<vmem>>, vector<1x8x32xf32>
    %22 = vector.shape_cast %21 : vector<1x8x32xf32> to vector<8x32xf32>
    %cst_17 = arith.constant dense<0.000000e+00> : vector<256x32xf32>
    %23 = tpu.matmul %20, %22, %cst_17 {dimension_numbers = #tpu.dot_dimension_numbers<[1], [0], [0], [1], [0, 0, 1, 1], [], []>} : vector<256x8xf32>, vector<8x32xf32>, vector<256x32xf32> -> vector<256x32xf32>
    %24 = arith.addf %18, %23 : vector<256x32xf32>
    %25 = vector.extract_strided_slice %17 {offsets = [0, 1, 0], sizes = [16, 16, 8], strides = [1, 1, 1]} : vector<18x18x8xf32> to vector<16x16x8xf32>
    %26 = vector.shape_cast %25 : vector<16x16x8xf32> to vector<256x8xf32>
    %c1 = arith.constant 1 : index
    %c0_18 = arith.constant 0 : index
    %c0_19 = arith.constant 0 : index
    %27 = vector.load %arg4[%c1, %c0_18, %c0_19] : memref<9x8x32xf32, #tpu.memory_space<vmem>>, vector<1x8x32xf32>
    %28 = vector.shape_cast %27 : vector<1x8x32xf32> to vector<8x32xf32>
    %cst_20 = arith.constant dense<0.000000e+00> : vector<256x32xf32>
    %29 = tpu.matmul %26, %28, %cst_20 {dimension_numbers = #tpu.dot_dimension_numbers<[1], [0], [0], [1], [0, 0, 1, 1], [], []>} : vector<256x8xf32>, vector<8x32xf32>, vector<256x32xf32> -> vector<256x32xf32>
    %30 = arith.addf %24, %29 : vector<256x32xf32>
    %31 = vector.extract_strided_slice %17 {offsets = [0, 2, 0], sizes = [16, 16, 8], strides = [1, 1, 1]} : vector<18x18x8xf32> to vector<16x16x8xf32>
    %32 = vector.shape_cast %31 : vector<16x16x8xf32> to vector<256x8xf32>
    %c2 = arith.constant 2 : index
    %c0_21 = arith.constant 0 : index
    %c0_22 = arith.constant 0 : index
    %33 = vector.load %arg4[%c2, %c0_21, %c0_22] : memref<9x8x32xf32, #tpu.memory_space<vmem>>, vector<1x8x32xf32>
    %34 = vector.shape_cast %33 : vector<1x8x32xf32> to vector<8x32xf32>
    %cst_23 = arith.constant dense<0.000000e+00> : vector<256x32xf32>
    %35 = tpu.matmul %32, %34, %cst_23 {dimension_numbers = #tpu.dot_dimension_numbers<[1], [0], [0], [1], [0, 0, 1, 1], [], []>} : vector<256x8xf32>, vector<8x32xf32>, vector<256x32xf32> -> vector<256x32xf32>
    %36 = arith.addf %30, %35 : vector<256x32xf32>
    %37 = vector.extract_strided_slice %17 {offsets = [1, 0, 0], sizes = [16, 16, 8], strides = [1, 1, 1]} : vector<18x18x8xf32> to vector<16x16x8xf32>
    %38 = vector.shape_cast %37 : vector<16x16x8xf32> to vector<256x8xf32>
    %c3 = arith.constant 3 : index
    %c0_24 = arith.constant 0 : index
    %c0_25 = arith.constant 0 : index
    %39 = vector.load %arg4[%c3, %c0_24, %c0_25] : memref<9x8x32xf32, #tpu.memory_space<vmem>>, vector<1x8x32xf32>
    %40 = vector.shape_cast %39 : vector<1x8x32xf32> to vector<8x32xf32>
    %cst_26 = arith.constant dense<0.000000e+00> : vector<256x32xf32>
    %41 = tpu.matmul %38, %40, %cst_26 {dimension_numbers = #tpu.dot_dimension_numbers<[1], [0], [0], [1], [0, 0, 1, 1], [], []>} : vector<256x8xf32>, vector<8x32xf32>, vector<256x32xf32> -> vector<256x32xf32>
    %42 = arith.addf %36, %41 : vector<256x32xf32>
    %43 = vector.extract_strided_slice %17 {offsets = [1, 1, 0], sizes = [16, 16, 8], strides = [1, 1, 1]} : vector<18x18x8xf32> to vector<16x16x8xf32>
    %44 = vector.shape_cast %43 : vector<16x16x8xf32> to vector<256x8xf32>
    %c4 = arith.constant 4 : index
    %c0_27 = arith.constant 0 : index
    %c0_28 = arith.constant 0 : index
    %45 = vector.load %arg4[%c4, %c0_27, %c0_28] : memref<9x8x32xf32, #tpu.memory_space<vmem>>, vector<1x8x32xf32>
    %46 = vector.shape_cast %45 : vector<1x8x32xf32> to vector<8x32xf32>
    %cst_29 = arith.constant dense<0.000000e+00> : vector<256x32xf32>
    %47 = tpu.matmul %44, %46, %cst_29 {dimension_numbers = #tpu.dot_dimension_numbers<[1], [0], [0], [1], [0, 0, 1, 1], [], []>} : vector<256x8xf32>, vector<8x32xf32>, vector<256x32xf32> -> vector<256x32xf32>
    %48 = arith.addf %42, %47 : vector<256x32xf32>
    %49 = vector.extract_strided_slice %17 {offsets = [1, 2, 0], sizes = [16, 16, 8], strides = [1, 1, 1]} : vector<18x18x8xf32> to vector<16x16x8xf32>
    %50 = vector.shape_cast %49 : vector<16x16x8xf32> to vector<256x8xf32>
    %c5 = arith.constant 5 : index
    %c0_30 = arith.constant 0 : index
    %c0_31 = arith.constant 0 : index
    %51 = vector.load %arg4[%c5, %c0_30, %c0_31] : memref<9x8x32xf32, #tpu.memory_space<vmem>>, vector<1x8x32xf32>
    %52 = vector.shape_cast %51 : vector<1x8x32xf32> to vector<8x32xf32>
    %cst_32 = arith.constant dense<0.000000e+00> : vector<256x32xf32>
    %53 = tpu.matmul %50, %52, %cst_32 {dimension_numbers = #tpu.dot_dimension_numbers<[1], [0], [0], [1], [0, 0, 1, 1], [], []>} : vector<256x8xf32>, vector<8x32xf32>, vector<256x32xf32> -> vector<256x32xf32>
    %54 = arith.addf %48, %53 : vector<256x32xf32>
    %55 = vector.extract_strided_slice %17 {offsets = [2, 0, 0], sizes = [16, 16, 8], strides = [1, 1, 1]} : vector<18x18x8xf32> to vector<16x16x8xf32>
    %56 = vector.shape_cast %55 : vector<16x16x8xf32> to vector<256x8xf32>
    %c6 = arith.constant 6 : index
    %c0_33 = arith.constant 0 : index
    %c0_34 = arith.constant 0 : index
    %57 = vector.load %arg4[%c6, %c0_33, %c0_34] : memref<9x8x32xf32, #tpu.memory_space<vmem>>, vector<1x8x32xf32>
    %58 = vector.shape_cast %57 : vector<1x8x32xf32> to vector<8x32xf32>
    %cst_35 = arith.constant dense<0.000000e+00> : vector<256x32xf32>
    %59 = tpu.matmul %56, %58, %cst_35 {dimension_numbers = #tpu.dot_dimension_numbers<[1], [0], [0], [1], [0, 0, 1, 1], [], []>} : vector<256x8xf32>, vector<8x32xf32>, vector<256x32xf32> -> vector<256x32xf32>
    %60 = arith.addf %54, %59 : vector<256x32xf32>
    %61 = vector.extract_strided_slice %17 {offsets = [2, 1, 0], sizes = [16, 16, 8], strides = [1, 1, 1]} : vector<18x18x8xf32> to vector<16x16x8xf32>
    %62 = vector.shape_cast %61 : vector<16x16x8xf32> to vector<256x8xf32>
    %c7 = arith.constant 7 : index
    %c0_36 = arith.constant 0 : index
    %c0_37 = arith.constant 0 : index
    %63 = vector.load %arg4[%c7, %c0_36, %c0_37] : memref<9x8x32xf32, #tpu.memory_space<vmem>>, vector<1x8x32xf32>
    %64 = vector.shape_cast %63 : vector<1x8x32xf32> to vector<8x32xf32>
    %cst_38 = arith.constant dense<0.000000e+00> : vector<256x32xf32>
    %65 = tpu.matmul %62, %64, %cst_38 {dimension_numbers = #tpu.dot_dimension_numbers<[1], [0], [0], [1], [0, 0, 1, 1], [], []>} : vector<256x8xf32>, vector<8x32xf32>, vector<256x32xf32> -> vector<256x32xf32>
    %66 = arith.addf %60, %65 : vector<256x32xf32>
    %67 = vector.extract_strided_slice %17 {offsets = [2, 2, 0], sizes = [16, 16, 8], strides = [1, 1, 1]} : vector<18x18x8xf32> to vector<16x16x8xf32>
    %68 = vector.shape_cast %67 : vector<16x16x8xf32> to vector<256x8xf32>
    %c8 = arith.constant 8 : index
    %c0_39 = arith.constant 0 : index
    %c0_40 = arith.constant 0 : index
    %69 = vector.load %arg4[%c8, %c0_39, %c0_40] : memref<9x8x32xf32, #tpu.memory_space<vmem>>, vector<1x8x32xf32>
    %70 = vector.shape_cast %69 : vector<1x8x32xf32> to vector<8x32xf32>
    %cst_41 = arith.constant dense<0.000000e+00> : vector<256x32xf32>
    %71 = tpu.matmul %68, %70, %cst_41 {dimension_numbers = #tpu.dot_dimension_numbers<[1], [0], [0], [1], [0, 0, 1, 1], [], []>} : vector<256x8xf32>, vector<8x32xf32>, vector<256x32xf32> -> vector<256x32xf32>
    %72 = arith.addf %66, %71 : vector<256x32xf32>
    %cst_42 = arith.constant dense<0.000000e+00> : vector<32xf32>
    %73 = vector.multi_reduction <add>, %72, %cst_42 [0] : vector<256x32xf32> to vector<32xf32>
    %74 = vector.shape_cast %73 : vector<32xf32> to vector<1x32xf32>
    %c0_43 = arith.constant 0 : index
    %c0_44 = arith.constant 0 : index
    %c0_45 = arith.constant 0 : index
    %c0_46 = arith.constant 0 : index
    %75 = vector.load %arg7[%c0_43, %c0_44, %c0_45, %c0_46] : memref<1x1x1x32xf32, #tpu.memory_space<vmem>>, vector<1x1x1x32xf32>
    %76 = vector.shape_cast %75 : vector<1x1x1x32xf32> to vector<1x32xf32>
    %77 = vector.shape_cast %74 : vector<1x32xf32> to vector<1x1x1x32xf32>
    tpu.vector_store %arg7[%c0_43, %c0_44, %c0_45, %c0_46], %77 {strides = array<i32>} : memref<1x1x1x32xf32, #tpu.memory_space<vmem>>, vector<1x1x1x32xf32>,
    %78 = arith.mulf %72, %72 : vector<256x32xf32>
    %cst_47 = arith.constant dense<0.000000e+00> : vector<32xf32>
    %79 = vector.multi_reduction <add>, %78, %cst_47 [0] : vector<256x32xf32> to vector<32xf32>
    %80 = vector.shape_cast %79 : vector<32xf32> to vector<1x32xf32>
    %c0_48 = arith.constant 0 : index
    %c0_49 = arith.constant 0 : index
    %c0_50 = arith.constant 0 : index
    %c0_51 = arith.constant 0 : index
    %81 = vector.load %arg8[%c0_48, %c0_49, %c0_50, %c0_51] : memref<1x1x1x32xf32, #tpu.memory_space<vmem>>, vector<1x1x1x32xf32>
    %82 = vector.shape_cast %81 : vector<1x1x1x32xf32> to vector<1x32xf32>
    %83 = vector.shape_cast %80 : vector<1x32xf32> to vector<1x1x1x32xf32>
    tpu.vector_store %arg8[%c0_48, %c0_49, %c0_50, %c0_51], %83 {strides = array<i32>} : memref<1x1x1x32xf32, #tpu.memory_space<vmem>>, vector<1x1x1x32xf32>,
    return
  }
  func.func @transform_0(%arg0: i32, %arg1: i32) -> (i32, i32, i32, i32) {
    %c0_i32 = arith.constant 0 : i32
    %c0_i32_0 = arith.constant 0 : i32
    %c0_i32_1 = arith.constant 0 : i32
    return %arg0, %arg1, %c0_i32, %c0_i32_0 : i32, i32, i32, i32
  }
  func.func @transform_1(%arg0: i32, %arg1: i32) -> (i32, i32, i32, i32, i32) {
    %c0_i32 = arith.constant 0 : i32
    %c0_i32_0 = arith.constant 0 : i32
    %c0_i32_1 = arith.constant 0 : i32
    %c0_i32_2 = arith.constant 0 : i32
    return %arg0, %arg1, %c0_i32, %c0_i32_0, %c0_i32_1 : i32, i32, i32, i32, i32
  }
  func.func @transform_2(%arg0: i32, %arg1: i32) -> (i32, i32, i32) {
    %c0_i32 = arith.constant 0 : i32
    %c0_i32_0 = arith.constant 0 : i32
    %c0_i32_1 = arith.constant 0 : i32
    %c0_i32_2 = arith.constant 0 : i32
    return %c0_i32, %c0_i32_0, %c0_i32_1 : i32, i32, i32
  }
  func.func @transform_3(%arg0: i32, %arg1: i32) -> (i32, i32) {
    %c0_i32 = arith.constant 0 : i32
    %c0_i32_0 = arith.constant 0 : i32
    %c0_i32_1 = arith.constant 0 : i32
    return %c0_i32, %c0_i32_0 : i32, i32
  }
  func.func @transform_4(%arg0: i32, %arg1: i32) -> (i32, i32) {
    %c0_i32 = arith.constant 0 : i32
    %c0_i32_0 = arith.constant 0 : i32
    %c0_i32_1 = arith.constant 0 : i32
    return %c0_i32, %c0_i32_0 : i32, i32
  }
  func.func @transform_5(%arg0: i32, %arg1: i32) -> (i32, i32, i32, i32) {
    %c0_i32 = arith.constant 0 : i32
    %c0_i32_0 = arith.constant 0 : i32
    %c0_i32_1 = arith.constant 0 : i32
    return %arg0, %arg1, %c0_i32, %c0_i32_0 : i32, i32, i32, i32
  }
  func.func @transform_6(%arg0: i32, %arg1: i32) -> (i32, i32, i32, i32) {
    %c0_i32 = arith.constant 0 : i32
    %c0_i32_0 = arith.constant 0 : i32
    %c0_i32_1 = arith.constant 0 : i32
    return %arg0, %arg1, %c0_i32, %c0_i32_0 : i32, i32, i32, i32
  }
}

module attributes {stable_mosaic.version = 11 : i64} {
  func.func @_conv_band_kernel(%arg0: i32, %arg1: i32, %arg2: memref<1x16x18x8xf32, #tpu.memory_space<vmem>>, %arg3: memref<1x1x2x18x8xf32, #tpu.memory_space<vmem>>, %arg4: memref<9x8x32xf32, #tpu.memory_space<vmem>>, %arg5: memref<1x8xf32, #tpu.memory_space<vmem>>, %arg6: memref<1x8xf32, #tpu.memory_space<vmem>>, %arg7: memref<1x32xf32, #tpu.memory_space<vmem>>, %arg8: memref<1x32xf32, #tpu.memory_space<vmem>>, %arg9: memref<1x256x32xf32, #tpu.memory_space<vmem>>) attributes {dimension_semantics = [#tpu.dimension_semantics<parallel>, #tpu.dimension_semantics<parallel>], iteration_bounds = array<i64: 2, 1>, scalar_prefetch = 0 : i64, scratch_operands = 0 : i64, tpu.core_type = #tpu.core_type<tc>, window_params = [{transform_indices = @transform_0, window_bounds = array<i64: 1, 16, 18, 8>}, {transform_indices = @transform_1, window_bounds = array<i64: 1, 1, 2, 18, 8>}, {pipeline_mode = #tpu.pipeline_mode<synchronous>, transform_indices = @transform_2, window_bounds = array<i64: 9, 8, 32>}, {pipeline_mode = #tpu.pipeline_mode<synchronous>, transform_indices = @transform_3, window_bounds = array<i64: 1, 8>}, {pipeline_mode = #tpu.pipeline_mode<synchronous>, transform_indices = @transform_4, window_bounds = array<i64: 1, 8>}, {pipeline_mode = #tpu.pipeline_mode<synchronous>, transform_indices = @transform_5, window_bounds = array<i64: 1, 32>}, {pipeline_mode = #tpu.pipeline_mode<synchronous>, transform_indices = @transform_6, window_bounds = array<i64: 1, 32>}, {transform_indices = @transform_7, window_bounds = array<i64: 1, 256, 32>}]} {
    %c0 = arith.constant 0 : index
    %c0_0 = arith.constant 0 : index
    %c0_1 = arith.constant 0 : index
    %c0_2 = arith.constant 0 : index
    %0 = vector.load %arg2[%c0, %c0_0, %c0_1, %c0_2] : memref<1x16x18x8xf32, #tpu.memory_space<vmem>>, vector<1x16x18x8xf32>
    %1 = vector.shape_cast %0 : vector<1x16x18x8xf32> to vector<16x18x8xf32>
    %c0_3 = arith.constant 0 : index
    %c0_4 = arith.constant 0 : index
    %c0_5 = arith.constant 0 : index
    %c0_6 = arith.constant 0 : index
    %c0_7 = arith.constant 0 : index
    %2 = vector.load %arg3[%c0_3, %c0_4, %c0_5, %c0_6, %c0_7] : memref<1x1x2x18x8xf32, #tpu.memory_space<vmem>>, vector<1x1x2x18x8xf32>
    %3 = vector.shape_cast %2 : vector<1x1x2x18x8xf32> to vector<2x18x8xf32>
    %4 = tpu.concatenate %1, %3 in 0 : vector<16x18x8xf32>, vector<2x18x8xf32> -> vector<18x18x8xf32>
    %c0_8 = arith.constant 0 : index
    %c0_9 = arith.constant 0 : index
    %5 = vector.load %arg5[%c0_8, %c0_9] : memref<1x8xf32, #tpu.memory_space<vmem>>, vector<1x8xf32>
    %6 = vector.shape_cast %5 : vector<1x8xf32> to vector<1x1x8xf32>
    %7 = vector.broadcast %6 : vector<1x1x8xf32> to vector<18x18x8xf32>
    %8 = arith.mulf %4, %7 : vector<18x18x8xf32>
    %c0_10 = arith.constant 0 : index
    %c0_11 = arith.constant 0 : index
    %9 = vector.load %arg6[%c0_10, %c0_11] : memref<1x8xf32, #tpu.memory_space<vmem>>, vector<1x8xf32>
    %10 = vector.shape_cast %9 : vector<1x8xf32> to vector<1x1x8xf32>
    %11 = vector.broadcast %10 : vector<1x1x8xf32> to vector<18x18x8xf32>
    %12 = arith.addf %8, %11 : vector<18x18x8xf32>
    %cst = arith.constant 0.000000e+00 : f32
    %13 = vector.broadcast %cst : f32 to vector<18x18x8xf32>
    %14 = arith.cmpf oge, %12, %13 : vector<18x18x8xf32>
    %cst_12 = arith.constant 0.00999999977 : f32
    %15 = vector.broadcast %cst_12 : f32 to vector<18x18x8xf32>
    %16 = arith.mulf %15, %12 : vector<18x18x8xf32>
    %17 = arith.select %14, %12, %16 : vector<18x18x8xi1>, vector<18x18x8xf32>
    %cst_13 = arith.constant 0.000000e+00 : f32
    %18 = vector.broadcast %cst_13 : f32 to vector<256x32xf32>
    %19 = vector.extract_strided_slice %17 {offsets = [0, 0, 0], sizes = [16, 16, 8], strides = [1, 1, 1]} : vector<18x18x8xf32> to vector<16x16x8xf32>
    %20 = vector.shape_cast %19 : vector<16x16x8xf32> to vector<256x8xf32>
    %c0_14 = arith.constant 0 : index
    %c0_15 = arith.constant 0 : index
    %c0_16 = arith.constant 0 : index
    %21 = vector.load %arg4[%c0_14, %c0_15, %c0_16] : memref<9x8x32xf32, #tpu.memory_space<vmem>>, vector<1x8x32xf32>
    %22 = vector.shape_cast %21 : vector<1x8x32xf32> to vector<8x32xf32>
    %cst_17 = arith.constant dense<0.000000e+00> : vector<256x32xf32>
    %23 = tpu.matmul %20, %22, %cst_17 {dimension_numbers = #tpu.dot_dimension_numbers<[1], [0], [0], [1], [0, 0, 1, 1], [], []>} : vector<256x8xf32>, vector<8x32xf32>, vector<256x32xf32> -> vector<256x32xf32>
    %24 = arith.addf %18, %23 : vector<256x32xf32>
    %25 = vector.extract_strided_slice %17 {offsets = [0, 1, 0], sizes = [16, 16, 8], strides = [1, 1, 1]} : vector<18x18x8xf32> to vector<16x16x8xf32>
    %26 = vector.shape_cast %25 : vector<16x16x8xf32> to vector<256x8xf32>
    %c1 = arith.constant 1 : index
    %c0_18 = arith.constant 0 : index
    %c0_19 = arith.constant 0 : index
    %27 = vector.load %arg4[%c1, %c0_18, %c0_19] : memref<9x8x32xf32, #tpu.memory_space<vmem>>, vector<1x8x32xf32>
    %28 = vector.shape_cast %27 : vector<1x8x32xf32> to vector<8x32xf32>
    %cst_20 = arith.constant dense<0.000000e+00> : vector<256x32xf32>
    %29 = tpu.matmul %26, %28, %cst_20 {dimension_numbers = #tpu.dot_dimension_numbers<[1], [0], [0], [1], [0, 0, 1, 1], [], []>} : vector<256x8xf32>, vector<8x32xf32>, vector<256x32xf32> -> vector<256x32xf32>
    %30 = arith.addf %24, %29 : vector<256x32xf32>
    %31 = vector.extract_strided_slice %17 {offsets = [0, 2, 0], sizes = [16, 16, 8], strides = [1, 1, 1]} : vector<18x18x8xf32> to vector<16x16x8xf32>
    %32 = vector.shape_cast %31 : vector<16x16x8xf32> to vector<256x8xf32>
    %c2 = arith.constant 2 : index
    %c0_21 = arith.constant 0 : index
    %c0_22 = arith.constant 0 : index
    %33 = vector.load %arg4[%c2, %c0_21, %c0_22] : memref<9x8x32xf32, #tpu.memory_space<vmem>>, vector<1x8x32xf32>
    %34 = vector.shape_cast %33 : vector<1x8x32xf32> to vector<8x32xf32>
    %cst_23 = arith.constant dense<0.000000e+00> : vector<256x32xf32>
    %35 = tpu.matmul %32, %34, %cst_23 {dimension_numbers = #tpu.dot_dimension_numbers<[1], [0], [0], [1], [0, 0, 1, 1], [], []>} : vector<256x8xf32>, vector<8x32xf32>, vector<256x32xf32> -> vector<256x32xf32>
    %36 = arith.addf %30, %35 : vector<256x32xf32>
    %37 = vector.extract_strided_slice %17 {offsets = [1, 0, 0], sizes = [16, 16, 8], strides = [1, 1, 1]} : vector<18x18x8xf32> to vector<16x16x8xf32>
    %38 = vector.shape_cast %37 : vector<16x16x8xf32> to vector<256x8xf32>
    %c3 = arith.constant 3 : index
    %c0_24 = arith.constant 0 : index
    %c0_25 = arith.constant 0 : index
    %39 = vector.load %arg4[%c3, %c0_24, %c0_25] : memref<9x8x32xf32, #tpu.memory_space<vmem>>, vector<1x8x32xf32>
    %40 = vector.shape_cast %39 : vector<1x8x32xf32> to vector<8x32xf32>
    %cst_26 = arith.constant dense<0.000000e+00> : vector<256x32xf32>
    %41 = tpu.matmul %38, %40, %cst_26 {dimension_numbers = #tpu.dot_dimension_numbers<[1], [0], [0], [1], [0, 0, 1, 1], [], []>} : vector<256x8xf32>, vector<8x32xf32>, vector<256x32xf32> -> vector<256x32xf32>
    %42 = arith.addf %36, %41 : vector<256x32xf32>
    %43 = vector.extract_strided_slice %17 {offsets = [1, 1, 0], sizes = [16, 16, 8], strides = [1, 1, 1]} : vector<18x18x8xf32> to vector<16x16x8xf32>
    %44 = vector.shape_cast %43 : vector<16x16x8xf32> to vector<256x8xf32>
    %c4 = arith.constant 4 : index
    %c0_27 = arith.constant 0 : index
    %c0_28 = arith.constant 0 : index
    %45 = vector.load %arg4[%c4, %c0_27, %c0_28] : memref<9x8x32xf32, #tpu.memory_space<vmem>>, vector<1x8x32xf32>
    %46 = vector.shape_cast %45 : vector<1x8x32xf32> to vector<8x32xf32>
    %cst_29 = arith.constant dense<0.000000e+00> : vector<256x32xf32>
    %47 = tpu.matmul %44, %46, %cst_29 {dimension_numbers = #tpu.dot_dimension_numbers<[1], [0], [0], [1], [0, 0, 1, 1], [], []>} : vector<256x8xf32>, vector<8x32xf32>, vector<256x32xf32> -> vector<256x32xf32>
    %48 = arith.addf %42, %47 : vector<256x32xf32>
    %49 = vector.extract_strided_slice %17 {offsets = [1, 2, 0], sizes = [16, 16, 8], strides = [1, 1, 1]} : vector<18x18x8xf32> to vector<16x16x8xf32>
    %50 = vector.shape_cast %49 : vector<16x16x8xf32> to vector<256x8xf32>
    %c5 = arith.constant 5 : index
    %c0_30 = arith.constant 0 : index
    %c0_31 = arith.constant 0 : index
    %51 = vector.load %arg4[%c5, %c0_30, %c0_31] : memref<9x8x32xf32, #tpu.memory_space<vmem>>, vector<1x8x32xf32>
    %52 = vector.shape_cast %51 : vector<1x8x32xf32> to vector<8x32xf32>
    %cst_32 = arith.constant dense<0.000000e+00> : vector<256x32xf32>
    %53 = tpu.matmul %50, %52, %cst_32 {dimension_numbers = #tpu.dot_dimension_numbers<[1], [0], [0], [1], [0, 0, 1, 1], [], []>} : vector<256x8xf32>, vector<8x32xf32>, vector<256x32xf32> -> vector<256x32xf32>
    %54 = arith.addf %48, %53 : vector<256x32xf32>
    %55 = vector.extract_strided_slice %17 {offsets = [2, 0, 0], sizes = [16, 16, 8], strides = [1, 1, 1]} : vector<18x18x8xf32> to vector<16x16x8xf32>
    %56 = vector.shape_cast %55 : vector<16x16x8xf32> to vector<256x8xf32>
    %c6 = arith.constant 6 : index
    %c0_33 = arith.constant 0 : index
    %c0_34 = arith.constant 0 : index
    %57 = vector.load %arg4[%c6, %c0_33, %c0_34] : memref<9x8x32xf32, #tpu.memory_space<vmem>>, vector<1x8x32xf32>
    %58 = vector.shape_cast %57 : vector<1x8x32xf32> to vector<8x32xf32>
    %cst_35 = arith.constant dense<0.000000e+00> : vector<256x32xf32>
    %59 = tpu.matmul %56, %58, %cst_35 {dimension_numbers = #tpu.dot_dimension_numbers<[1], [0], [0], [1], [0, 0, 1, 1], [], []>} : vector<256x8xf32>, vector<8x32xf32>, vector<256x32xf32> -> vector<256x32xf32>
    %60 = arith.addf %54, %59 : vector<256x32xf32>
    %61 = vector.extract_strided_slice %17 {offsets = [2, 1, 0], sizes = [16, 16, 8], strides = [1, 1, 1]} : vector<18x18x8xf32> to vector<16x16x8xf32>
    %62 = vector.shape_cast %61 : vector<16x16x8xf32> to vector<256x8xf32>
    %c7 = arith.constant 7 : index
    %c0_36 = arith.constant 0 : index
    %c0_37 = arith.constant 0 : index
    %63 = vector.load %arg4[%c7, %c0_36, %c0_37] : memref<9x8x32xf32, #tpu.memory_space<vmem>>, vector<1x8x32xf32>
    %64 = vector.shape_cast %63 : vector<1x8x32xf32> to vector<8x32xf32>
    %cst_38 = arith.constant dense<0.000000e+00> : vector<256x32xf32>
    %65 = tpu.matmul %62, %64, %cst_38 {dimension_numbers = #tpu.dot_dimension_numbers<[1], [0], [0], [1], [0, 0, 1, 1], [], []>} : vector<256x8xf32>, vector<8x32xf32>, vector<256x32xf32> -> vector<256x32xf32>
    %66 = arith.addf %60, %65 : vector<256x32xf32>
    %67 = vector.extract_strided_slice %17 {offsets = [2, 2, 0], sizes = [16, 16, 8], strides = [1, 1, 1]} : vector<18x18x8xf32> to vector<16x16x8xf32>
    %68 = vector.shape_cast %67 : vector<16x16x8xf32> to vector<256x8xf32>
    %c8 = arith.constant 8 : index
    %c0_39 = arith.constant 0 : index
    %c0_40 = arith.constant 0 : index
    %69 = vector.load %arg4[%c8, %c0_39, %c0_40] : memref<9x8x32xf32, #tpu.memory_space<vmem>>, vector<1x8x32xf32>
    %70 = vector.shape_cast %69 : vector<1x8x32xf32> to vector<8x32xf32>
    %cst_41 = arith.constant dense<0.000000e+00> : vector<256x32xf32>
    %71 = tpu.matmul %68, %70, %cst_41 {dimension_numbers = #tpu.dot_dimension_numbers<[1], [0], [0], [1], [0, 0, 1, 1], [], []>} : vector<256x8xf32>, vector<8x32xf32>, vector<256x32xf32> -> vector<256x32xf32>
    %72 = arith.addf %66, %71 : vector<256x32xf32>
    %c0_42 = arith.constant 0 : index
    %c0_43 = arith.constant 0 : index
    %73 = vector.load %arg7[%c0_42, %c0_43] : memref<1x32xf32, #tpu.memory_space<vmem>>, vector<1x32xf32>
    %74 = vector.broadcast %73 : vector<1x32xf32> to vector<256x32xf32>
    %75 = arith.mulf %72, %74 : vector<256x32xf32>
    %c0_44 = arith.constant 0 : index
    %c0_45 = arith.constant 0 : index
    %76 = vector.load %arg8[%c0_44, %c0_45] : memref<1x32xf32, #tpu.memory_space<vmem>>, vector<1x32xf32>
    %77 = vector.broadcast %76 : vector<1x32xf32> to vector<256x32xf32>
    %78 = arith.addf %75, %77 : vector<256x32xf32>
    %cst_46 = arith.constant 0.000000e+00 : f32
    %79 = vector.broadcast %cst_46 : f32 to vector<256x32xf32>
    %80 = arith.cmpf oge, %78, %79 : vector<256x32xf32>
    %cst_47 = arith.constant 0.00999999977 : f32
    %81 = vector.broadcast %cst_47 : f32 to vector<256x32xf32>
    %82 = arith.mulf %81, %78 : vector<256x32xf32>
    %83 = arith.select %80, %78, %82 : vector<256x32xi1>, vector<256x32xf32>
    %c0_48 = arith.constant 0 : index
    %c0_49 = arith.constant 0 : index
    %c0_50 = arith.constant 0 : index
    %84 = vector.load %arg9[%c0_48, %c0_49, %c0_50] : memref<1x256x32xf32, #tpu.memory_space<vmem>>, vector<1x256x32xf32>
    %85 = vector.shape_cast %84 : vector<1x256x32xf32> to vector<256x32xf32>
    %86 = vector.shape_cast %83 : vector<256x32xf32> to vector<1x256x32xf32>
    tpu.vector_store %arg9[%c0_48, %c0_49, %c0_50], %86 {strides = array<i32>} : memref<1x256x32xf32, #tpu.memory_space<vmem>>, vector<1x256x32xf32>,
    return
  }
  func.func @transform_0(%arg0: i32, %arg1: i32) -> (i32, i32, i32, i32) {
    %c0_i32 = arith.constant 0 : i32
    %c0_i32_0 = arith.constant 0 : i32
    %c0_i32_1 = arith.constant 0 : i32
    return %arg0, %arg1, %c0_i32, %c0_i32_0 : i32, i32, i32, i32
  }
  func.func @transform_1(%arg0: i32, %arg1: i32) -> (i32, i32, i32, i32, i32) {
    %c0_i32 = arith.constant 0 : i32
    %c0_i32_0 = arith.constant 0 : i32
    %c0_i32_1 = arith.constant 0 : i32
    %c0_i32_2 = arith.constant 0 : i32
    return %arg0, %arg1, %c0_i32, %c0_i32_0, %c0_i32_1 : i32, i32, i32, i32, i32
  }
  func.func @transform_2(%arg0: i32, %arg1: i32) -> (i32, i32, i32) {
    %c0_i32 = arith.constant 0 : i32
    %c0_i32_0 = arith.constant 0 : i32
    %c0_i32_1 = arith.constant 0 : i32
    %c0_i32_2 = arith.constant 0 : i32
    return %c0_i32, %c0_i32_0, %c0_i32_1 : i32, i32, i32
  }
  func.func @transform_3(%arg0: i32, %arg1: i32) -> (i32, i32) {
    %c0_i32 = arith.constant 0 : i32
    %c0_i32_0 = arith.constant 0 : i32
    %c0_i32_1 = arith.constant 0 : i32
    return %c0_i32, %c0_i32_0 : i32, i32
  }
  func.func @transform_4(%arg0: i32, %arg1: i32) -> (i32, i32) {
    %c0_i32 = arith.constant 0 : i32
    %c0_i32_0 = arith.constant 0 : i32
    %c0_i32_1 = arith.constant 0 : i32
    return %c0_i32, %c0_i32_0 : i32, i32
  }
  func.func @transform_5(%arg0: i32, %arg1: i32) -> (i32, i32) {
    %c0_i32 = arith.constant 0 : i32
    %c0_i32_0 = arith.constant 0 : i32
    %c0_i32_1 = arith.constant 0 : i32
    return %c0_i32, %c0_i32_0 : i32, i32
  }
  func.func @transform_6(%arg0: i32, %arg1: i32) -> (i32, i32) {
    %c0_i32 = arith.constant 0 : i32
    %c0_i32_0 = arith.constant 0 : i32
    %c0_i32_1 = arith.constant 0 : i32
    return %c0_i32, %c0_i32_0 : i32, i32
  }
  func.func @transform_7(%arg0: i32, %arg1: i32) -> (i32, i32, i32) {
    %c0_i32 = arith.constant 0 : i32
    %c0_i32_0 = arith.constant 0 : i32
    return %arg0, %arg1, %c0_i32 : i32, i32, i32
  }
}

</mosaic_0001>

<bundles_post_ra>
// kernel: up_forward.4
= control target key start
LH: loop header
LB: loop body
LE: loop exit
PB: predicated region body
PF: predicated region fallthrough
CT: control target
= control target key end

     0   :  { %8 = vsyncpa [#allocation3], 0  ;;  %s251_s0 = inlined_call_operand.hbm [shape: f32[32,128], index: 0, kind: input, shape index: {}]   ;;  %s252_s1 = inlined_call_operand.hbm [shape: f32[1,1,128], index: 1, kind: output, shape index: {0}]   ;;  %s253_s2 = inlined_call_operand.hbm [shape: f32[1,1,128], index: 2, kind: output, shape index: {1}]  }
   0x1   :  { %9 = vsyncpa [#allocation4], 0 }
   0x2   :  { %10 = vsyncpa [#allocation7], 0  ;;  %s187_s9 = smov [#allocation2]   ;;  %s115_s13 = scalar_lea.hbm %s251_s0, 512 }
   0x3   :  { %s16_s10 = sshll.u32 %s187_s9, 4  ;;  %p116_p0 = scmp.ne.s32.totalorder %s251_s0, %s115_s13  ;;  %s17_s10 = int_to_ptr.vmem [resolvable:$true] %s16_s10 }
   0x4   :  { %p119_p1 = scmp.lt.u32.totalorder %s115_s13, %s251_s0 }
   0x6   :  { %p121_p2 = pnand %p119_p1, %p116_p0 }
   0x8   :  { %124 = shalt.err (!%p121_p2)
}
   0x9   :  { %s125_s18 = scalar_lea.vmem %s17_s10, 512  ;;  %p130_p4 = scmp.lt.s32.totalorder %s17_s10, %s17_s10 }
   0xa   :  { %p126_p3 = scmp.ne.s32.totalorder %s17_s10, %s125_s18  ;;  %p131_p5 = scmp.lt.s32.totalorder %s125_s18, %s125_s18 }
   0xc   :  { %p132_p6 = por %p131_p5, %p130_p4 }
   0xe   :  { %p133_p7 = pnand %p132_p6, %p126_p3 }
  0x10   :  { %136 = shalt.err (!%p133_p7)
}
  0x11   :  { %s188_s19 = smov 128   ;;  %s189_s20 = smov 8  }
  0x12   :  { %22 = dma.hbm_to_vmem [thread:$0]  %s251_s0, 512, %s17_s10, [#allocation3], %s188_s19, %s188_s19, %s189_s20  }
  0x13   :  { %181 = dma.done.wait [#allocation3], 512  }
  0x14   :  { %182 = vsyncadd [#allocation3], 4294966784  ;;  %v41_v0 = vld [vmem:[#allocation2] sm:$0xff]  ;;  %v42_v1 = vld [vmem:[#allocation2 + $0x8] sm:$0xff]  ;;  %s190_s0 = smov [#allocation5]   ;;  %s191_s24 = smov [#allocation6]  }
  0x15   :  { %v43_v2 = vld [vmem:[#allocation2 + $0x10] sm:$0xff]  ;;  %v44_v3 = vld [vmem:[#allocation2 + $0x18] sm:$0xff]  ;;  %v57_v4 = vadd.f32 %v42_v1, %v41_v0  ;;  %v67_v5 = vmul.f32 %v41_v0, %v41_v0  ;;  %v68_v6 = vmul.f32 %v42_v1, %v42_v1  ;;  %s87_s23 = sshll.u32 %s190_s0, 4  ;;  %s97_s25 = sshll.u32 %s191_s24, 4  ;;  %s88_s23 = int_to_ptr.vmem [resolvable:$true] %s87_s23  ;;  %s219_s25 = int_to_ptr.vmem [resolvable:$true] %s97_s25 }
  0x16   :  { %v69_v7 = vmul.f32 %v43_v2, %v43_v2  ;;  %v70_v9 = vmul.f32 %v44_v3, %v44_v3  ;;  %s137_s26 = scalar_lea.vmem %s88_s23, 16  ;;  %s141_s27 = scalar_lea.vmem %s88_s23, 32 }
  0x17   :  { %v58_v8 = vadd.f32 %v57_v4, %v43_v2  ;;  %v71_v10 = vadd.f32 %v68_v6, %v67_v5  ;;  %p138_p8 = scmp.ne.s32.totalorder %s88_s23, %s137_s26  ;;  %p142_p9 = scmp.lt.s32.totalorder %s88_s23, %s88_s23 }
  0x18   :  { %p143_p10 = scmp.lt.s32.totalorder %s141_s27, %s137_s26 }
  0x19   :  { %v59_v11 = vadd.f32 %v58_v8, %v44_v3  ;;  %v72_v12 = vadd.f32 %v71_v10, %v69_v7 }
  0x1a   :  { %p144_p11 = por %p143_p10, %p142_p9 }
  0x1b   :  { %v60_v13 = vrot.slane %v59_v11, 4  ;;  %v73_v14 = vadd.f32 %v72_v12, %v70_v9 }
  0x1c   :  { %p145_p12 = pnand %p144_p11, %p138_p8 }
  0x1d   :  { %v61_v15 = vadd.f32 %v60_v13, %v59_v11  ;;  %v74_v16 = vrot.slane %v73_v14, 4 }
  0x1f   :  { %v62_v17 = vrot.slane %v61_v15, 2  ;;  %v75_v18 = vadd.f32 %v74_v16, %v73_v14 }
  0x21   :  { %v63_v19 = vadd.f32 %v62_v17, %v61_v15  ;;  %v76_v20 = vrot.slane %v75_v18, 2 }
  0x23   :  { %v64_v21 = vrot.slane %v63_v19, 1  ;;  %v77_v22 = vadd.f32 %v76_v20, %v75_v18 }
  0x25   :  { %v65_v23 = vadd.f32 %v64_v21, %v63_v19  ;;  %v78_v24 = vrot.slane %v77_v22, 1 }
  0x27   :  { %66 = vst [vmem:[#allocation5] sm:$0x1] %v65_v23  ;;  %v79_v25 = vadd.f32 %v78_v24, %v77_v22 }
  0x28   :  { %148 = shalt.err (!%p145_p12)
}
  0x29   :  { %s149_s30 = scalar_lea.hbm %s252_s1, 16 }
  0x2a   :  { %p150_p13 = scmp.ne.s32.totalorder %s252_s1, %s149_s30  ;;  %p153_p0 = scmp.lt.u32.totalorder %s149_s30, %s252_s1 }
  0x2c   :  { %p155_p1 = pnand %p153_p0, %p150_p13 }
  0x2e   :  { %158 = shalt.err (!%p155_p1)
}
  0x2f   :  { %90 = dma.vmem_to_hbm [thread:$0]  %s88_s23, 16, %s252_s1, [#allocation4]   ;;  %80 = vst [vmem:[#allocation6] sm:$0x1] %v79_v25 }
  0x30   :  { %s159_s9 = scalar_lea.vmem %s219_s25, 16  ;;  %s163_s10 = scalar_lea.vmem %s219_s25, 32 }
  0x31   :  { %p160_p2 = scmp.ne.s32.totalorder %s219_s25, %s159_s9  ;;  %p164_p3 = scmp.lt.s32.totalorder %s219_s25, %s219_s25 }
  0x32   :  { %p165_p4 = scmp.lt.s32.totalorder %s163_s10, %s159_s9 }
  0x34   :  { %p166_p5 = por %p165_p4, %p164_p3 }
  0x36   :  { %p167_p6 = pnand %p166_p5, %p160_p2 }
  0x38   :  { %170 = shalt.err (!%p167_p6)
}
  0x39   :  { %s171_s13 = scalar_lea.hbm %s253_s2, 16 }
  0x3a   :  { %p172_p7 = scmp.ne.s32.totalorder %s253_s2, %s171_s13  ;;  %p175_p8 = scmp.lt.u32.totalorder %s171_s13, %s253_s2 }
  0x3c   :  { %p177_p9 = pnand %p175_p8, %p172_p7 }
  0x3e   :  { %180 = shalt.err (!%p177_p9)
}
  0x3f   :  { %100 = dma.vmem_to_hbm [thread:$0]  %s219_s25, 16, %s253_s2, [#allocation7]  }
  0x40   :  { %183 = dma.done.wait [#allocation4], 16  }
  0x41   :  { %184 = vsyncadd [#allocation4], 4294967280 }
  0x42   :  { %185 = dma.done.wait [#allocation7], 16  }
  0x43   :  { %186 = vsyncadd [#allocation7], 4294967280 }
  0x44   :  { %107 = vsyncpa [#allocation3], 1 }
  0x45   :  { %108 = vsyncpa [#allocation4], 1 }
  0x46   :  { %109 = vsyncpa [#allocation7], 1 }

// kernel: tile.17
= control target key start
LH: loop header
LB: loop body
LE: loop exit
PB: predicated region body
PF: predicated region fallthrough
CT: control target
= control target key end

     0   :  { %s22_s0 = inlined_call_operand.vmem [shape: f32[8], index: 0, kind: input, shape index: {}]   ;;  %s23_s1 = inlined_call_operand.vmem [shape: f32[4,8], index: 1, kind: output, shape index: {}]  }
   0x1   :  { %v4_v0 = vld [vmem:[%s22_s0] ss:$0 sm:$0xff] }
   0x2   :  { %5 = vst [vmem:[%s23_s1] sm:$0xf] %v4_v0 }

// kernel: tile.19
= control target key start
LH: loop header
LB: loop body
LE: loop exit
PB: predicated region body
PF: predicated region fallthrough
CT: control target
= control target key end

     0   :  { %s101_s0 = inlined_call_operand.vmem [shape: f32[4,8], index: 0, kind: input, shape index: {}]   ;;  %s102_s1 = inlined_call_operand.hbm [shape: f32[1,32], index: 1, kind: output, shape index: {}]  }
   0x1   :  { %v5_v0 = vld [vmem:[%s101_s0] sm:$0xf] }
   0x2   :  { %6 = vst [vmem:[#allocation3] sm:$0xf] %v5_v0 }
   0x3   :  { %2 = vsyncpa [#allocation1], 0  ;;  %vm8_vm0 = vcmask 64512   ;;  %s72_s0 = smov 24   ;;  %s73_s8 = smov 8   ;;  %vm14_vm1 = vcmask 261312  }
   0x4   :  { %s74_s9 = smov 16   ;;  %vm20_vm2 = vcmask 195712   ;;  %vm26_vm3 = vcmask 130112   ;;  %s75_s10 = smov [#allocation0]  }
   0x5   :  { %s38_s11 = sshll.u32 %s75_s10, 4  ;;  %s39_s11 = int_to_ptr.vmem [resolvable:$true] %s38_s11 }
   0x6   :  { %s48_s12 = scalar_lea.vmem %s39_s11, 16  ;;  %s52_s13 = scalar_lea.vmem %s39_s11, 32 }
   0x7   :  { %p49_p0 = scmp.ne.s32.totalorder %s39_s11, %s48_s12  ;;  %p53_p1 = scmp.lt.s32.totalorder %s39_s11, %s39_s11 }
   0x8   :  { %p54_p2 = scmp.lt.s32.totalorder %s52_s13, %s48_s12 }
   0x9   :  { %v11_v1 = vld [vmem:[#allocation3 + $0x3] sm:$0x1]   ;;  %v23_v2 = vld [vmem:[#allocation3 + $0x1] sm:$0x1]   ;;  %v7_v3 = vld [vmem:[#allocation3] sm:$0x1]  }
   0xa   :  { %12 = vrot.lane.b32.xlu0 %v11_v1, %s72_s0  ;;  %24 = vrot.lane.b32.xlu1 %v23_v2, %s73_s8  ;;  %v17_v4 = vld [vmem:[#allocation3 + $0x2] sm:$0x1]   ;;  %9 = vst.msk [vmem:[#allocation2] sm:$0x1] %vm8_vm0, %v7_v3   ;;  %p55_p3 = por %p54_p2, %p53_p1 }
   0xc   :  { %p56_p4 = pnand %p55_p3, %p49_p0 }
   0xe   :  { %18 = vrot.lane.b32.xlu0 %v17_v4, %s74_s9 }
  0x7c   :  { %v13_v5 = vpop.permute.xlu0 %12   ;;  %v25_v6 = vpop.permute.xlu1 %24  }
  0x7d   :  { %15 = vst.msk [vmem:[#allocation2] sm:$0x1] %vm14_vm1, %v13_v5  }
  0x80   :  { %v19_v7 = vpop.permute.xlu0 %18  }
  0x81   :  { %21 = vst.msk [vmem:[#allocation2] sm:$0x1] %vm20_vm2, %v19_v7  }
  0x82   :  { %27 = vst.msk [vmem:[#allocation2] sm:$0x1] %vm26_vm3, %v25_v6  }
  0x89   :  { %v31_v8 = vld [vmem:[#allocation2] sm:$0x1] }
  0x8a   :  { %33 = vst [vmem:[#allocation0] sm:$0x1] %v31_v8 }
  0x8b   :  { %59 = shalt.err (!%p56_p4)
}
  0x8c   :  { %s60_s16 = scalar_lea.hbm %s102_s1, 16 }
  0x8d   :  { %p61_p5 = scmp.ne.s32.totalorder %s102_s1, %s60_s16  ;;  %p64_p6 = scmp.lt.u32.totalorder %s60_s16, %s102_s1 }
  0x8f   :  { %p66_p7 = pnand %p64_p6, %p61_p5 }
  0x91   :  { %69 = shalt.err (!%p66_p7)
}
  0x92   :  { %41 = dma.vmem_to_hbm [thread:$0]  %s39_s11, 16, %s102_s1, [#allocation1]  }
  0x93   :  { %70 = dma.done.wait [#allocation1], 16  }
  0x94   :  { %71 = vsyncadd [#allocation1], 4294967280 }
  0x95   :  { %43 = vsyncpa [#allocation1], 1 }

// kernel: up_forward.5
= control target key start
LH: loop header
LB: loop body
LE: loop exit
PB: predicated region body
PF: predicated region fallthrough
CT: control target
= control target key end

     0   :  { %s6809_s0 = inlined_call_operand.hbm [shape: f32[2,18,18,8], index: 0, kind: input, shape index: {}]   ;;  %s6810_s1 = inlined_call_operand.hbm [shape: f32[2,1,2,18,8], index: 1, kind: input, shape index: {}]   ;;  %s6811_s2 = inlined_call_operand.hbm [shape: f32[9,8,8], index: 2, kind: input, shape index: {}]   ;;  %s6812_s3 = inlined_call_operand.hbm [shape: f32[2,256,8], index: 3, kind: output, shape index: {0}]   ;;  %s6813_s4 = inlined_call_operand.hbm [shape: f32[2,1,1,8], index: 4, kind: output, shape index: {1}]   ;;  %s6814_s5 = inlined_call_operand.hbm [shape: f32[2,1,1,8], index: 5, kind: output, shape index: {2}]  }
   0x1   :  { %6898 = sst [smem:[#allocation69_spill]] %s6809_s0 }
   0x2   :  { %6899 = sst [smem:[#allocation70_spill]] %s6811_s2 }
   0x3   :  { %11 = vsyncpa [#allocation3], 0 }
   0x4   :  { %13 = vsyncpa [#allocation3 + $0x1], 0 }
   0x5   :  { %14 = vsyncpa [#allocation6], 0 }
   0x6   :  { %16 = vsyncpa [#allocation6 + $0x1], 0 }
   0x7   :  { %17 = vsyncpa [#allocation4], 0 }
   0x8   :  { %19 = vsyncpa [#allocation4 + $0x1], 0 }
   0x9   :  { %20 = vsyncpa [#allocation10], 0 }
   0xa   :  { %22 = vsyncpa [#allocation10 + $0x1], 0  ;;  %s5251_s18 = smov 0   ;;  %s5253_s19 = smov 0  }
   0xb   :  { %s5255_s20 = smov 0   ;;  %s5257_s21 = smov 0  }
   0xc   :  { %s5259_s22 = smov 0   ;;  %s5261_s23 = smov 0  }
   0xd LB: > { %6900 = sst [smem:[#allocation17_spill]] %s5197_s20  ;;  %s5282_s24 = sadd.s32 4294967295, %s5209_s23   ;;  %s5209_s23 = sphi %s5261_s23, %s28_s23   ;;  %s5205_s22 = sphi %s5259_s22, %s7029_s22   ;;  %s5201_s21 = sphi %s5257_s21, %s7028_s21   ;;  %s5197_s20 = sphi %s5255_s20, %s7024_s20   ;;  %s5193_s19 = sphi %s5253_s19, %s7027_s19   ;;  %s5189_s18 = sphi %s5251_s18, %s7026_s18  }
   0xe   : > { %s6818_s25 = sadd.s32 4294967294, %s5209_s23   ;;  %p62_p0 = scmp.ne.s32.totalorder %s5193_s19, %s5189_s18 }
   0xf   : > { %p6815_p1 = scmp.eq.s32.totalorder %s5282_s24, 0  ;;  %p143_p3 = scmp.eq.s32.totalorder %s6818_s25, 1 }
  0x10   : > { %p3564_p5 = scmp.ge.s32.totalorder %s5209_s23, 1  ;;  %p206_p7 = scmp.lt.s32.totalorder %s5209_s23, 3 }
  0x11   : > { %p5293_p4 = por %p6815_p1, %p62_p0  ;;  %p5298_p6 = por %p143_p3, %p62_p0 }
  0x12   : > { %p5303_p8 = pnand %p3564_p5, %p206_p7  ;;  %s5211_s29 = smov [#allocation7]  }
  0x13   : > { %s6901_s26 = scalar_select %p5293_p4, 1, 0 }
  0x14   : > { %s6902_s27 = scalar_select %p5298_p6, 1, 0 }
  0x15   : > { %s6903_s28 = scalar_select %p5303_p8, 1, 0 }
  0x16   : > { %s218_s30 = sshll.u32 %s5211_s29, 4  ;;  %p4893_p9 = pneg %p5303_p8  ;;  %s219_s30 = int_to_ptr.vmem [resolvable:$true] %s218_s30 }
  0x17   : > { %s40_s7 = sadd.s32 1, %s5205_s22  ;;  %s6905_s2 = sld [smem:[#allocation70_spill]] }
  0x18   : > { %p5312_p11 = pnand %p4893_p9, %p6815_p1 }
  0x1a   : > { %p4973_p13 = pneg %p5312_p11 }
  0x1d   : > { %s4971_s10 = scalar_lea.hbm %s6905_s2, 1152 }
  0x1e   : > { %p4972_p12 = scmp.ne.s32.totalorder %s6905_s2, %s4971_s10  ;;  %p4978_p5 = scmp.lt.u32.totalorder %s4971_s10, %s6905_s2 }
  0x20   : > { %p4974_p0 = pnand %p4973_p13, %p4972_p12 }
  0x22   : > { %p4975_p3 = pneg %p4974_p0 }
  0x24   : > { %p4980_p7 = pnand %p4978_p5, %p4975_p3 }
  0x26   : > { %4983 = shalt.err (!%p4980_p7)
}
  0x27   : > { %s4984_s15 = scalar_lea.vmem %s219_s30, 1152  ;;  %p4992_p2 = scmp.lt.s32.totalorder %s219_s30, %s219_s30 }
  0x28   : > { %p4985_p9 = scmp.ne.s32.totalorder %s219_s30, %s4984_s15  ;;  %p4993_p6 = scmp.lt.s32.totalorder %s4984_s15, %s4984_s15 }
  0x2a   : > { %p4987_p10 = pnand %p4985_p9, %p4973_p13  ;;  %p4994_p4 = por %p4993_p6, %p4992_p2 }
  0x2c   : > { %p4988_p1 = pneg %p4987_p10 }
  0x2e   : > { %p4995_p8 = pnand %p4994_p4, %p4988_p1 }
  0x30   : > { %4998 = shalt.err (!%p4995_p8)
}
  0x31   : > { %s6819_s16 = smov 128   ;;  %s6821_s17 = smov 8  }
  0x32   : > { %4896 = dma.hbm_to_vmem [thread:$0]  (!%p5312_p11), %s6905_s2, 1152, %s219_s30, [#allocation6], %s6819_s16, %s6819_s16, %s6821_s17  }
  0x33   : > { %p42_p1 = scmp.ge.s32.totalorder %s40_s7, 2  ;;  %s49_s9 = sadd.s32 1, %s5197_s20 }
  0x34   : > { %p56_p2 = scmp.ne.s32.totalorder %s5197_s20, %s5193_s19  ;;  %p57_p4 = scmp.eq.s32.totalorder %s5209_s23, 0 }
  0x35   : > { %s7031_s7 = smov (%p42_p1, %s40_s7), 0  ;;  %p6907_p8 = scmp.eq.s32.totalorder %s5282_s24, 1 }
  0x36   : > { %6906 = sst [smem:[#allocation18_spill]] %s7031_s7  ;;  %p58_p6 = por %p57_p4, %p56_p2 }
  0x37   : > { %p5344_p10 = por %p6907_p8, %p56_p2  ;;  %s44_s6 = ssub.s32 %s5205_s22, %s7031_s7 }
  0x38   : > { %p4915_p12 = scmp.lt.s32.totalorder %s5209_s23, 2  ;;  %p47_p13 = scmp.eq.s32.totalorder %s44_s6, 0 }
  0x39   : > { %s5352_s11 = sand.u32 1, %s5197_s20   ;;  %s4874_s13 = smul.u32 6912, %s5205_s22 }
  0x3a   : > { %s4873_s30 = smul.u32 384, %s5352_s11  ;;  %p5359_p11 = pnand %p4915_p12, %p58_p6 }
  0x3b   : > { %s5356_s12 = scalar_select %p47_p13, %s5197_s20, %s49_s9  }
  0x3c   : > { %s236_s14 = scalar_lea.vmem [#allocation2], %s4873_s30  ;;  %s6911_s0 = sld [smem:[#allocation69_spill]] }
  0x3d   : > { %6909 = sst [smem:[#allocation19_spill]] %s5356_s12  ;;  %s254_s15 = sshll.u32 %s236_s14, 4  ;;  %s5368_s15 = int_to_ptr.vmem [resolvable:$true] %s254_s15 }
  0x3e   : > { %s233_s30 = scalar_lea.sflag [#allocation3], %s5352_s11  ;;  %p5001_p3 = pneg %p5359_p11 }
  0x42   : > { %s5366_s6 = scalar_lea.hbm %s6911_s0, %s4874_s13  ;;  %s5004_s13 = scalar_lea.hbm %s6911_s0, 13824 }
  0x43   : > { %s4999_s14 = scalar_lea.hbm %s5366_s6, 6144  ;;  %p5005_p9 = scmp.lt.u32.totalorder %s5366_s6, %s6911_s0 }
  0x44   : > { %p5000_p0 = scmp.ne.s32.totalorder %s5366_s6, %s4999_s14  ;;  %p5006_p1 = scmp.lt.u32.totalorder %s5004_s13, %s4999_s14 }
  0x45   : > { %p5008_p4 = scmp.lt.u32.totalorder %s4999_s14, %s5366_s6 }
  0x46   : > { %p5002_p5 = pnand %p5001_p3, %p5000_p0  ;;  %p5007_p2 = por %p5006_p1, %p5005_p9 }
  0x48   : > { %p5003_p7 = pneg %p5002_p5  ;;  %p5009_p6 = por %p5008_p4, %p5007_p2 }
  0x4a   : > { %p5010_p8 = pnand %p5009_p6, %p5003_p7 }
  0x4c   : > { %5013 = shalt.err (!%p5010_p8)
}
  0x4d   : > { %s5014_s9 = scalar_lea.vmem %s5368_s15, 6144  ;;  %s5214_s25 = smov [#allocation2]  }
  0x4e   : > { %p5015_p12 = scmp.ne.s32.totalorder %s5368_s15, %s5014_s9  ;;  %s5019_s8 = sshll.u32 %s5214_s25, 4  ;;  %s5020_s8 = int_to_ptr.vmem [resolvable:$false] %s5019_s8 }
  0x4f   : > { %s5021_s16 = scalar_lea.vmem %s5020_s8, 12288  ;;  %p5022_p5 = scmp.lt.s32.totalorder %s5368_s15, %s5020_s8 }
  0x50   : > { %p5017_p13 = pnand %p5015_p12, %p5001_p3  ;;  %p5023_p9 = scmp.lt.s32.totalorder %s5021_s16, %s5014_s9 }
  0x52   : > { %p5018_p0 = pneg %p5017_p13  ;;  %p5024_p1 = por %p5023_p9, %p5022_p5 }
  0x54   : > { %p5025_p2 = pnand %p5024_p1, %p5018_p0 }
  0x56   : > { %5028 = shalt.err (!%p5025_p2)
}
  0x57   : > { %s6912_s17 = smov 8   ;;  %s6913_s14 = smov 128  }
  0x58   : > { %4900 = dma.hbm_to_vmem [thread:$0]  (!%p5359_p11), %s5366_s6, 6144, %s5368_s15, %s233_s30, %s6913_s14, %s6913_s14, %s6912_s17  }
  0x59   : > { %s4875_s13 = smul.u32 48, %s5352_s11  ;;  %s6914_s7 = sand.u32 1, %s5209_s23  }
  0x5a   : > { %s4876_s25 = smul.u32 768, %s5205_s22  ;;  %s5413_s12 = scalar_lea.sflag [#allocation6], %s6914_s7 }
  0x5b   : > { %s268_s0 = scalar_lea.vmem [#allocation5], %s4875_s13  ;;  %s5034_s6 = scalar_lea.hbm %s6810_s1, 1536 }
  0x5c   : > { %s5407_s16 = scalar_lea.hbm %s6810_s1, %s4876_s25  ;;  %s277_s2 = sshll.u32 %s268_s0, 4  ;;  %s5409_s2 = int_to_ptr.vmem [resolvable:$true] %s277_s2 }
  0x5d   : > { %s5029_s20 = scalar_lea.hbm %s5407_s16, 768  ;;  %p5035_p8 = scmp.lt.u32.totalorder %s5407_s16, %s6810_s1 }
  0x5e   : > { %p5030_p7 = scmp.ne.s32.totalorder %s5407_s16, %s5029_s20  ;;  %p5036_p12 = scmp.lt.u32.totalorder %s5034_s6, %s5029_s20 }
  0x5f   : > { %p5038_p0 = scmp.lt.u32.totalorder %s5029_s20, %s5407_s16 }
  0x60   : > { %p5032_p4 = pnand %p5030_p7, %p5001_p3  ;;  %p5037_p13 = por %p5036_p12, %p5035_p8 }
  0x62   : > { %p5033_p6 = pneg %p5032_p4  ;;  %p5039_p5 = por %p5038_p0, %p5037_p13 }
  0x64   : > { %p5040_p9 = pnand %p5039_p5, %p5033_p6 }
  0x66   : > { %5043 = shalt.err (!%p5040_p9)
}
  0x67   : > { %s5044_s0 = scalar_lea.vmem %s5409_s2, 768  ;;  %s5215_s7 = smov [#allocation5]  }
  0x68   : > { %p5045_p1 = scmp.ne.s32.totalorder %s5409_s2, %s5044_s0  ;;  %s5049_s13 = sshll.u32 %s5215_s7, 4  ;;  %s5050_s13 = int_to_ptr.vmem [resolvable:$false] %s5049_s13 }
  0x69   : > { %s5051_s9 = scalar_lea.vmem %s5050_s13, 1536  ;;  %p5052_p4 = scmp.lt.s32.totalorder %s5409_s2, %s5050_s13 }
  0x6a   : > { %p5047_p2 = pnand %p5045_p1, %p5001_p3  ;;  %p5053_p8 = scmp.lt.s32.totalorder %s5051_s9, %s5044_s0 }
  0x6c   : > { %p5048_p7 = pneg %p5047_p2  ;;  %p5054_p12 = por %p5053_p8, %p5052_p4 }
  0x6e   : > { %p5055_p13 = pnand %p5054_p12, %p5048_p7 }
  0x70   : > { %5058 = shalt.err (!%p5055_p13)
}
  0x71   : > { %4903 = dma.hbm_to_vmem [thread:$0]  (!%p5359_p11), %s5407_s16, 768, %s5409_s2, %s5413_s12, %s6913_s14, %s6913_s14, %s6912_s17  }
  0x72   : > { %p6915_p3 = scmp.ne.s32.totalorder %s6903_s28, 0 }
  0x74   : > { %289 = sbr.rel (%p6915_p3) target bundleno = 707 (0x2c3), region = 32 }
  0x7b   : > { %s5445_s20 = sand.u32 1, %s5193_s19   ;;  %p6916_p6 = scmp.ne.s32.totalorder %s6901_s26, 0 }
  0x7c   : > { %s4877_s8 = smul.u32 384, %s5445_s20  ;;  %s292_s11 = scalar_lea.sflag [#allocation3], %s5445_s20 }
  0x7e   : > { %s5449_s15 = scalar_lea.vmem [#allocation2], %s4877_s8 }
  0x7f   : > { %5168 = dma.done.wait (%p6916_p6), %s292_s11, 6144  }
  0x80   : > { %5170 = vsyncadd (%p6916_p6), %s292_s11, 4294961152  ;;  %s300_s2 = sand.u32 1, %s5282_s24   ;;  %s4878_s28 = smul.u32 48, %s5445_s20 }
  0x81   : > { %s301_s12 = scalar_lea.sflag [#allocation6], %s300_s2 }
  0x82   : > { %s5459_s29 = scalar_lea.vmem [#allocation5], %s4878_s28 }
  0x83   : > { %5172 = dma.done.wait (%p6916_p6), %s301_s12, 768  }
  0x84   : > { %5174 = vsyncadd (%p6916_p6), %s301_s12, 4294966528  ;;  %p6917_p11 = scmp.eq.s32.totalorder %s5282_s24, 0 }
  0x86   : > { %5176 = dma.done.wait (%p6917_p11), [#allocation6], 1152   ;;  %p6918_p0 = pmov %p6917_p11 }
  0x87   : > { %v540_v0 = vld [vmem:[#allocation7 + $0x8] sm:$0xff]  ;;  %v5469_v1 = vld [vmem:[#allocation7 + $0x20] sm:$0xff]  ;;  %vm458_vm0 = vcmask 1046528   ;;  %vm541_vm1 = vcmask 64512   ;;  %v5480_v6 = vld [vmem:[%s5449_s15 + $0x18] sm:$0xff]  ;;  %vm1120_vm2 = vcmask 1045504  }
  0x88   : > { %5178 = vsyncadd (%p6918_p0), [#allocation6], 4294966144  ;;  %v5472_v2 = vld [vmem:[%s5449_s15] sm:$0xff]  ;;  %4165 = vmatprep.subr.mxu1 %v540_v0  ;;  %4365 = vmatprep.subr.mxu0 %v5469_v1  ;;  %v5476_v3 = vld [vmem:[%s5449_s15 + $0x8] sm:$0xff]  ;;  %6919 = vst [vmem:[#allocation20_spill] sm:$0xff] %v5480_v6  ;;  %v464_v9 = vrot.slane %v5480_v6, 1 }
  0x89   : > { %v459_v4 = vrot.slane %v5472_v2, 1  ;;  %v409_v5 = vld [vmem:[#allocation7] sm:$0xff]  ;;  %4166 = vmatpush3.msra.mxu1 %v540_v0  ;;  %4366 = vmatpush3.msra.mxu0 %v5469_v1  ;;  %v460_v7 = vrot.slane %v5476_v3, 1  ;;  %v2064_v10 = vld [vmem:[#allocation7 + $0x28] sm:$0xff]  ;;  %v5489_v11 = vld [vmem:[%s5449_s15 + $0x10] sm:$0x3] }
  0x8a   : > { %v5485_v8 = vld [vmem:[%s5449_s15 + $0x20] sm:$0xff]  ;;  %4215 = vmatprep.subr.mxu1 %v409_v5  ;;  %4415 = vmatprep.subr.mxu0 %v2064_v10  ;;  %v462_v13 = vrot.slane %v5489_v11, 1  ;;  %v5494_v14 = vld [vmem:[%s5449_s15 + $0x28] sm:$0x3]  ;;  %v5497_v15 = vld [vmem:[%s5449_s15 + $0x30] sm:$0xff]  ;;  %s3571_s26 = sshll.u32 %s5445_s20, 8 }
  0x8b   : > { %6920 = vst [vmem:[#allocation21_spill] sm:$0xff] %v5485_v8  ;;  %v465_v12 = vrot.slane %v5485_v8, 1  ;;  %v461_v16 = vsel %vm458_vm0, %v459_v4, %v460_v7  ;;  %v467_v17 = vrot.slane %v5494_v14, 1  ;;  %v5502_v18 = vld [vmem:[%s5449_s15 + $0x38] sm:$0xff]  ;;  %v469_v19 = vrot.slane %v5497_v15, 1  ;;  %v5514_v25 = vld [vmem:[%s5449_s15 + $0x48] sm:$0xff] }
  0x8c   : > { %v5506_v20 = vld [vmem:[%s5449_s15 + $0x40] sm:$0x3]  ;;  %4167 = vmatprep.mubr.msk.f32.mxu1 %vm541_vm1, %v461_v16  ;;  %v463_v22 = vsel %vm458_vm0, %v460_v7, %v462_v13  ;;  %v470_v23 = vrot.slane %v5502_v18, 1  ;;  %v5517_v26 = vld [vmem:[%s5449_s15 + $0x50] sm:$0xff]  ;;  %v5520_v27 = vld [vmem:[%s5449_s15 + $0x58] sm:$0x3] }
  0x8d   : > { %v466_v21 = vsel %vm458_vm0, %v464_v9, %v465_v12  ;;  %v472_v24 = vrot.slane %v5506_v20, 1  ;;  %4168 = vmatmul.mubr.msk.f32.vlgmr.msra.gmra.mrb[0].mxu1 %vm541_vm1, %v463_v22  ;;  %v468_v28 = vsel %vm458_vm0, %v465_v12, %v467_v17  ;;  %v474_v29 = vrot.slane %v5514_v25, 1  ;;  %v5528_v31 = vld [vmem:[%s5449_s15 + $0x60] sm:$0xff]  ;;  %v5531_v32 = vld [vmem:[%s5449_s15 + $0x68] sm:$0xff]  ;;  %v5550_v39 = vld [vmem:[%s5449_s15 + $0x70] sm:$0x3] }
  0x8e   : > { %4367 = vmatprep.mubr.msk.f32.mxu0 %vm541_vm1, %v466_v21  ;;  %v475_v30 = vrot.slane %v5517_v26, 1  ;;  %4216 = vmatpush3.msra.mxu1 %v409_v5  ;;  %v5535_v33 = vsel %vm458_vm0, %v469_v19, %v470_v23  ;;  %v477_v35 = vrot.slane %v5520_v27, 1  ;;  %v479_v37 = vrot.slane %v5528_v31, 1  ;;  %v5554_v40 = vld [vmem:[%s5449_s15 + $0x78] sm:$0xff]  ;;  %v5557_v41 = vld [vmem:[%s5449_s15 + $0x80] sm:$0xff]  ;;  %v5563_v42 = vld [vmem:[#allocation7 + $0x30] sm:$0xff] }
  0x8f   : > { %4368 = vmatmul.mubr.msk.f32.vlgmr.msra.gmra.mrb[0].mxu0 %vm541_vm1, %v468_v28  ;;  %6921 = vst [vmem:[#allocation22_spill] sm:$0xff] %v5535_v33  ;;  %4170 = vmatprep.mubr.msk.f32.mxu1 %vm541_vm1, %v466_v21  ;;  %v5539_v34 = vsel %vm458_vm0, %v470_v23, %v472_v24  ;;  %v480_v38 = vrot.slane %v5531_v32, 1  ;;  %v482_v44 = vrot.slane %v5550_v39, 1  ;;  %v484_v46 = vrot.slane %v5554_v40, 1  ;;  %v5578_v48 = vld [vmem:[%s5449_s15 + $0x88] sm:$0x3] }
  0x90   : > { %4416 = vmatpush3.msra.mxu0 %v2064_v10  ;;  %6922 = vst [vmem:[#allocation23_spill] sm:$0xff] %v5539_v34  ;;  %4370 = vmatprep.mubr.msk.f32.mxu0 %vm541_vm1, %v5535_v33  ;;  %v5545_v36 = vsel %vm458_vm0, %v474_v29, %v475_v30  ;;  %v5568_v43 = vsel %vm458_vm0, %v475_v30, %v477_v35  ;;  %v485_v47 = vrot.slane %v5557_v41, 1  ;;  %v5583_v49 = vld [vmem:[%s5449_s15 + $0x90] sm:$0xff]  ;;  %v5586_v50 = vld [vmem:[%s5449_s15 + $0x98] sm:$0xff]  ;;  %v487_v52 = vrot.slane %v5578_v48, 1  ;;  %v5609_v57 = vld [vmem:[%s5449_s15 + $0xa8] sm:$0xff] }
  0x91   : > { %6923 = vst [vmem:[#allocation24_spill] sm:$0xff] %v5545_v36  ;;  %4171 = vmatmul.mubr.msk.f32.gmra.mrb[2].mxu1 %vm541_vm1, %v468_v28  ;;  %6924 = vst [vmem:[#allocation25_spill] sm:$0xff] %v5568_v43  ;;  %4465 = vmatprep.subr.mxu0 %v5563_v42  ;;  %v5573_v45 = vsel %vm458_vm0, %v479_v37, %v480_v38  ;;  %v5595_v51 = vsel %vm458_vm0, %v480_v38, %v482_v44  ;;  %v489_v54 = vrot.slane %v5583_v49, 1  ;;  %v5604_v56 = vld [vmem:[%s5449_s15 + $0xa0] sm:$0x3]  ;;  %v5612_v58 = vld [vmem:[%s5449_s15 + $0xb0] sm:$0xff] }
  0x92   : > { %4173 = vmatprep.mubr.msk.f32.mxu1 %vm541_vm1, %v5535_v33  ;;  %6925 = vst [vmem:[#allocation26_spill] sm:$0xff] %v5573_v45  ;;  %6926 = vst [vmem:[#allocation27_spill] sm:$0xff] %v5595_v51  ;;  %v5599_v53 = vsel %vm458_vm0, %v484_v46, %v485_v47  ;;  %v490_v55 = vrot.slane %v5586_v50, 1  ;;  %v5621_v59 = vsel %vm458_vm0, %v485_v47, %v487_v52  ;;  %v492_v60 = vrot.slane %v5604_v56, 1  ;;  %v5624_v61 = vld [vmem:[#allocation7 + $0x10] sm:$0xff]  ;;  %v5638_v5 = vld [vmem:[%s5449_s15 + $0xc0] sm:$0xff] }
  0x93   : > { %4371 = vmatmul.mubr.msk.f32.gmra.mrb[2].mxu0 %vm541_vm1, %v5539_v34  ;;  %6927 = vst [vmem:[#allocation28_spill] sm:$0xff] %v5599_v53  ;;  %6928 = vst [vmem:[#allocation29_spill] sm:$0xff] %v5621_v59  ;;  %v494_v63 = vrot.slane %v5609_v57, 1  ;;  %v495_v0 = vrot.slane %v5612_v58, 1  ;;  %v5632_v4 = vld [vmem:[%s5449_s15 + $0xb8] sm:$0x3]  ;;  %4265 = vmatprep.subr.mxu1 %v5624_v61 }
  0x94   : > { %4373 = vmatprep.mubr.msk.f32.mxu0 %vm541_vm1, %v5545_v36  ;;  %v5627_v62 = vsel %vm458_vm0, %v489_v54, %v490_v55  ;;  %v5641_v7 = vld [vmem:[%s5449_s15 + $0xc8] sm:$0xff]  ;;  %v5650_v9 = vsel %vm458_vm0, %v490_v55, %v492_v60  ;;  %v497_v10 = vrot.slane %v5632_v4, 1  ;;  %v499_v13 = vrot.slane %v5638_v5, 1  ;;  %v5659_v17 = vld [vmem:[%s5449_s15 + $0xd0] sm:$0x3]  ;;  %v5679_v28 = vld [vmem:[%s5449_s15 + $0xd8] sm:$0xff] }
  0x95   : > { %4174 = vmatmul.mubr.msk.f32.gmra.mrb[4].mxu1 %vm541_vm1, %v5539_v34  ;;  %6929 = vst [vmem:[#allocation30_spill] sm:$0xff] %v5627_v62  ;;  %6930 = vst [vmem:[#allocation31_spill] sm:$0xff] %v5650_v9  ;;  %v5654_v12 = vsel %vm458_vm0, %v494_v63, %v495_v0  ;;  %v500_v16 = vrot.slane %v5641_v7, 1  ;;  %v502_v21 = vrot.slane %v5659_v17, 1  ;;  %v1126_v23 = vrot.slane %v5480_v6, 2  ;;  %v5682_v29 = vld [vmem:[%s5449_s15 + $0xe0] sm:$0xff] }
  0x96   : > { %4176 = vmatprep.mubr.msk.f32.mxu1 %vm541_vm1, %v5545_v36  ;;  %6931 = vst [vmem:[#allocation32_spill] sm:$0xff] %v5654_v12  ;;  %v5670_v19 = vsel %vm458_vm0, %v495_v0, %v497_v10  ;;  %v1127_v24 = vrot.slane %v5485_v8, 2  ;;  %v1129_v30 = vrot.slane %v5494_v14, 2  ;;  %v504_v37 = vrot.slane %v5679_v28, 1  ;;  %v5699_v44 = vld [vmem:[%s5449_s15 + $0xe8] sm:$0x3] }
  0x97   : > { %4374 = vmatmul.mubr.msk.f32.gmra.mrb[4].mxu0 %vm541_vm1, %v5568_v43  ;;  %6932 = vst [vmem:[#allocation33_spill] sm:$0xff] %v5670_v19  ;;  %v5674_v22 = vsel %vm458_vm0, %v499_v13, %v500_v16  ;;  %v5694_v35 = vsel %vm458_vm0, %v500_v16, %v502_v21  ;;  %v505_v38 = vrot.slane %v5682_v29, 1  ;;  %v1131_v47 = vrot.slane %v5497_v15, 2  ;;  %v5707_v52 = vld [vmem:[%s5449_s15 + $0xf0] sm:$0xff]  ;;  %v5710_v54 = vld [vmem:[%s5449_s15 + $0xf8] sm:$0xff]  ;;  %s6543_s17 = scalar_lea.vmem [#allocation8], %s3571_s26 }
  0x98   : > { %4376 = vmatprep.mubr.msk.f32.mxu0 %vm541_vm1, %v5573_v45  ;;  %6933 = vst [vmem:[#allocation34_spill] sm:$0xff] %v5674_v22  ;;  %6934 = vst [vmem:[#allocation35_spill] sm:$0xff] %v5694_v35  ;;  %v5702_v46 = vsel %vm1120_vm2, %v1126_v23, %v1127_v24  ;;  %v1132_v14 = vrot.slane %v5502_v18, 2  ;;  %v507_v55 = vrot.slane %v5699_v44, 1  ;;  %v1134_v60 = vrot.slane %v5506_v20, 2  ;;  %s3867_s14 = sshll.u32 %s5201_s21, 12 }
  0x99   : > { %4177 = vmatmul.mubr.msk.f32.gmra.mrb[6].mxu1 %vm541_vm1, %v5568_v43  ;;  %v5723_v63 = vsel %vm1120_vm2, %v1127_v24, %v1129_v30  ;;  %v5726_v0 = vsel %vm458_vm0, %v504_v37, %v505_v38  ;;  %v509_v10 = vrot.slane %v5707_v52, 1  ;;  %v510_v13 = vrot.slane %v5710_v54, 1  ;;  %v5731_v16 = vld [vmem:[%s5449_s15 + $0x100] sm:$0x3]  ;;  %v5742_v24 = vld [vmem:[%s5449_s15 + $0x110] sm:$0xff]  ;;  %v5746_v30 = vld [vmem:[#allocation7 + $0x38] sm:$0xff]  ;;  %s6674_s25 = scalar_lea.hbm %s6812_s3, %s3867_s14 }
  0x9a   : > { %4179 = vmatprep.mubr.msk.f32.mxu1 %vm541_vm1, %v5573_v45  ;;  %6935 = vst [vmem:[#allocation36_spill] sm:$0xff] %v5726_v0  ;;  %v5734_v21 = vsel %vm1120_vm2, %v1131_v47, %v1132_v14  ;;  %v1136_v20 = vrot.slane %v5514_v25, 2  ;;  %v1137_v23 = vrot.slane %v5517_v26, 2  ;;  %v5753_v37 = vsel %vm458_vm0, %v505_v38, %v507_v55  ;;  %v5769_v55 = vld [vmem:[%s5449_s15 + $0x118] sm:$0x3]  ;;  %s3357_s16 = sshll.u32 %s6543_s17, 4  ;;  %s6676_s16 = int_to_ptr.vmem [resolvable:$true] %s3357_s16 }
  0x9b   : > { %4377 = vmatmul.mubr.msk.f32.gmra.mrb[6].mxu0 %vm541_vm1, %v5595_v51  ;;  %6936 = vst [vmem:[#allocation37_spill] sm:$0xff] %v5753_v37  ;;  %v5756_v47 = vsel %vm1120_vm2, %v1132_v14, %v1134_v60  ;;  %v515_v38 = vrot.slane %v5742_v24, 1  ;;  %v1141_v60 = vrot.slane %v5528_v31, 2  ;;  %v5813_v45 = vld [vmem:[%s5449_s15 + $0x138] sm:$0xff]  ;;  %v1149_v43 = vrot.slane %v5578_v48, 2  ;;  %s3334_s0 = scalar_lea.sflag [#allocation4], %s5445_s20 }
  0x9c   : > { %4379 = vmatprep.mubr.msk.f32.mxu0 %vm541_vm1, %v5599_v53  ;;  %6937 = vst [vmem:[#allocation38_spill] sm:$0xff] %v5756_v47  ;;  %v5772_v14 = vsel %vm1120_vm2, %v1136_v20, %v1137_v23  ;;  %v517_v20 = vrot.slane %v5769_v55, 1  ;;  %v524_v36 = vrot.slane %v5813_v45, 1  ;;  %v5840_v34 = vld [vmem:[%s5449_s15 + $0x148] sm:$0x3]  ;;  %v1154_v33 = vrot.slane %v5604_v56, 2 }
  0x9d   : > { %4180 = vmatmul.mubr.msk.f32.gmra.mrb[8].mxu1 %vm541_vm1, %v5595_v51  ;;  %6939 = vst [vmem:[#allocation40_spill] sm:$0xff] %v5772_v14  ;;  %v5805_v51 = vld [vmem:[%s5449_s15 + $0x130] sm:$0x3]  ;;  %v1156_v56 = vrot.slane %v5609_v57, 2  ;;  %s5059_s7 = scalar_lea.vmem %s6676_s16, 4096  ;;  %s5216_s13 = smov [#allocation8]  }
  0x9e   : > { %4182 = vmatprep.mubr.msk.f32.mxu1 %vm541_vm1, %v5599_v53  ;;  %p5060_p5 = scmp.ne.s32.totalorder %s6676_s16, %s5059_s7  ;;  %s5063_s9 = sshll.u32 %s5216_s13, 4  ;;  %s5064_s9 = int_to_ptr.vmem [resolvable:$false] %s5063_s9 }
  0x9f   : > { %4380 = vmatmul.mubr.msk.f32.gmra.mrb[8].mxu0 %vm541_vm1, %v5621_v59  ;;  %s5065_s8 = scalar_lea.vmem %s5064_s9, 8192  ;;  %p5066_p2 = scmp.lt.s32.totalorder %s6676_s16, %s5064_s9 }
  0xa0   : > { %4382 = vmatprep.mubr.msk.f32.mxu0 %vm541_vm1, %v5627_v62  ;;  %p5061_p9 = pnand %p5060_p5, %p5344_p10  ;;  %p5067_p7 = scmp.lt.s32.totalorder %s5065_s8, %s5059_s7 }
  0xa1   : > { %4183 = vmatmul.mubr.msk.f32.gmra.mrb[10].mxu1 %vm541_vm1, %v5621_v59 }
  0xa2   : > { %4185 = vmatprep.mubr.msk.f32.mxu1 %vm541_vm1, %v5627_v62  ;;  %v1144_v62 = vrot.slane %v5550_v39, 2  ;;  %v1146_v39 = vrot.slane %v5554_v40, 2  ;;  %p5062_p1 = pneg %p5061_p9  ;;  %p5068_p4 = por %p5067_p7, %p5066_p2 }
  0xa3   : > { %4383 = vmatmul.mubr.msk.f32.gmra.mrb[10].mxu0 %vm541_vm1, %v5650_v9 }
  0xa4   : > { %4385 = vmatprep.mubr.msk.f32.mxu0 %vm541_vm1, %v5654_v12  ;;  %p5069_p8 = pnand %p5068_p4, %p5062_p1 }
  0xa5   : > { %4186 = vmatmul.mubr.msk.f32.gmra.mrb[12].mxu1 %vm541_vm1, %v5650_v9  ;;  %v5777_v9 = vld [vmem:[%s5449_s15 + $0x120] sm:$0xff] }
  0xa6   : > { %4188 = vmatprep.mubr.msk.f32.mxu1 %vm541_vm1, %v5654_v12  ;;  %v1139_v12 = vrot.slane %v5520_v27, 2  ;;  %v519_v53 = vrot.slane %v5777_v9, 1 }
  0xa7   : > { %4386 = vmatmul.mubr.msk.f32.gmra.mrb[12].mxu0 %vm541_vm1, %v5670_v19 }
  0xa8   : > { %4388 = vmatprep.mubr.msk.f32.mxu0 %vm541_vm1, %v5674_v22  ;;  %v5797_v59 = vsel %vm1120_vm2, %v1137_v23, %v1139_v12  ;;  %v5816_v12 = vld [vmem:[%s5449_s15 + $0x140] sm:$0xff] }
  0xa9   : > { %4189 = vmatmul.mubr.msk.f32.gmra.mrb[14].mxu1 %vm541_vm1, %v5670_v19  ;;  %v512_v19 = vrot.slane %v5731_v16, 1  ;;  %6941 = vst [vmem:[#allocation42_spill] sm:$0xff] %v5797_v59 }
  0xaa   : > { %4191 = vmatprep.mubr.msk.f32.mxu1 %vm541_vm1, %v5674_v22  ;;  %v5739_v22 = vld [vmem:[%s5449_s15 + $0x108] sm:$0xff] }
  0xab   : > { %4389 = vmatmul.mubr.msk.f32.gmra.mrb[14].mxu0 %vm541_vm1, %v5694_v35  ;;  %v5790_v27 = vsel %vm458_vm0, %v510_v13, %v512_v19 }
  0xac   : > { %4417 = vmatprep.mubr.msk.f32.mxu0 %vm541_vm1, %v5702_v46  ;;  %6940 = vst [vmem:[#allocation41_spill] sm:$0xff] %v5790_v27 }
  0xad   : > { %4192 = vmatmul.mubr.msk.f32.gmra.mrb[16].mxu1 %vm541_vm1, %v5694_v35  ;;  %v5763_v35 = vsel %vm458_vm0, %v509_v10, %v510_v13  ;;  %v5780_v10 = vld [vmem:[%s5449_s15 + $0x128] sm:$0xff]  ;;  %v1147_v13 = vrot.slane %v5557_v41, 2 }
  0xae   : > { %4194 = vmatprep.mubr.msk.f32.mxu1 %vm541_vm1, %v5726_v0  ;;  %6938 = vst [vmem:[#allocation39_spill] sm:$0xff] %v5763_v35  ;;  %v514_v0 = vrot.slane %v5739_v22, 1 }
  0xaf   : > { %4418 = vmatmul.mubr.msk.f32.vlgmr.msra.gmra.mrb[0].mxu0 %vm541_vm1, %v5723_v63 }
  0xb0   : > { %4466 = vmatpush3.msra.mxu0 %v5563_v42  ;;  %4420 = vmatprep.mubr.msk.f32.mxu0 %vm541_vm1, %v5734_v21  ;;  %v1142_v42 = vrot.slane %v5531_v32, 2 }
  0xb1   : > { %4515 = vmatprep.subr.mxu0 %v5746_v30  ;;  %4195 = vmatmul.mubr.msk.f32.gmra.mrb[18].mxu1 %vm541_vm1, %v5753_v37  ;;  %v5800_v37 = vsel %vm458_vm0, %v514_v0, %v515_v38  ;;  %v5825_v0 = vsel %vm458_vm0, %v515_v38, %v517_v20  ;;  %v5843_v38 = vsel %vm1120_vm2, %v1146_v39, %v1147_v13  ;;  %v5848_v20 = vld [vmem:[%s5449_s15 + $0x150] sm:$0xff]  ;;  %v527_v39 = vrot.slane %v5840_v34, 1 }
  0xb2   : > { %4197 = vmatprep.mubr.msk.f32.mxu1 %vm541_vm1, %v5763_v35  ;;  %6942 = vst [vmem:[#allocation43_spill] sm:$0xff] %v5800_v37  ;;  %v520_v35 = vrot.slane %v5780_v10, 1  ;;  %v5808_v19 = vsel %vm1120_vm2, %v1141_v60, %v1142_v42  ;;  %6944 = vst [vmem:[#allocation45_spill] sm:$0xff] %v5825_v0  ;;  %v5828_v23 = vsel %vm1120_vm2, %v1142_v42, %v1144_v62  ;;  %v522_v60 = vrot.slane %v5805_v51, 1 }
  0xb3   : > { %4421 = vmatmul.mubr.msk.f32.gmra.mrb[2].mxu0 %vm541_vm1, %v5756_v47  ;;  %6943 = vst [vmem:[#allocation44_spill] sm:$0xff] %v5808_v19  ;;  %6945 = vst [vmem:[#allocation46_spill] sm:$0xff] %v5828_v23  ;;  %v1151_v62 = vrot.slane %v5583_v49, 2  ;;  %v1152_v42 = vrot.slane %v5586_v50, 2  ;;  %v5910_v47 = vld [vmem:[%s5449_s15 + $0x178] sm:$0x3] }
  0xb4   : > { %4423 = vmatprep.mubr.msk.f32.mxu0 %vm541_vm1, %v5772_v14  ;;  %6947 = vst [vmem:[#allocation48_spill] sm:$0xff] %v5843_v38  ;;  %v5860_v48 = vsel %vm458_vm0, %v520_v35, %v522_v60  ;;  %v1157_v60 = vrot.slane %v5612_v58, 2 }
  0xb5   : > { %4198 = vmatmul.mubr.msk.f32.gmra.mrb[20].mxu1 %vm541_vm1, %v5790_v27  ;;  %v5834_v27 = vsel %vm458_vm0, %v519_v53, %v520_v35  ;;  %v5851_v53 = vld [vmem:[%s5449_s15 + $0x158] sm:$0xff]  ;;  %6948 = vst [vmem:[#allocation49_spill] sm:$0xff] %v5860_v48  ;;  %v5878_v35 = vsel %vm1120_vm2, %v1151_v62, %v1152_v42 }
  0xb6   : > { %4200 = vmatprep.mubr.msk.f32.mxu1 %vm541_vm1, %v5800_v37  ;;  %6946 = vst [vmem:[#allocation47_spill] sm:$0xff] %v5834_v27  ;;  %v525_v37 = vrot.slane %v5816_v12, 1 }
  0xb7   : > { %4424 = vmatmul.mubr.msk.f32.gmra.mrb[4].mxu0 %vm541_vm1, %v5797_v59  ;;  %v5875_v59 = vld [vmem:[%s5449_s15 + $0x160] sm:$0x3] }
  0xb8   : > { %4426 = vmatprep.mubr.msk.f32.mxu0 %vm541_vm1, %v5808_v19  ;;  %v5867_v19 = vsel %vm1120_vm2, %v1147_v13, %v1149_v43  ;;  %v5886_v43 = vld [vmem:[%s5449_s15 + $0x170] sm:$0xff]  ;;  %v5898_v13 = vsel %vm1120_vm2, %v1152_v42, %v1154_v33  ;;  %v532_v62 = vrot.slane %v5875_v59, 1  ;;  %v1161_v33 = vrot.slane %v5638_v5, 2 }
  0xb9   : > { %4201 = vmatmul.mubr.msk.f32.gmra.mrb[22].mxu1 %vm541_vm1, %v5825_v0  ;;  %6949 = vst [vmem:[#allocation50_spill] sm:$0xff] %v5867_v19  ;;  %v5870_v0 = vsel %vm458_vm0, %v524_v36, %v525_v37  ;;  %6951 = vst [vmem:[#allocation52_spill] sm:$0xff] %v5886_v43  ;;  %v5895_v36 = vsel %vm458_vm0, %v525_v37, %v527_v39  ;;  %v5913_v37 = vsel %vm1120_vm2, %v1156_v56, %v1157_v60 }
  0xba   : > { %4203 = vmatprep.mubr.msk.f32.mxu1 %vm541_vm1, %v5834_v27  ;;  %6950 = vst [vmem:[#allocation51_spill] sm:$0xff] %v5870_v0  ;;  %v530_v27 = vrot.slane %v5851_v53, 1  ;;  %6952 = vst [vmem:[#allocation53_spill] sm:$0xff] %v5895_v36  ;;  %v1162_v42 = vrot.slane %v5641_v7, 2 }
  0xbb   : > { %4427 = vmatmul.mubr.msk.f32.gmra.mrb[6].mxu0 %vm541_vm1, %v5828_v23  ;;  %v529_v23 = vrot.slane %v5848_v20, 1  ;;  %6953 = vst [vmem:[#allocation54_spill] sm:$0xff] %v5898_v13 }
  0xbc   : > { %4429 = vmatprep.mubr.msk.f32.mxu0 %vm541_vm1, %v5843_v38  ;;  %v5883_v38 = vld [vmem:[%s5449_s15 + $0x168] sm:$0xff] }
  0xbd   : > { %4204 = vmatmul.mubr.msk.f32.gmra.mrb[24].mxu1 %vm541_vm1, %v5860_v48  ;;  %v5904_v14 = vsel %vm458_vm0, %v529_v23, %v530_v27  ;;  %v1159_v48 = vrot.slane %v5632_v4, 2  ;;  %v5924_v4 = vsel %vm458_vm0, %v530_v27, %v532_v62  ;;  %v537_v23 = vrot.slane %v5910_v47, 1 }
  0xbe   : > { %4206 = vmatprep.mubr.msk.f32.mxu1 %vm541_vm1, %v5870_v0  ;;  %6954 = vst [vmem:[#allocation55_spill] sm:$0xff] %v5904_v14  ;;  %v535_v0 = vrot.slane %v5886_v43, 1  ;;  %6955 = vst [vmem:[#allocation56_spill] sm:$0xff] %v5924_v4  ;;  %v1167_v27 = vrot.slane %v5682_v29, 2  ;;  %v1171_v62 = vrot.slane %v5707_v52, 2 }
  0xbf   : > { %4430 = vmatmul.mubr.msk.f32.gmra.mrb[8].mxu0 %vm541_vm1, %v5867_v19  ;;  %v534_v19 = vrot.slane %v5883_v38, 1  ;;  %v5930_v39 = vsel %vm1120_vm2, %v1157_v60, %v1159_v48  ;;  %v1169_v48 = vrot.slane %v5699_v44, 2 }
  0xc0   : > { %4432 = vmatprep.mubr.msk.f32.mxu0 %vm541_vm1, %v5878_v35 }
  0xc1   : > { %4207 = vmatmul.mubr.msk.f32.gmra.mrb[26].mxu1 %vm541_vm1, %v5895_v36  ;;  %v5933_v56 = vsel %vm458_vm0, %v534_v19, %v535_v0  ;;  %v1164_v36 = vrot.slane %v5659_v17, 2  ;;  %v5948_v19 = vsel %vm458_vm0, %v535_v0, %v537_v23  ;;  %v5970_v44 = vsel %vm1120_vm2, %v1167_v27, %v1169_v48  ;;  %v5980_v23 = vld [vmem:[#allocation7 + $0x18] sm:$0xff] }
  0xc2   : > { %4209 = vmatprep.mubr.msk.f32.mxu1 %vm541_vm1, %v5904_v14  ;;  %6956 = vst [vmem:[#allocation57_spill] sm:$0xff] %v5933_v56  ;;  %v1166_v14 = vrot.slane %v5679_v28, 2  ;;  %6957 = vst [vmem:[#allocation58_spill] sm:$0xff] %v5948_v19 }
  0xc3   : > { %4433 = vmatmul.mubr.msk.f32.gmra.mrb[10].mxu0 %vm541_vm1, %v5898_v13  ;;  %v5937_v13 = vsel %vm1120_vm2, %v1161_v33, %v1162_v42  ;;  %v5953_v17 = vsel %vm1120_vm2, %v1162_v42, %v1164_v36  ;;  %v1172_v33 = vrot.slane %v5710_v54, 2  ;;  %v1176_v36 = vrot.slane %v5739_v22, 2 }
  0xc4   : > { %4435 = vmatprep.mubr.msk.f32.mxu0 %vm541_vm1, %v5913_v37  ;;  %v5957_v60 = vsel %vm1120_vm2, %v1166_v14, %v1167_v27  ;;  %v1174_v14 = vrot.slane %v5731_v16, 2  ;;  %v1177_v42 = vrot.slane %v5742_v24, 2  ;;  %v1179_v27 = vrot.slane %v5769_v55, 2 }
  0xc5   : > { %4210 = vmatmul.mubr.msk.f32.gmra.mrb[28].mxu1 %vm541_vm1, %v5924_v4  ;;  %v5974_v0 = vsel %vm1120_vm2, %v1171_v62, %v1172_v33  ;;  %v1181_v62 = vrot.slane %v5777_v9, 2  ;;  %v1197_v4 = vrot.slane %v5886_v43, 2 }
  0xc6   : > { %4212 = vmatprep.mubr.msk.f32.mxu1 %vm541_vm1, %v5933_v56  ;;  %v5990_v16 = vsel %vm1120_vm2, %v1172_v33, %v1174_v14  ;;  %v5994_v48 = vsel %vm1120_vm2, %v1176_v36, %v1177_v42  ;;  %v6008_v55 = vsel %vm1120_vm2, %v1177_v42, %v1179_v27  ;;  %v1184_v33 = vrot.slane %v5805_v51, 2 }
  0xc7   : > { %4436 = vmatmul.mubr.msk.f32.gmra.mrb[12].mxu0 %vm541_vm1, %v5930_v39  ;;  %6958 = vst [vmem:[#allocation59_spill] sm:$0xff] %v5994_v48  ;;  %v1186_v36 = vrot.slane %v5813_v45, 2  ;;  %v1189_v42 = vrot.slane %v5840_v34, 2  ;;  %v1192_v56 = vrot.slane %v5851_v53, 2 }
  0xc8   : > { %4438 = vmatprep.mubr.msk.f32.mxu0 %vm541_vm1, %v5937_v13 }
  0xc9   : > { %4213 = vmatmul.mubr.msk.f32.gmra.mrb[30].mxu1 %vm541_vm1, %v5948_v19  ;;  %v1187_v19 = vrot.slane %v5816_v12, 2 }
  0xca   : > { %4217 = vmatprep.mubr.msk.f32.mxu1 %vm541_vm1, %v5472_v2 }
  0xcb   : > { %4439 = vmatmul.mubr.msk.f32.gmra.mrb[14].mxu0 %vm541_vm1, %v5953_v17  ;;  %v6029_v27 = vsel %vm1120_vm2, %v1186_v36, %v1187_v19  ;;  %v6042_v34 = vsel %vm1120_vm2, %v1187_v19, %v1189_v42  ;;  %v1196_v36 = vrot.slane %v5883_v38, 2  ;;  %v1199_v19 = vrot.slane %v5910_v47, 2 }
  0xcc   : > { %4441 = vmatprep.mubr.msk.f32.mxu0 %vm541_vm1, %v5957_v60  ;;  %6960 = vst [vmem:[#allocation61_spill] sm:$0xff] %v6029_v27  ;;  %6961 = vst [vmem:[#allocation62_spill] sm:$0xff] %v6042_v34 }
  0xcd   : > { %4218 = vmatmul.mubr.msk.f32.vlgmr.msra.gmra.mrb[0].mxu1 %vm541_vm1, %v5476_v3  ;;  %v6069_v42 = vsel %vm1120_vm2, %v1196_v36, %v1197_v4  ;;  %v6085_v47 = vsel %vm1120_vm2, %v1197_v4, %v1199_v19  ;;  %v6112_v36 = vld [vmem:[#allocation7 + $0x40] sm:$0xff]  ;;  %v1124_v19 = vrot.slane %v5489_v11, 2  ;;  %v6969_v11 = vld [vmem:[#allocation40_spill] sm:$0xff] }
  0xce   : > { %4266 = vmatpush3.msra.mxu1 %v5624_v61  ;;  %4220 = vmatprep.mubr.msk.f32.mxu1 %vm541_vm1, %v5480_v6  ;;  %v1182_v61 = vrot.slane %v5780_v10, 2  ;;  %v6056_v6 = vld [vmem:[%s5459_s29 + $0x8] sm:$0xff]  ;;  %6964 = vst [vmem:[#allocation65_spill] sm:$0xff] %v6069_v42  ;;  %6965 = vst [vmem:[#allocation66_spill] sm:$0xff] %v6085_v47 }
  0xcf   : > { %4442 = vmatmul.mubr.msk.f32.gmra.mrb[16].mxu0 %vm541_vm1, %v5970_v44  ;;  %4315 = vmatprep.subr.mxu1 %v5980_v23 }
  0xd0   : > { %4444 = vmatprep.mubr.msk.f32.mxu0 %vm541_vm1, %v5974_v0  ;;  %v6012_v14 = vsel %vm1120_vm2, %v1181_v62, %v1182_v61  ;;  %v6025_v51 = vsel %vm1120_vm2, %v1182_v61, %v1184_v33  ;;  %v1191_v62 = vrot.slane %v5848_v20, 2  ;;  %v1194_v61 = vrot.slane %v5875_v59, 2 }
  0xd1   : > { %4221 = vmatmul.mubr.msk.f32.gmra.mrb[2].mxu1 %vm541_vm1, %v5485_v8  ;;  %6959 = vst [vmem:[#allocation60_spill] sm:$0xff] %v6025_v51  ;;  %v6053_v8 = vld [vmem:[%s5459_s29] sm:$0xff] }
  0xd2   : > { %4223 = vmatprep.mubr.msk.f32.mxu1 %vm541_vm1, %v5497_v15  ;;  %v6046_v33 = vsel %vm1120_vm2, %v1191_v62, %v1192_v56  ;;  %v6065_v59 = vsel %vm1120_vm2, %v1192_v56, %v1194_v61  ;;  %v2058_v62 = vrot.slane %v6053_v8, 2 }
  0xd3   : > { %4445 = vmatmul.mubr.msk.f32.gmra.mrb[18].mxu0 %vm541_vm1, %v5990_v16  ;;  %6962 = vst [vmem:[#allocation63_spill] sm:$0xff] %v6046_v33  ;;  %6963 = vst [vmem:[#allocation64_spill] sm:$0xff] %v6065_v59 }
  0xd4   : > { %4447 = vmatprep.mubr.msk.f32.mxu0 %vm541_vm1, %v5994_v48 }
  0xd5   : > { %4224 = vmatmul.mubr.msk.f32.gmra.mrb[4].mxu1 %vm541_vm1, %v5502_v18 }
  0xd6   : > { %4226 = vmatprep.mubr.msk.f32.mxu1 %vm541_vm1, %v5514_v25 }
  0xd7   : > { %4448 = vmatmul.mubr.msk.f32.gmra.mrb[20].mxu0 %vm541_vm1, %v6008_v55 }
  0xd8   : > { %4450 = vmatprep.mubr.msk.f32.mxu0 %vm541_vm1, %v6012_v14 }
  0xd9   : > { %4227 = vmatmul.mubr.msk.f32.gmra.mrb[6].mxu1 %vm541_vm1, %v5517_v26 }
  0xda   : > { %4229 = vmatprep.mubr.msk.f32.mxu1 %vm541_vm1, %v5528_v31 }
  0xdb   : > { %4451 = vmatmul.mubr.msk.f32.gmra.mrb[22].mxu0 %vm541_vm1, %v6025_v51  ;;  %v6074_v51 = vld [vmem:[%s5459_s29 + $0x10] sm:$0x3] }
  0xdc   : > { %4453 = vmatprep.mubr.msk.f32.mxu0 %vm541_vm1, %v6029_v27  ;;  %v2059_v27 = vrot.slane %v6056_v6, 2  ;;  %v2061_v56 = vrot.slane %v6074_v51, 2 }
  0xdd   : > { %4230 = vmatmul.mubr.msk.f32.gmra.mrb[8].mxu1 %vm541_vm1, %v5531_v32 }
  0xde   : > { %4232 = vmatprep.mubr.msk.f32.mxu1 %vm541_vm1, %v5554_v40  ;;  %v6089_v61 = vsel %vm1120_vm2, %v2058_v62, %v2059_v27  ;;  %v6100_v4 = vsel %vm1120_vm2, %v2059_v27, %v2061_v56  ;;  %v1122_v27 = vrot.slane %v5476_v3, 2  ;;  %v6968_v3 = vld [vmem:[#allocation38_spill] sm:$0xff]  ;;  %v6973_v56 = vld [vmem:[#allocation48_spill] sm:$0xff] }
  0xdf   : > { %4454 = vmatmul.mubr.msk.f32.gmra.mrb[24].mxu0 %vm541_vm1, %v6042_v34  ;;  %6966 = vst [vmem:[#allocation67_spill] sm:$0xff] %v6089_v61  ;;  %6967 = vst [vmem:[#allocation68_spill] sm:$0xff] %v6100_v4 }
  0xe0   : > { %4456 = vmatprep.mubr.msk.f32.mxu0 %vm541_vm1, %v6046_v33 }
  0xe1   : > { %4233 = vmatmul.mubr.msk.f32.gmra.mrb[10].mxu1 %vm541_vm1, %v5557_v41 }
  0xe2   : > { %4235 = vmatprep.mubr.msk.f32.mxu1 %vm541_vm1, %v5583_v49 }
  0xe3   : > { %4457 = vmatmul.mubr.msk.f32.gmra.mrb[26].mxu0 %vm541_vm1, %v6065_v59 }
  0xe4   : > { %4459 = vmatprep.mubr.msk.f32.mxu0 %vm541_vm1, %v6069_v42 }
  0xe5   : > { %4236 = vmatmul.mubr.msk.f32.gmra.mrb[12].mxu1 %vm541_vm1, %v5586_v50 }
  0xe6   : > { %4238 = vmatprep.mubr.msk.f32.mxu1 %vm541_vm1, %v5609_v57 }
  0xe7   : > { %4460 = vmatmul.mubr.msk.f32.gmra.mrb[28].mxu0 %vm541_vm1, %v6085_v47 }
  0xe8   : > { %4462 = vmatprep.mubr.msk.f32.mxu0 %vm541_vm1, %v6089_v61  ;;  %v6978_v61 = vld [vmem:[#allocation24_spill] sm:$0xff] }
  0xe9   : > { %4239 = vmatmul.mubr.msk.f32.gmra.mrb[14].mxu1 %vm541_vm1, %v5612_v58 }
  0xea   : > { %4241 = vmatprep.mubr.msk.f32.mxu1 %vm541_vm1, %v5638_v5 }
  0xeb   : > { %4463 = vmatmul.mubr.msk.f32.gmra.mrb[30].mxu0 %vm541_vm1, %v6100_v4  ;;  %v6977_v4 = vld [vmem:[#allocation23_spill] sm:$0xff] }
  0xec   : > { %4467 = vmatprep.mubr.msk.f32.mxu0 %vm541_vm1, %v5497_v15 }
  0xed   : > { %4242 = vmatmul.mubr.msk.f32.gmra.mrb[16].mxu1 %vm541_vm1, %v5641_v7 }
  0xee   : > { %4244 = vmatprep.mubr.msk.f32.mxu1 %vm541_vm1, %v5679_v28 }
  0xef   : > { %4468 = vmatmul.mubr.msk.f32.vlgmr.msra.gmra.mrb[0].mxu0 %vm541_vm1, %v5502_v18 }
  0xf0   : > { %4516 = vmatpush3.msra.mxu0 %v5746_v30  ;;  %4470 = vmatprep.mubr.msk.f32.mxu0 %vm541_vm1, %v5514_v25  ;;  %v1121_v30 = vrot.slane %v5472_v2, 2  ;;  %v1125_v2 = vsel %vm1120_vm2, %v1122_v27, %v1124_v19  ;;  %v6975_v19 = vld [vmem:[#allocation54_spill] sm:$0xff] }
  0xf1   : > { %4565 = vmatprep.subr.mxu0 %v6112_v36  ;;  %4245 = vmatmul.mubr.msk.f32.gmra.mrb[18].mxu1 %vm541_vm1, %v5682_v29 }
  0xf2   : > { %4247 = vmatprep.mubr.msk.f32.mxu1 %vm541_vm1, %v5707_v52  ;;  %v1123_v62 = vsel %vm1120_vm2, %v1121_v30, %v1122_v27  ;;  %v6974_v30 = vld [vmem:[#allocation50_spill] sm:$0xff] }
  0xf3   : > { %4471 = vmatmul.mubr.msk.f32.gmra.mrb[2].mxu0 %vm541_vm1, %v5517_v26  ;;  %v6232_v27 = vld [vmem:[%s5459_s29 + $0x18] sm:$0xff] }
  0xf4   : > { %4473 = vmatprep.mubr.msk.f32.mxu0 %vm541_vm1, %v5528_v31 }
  0xf5   : > { %4248 = vmatmul.mubr.msk.f32.gmra.mrb[20].mxu1 %vm541_vm1, %v5710_v54 }
  0xf6   : > { %4250 = vmatprep.mubr.msk.f32.mxu1 %vm541_vm1, %v5739_v22 }
  0xf7   : > { %4474 = vmatmul.mubr.msk.f32.gmra.mrb[4].mxu0 %vm541_vm1, %v5531_v32 }
  0xf8   : > { %4476 = vmatprep.mubr.msk.f32.mxu0 %vm541_vm1, %v5554_v40 }
  0xf9   : > { %4251 = vmatmul.mubr.msk.f32.gmra.mrb[22].mxu1 %vm541_vm1, %v5742_v24 }
  0xfa   : > { %4253 = vmatprep.mubr.msk.f32.mxu1 %vm541_vm1, %v5777_v9 }
  0xfb   : > { %4477 = vmatmul.mubr.msk.f32.gmra.mrb[6].mxu0 %vm541_vm1, %v5557_v41 }
  0xfc   : > { %4479 = vmatprep.mubr.msk.f32.mxu0 %vm541_vm1, %v5583_v49 }
  0xfd   : > { %4254 = vmatmul.mubr.msk.f32.gmra.mrb[24].mxu1 %vm541_vm1, %v5780_v10 }
  0xfe   : > { %4256 = vmatprep.mubr.msk.f32.mxu1 %vm541_vm1, %v5813_v45 }
  0xff   : > { %4480 = vmatmul.mubr.msk.f32.gmra.mrb[8].mxu0 %vm541_vm1, %v5586_v50 }
 0x100   : > { %4482 = vmatprep.mubr.msk.f32.mxu0 %vm541_vm1, %v5609_v57 }
 0x101   : > { %4257 = vmatmul.mubr.msk.f32.gmra.mrb[26].mxu1 %vm541_vm1, %v5816_v12 }
 0x102   : > { %4259 = vmatprep.mubr.msk.f32.mxu1 %vm541_vm1, %v5848_v20 }
 0x103   : > { %4483 = vmatmul.mubr.msk.f32.gmra.mrb[10].mxu0 %vm541_vm1, %v5612_v58 }
 0x104   : > { %4485 = vmatprep.mubr.msk.f32.mxu0 %vm541_vm1, %v5638_v5 }
 0x105   : > { %4260 = vmatmul.mubr.msk.f32.gmra.mrb[28].mxu1 %vm541_vm1, %v5851_v53 }
 0x106   : > { %4262 = vmatprep.mubr.msk.f32.mxu1 %vm541_vm1, %v5883_v38 }
 0x107   : > { %4486 = vmatmul.mubr.msk.f32.gmra.mrb[12].mxu0 %vm541_vm1, %v5641_v7 }
 0x108   : > { %4488 = vmatprep.mubr.msk.f32.mxu0 %vm541_vm1, %v5679_v28 }
 0x109   : > { %4263 = vmatmul.mubr.msk.f32.gmra.mrb[30].mxu1 %vm541_vm1, %v5886_v43 }
 0x10a   : > { %4267 = vmatprep.mubr.msk.f32.mxu1 %vm541_vm1, %v1123_v62  ;;  %v6243_v62 = vld [vmem:[%s5459_s29 + $0x20] sm:$0xff] }
 0x10b   : > { %4489 = vmatmul.mubr.msk.f32.gmra.mrb[14].mxu0 %vm541_vm1, %v5682_v29 }
 0x10c   : > { %4491 = vmatprep.mubr.msk.f32.mxu0 %vm541_vm1, %v5707_v52 }
 0x10d   : > { %4268 = vmatmul.mubr.msk.f32.vlgmr.msra.gmra.mrb[0].mxu1 %vm541_vm1, %v1125_v2  ;;  %v6976_v2 = vld [vmem:[#allocation22_spill] sm:$0xff] }
 0x10e   : > { %4316 = vmatpush3.msra.mxu1 %v5980_v23  ;;  %4270 = vmatprep.mubr.msk.f32.mxu1 %vm541_vm1, %v5702_v46  ;;  %v6970_v46 = vld [vmem:[#allocation42_spill] sm:$0xff] }
 0x10f   : > { %4492 = vmatmul.mubr.msk.f32.gmra.mrb[16].mxu0 %vm541_vm1, %v5710_v54  ;;  %4615 = vmatprep.subr.mxu1 %v5469_v1  ;;  %v6972_v23 = vld [vmem:[#allocation46_spill] sm:$0xff] }
 0x110   : > { %4494 = vmatprep.mubr.msk.f32.mxu0 %vm541_vm1, %v5739_v22 }
 0x111   : > { %4271 = vmatmul.mubr.msk.f32.gmra.mrb[2].mxu1 %vm541_vm1, %v5723_v63  ;;  %v6971_v63 = vld [vmem:[#allocation44_spill] sm:$0xff] }
 0x112   : > { %4273 = vmatprep.mubr.msk.f32.mxu1 %vm541_vm1, %v5734_v21 }
 0x113   : > { %4495 = vmatmul.mubr.msk.f32.gmra.mrb[18].mxu0 %vm541_vm1, %v5742_v24 }
 0x114   : > { %4497 = vmatprep.mubr.msk.f32.mxu0 %vm541_vm1, %v5777_v9 }
 0x115   : > { %4274 = vmatmul.mubr.msk.f32.gmra.mrb[4].mxu1 %vm541_vm1, %v6968_v3 }
 0x116   : > { %4276 = vmatprep.mubr.msk.f32.mxu1 %vm541_vm1, %v6969_v11 }
 0x117   : > { %4498 = vmatmul.mubr.msk.f32.gmra.mrb[20].mxu0 %vm541_vm1, %v5780_v10 }
 0x118   : > { %4500 = vmatprep.mubr.msk.f32.mxu0 %vm541_vm1, %v5813_v45 }
 0x119   : > { %4277 = vmatmul.mubr.msk.f32.gmra.mrb[6].mxu1 %vm541_vm1, %v6970_v46 }
 0x11a   : > { %4279 = vmatprep.mubr.msk.f32.mxu1 %vm541_vm1, %v6971_v63 }
 0x11b   : > { %4501 = vmatmul.mubr.msk.f32.gmra.mrb[22].mxu0 %vm541_vm1, %v5816_v12 }
 0x11c   : > { %4503 = vmatprep.mubr.msk.f32.mxu0 %vm541_vm1, %v5848_v20 }
 0x11d   : > { %4280 = vmatmul.mubr.msk.f32.gmra.mrb[8].mxu1 %vm541_vm1, %v6972_v23 }
 0x11e   : > { %4282 = vmatprep.mubr.msk.f32.mxu1 %vm541_vm1, %v6973_v56 }
 0x11f   : > { %4504 = vmatmul.mubr.msk.f32.gmra.mrb[24].mxu0 %vm541_vm1, %v5851_v53 }
 0x120   : > { %4506 = vmatprep.mubr.msk.f32.mxu0 %vm541_vm1, %v5883_v38 }
 0x121   : > { %4283 = vmatmul.mubr.msk.f32.gmra.mrb[10].mxu1 %vm541_vm1, %v6974_v30 }
 0x122   : > { %4285 = vmatprep.mubr.msk.f32.mxu1 %vm541_vm1, %v5878_v35 }
 0x123   : > { %4507 = vmatmul.mubr.msk.f32.gmra.mrb[26].mxu0 %vm541_vm1, %v5886_v43  ;;  %v6979_v43 = vld [vmem:[#allocation25_spill] sm:$0xff] }
 0x124   : > { %4509 = vmatprep.mubr.msk.f32.mxu0 %vm541_vm1, %v6053_v8 }
 0x125   : > { %4286 = vmatmul.mubr.msk.f32.gmra.mrb[12].mxu1 %vm541_vm1, %v6975_v19 }
 0x126   : > { %4288 = vmatprep.mubr.msk.f32.mxu1 %vm541_vm1, %v5913_v37 }
 0x127   : > { %4510 = vmatmul.mubr.msk.f32.gmra.mrb[28].mxu0 %vm541_vm1, %v6056_v6 }
 0x128   : > { %4512 = vmatprep.mubr.msk.f32.mxu0 %vm541_vm1, %v6232_v27 }
 0x129   : > { %4289 = vmatmul.mubr.msk.f32.gmra.mrb[14].mxu1 %vm541_vm1, %v5930_v39 }
 0x12a   : > { %4291 = vmatprep.mubr.msk.f32.mxu1 %vm541_vm1, %v5937_v13 }
 0x12b   : > { %4513 = vmatmul.mubr.msk.f32.gmra.mrb[30].mxu0 %vm541_vm1, %v6243_v62 }
 0x12c   : > { %4517 = vmatprep.mubr.msk.f32.mxu0 %vm541_vm1, %v6976_v2  ;;  %v6980_v2 = vld [vmem:[#allocation26_spill] sm:$0xff] }
 0x12d   : > { %4292 = vmatmul.mubr.msk.f32.gmra.mrb[16].mxu1 %vm541_vm1, %v5953_v17 }
 0x12e   : > { %4294 = vmatprep.mubr.msk.f32.mxu1 %vm541_vm1, %v5957_v60 }
 0x12f   : > { %4518 = vmatmul.mubr.msk.f32.vlgmr.msra.gmra.mrb[0].mxu0 %vm541_vm1, %v6977_v4  ;;  %v6981_v4 = vld [vmem:[#allocation27_spill] sm:$0xff] }
 0x130   : > { %4566 = vmatpush3.msra.mxu0 %v6112_v36  ;;  %4520 = vmatprep.mubr.msk.f32.mxu0 %vm541_vm1, %v6978_v61  ;;  %v6982_v61 = vld [vmem:[#allocation28_spill] sm:$0xff]  ;;  %v6984_v36 = vld [vmem:[#allocation30_spill] sm:$0xff] }
 0x131   : > { %4295 = vmatmul.mubr.msk.f32.gmra.mrb[18].mxu1 %vm541_vm1, %v5970_v44 }
 0x132   : > { %4297 = vmatprep.mubr.msk.f32.mxu1 %vm541_vm1, %v5974_v0 }
 0x133   : > { %4521 = vmatmul.mubr.msk.f32.gmra.mrb[2].mxu0 %vm541_vm1, %v6979_v43  ;;  %v6983_v43 = vld [vmem:[#allocation29_spill] sm:$0xff] }
 0x134   : > { %4523 = vmatprep.mubr.msk.f32.mxu0 %vm541_vm1, %v6980_v2  ;;  %v6985_v2 = vld [vmem:[#allocation60_spill] sm:$0xff] }
 0x135   : > { %4298 = vmatmul.mubr.msk.f32.gmra.mrb[20].mxu1 %vm541_vm1, %v5990_v16 }
 0x136   : > { %4300 = vmatprep.mubr.msk.f32.mxu1 %vm541_vm1, %v5994_v48  ;;  %v6987_v48 = vld [vmem:[#allocation61_spill] sm:$0xff] }
 0x137   : > { %4524 = vmatmul.mubr.msk.f32.gmra.mrb[4].mxu0 %vm541_vm1, %v6981_v4  ;;  %v6986_v4 = vld [vmem:[#allocation31_spill] sm:$0xff] }
 0x138   : > { %4526 = vmatprep.mubr.msk.f32.mxu0 %vm541_vm1, %v6982_v61  ;;  %v6988_v61 = vld [vmem:[#allocation32_spill] sm:$0xff] }
 0x139   : > { %4301 = vmatmul.mubr.msk.f32.gmra.mrb[22].mxu1 %vm541_vm1, %v6008_v55 }
 0x13a   : > { %4303 = vmatprep.mubr.msk.f32.mxu1 %vm541_vm1, %v6012_v14 }
 0x13b   : > { %4527 = vmatmul.mubr.msk.f32.gmra.mrb[6].mxu0 %vm541_vm1, %v6983_v43  ;;  %v6989_v43 = vld [vmem:[#allocation33_spill] sm:$0xff] }
 0x13c   : > { %4529 = vmatprep.mubr.msk.f32.mxu0 %vm541_vm1, %v6984_v36  ;;  %v6990_v36 = vld [vmem:[#allocation34_spill] sm:$0xff] }
 0x13d   : > { %4304 = vmatmul.mubr.msk.f32.gmra.mrb[24].mxu1 %vm541_vm1, %v6985_v2 }
 0x13e   : > { %4306 = vmatprep.mubr.msk.f32.mxu1 %vm541_vm1, %v6987_v48 }
 0x13f   : > { %4530 = vmatmul.mubr.msk.f32.gmra.mrb[8].mxu0 %vm541_vm1, %v6986_v4  ;;  %v6991_v4 = vld [vmem:[#allocation35_spill] sm:$0xff] }
 0x140   : > { %4532 = vmatprep.mubr.msk.f32.mxu0 %vm541_vm1, %v6988_v61  ;;  %v6992_v61 = vld [vmem:[#allocation36_spill] sm:$0xff] }
 0x141   : > { %4307 = vmatmul.mubr.msk.f32.gmra.mrb[26].mxu1 %vm541_vm1, %v6042_v34  ;;  %v6368_v34 = vld [vmem:[%s5459_s29 + $0x28] sm:$0x3] }
 0x142   : > { %4309 = vmatprep.mubr.msk.f32.mxu1 %vm541_vm1, %v6046_v33  ;;  %v6994_v33 = vld [vmem:[#allocation20_spill] sm:$0xff] }
 0x143   : > { %4533 = vmatmul.mubr.msk.f32.gmra.mrb[10].mxu0 %vm541_vm1, %v6989_v43  ;;  %v6993_v43 = vld [vmem:[#allocation37_spill] sm:$0xff] }
 0x144   : > { %4535 = vmatprep.mubr.msk.f32.mxu0 %vm541_vm1, %v6990_v36  ;;  %v6995_v36 = vld [vmem:[#allocation39_spill] sm:$0xff] }
 0x145   : > { %4310 = vmatmul.mubr.msk.f32.gmra.mrb[28].mxu1 %vm541_vm1, %v6065_v59  ;;  %v6996_v59 = vld [vmem:[#allocation21_spill] sm:$0xff] }
 0x146   : > { %4312 = vmatprep.mubr.msk.f32.mxu1 %vm541_vm1, %v6069_v42  ;;  %v7005_v42 = vld [vmem:[#allocation56_spill] sm:$0xff] }
 0x147   : > { %4536 = vmatmul.mubr.msk.f32.gmra.mrb[12].mxu0 %vm541_vm1, %v6991_v4  ;;  %v6997_v4 = vld [vmem:[#allocation41_spill] sm:$0xff] }
 0x148   : > { %4538 = vmatprep.mubr.msk.f32.mxu0 %vm541_vm1, %v6992_v61 }
 0x149   : > { %4313 = vmatmul.mubr.msk.f32.gmra.mrb[30].mxu1 %vm541_vm1, %v6085_v47  ;;  %v6998_v47 = vld [vmem:[#allocation43_spill] sm:$0xff] }
 0x14a   : > { %4317 = vmatprep.mubr.msk.f32.mxu1 %vm541_vm1, %v6994_v33  ;;  %v6999_v33 = vld [vmem:[#allocation45_spill] sm:$0xff] }
 0x14b   : > { %4539 = vmatmul.mubr.msk.f32.gmra.mrb[14].mxu0 %vm541_vm1, %v6993_v43 }
 0x14c   : > { %4541 = vmatprep.mubr.msk.f32.mxu0 %vm541_vm1, %v6995_v36 }
 0x14d   : > { %4318 = vmatmul.mubr.msk.f32.vlgmr.msra.gmra.mrb[0].mxu1 %vm541_vm1, %v6996_v59  ;;  %v7000_v59 = vld [vmem:[#allocation47_spill] sm:$0xff] }
 0x14e   : > { %4616 = vmatpush3.msra.mxu1 %v5469_v1  ;;  %4320 = vmatprep.mubr.msk.f32.mxu1 %vm541_vm1, %v5497_v15  ;;  %v7001_v1 = vld [vmem:[#allocation49_spill] sm:$0xff]  ;;  %v7002_v15 = vld [vmem:[#allocation51_spill] sm:$0xff] }
 0x14f   : > { %4542 = vmatmul.mubr.msk.f32.gmra.mrb[16].mxu0 %vm541_vm1, %v6997_v4 }
 0x150   : > { %4544 = vmatprep.mubr.msk.f32.mxu0 %vm541_vm1, %v6998_v47 }
 0x151   : > { %4321 = vmatmul.mubr.msk.f32.gmra.mrb[2].mxu1 %vm541_vm1, %v5502_v18  ;;  %v7003_v18 = vld [vmem:[#allocation53_spill] sm:$0xff] }
 0x152   : > { %4323 = vmatprep.mubr.msk.f32.mxu1 %vm541_vm1, %v5514_v25  ;;  %v7004_v25 = vld [vmem:[#allocation55_spill] sm:$0xff] }
 0x153   : > { %4545 = vmatmul.mubr.msk.f32.gmra.mrb[18].mxu0 %vm541_vm1, %v6999_v33 }
 0x154   : > { %4547 = vmatprep.mubr.msk.f32.mxu0 %vm541_vm1, %v7000_v59 }
 0x155   : > { %4324 = vmatmul.mubr.msk.f32.gmra.mrb[4].mxu1 %vm541_vm1, %v5517_v26  ;;  %v1790_v26 = vrot.slane %v6053_v8, 1 }
 0x156   : > { %4326 = vmatprep.mubr.msk.f32.mxu1 %vm541_vm1, %v5528_v31  ;;  %v1791_v31 = vrot.slane %v6056_v6, 1 }
 0x157   : > { %4548 = vmatmul.mubr.msk.f32.gmra.mrb[20].mxu0 %vm541_vm1, %v7001_v1 }
 0x158   : > { %4550 = vmatprep.mubr.msk.f32.mxu0 %vm541_vm1, %v7002_v15  ;;  %v6365_v15 = vsel %vm458_vm0, %v1790_v26, %v1791_v31 }
 0x159   : > { %4327 = vmatmul.mubr.msk.f32.gmra.mrb[6].mxu1 %vm541_vm1, %v5531_v32  ;;  %v7006_v32 = vld [vmem:[#allocation57_spill] sm:$0xff] }
 0x15a   : > { %4329 = vmatprep.mubr.msk.f32.mxu1 %vm541_vm1, %v5554_v40  ;;  %v1793_v40 = vrot.slane %v6074_v51, 1  ;;  %v2595_v51 = vrot.slane %v6368_v34, 1 }
 0x15b   : > { %4551 = vmatmul.mubr.msk.f32.gmra.mrb[22].mxu0 %vm541_vm1, %v7003_v18  ;;  %v2593_v18 = vrot.slane %v6243_v62, 1 }
 0x15c   : > { %4553 = vmatprep.mubr.msk.f32.mxu0 %vm541_vm1, %v7004_v25  ;;  %v2592_v25 = vrot.slane %v6232_v27, 1 }
 0x15d   : > { %4330 = vmatmul.mubr.msk.f32.gmra.mrb[8].mxu1 %vm541_vm1, %v5557_v41  ;;  %v7007_v41 = vld [vmem:[#allocation58_spill] sm:$0xff] }
 0x15e   : > { %4332 = vmatprep.mubr.msk.f32.mxu1 %vm541_vm1, %v5583_v49  ;;  %v6379_v49 = vsel %vm458_vm0, %v1791_v31, %v1793_v40  ;;  %v2594_v26 = vsel %vm458_vm0, %v2592_v25, %v2593_v18 }
 0x15f   : > { %4554 = vmatmul.mubr.msk.f32.gmra.mrb[24].mxu0 %vm541_vm1, %v7005_v42 }
 0x160   : > { %4556 = vmatprep.mubr.msk.f32.mxu0 %vm541_vm1, %v7006_v32 }
 0x161   : > { %4333 = vmatmul.mubr.msk.f32.gmra.mrb[10].mxu1 %vm541_vm1, %v5586_v50  ;;  %v2596_v50 = vsel %vm458_vm0, %v2593_v18, %v2595_v51 }
 0x162   : > { %4335 = vmatprep.mubr.msk.f32.mxu1 %vm541_vm1, %v5609_v57  ;;  %v7011_v57 = vld [vmem:[#allocation51_spill] sm:$0xff] }
 0x163   : > { %4557 = vmatmul.mubr.msk.f32.gmra.mrb[26].mxu0 %vm541_vm1, %v7007_v41 }
 0x164   : > { %4559 = vmatprep.mubr.msk.f32.mxu0 %vm541_vm1, %v6365_v15 }
 0x165   : > { %4336 = vmatmul.mubr.msk.f32.gmra.mrb[12].mxu1 %vm541_vm1, %v5612_v58  ;;  %v7012_v58 = vld [vmem:[#allocation63_spill] sm:$0xff] }
 0x166   : > { %4338 = vmatprep.mubr.msk.f32.mxu1 %vm541_vm1, %v5638_v5  ;;  %v7013_v5 = vld [vmem:[#allocation53_spill] sm:$0xff] }
 0x167   : > { %4560 = vmatmul.mubr.msk.f32.gmra.mrb[28].mxu0 %vm541_vm1, %v6379_v49 }
 0x168   : > { %4562 = vmatprep.mubr.msk.f32.mxu0 %vm541_vm1, %v2594_v26 }
 0x169   : > { %4339 = vmatmul.mubr.msk.f32.gmra.mrb[14].mxu1 %vm541_vm1, %v5641_v7  ;;  %v7014_v7 = vld [vmem:[#allocation64_spill] sm:$0xff] }
 0x16a   : > { %4341 = vmatprep.mubr.msk.f32.mxu1 %vm541_vm1, %v5679_v28  ;;  %v2860_v28 = vrot.slane %v6232_v27, 2 }
 0x16b   : > { %4563 = vmatmul.mubr.msk.f32.gmra.mrb[30].mxu0 %vm541_vm1, %v2596_v50 }
 0x16c   : > { %4567 = vmatprep.mubr.msk.f32.mxu0 %vm541_vm1, %v5734_v21  ;;  %v2863_v21 = vrot.slane %v6368_v34, 2 }
 0x16d   : > { %4342 = vmatmul.mubr.msk.f32.gmra.mrb[16].mxu1 %vm541_vm1, %v5682_v29  ;;  %v2861_v29 = vrot.slane %v6243_v62, 2 }
 0x16e   : > { %4344 = vmatprep.mubr.msk.f32.mxu1 %vm541_vm1, %v5707_v52  ;;  %v7017_v52 = vld [vmem:[#allocation66_spill] sm:$0xff] }
 0x16f   : > { %4568 = vmatmul.mubr.msk.f32.vlgmr.msra.gmra.mrb[0].mxu0 %vm541_vm1, %v6968_v3 }
 0x170   : > { %4570 = vmatprep.mubr.msk.f32.mxu0 %vm541_vm1, %v6969_v11 }
 0x171   : > { %4345 = vmatmul.mubr.msk.f32.gmra.mrb[18].mxu1 %vm541_vm1, %v5710_v54  ;;  %v7018_v54 = vld [vmem:[#allocation67_spill] sm:$0xff] }
 0x172   : > { %4347 = vmatprep.mubr.msk.f32.mxu1 %vm541_vm1, %v5739_v22  ;;  %v7016_v22 = vld [vmem:[#allocation65_spill] sm:$0xff] }
 0x173   : > { %4571 = vmatmul.mubr.msk.f32.gmra.mrb[2].mxu0 %vm541_vm1, %v6970_v46 }
 0x174   : > { %4573 = vmatprep.mubr.msk.f32.mxu0 %vm541_vm1, %v6971_v63 }
 0x175   : > { %4348 = vmatmul.mubr.msk.f32.gmra.mrb[20].mxu1 %vm541_vm1, %v5742_v24  ;;  %v2862_v24 = vsel %vm1120_vm2, %v2860_v28, %v2861_v29 }
 0x176   : > { %4350 = vmatprep.mubr.msk.f32.mxu1 %vm541_vm1, %v5777_v9  ;;  %v7015_v9 = vld [vmem:[#allocation55_spill] sm:$0xff] }
 0x177   : > { %4574 = vmatmul.mubr.msk.f32.gmra.mrb[4].mxu0 %vm541_vm1, %v6972_v23 }
 0x178   : > { %4576 = vmatprep.mubr.msk.f32.mxu0 %vm541_vm1, %v6973_v56 }
 0x179   : > { %4351 = vmatmul.mubr.msk.f32.gmra.mrb[22].mxu1 %vm541_vm1, %v5780_v10  ;;  %v7019_v10 = vld [vmem:[#allocation68_spill] sm:$0xff] }
 0x17a   : > { %4353 = vmatprep.mubr.msk.f32.mxu1 %vm541_vm1, %v5813_v45  ;;  %v7008_v45 = vld [vmem:[#allocation52_spill] sm:$0xff] }
 0x17b   : > { %4577 = vmatmul.mubr.msk.f32.gmra.mrb[6].mxu0 %vm541_vm1, %v6974_v30 }
 0x17c   : > { %4579 = vmatprep.mubr.msk.f32.mxu0 %vm541_vm1, %v5878_v35 }
 0x17d   : > { %4354 = vmatmul.mubr.msk.f32.gmra.mrb[24].mxu1 %vm541_vm1, %v5816_v12  ;;  %v2864_v12 = vsel %vm1120_vm2, %v2861_v29, %v2863_v21 }
 0x17e   : > { %4356 = vmatprep.mubr.msk.f32.mxu1 %vm541_vm1, %v5848_v20 }
 0x17f   : > { %4580 = vmatmul.mubr.msk.f32.gmra.mrb[8].mxu0 %vm541_vm1, %v6975_v19 }
 0x180   : > { %4582 = vmatprep.mubr.msk.f32.mxu0 %vm541_vm1, %v5913_v37 }
 0x181   : > { %4357 = vmatmul.mubr.msk.f32.gmra.mrb[26].mxu1 %vm541_vm1, %v5851_v53 }
 0x182   : > { %4359 = vmatprep.mubr.msk.f32.mxu1 %vm541_vm1, %v5883_v38 }
 0x183   : > { %4583 = vmatmul.mubr.msk.f32.gmra.mrb[10].mxu0 %vm541_vm1, %v5930_v39 }
 0x184   : > { %4585 = vmatprep.mubr.msk.f32.mxu0 %vm541_vm1, %v5937_v13 }
 0x185   : > { %4360 = vmatmul.mubr.msk.f32.gmra.mrb[28].mxu1 %vm541_vm1, %v7008_v45 }
 0x186   : > { %4362 = vmatprep.mubr.msk.f32.mxu1 %vm541_vm1, %v6053_v8  ;;  %v7009_v8 = vld [vmem:[#allocation59_spill] sm:$0xff] }
 0x187   : > { %4586 = vmatmul.mubr.msk.f32.gmra.mrb[12].mxu0 %vm541_vm1, %v5953_v17 }
 0x188   : > { %4588 = vmatprep.mubr.msk.f32.mxu0 %vm541_vm1, %v5957_v60 }
 0x189   : > { %4363 = vmatmul.mubr.msk.f32.gmra.mrb[30].mxu1 %vm541_vm1, %v6056_v6  ;;  %v7010_v6 = vld [vmem:[#allocation62_spill] sm:$0xff] }
 0x18a   : > { %4391 = vmatprep.mubr.msk.f32.mxu1 %vm541_vm1, %v6992_v61 }
 0x18b   : > { %4589 = vmatmul.mubr.msk.f32.gmra.mrb[14].mxu0 %vm541_vm1, %v5970_v44 }
 0x18c   : > { %4591 = vmatprep.mubr.msk.f32.mxu0 %vm541_vm1, %v5974_v0 }
 0x18d   : > { %4392 = vmatmul.mubr.msk.f32.vlgmr.msra.gmra.mrb[16].mxu1 %vm541_vm1, %v6993_v43 }
 0x18e   : > { %4394 = vmatprep.mubr.msk.f32.mxu1 %vm541_vm1, %v6995_v36 }
 0x18f   : > { %4592 = vmatmul.mubr.msk.f32.gmra.mrb[16].mxu0 %vm541_vm1, %v5990_v16 }
 0x190   : > { %4594 = vmatprep.mubr.msk.f32.mxu0 %vm541_vm1, %v7009_v8 }
 0x191   : > { %4395 = vmatmul.mubr.msk.f32.gmra.mrb[18].mxu1 %vm541_vm1, %v6997_v4 }
 0x192   : > { %4397 = vmatprep.mubr.msk.f32.mxu1 %vm541_vm1, %v6998_v47 }
 0x193   : > { %4595 = vmatmul.mubr.msk.f32.gmra.mrb[18].mxu0 %vm541_vm1, %v6008_v55 }
 0x194   : > { %4597 = vmatprep.mubr.msk.f32.mxu0 %vm541_vm1, %v6012_v14 }
 0x195   : > { %4398 = vmatmul.mubr.msk.f32.gmra.mrb[20].mxu1 %vm541_vm1, %v6999_v33 }
 0x196   : > { %4400 = vmatprep.mubr.msk.f32.mxu1 %vm541_vm1, %v7000_v59 }
 0x197   : > { %4598 = vmatmul.mubr.msk.f32.gmra.mrb[20].mxu0 %vm541_vm1, %v6985_v2 }
 0x198   : > { %4600 = vmatprep.mubr.msk.f32.mxu0 %vm541_vm1, %v6987_v48 }
 0x199   : > { %4401 = vmatmul.mubr.msk.f32.gmra.mrb[22].mxu1 %vm541_vm1, %v7001_v1 }
 0x19a   : > { %4403 = vmatprep.mubr.msk.f32.mxu1 %vm541_vm1, %v7011_v57 }
 0x19b   : > { %4601 = vmatmul.mubr.msk.f32.gmra.mrb[22].mxu0 %vm541_vm1, %v7010_v6 }
 0x19c   : > { %4603 = vmatprep.mubr.msk.f32.mxu0 %vm541_vm1, %v7012_v58 }
 0x19d   : > { %4404 = vmatmul.mubr.msk.f32.gmra.mrb[24].mxu1 %vm541_vm1, %v7013_v5 }
 0x19e   : > { %4406 = vmatprep.mubr.msk.f32.mxu1 %vm541_vm1, %v7015_v9 }
 0x19f   : > { %4604 = vmatmul.mubr.msk.f32.gmra.mrb[24].mxu0 %vm541_vm1, %v7014_v7 }
 0x1a0   : > { %4606 = vmatprep.mubr.msk.f32.mxu0 %vm541_vm1, %v7016_v22 }
 0x1a1   : > { %4407 = vmatmul.mubr.msk.f32.gmra.mrb[26].mxu1 %vm541_vm1, %v7005_v42 }
 0x1a2   : > { %4409 = vmatprep.mubr.msk.f32.mxu1 %vm541_vm1, %v7006_v32 }
 0x1a3   : > { %4607 = vmatmul.mubr.msk.f32.gmra.mrb[26].mxu0 %vm541_vm1, %v7017_v52 }
 0x1a4   : > { %4609 = vmatprep.mubr.msk.f32.mxu0 %vm541_vm1, %v7018_v54 }
 0x1a5   : > { %4410 = vmatmul.mubr.msk.f32.gmra.mrb[28].mxu1 %vm541_vm1, %v7007_v41 }
 0x1a6   : > { %4412 = vmatprep.mubr.msk.f32.mxu1 %vm541_vm1, %v6365_v15 }
 0x1a7   : > { %4610 = vmatmul.mubr.msk.f32.gmra.mrb[28].mxu0 %vm541_vm1, %v7019_v10 }
 0x1a8   : > { %4612 = vmatprep.mubr.msk.f32.mxu0 %vm541_vm1, %v2862_v24 }
 0x1a9   : > { %4413 = vmatmul.mubr.msk.f32.gmra.mrb[30].mxu1 %vm541_vm1, %v6379_v49 }
 0x1ab   : > { %4613 = vmatmul.mubr.msk.f32.gmra.mrb[30].mxu0 %vm541_vm1, %v2864_v12 }
 0x220   : > { %v4319_v38 = vpop.f32.mrb[0].mxu1 }
 0x221   : > { %v1598_v20 = vpop.f32.mrb[1].mxu1 }
 0x224   : > { %v4322_v53 = vpop.f32.mrb[2].mxu1 }
 0x225   : > { %v1608_v35 = vpop.f32.mrb[3].mxu1 }
 0x228   : > { %v4325_v13 = vpop.f32.mrb[4].mxu1 }
 0x229   : > { %v1618_v37 = vpop.f32.mrb[5].mxu1 }
 0x22c   : > { %v4328_v39 = vpop.f32.mrb[6].mxu1 }
 0x22d   : > { %v1628_v17 = vpop.f32.mrb[7].mxu1 }
 0x230   : > { %v6525_v60 = vpop.f32.mrb[8].mxu1 }
 0x231   : > { %v6527_v44 = vpop.f32.mrb[9].mxu1 }
 0x234   : > { %v6529_v0 = vpop.f32.mrb[10].mxu1 }
 0x235   : > { %v6531_v16 = vpop.f32.mrb[11].mxu1 }
 0x238   : > { %v6533_v48 = vpop.f32.mrb[12].mxu1 }
 0x239   : > { %v6535_v55 = vpop.f32.mrb[13].mxu1 }
 0x23c   : > { %v6537_v14 = vpop.f32.mrb[14].mxu1 }
 0x23d   : > { %v6539_v34 = vpop.f32.mrb[15].mxu1 }
 0x242   : > { %v4569_v42 = vpop.f32.mrb[0].mxu0 }
 0x243   : > { %v4617_v47 = vadd.f32 %v4569_v42, %v4319_v38  ;;  %v2937_v3 = vpop.f32.mrb[1].mxu0 }
 0x244   : > { %v4618_v11 = vadd.f32 %v2937_v3, %v1598_v20 }
 0x245   : > { %v3129_v46 = vsel %vm541_vm1, %v4617_v47, 0.0  ;;  %v3200_v63 = vmul.f32 %v4617_v47, %v4617_v47  ;;  %3302 = vst.msk [vmem:[%s6543_s17 + $0x8] sm:$0xff] %vm541_vm1, %v4617_v47 }
 0x246   : > { %v3128_v23 = vsel %vm541_vm1, %v4618_v11, 0.0  ;;  %v3199_v56 = vmul.f32 %v4618_v11, %v4618_v11  ;;  %3301 = vst.msk [vmem:[%s6543_s17] sm:$0xff] %vm541_vm1, %v4618_v11  ;;  %v4572_v30 = vpop.f32.mrb[2].mxu0 }
 0x247   : > { %v3232_v27 = vsel %vm541_vm1, %v3200_v63, 0.0  ;;  %v3130_v19 = vadd.f32 %v3129_v46, %v3128_v23  ;;  %v4619_v62 = vadd.f32 %v4572_v30, %v4322_v53  ;;  %v2947_v2 = vpop.f32.mrb[3].mxu0 }
 0x248   : > { %v3231_v61 = vsel %vm541_vm1, %v3199_v56, 0.0  ;;  %v4620_v43 = vadd.f32 %v2947_v2, %v1608_v35 }
 0x249   : > { %v3233_v36 = vadd.f32 %v3232_v27, %v3231_v61  ;;  %3304 = vst.msk [vmem:[%s6543_s17 + $0x18] sm:$0xff] %vm541_vm1, %v4619_v62  ;;  %v3202_v4 = vmul.f32 %v4619_v62, %v4619_v62  ;;  %v3133_v31 = vsel %vm541_vm1, %v4619_v62, 0.0 }
 0x24a   : > { %v3131_v33 = vsel %vm541_vm1, %v4620_v43, 0.0  ;;  %v3201_v59 = vmul.f32 %v4620_v43, %v4620_v43  ;;  %3303 = vst.msk [vmem:[%s6543_s17 + $0x10] sm:$0xff] %vm541_vm1, %v4620_v43  ;;  %v4575_v1 = vpop.f32.mrb[4].mxu0 }
 0x24b   : > { %v3132_v15 = vadd.f32 %v3131_v33, %v3130_v19  ;;  %v4621_v18 = vadd.f32 %v4575_v1, %v4325_v13  ;;  %v2957_v25 = vpop.f32.mrb[5].mxu0  ;;  %v3236_v51 = vsel %vm541_vm1, %v3202_v4, 0.0 }
 0x24c   : > { %v3234_v32 = vsel %vm541_vm1, %v3201_v59, 0.0  ;;  %v4622_v40 = vadd.f32 %v2957_v25, %v1618_v37 }
 0x24d   : > { %v3235_v41 = vadd.f32 %v3234_v32, %v3233_v36  ;;  %3306 = vst.msk [vmem:[%s6543_s17 + $0x28] sm:$0xff] %vm541_vm1, %v4621_v18  ;;  %v3134_v49 = vadd.f32 %v3133_v31, %v3132_v15  ;;  %v3204_v26 = vmul.f32 %v4621_v18, %v4621_v18  ;;  %v3137_v7 = vsel %vm541_vm1, %v4621_v18, 0.0 }
 0x24e   : > { %v3135_v50 = vsel %vm541_vm1, %v4622_v40, 0.0  ;;  %v3203_v45 = vmul.f32 %v4622_v40, %v4622_v40  ;;  %3305 = vst.msk [vmem:[%s6543_s17 + $0x20] sm:$0xff] %vm541_vm1, %v4622_v40  ;;  %v4578_v8 = vpop.f32.mrb[6].mxu0 }
 0x24f   : > { %v3136_v6 = vadd.f32 %v3135_v50, %v3134_v49  ;;  %v3237_v57 = vadd.f32 %v3236_v51, %v3235_v41  ;;  %v4623_v58 = vadd.f32 %v4578_v8, %v4328_v39  ;;  %v2967_v5 = vpop.f32.mrb[7].mxu0  ;;  %v3240_v52 = vsel %vm541_vm1, %v3204_v26, 0.0 }
 0x250   : > { %v3238_v9 = vsel %vm541_vm1, %v3203_v45, 0.0  ;;  %v4624_v22 = vadd.f32 %v2967_v5, %v1628_v17 }
 0x251   : > { %v3239_v28 = vadd.f32 %v3238_v9, %v3237_v57  ;;  %3308 = vst.msk [vmem:[%s6543_s17 + $0x38] sm:$0xff] %vm541_vm1, %v4623_v58  ;;  %v3138_v29 = vadd.f32 %v3137_v7, %v3136_v6  ;;  %v3206_v54 = vmul.f32 %v4623_v58, %v4623_v58  ;;  %v3141_v35 = vsel %vm541_vm1, %v4623_v58, 0.0 }
 0x252   : > { %v3139_v21 = vsel %vm541_vm1, %v4624_v22, 0.0  ;;  %v3205_v24 = vmul.f32 %v4624_v22, %v4624_v22  ;;  %3307 = vst.msk [vmem:[%s6543_s17 + $0x30] sm:$0xff] %vm541_vm1, %v4624_v22  ;;  %v4581_v10 = vpop.f32.mrb[8].mxu0 }
 0x253   : > { %v3140_v12 = vadd.f32 %v3139_v21, %v3138_v29  ;;  %v3241_v38 = vadd.f32 %v3240_v52, %v3239_v28  ;;  %v4625_v20 = vadd.f32 %v4581_v10, %v6525_v60  ;;  %v2977_v53 = vpop.f32.mrb[9].mxu0  ;;  %v3244_v42 = vsel %vm541_vm1, %v3206_v54, 0.0 }
 0x254   : > { %v3242_v13 = vsel %vm541_vm1, %v3205_v24, 0.0  ;;  %v4626_v37 = vadd.f32 %v2977_v53, %v6527_v44 }
 0x255   : > { %v3243_v39 = vadd.f32 %v3242_v13, %v3241_v38  ;;  %3310 = vst.msk [vmem:[%s6543_s17 + $0x48] sm:$0xff] %vm541_vm1, %v4625_v20  ;;  %v3142_v17 = vadd.f32 %v3141_v35, %v3140_v12  ;;  %v3208_v47 = vmul.f32 %v4625_v20, %v4625_v20  ;;  %v3145_v56 = vsel %vm541_vm1, %v4625_v20, 0.0 }
 0x256   : > { %v3143_v3 = vsel %vm541_vm1, %v4626_v37, 0.0  ;;  %v3207_v11 = vmul.f32 %v4626_v37, %v4626_v37  ;;  %3309 = vst.msk [vmem:[%s6543_s17 + $0x40] sm:$0xff] %vm541_vm1, %v4626_v37  ;;  %v4584_v60 = vpop.f32.mrb[10].mxu0 }
 0x257   : > { %v3144_v46 = vadd.f32 %v3143_v3, %v3142_v17  ;;  %v3245_v63 = vadd.f32 %v3244_v42, %v3243_v39  ;;  %v4627_v23 = vadd.f32 %v4584_v60, %v6529_v0  ;;  %v2987_v44 = vpop.f32.mrb[11].mxu0  ;;  %v3248_v2 = vsel %vm541_vm1, %v3208_v47, 0.0 }
 0x258   : > { %v3246_v30 = vsel %vm541_vm1, %v3207_v11, 0.0  ;;  %v4628_v27 = vadd.f32 %v2987_v44, %v6531_v16 }
 0x259   : > { %v3247_v19 = vadd.f32 %v3246_v30, %v3245_v63  ;;  %3312 = vst.msk [vmem:[%s6543_s17 + $0x58] sm:$0xff] %vm541_vm1, %v4627_v23  ;;  %v3146_v62 = vadd.f32 %v3145_v56, %v3144_v46  ;;  %v3210_v61 = vmul.f32 %v4627_v23, %v4627_v23  ;;  %v3149_v1 = vsel %vm541_vm1, %v4627_v23, 0.0 }
 0x25a   : > { %v3147_v43 = vsel %vm541_vm1, %v4628_v27, 0.0  ;;  %v3209_v36 = vmul.f32 %v4628_v27, %v4628_v27  ;;  %3311 = vst.msk [vmem:[%s6543_s17 + $0x50] sm:$0xff] %vm541_vm1, %v4628_v27  ;;  %v4587_v0 = vpop.f32.mrb[12].mxu0 }
 0x25b   : > { %v3148_v4 = vadd.f32 %v3147_v43, %v3146_v62  ;;  %v3249_v33 = vadd.f32 %v3248_v2, %v3247_v19  ;;  %v4629_v59 = vadd.f32 %v4587_v0, %v6533_v48  ;;  %v2997_v16 = vpop.f32.mrb[13].mxu0  ;;  %v3252_v32 = vsel %vm541_vm1, %v3210_v61, 0.0 }
 0x25c   : > { %v3250_v15 = vsel %vm541_vm1, %v3209_v36, 0.0  ;;  %v4630_v18 = vadd.f32 %v2997_v16, %v6535_v55 }
 0x25d   : > { %v3251_v25 = vadd.f32 %v3250_v15, %v3249_v33  ;;  %3314 = vst.msk [vmem:[%s6543_s17 + $0x68] sm:$0xff] %vm541_vm1, %v4629_v59  ;;  %v3150_v31 = vadd.f32 %v3149_v1, %v3148_v4  ;;  %v3212_v40 = vmul.f32 %v4629_v59, %v4629_v59  ;;  %v3153_v45 = vsel %vm541_vm1, %v4629_v59, 0.0 }
 0x25e   : > { %v3151_v41 = vsel %vm541_vm1, %v4630_v18, 0.0  ;;  %v3211_v49 = vmul.f32 %v4630_v18, %v4630_v18  ;;  %3313 = vst.msk [vmem:[%s6543_s17 + $0x60] sm:$0xff] %vm541_vm1, %v4630_v18  ;;  %v4590_v48 = vpop.f32.mrb[14].mxu0 }
 0x25f   : > { %v3152_v51 = vadd.f32 %v3151_v41, %v3150_v31  ;;  %v3253_v26 = vadd.f32 %v3252_v32, %v3251_v25  ;;  %v4631_v50 = vadd.f32 %v4590_v48, %v6537_v14  ;;  %v3007_v55 = vpop.f32.mrb[15].mxu0  ;;  %v3256_v7 = vsel %vm541_vm1, %v3212_v40, 0.0 }
 0x260   : > { %v3254_v8 = vsel %vm541_vm1, %v3211_v49, 0.0  ;;  %v4632_v6 = vadd.f32 %v3007_v55, %v6539_v34  ;;  %v4393_v5 = vpop.f32.mrb[16].mxu1 }
 0x261   : > { %v3255_v57 = vadd.f32 %v3254_v8, %v3253_v26  ;;  %3316 = vst.msk [vmem:[%s6543_s17 + $0x78] sm:$0xff] %vm541_vm1, %v4631_v50  ;;  %v3154_v58 = vadd.f32 %v3153_v45, %v3152_v51  ;;  %v3214_v9 = vmul.f32 %v4631_v50, %v4631_v50  ;;  %v1947_v29 = vpop.f32.mrb[17].mxu1  ;;  %v3157_v24 = vsel %vm541_vm1, %v4631_v50, 0.0 }
 0x262   : > { %v3155_v22 = vsel %vm541_vm1, %v4632_v6, 0.0  ;;  %v3213_v28 = vmul.f32 %v4632_v6, %v4632_v6  ;;  %3315 = vst.msk [vmem:[%s6543_s17 + $0x70] sm:$0xff] %vm541_vm1, %v4632_v6  ;;  %v4593_v14 = vpop.f32.mrb[16].mxu0 }
 0x263   : > { %v3156_v52 = vadd.f32 %v3155_v22, %v3154_v58  ;;  %v3257_v54 = vadd.f32 %v3256_v7, %v3255_v57  ;;  %v4633_v34 = vadd.f32 %v4593_v14, %v4393_v5  ;;  %v3017_v21 = vpop.f32.mrb[17].mxu0  ;;  %v3260_v35 = vsel %vm541_vm1, %v3214_v9, 0.0 }
 0x264   : > { %v3258_v10 = vsel %vm541_vm1, %v3213_v28, 0.0  ;;  %v4634_v12 = vadd.f32 %v3017_v21, %v1947_v29  ;;  %v4396_v53 = vpop.f32.mrb[18].mxu1 }
 0x265   : > { %v3259_v38 = vadd.f32 %v3258_v10, %v3257_v54  ;;  %3318 = vst.msk [vmem:[%s6543_s17 + $0x88] sm:$0xff] %vm541_vm1, %v4633_v34  ;;  %v3158_v20 = vadd.f32 %v3157_v24, %v3156_v52  ;;  %v3216_v13 = vmul.f32 %v4633_v34, %v4633_v34  ;;  %v1957_v42 = vpop.f32.mrb[19].mxu1  ;;  %v3161_v46 = vsel %vm541_vm1, %v4633_v34, 0.0 }
 0x266   : > { %v3159_v37 = vsel %vm541_vm1, %v4634_v12, 0.0  ;;  %v3215_v39 = vmul.f32 %v4634_v12, %v4634_v12  ;;  %3317 = vst.msk [vmem:[%s6543_s17 + $0x80] sm:$0xff] %vm541_vm1, %v4634_v12  ;;  %v4596_v17 = vpop.f32.mrb[18].mxu0 }
 0x267   : > { %v3160_v47 = vadd.f32 %v3159_v37, %v3158_v20  ;;  %v3261_v3 = vadd.f32 %v3260_v35, %v3259_v38  ;;  %v4635_v11 = vadd.f32 %v4596_v17, %v4396_v53  ;;  %v3027_v60 = vpop.f32.mrb[19].mxu0  ;;  %v3264_v27 = vsel %vm541_vm1, %v3216_v13, 0.0 }
 0x268   : > { %v3262_v63 = vsel %vm541_vm1, %v3215_v39, 0.0  ;;  %v4636_v23 = vadd.f32 %v3027_v60, %v1957_v42  ;;  %v4399_v30 = vpop.f32.mrb[20].mxu1 }
 0x269   : > { %v3263_v44 = vadd.f32 %v3262_v63, %v3261_v3  ;;  %3320 = vst.msk [vmem:[%s6543_s17 + $0x98] sm:$0xff] %vm541_vm1, %v4635_v11  ;;  %v3162_v56 = vadd.f32 %v3161_v46, %v3160_v47  ;;  %v3218_v19 = vmul.f32 %v4635_v11, %v4635_v11  ;;  %v1967_v43 = vpop.f32.mrb[21].mxu1  ;;  %v3165_v59 = vsel %vm541_vm1, %v4635_v11, 0.0 }
 0x26a   : > { %v3163_v62 = vsel %vm541_vm1, %v4636_v23, 0.0  ;;  %v3217_v2 = vmul.f32 %v4636_v23, %v4636_v23  ;;  %3319 = vst.msk [vmem:[%s6543_s17 + $0x90] sm:$0xff] %vm541_vm1, %v4636_v23  ;;  %v4599_v61 = vpop.f32.mrb[20].mxu0 }
 0x26b   : > { %v3164_v36 = vadd.f32 %v3163_v62, %v3162_v56  ;;  %v3265_v0 = vadd.f32 %v3264_v27, %v3263_v44  ;;  %v4637_v4 = vadd.f32 %v4599_v61, %v4399_v30  ;;  %v3037_v33 = vpop.f32.mrb[21].mxu0  ;;  %v3268_v31 = vsel %vm541_vm1, %v3218_v19, 0.0 }
 0x26c   : > { %v3266_v16 = vsel %vm541_vm1, %v3217_v2, 0.0  ;;  %v4638_v1 = vadd.f32 %v3037_v33, %v1967_v43  ;;  %v4402_v25 = vpop.f32.mrb[22].mxu1 }
 0x26d   : > { %v3267_v15 = vadd.f32 %v3266_v16, %v3265_v0  ;;  %3322 = vst.msk [vmem:[%s6543_s17 + $0xa8] sm:$0xff] %vm541_vm1, %v4637_v4  ;;  %v3166_v18 = vadd.f32 %v3165_v59, %v3164_v36  ;;  %v3220_v32 = vmul.f32 %v4637_v4, %v4637_v4  ;;  %v1977_v48 = vpop.f32.mrb[23].mxu1  ;;  %v3169_v45 = vsel %vm541_vm1, %v4637_v4, 0.0 }
 0x26e   : > { %v3167_v40 = vsel %vm541_vm1, %v4638_v1, 0.0  ;;  %v3219_v41 = vmul.f32 %v4638_v1, %v4638_v1  ;;  %3321 = vst.msk [vmem:[%s6543_s17 + $0xa0] sm:$0xff] %vm541_vm1, %v4638_v1  ;;  %v4602_v49 = vpop.f32.mrb[22].mxu0 }
 0x26f   : > { %v3168_v51 = vadd.f32 %v3167_v40, %v3166_v18  ;;  %v3269_v26 = vadd.f32 %v3268_v31, %v3267_v15  ;;  %v4639_v50 = vadd.f32 %v4602_v49, %v4402_v25  ;;  %v3047_v55 = vpop.f32.mrb[23].mxu0  ;;  %v3272_v7 = vsel %vm541_vm1, %v3220_v32, 0.0 }
 0x270   : > { %v3270_v8 = vsel %vm541_vm1, %v3219_v41, 0.0  ;;  %v4640_v6 = vadd.f32 %v3047_v55, %v1977_v48  ;;  %v4405_v5 = vpop.f32.mrb[24].mxu1 }
 0x271   : > { %v3271_v57 = vadd.f32 %v3270_v8, %v3269_v26  ;;  %3324 = vst.msk [vmem:[%s6543_s17 + $0xb8] sm:$0xff] %vm541_vm1, %v4639_v50  ;;  %v3170_v58 = vadd.f32 %v3169_v45, %v3168_v51  ;;  %v3222_v9 = vmul.f32 %v4639_v50, %v4639_v50  ;;  %v1987_v29 = vpop.f32.mrb[25].mxu1  ;;  %v3173_v24 = vsel %vm541_vm1, %v4639_v50, 0.0 }
 0x272   : > { %v3171_v22 = vsel %vm541_vm1, %v4640_v6, 0.0  ;;  %v3221_v28 = vmul.f32 %v4640_v6, %v4640_v6  ;;  %3323 = vst.msk [vmem:[%s6543_s17 + $0xb0] sm:$0xff] %vm541_vm1, %v4640_v6  ;;  %v4605_v14 = vpop.f32.mrb[24].mxu0 }
 0x273   : > { %v3172_v52 = vadd.f32 %v3171_v22, %v3170_v58  ;;  %v3273_v54 = vadd.f32 %v3272_v7, %v3271_v57  ;;  %v4641_v34 = vadd.f32 %v4605_v14, %v4405_v5  ;;  %v3057_v21 = vpop.f32.mrb[25].mxu0  ;;  %v3276_v35 = vsel %vm541_vm1, %v3222_v9, 0.0 }
 0x274   : > { %v3274_v10 = vsel %vm541_vm1, %v3221_v28, 0.0  ;;  %v4642_v12 = vadd.f32 %v3057_v21, %v1987_v29  ;;  %v4408_v53 = vpop.f32.mrb[26].mxu1 }
 0x275   : > { %v3275_v38 = vadd.f32 %v3274_v10, %v3273_v54  ;;  %3326 = vst.msk [vmem:[%s6543_s17 + $0xc8] sm:$0xff] %vm541_vm1, %v4641_v34  ;;  %v3174_v20 = vadd.f32 %v3173_v24, %v3172_v52  ;;  %v3224_v13 = vmul.f32 %v4641_v34, %v4641_v34  ;;  %v1997_v42 = vpop.f32.mrb[27].mxu1  ;;  %v3177_v46 = vsel %vm541_vm1, %v4641_v34, 0.0 }
 0x276   : > { %v3175_v37 = vsel %vm541_vm1, %v4642_v12, 0.0  ;;  %v3223_v39 = vmul.f32 %v4642_v12, %v4642_v12  ;;  %3325 = vst.msk [vmem:[%s6543_s17 + $0xc0] sm:$0xff] %vm541_vm1, %v4642_v12  ;;  %v4608_v17 = vpop.f32.mrb[26].mxu0 }
 0x277   : > { %v3176_v47 = vadd.f32 %v3175_v37, %v3174_v20  ;;  %v3277_v3 = vadd.f32 %v3276_v35, %v3275_v38  ;;  %v4643_v11 = vadd.f32 %v4608_v17, %v4408_v53  ;;  %v3067_v60 = vpop.f32.mrb[27].mxu0  ;;  %v3280_v27 = vsel %vm541_vm1, %v3224_v13, 0.0 }
 0x278   : > { %v3278_v63 = vsel %vm541_vm1, %v3223_v39, 0.0  ;;  %v4644_v23 = vadd.f32 %v3067_v60, %v1997_v42  ;;  %v4411_v30 = vpop.f32.mrb[28].mxu1 }
 0x279   : > { %v3279_v44 = vadd.f32 %v3278_v63, %v3277_v3  ;;  %3328 = vst.msk [vmem:[%s6543_s17 + $0xd8] sm:$0xff] %vm541_vm1, %v4643_v11  ;;  %v3178_v56 = vadd.f32 %v3177_v46, %v3176_v47  ;;  %v3226_v19 = vmul.f32 %v4643_v11, %v4643_v11  ;;  %v2007_v43 = vpop.f32.mrb[29].mxu1  ;;  %v3181_v59 = vsel %vm541_vm1, %v4643_v11, 0.0 }
 0x27a   : > { %v3179_v62 = vsel %vm541_vm1, %v4644_v23, 0.0  ;;  %v3225_v2 = vmul.f32 %v4644_v23, %v4644_v23  ;;  %3327 = vst.msk [vmem:[%s6543_s17 + $0xd0] sm:$0xff] %vm541_vm1, %v4644_v23  ;;  %v4611_v61 = vpop.f32.mrb[28].mxu0 }
 0x27b   : > { %v3180_v36 = vadd.f32 %v3179_v62, %v3178_v56  ;;  %v3281_v0 = vadd.f32 %v3280_v27, %v3279_v44  ;;  %v4645_v4 = vadd.f32 %v4611_v61, %v4411_v30  ;;  %v3077_v33 = vpop.f32.mrb[29].mxu0  ;;  %v3284_v31 = vsel %vm541_vm1, %v3226_v19, 0.0 }
 0x27c   : > { %v3282_v16 = vsel %vm541_vm1, %v3225_v2, 0.0  ;;  %v4646_v1 = vadd.f32 %v3077_v33, %v2007_v43  ;;  %v4414_v25 = vpop.f32.mrb[30].mxu1 }
 0x27d   : > { %v3283_v15 = vadd.f32 %v3282_v16, %v3281_v0  ;;  %3330 = vst.msk [vmem:[%s6543_s17 + $0xe8] sm:$0xff] %vm541_vm1, %v4645_v4  ;;  %v3182_v18 = vadd.f32 %v3181_v59, %v3180_v36  ;;  %v3228_v32 = vmul.f32 %v4645_v4, %v4645_v4  ;;  %v2017_v48 = vpop.f32.mrb[31].mxu1  ;;  %v3185_v45 = vsel %vm541_vm1, %v4645_v4, 0.0 }
 0x27e   : > { %v3183_v40 = vsel %vm541_vm1, %v4646_v1, 0.0  ;;  %v3227_v41 = vmul.f32 %v4646_v1, %v4646_v1  ;;  %3329 = vst.msk [vmem:[%s6543_s17 + $0xe0] sm:$0xff] %vm541_vm1, %v4646_v1  ;;  %v4614_v49 = vpop.f32.mrb[30].mxu0 }
 0x27f   : > { %v3184_v51 = vadd.f32 %v3183_v40, %v3182_v18  ;;  %v3285_v26 = vadd.f32 %v3284_v31, %v3283_v15  ;;  %v4647_v50 = vadd.f32 %v4614_v49, %v4414_v25  ;;  %v3087_v55 = vpop.f32.mrb[31].mxu0  ;;  %v3288_v5 = vsel %vm541_vm1, %v3228_v32, 0.0 }
 0x280   : > { %v3286_v8 = vsel %vm541_vm1, %v3227_v41, 0.0  ;;  %v4648_v6 = vadd.f32 %v3087_v55, %v2017_v48 }
 0x281   : > { %v3287_v57 = vadd.f32 %v3286_v8, %v3285_v26  ;;  %3332 = vst.msk [vmem:[%s6543_s17 + $0xf8] sm:$0xff] %vm541_vm1, %v4647_v50  ;;  %v3186_v58 = vadd.f32 %v3185_v45, %v3184_v51  ;;  %v3230_v7 = vmul.f32 %v4647_v50, %v4647_v50 }
 0x282   : > { %v3187_v9 = vsel %vm541_vm1, %v4648_v6, 0.0  ;;  %v3229_v22 = vmul.f32 %v4648_v6, %v4648_v6  ;;  %3331 = vst.msk [vmem:[%s6543_s17 + $0xf0] sm:$0xff] %vm541_vm1, %v4648_v6 }
 0x283   : > { %v3188_v28 = vadd.f32 %v3187_v9, %v3186_v58  ;;  %v3289_v14 = vadd.f32 %v3288_v5, %v3287_v57 }
 0x284   : > { %5072 = shalt.err (!%p5069_p8)
}
 0x285   : > { %s5073_s11 = scalar_lea.hbm %s6674_s25, 4096  ;;  %s5077_s12 = scalar_lea.hbm %s6812_s3, 8192 }
 0x286   : > { %p5074_p12 = scmp.ne.s32.totalorder %s6674_s25, %s5073_s11  ;;  %p5078_p6 = scmp.lt.u32.totalorder %s6674_s25, %s6812_s3 }
 0x287   : > { %p5079_p11 = scmp.lt.u32.totalorder %s5077_s12, %s5073_s11  ;;  %p5081_p5 = scmp.lt.u32.totalorder %s5073_s11, %s6674_s25 }
 0x288   : > { %p5075_p13 = pnand %p5074_p12, %p5344_p10 }
 0x289   : > { %p5080_p0 = por %p5079_p11, %p5078_p6 }
 0x28a   : > { %p5076_p3 = pneg %p5075_p13 }
 0x28b   : > { %p5082_p9 = por %p5081_p5, %p5080_p0 }
 0x28d   : > { %p5083_p1 = pnand %p5082_p9, %p5076_p3 }
 0x28f   : > { %5086 = shalt.err (!%p5083_p1)
}
 0x290   : > { %s5217_s17 = smov 128   ;;  %s5218_s14 = smov 8   ;;  %v3189_v29 = vsel %vm541_vm1, %v4647_v50, 0.0  ;;  %v3290_v52 = vsel %vm541_vm1, %v3229_v22, 0.0  ;;  %v3292_v21 = vsel %vm541_vm1, %v3230_v7, 0.0  ;;  %vm3197_vm3 = vcmask 57344  }
 0x291   : > { %4887 = dma.vmem_to_hbm [thread:$0]  (%p5344_p10), %s6676_s16, 4096, %s6674_s25, %s3334_s0, %s5217_s17, %s5217_s17, %s5218_s14   ;;  %v3190_v54 = vadd.f32 %v3189_v29, %v3188_v28  ;;  %v3291_v34 = vadd.f32 %v3290_v52, %v3289_v14 }
 0x292   : > { %s3863_s6 = sshll.u32 %s5201_s21, 4  ;;  %s341_s16 = scalar_lea.vmem [#allocation9], %s5445_s20 }
 0x293   : > { %v3191_v24 = vrot.slane %v3190_v54, 4  ;;  %v3293_v10 = vadd.f32 %v3292_v21, %v3291_v34  ;;  %s3374_s30 = sshll.u32 %s341_s16, 4  ;;  %s347_s25 = scalar_lea.vmem [#allocation11], %s5445_s20  ;;  %s6723_s30 = int_to_ptr.vmem [resolvable:$true] %s3374_s30 }
 0x294   : > { %s3388_s0 = sshll.u32 %s347_s25, 4  ;;  %s6721_s9 = scalar_lea.hbm %s6813_s4, %s3863_s6  ;;  %s6731_s0 = int_to_ptr.vmem [resolvable:$true] %s3388_s0 }
 0x295   : > { %v3192_v12 = vadd.f32 %v3191_v24, %v3190_v54  ;;  %v3294_v38 = vrot.slane %v3293_v10, 4  ;;  %s6729_s11 = scalar_lea.hbm %s6814_s5, %s3863_s6  ;;  %s6735_s15 = scalar_lea.sflag [#allocation10], %s300_s2 }
 0x296   : > { %s5087_s28 = scalar_lea.vmem %s6723_s30, 16  ;;  %s5219_s12 = smov [#allocation9]  }
 0x297   : > { %v3193_v20 = vrot.slane %v3192_v12, 2  ;;  %v3295_v53 = vadd.f32 %v3294_v38, %v3293_v10  ;;  %p5088_p2 = scmp.ne.s32.totalorder %s6723_s30, %s5087_s28  ;;  %s5091_s29 = sshll.u32 %s5219_s12, 4  ;;  %s5092_s29 = int_to_ptr.vmem [resolvable:$false] %s5091_s29 }
 0x298   : > { %s5093_s26 = scalar_lea.vmem %s5092_s29, 32  ;;  %p5094_p8 = scmp.lt.s32.totalorder %s6723_s30, %s5092_s29 }
 0x299   : > { %v3194_v35 = vadd.f32 %v3193_v20, %v3192_v12  ;;  %v3296_v13 = vrot.slane %v3295_v53, 2  ;;  %p5089_p7 = pnand %p5088_p2, %p5344_p10  ;;  %p5095_p12 = scmp.lt.s32.totalorder %s5093_s26, %s5087_s28 }
 0x29b   : > { %v3195_v37 = vrot.slane %v3194_v35, 1  ;;  %v3297_v39 = vadd.f32 %v3296_v13, %v3295_v53  ;;  %p5090_p4 = pneg %p5089_p7  ;;  %p5096_p13 = por %p5095_p12, %p5094_p8 }
 0x29d   : > { %v3298_v17 = vrot.slane %v3297_v39, 1  ;;  %v3196_v42 = vadd.f32 %v3195_v37, %v3194_v35  ;;  %p5097_p3 = pnand %p5096_p13, %p5090_p4 }
 0x29f   : > { %v3299_v47 = vadd.f32 %v3298_v17, %v3297_v39  ;;  %3198 = vst.msk [vmem:[%s341_s16] sm:$0x1] %vm3197_vm3, %v3196_v42 }
 0x2a0   : > { %5100 = shalt.err (!%p5097_p3)
}
 0x2a1   : > { %s5101_s24 = scalar_lea.hbm %s6721_s9, 16  ;;  %s5105_s14 = scalar_lea.hbm %s6813_s4, 32 }
 0x2a2   : > { %p5102_p6 = scmp.ne.s32.totalorder %s6721_s9, %s5101_s24  ;;  %p5106_p5 = scmp.lt.u32.totalorder %s6721_s9, %s6813_s4 }
 0x2a3   : > { %p5107_p9 = scmp.lt.u32.totalorder %s5105_s14, %s5101_s24  ;;  %p5109_p2 = scmp.lt.u32.totalorder %s5101_s24, %s6721_s9 }
 0x2a4   : > { %p5103_p11 = pnand %p5102_p6, %p5344_p10 }
 0x2a5   : > { %p5108_p1 = por %p5107_p9, %p5106_p5 }
 0x2a6   : > { %p5104_p0 = pneg %p5103_p11 }
 0x2a7   : > { %p5110_p7 = por %p5109_p2, %p5108_p1 }
 0x2a9   : > { %p5111_p4 = pnand %p5110_p7, %p5104_p0 }
 0x2ab   : > { %5114 = shalt.err (!%p5111_p4)
}
 0x2ac   : > { %4888 = dma.vmem_to_hbm [thread:$0]  (%p5344_p10), %s6723_s30, 16, %s6721_s9, %s6735_s15   ;;  %3300 = vst.msk [vmem:[%s347_s25] sm:$0x1] %vm3197_vm3, %v3299_v47 }
 0x2ad   : > { %s5115_s7 = scalar_lea.vmem %s6731_s0, 16  ;;  %s5220_s13 = smov [#allocation11]  }
 0x2ae   : > { %p5116_p8 = scmp.ne.s32.totalorder %s6731_s0, %s5115_s7  ;;  %s5119_s21 = sshll.u32 %s5220_s13, 4  ;;  %s5120_s21 = int_to_ptr.vmem [resolvable:$false] %s5119_s21 }
 0x2af   : > { %s5121_s8 = scalar_lea.vmem %s5120_s21, 32  ;;  %p5122_p3 = scmp.lt.s32.totalorder %s6731_s0, %s5120_s21 }
 0x2b0   : > { %p5117_p12 = pnand %p5116_p8, %p5344_p10  ;;  %p5123_p6 = scmp.lt.s32.totalorder %s5121_s8, %s5115_s7 }
 0x2b2   : > { %p5118_p13 = pneg %p5117_p12  ;;  %p5124_p11 = por %p5123_p6, %p5122_p3 }
 0x2b4   : > { %p5125_p0 = pnand %p5124_p11, %p5118_p13 }
 0x2b6   : > { %5128 = shalt.err (!%p5125_p0)
}
 0x2b7   : > { %s5129_s20 = scalar_lea.hbm %s6729_s11, 16  ;;  %s5133_s9 = scalar_lea.hbm %s6814_s5, 32 }
 0x2b8   : > { %p5130_p5 = scmp.ne.s32.totalorder %s6729_s11, %s5129_s20  ;;  %p5134_p2 = scmp.lt.u32.totalorder %s6729_s11, %s6814_s5 }
 0x2b9   : > { %p5135_p7 = scmp.lt.u32.totalorder %s5133_s9, %s5129_s20  ;;  %p5137_p8 = scmp.lt.u32.totalorder %s5129_s20, %s6729_s11 }
 0x2ba   : > { %p5131_p9 = pnand %p5130_p5, %p5344_p10 }
 0x2bb   : > { %p5136_p4 = por %p5135_p7, %p5134_p2 }
 0x2bc   : > { %p5132_p1 = pneg %p5131_p9 }
 0x2bd   : > { %p5138_p12 = por %p5137_p8, %p5136_p4 }
 0x2bf   : > { %p5139_p13 = pnand %p5138_p12, %p5132_p1 }
 0x2c1   : > { %5142 = shalt.err (!%p5139_p13)
}
 0x2c2   : > { %4889 = dma.vmem_to_hbm [thread:$0]  (%p5344_p10), %s6731_s0, 16, %s6729_s11, %s6735_s15  }
 0x2c3 PF: > { %s3400_s29 = sand.u32 1, %s5189_s18   ;;  %p7020_p3 = scmp.ne.s32.totalorder %s6902_s27, 0 }
 0x2c4   : > { %p7021_p6 = scmp.ge.s32.totalorder %s5209_s23, 2  ;;  %s3401_s26 = scalar_lea.sflag [#allocation4], %s3400_s29 }
 0x2c6   : > { %p4905_p11 = pnand %p7021_p6, %p7020_p3 }
 0x2c8   : > { %5180 = dma.done.wait (!%p4905_p11), %s3401_s26, 4096  }
 0x2c9   : > { %5182 = vsyncadd (!%p4905_p11), %s3401_s26, 4294963200  ;;  %s7022_s24 = sadd.s32 4294967294, %s5209_s23  }
 0x2ca   : > { %s3409_s2 = sand.u32 1, %s7022_s24  }
 0x2cb   : > { %s3410_s17 = scalar_lea.sflag [#allocation10], %s3409_s2 }
 0x2cc   : > { %5184 = dma.done.wait (!%p4905_p11), %s3410_s17, 32  }
 0x2cd   : > { %5186 = vsyncadd (!%p4905_p11), %s3410_s17, 4294967264  ;;  %s28_s23 = sadd.s32 1, %s5209_s23   ;;  %s7023_s10 = sld [smem:[#allocation17_spill]] }
 0x2ce   : > { %p25_p10 = scmp.ge.s32.totalorder %s28_s23, 4   ;;  %s7024_s20 = sld [smem:[#allocation19_spill]] }
 0x2cf   : > { %s7025_s0 = sld [smem:[#allocation18_spill]]  ;;  %s7026_s18 = smov %s5193_s19 }
 0x2d0   : > { %s7028_s21 = smov %s5205_s22  ;;  %27 = sbr.rel (!%p25_p10) target bundleno = 13 (0xd), region = 134 }
 0x2d3   : > { %s7027_s19 = smov %s7023_s10 }
 0x2d5   : > { %s7029_s22 = smov %s7025_s0 }
 0x2d7   :  { %3422 = vsyncpa [#allocation3], 1 }
 0x2d8   :  { %3424 = vsyncpa [#allocation3 + $0x1], 1 }
 0x2d9   :  { %3425 = vsyncpa [#allocation6], 1 }
 0x2da   :  { %3427 = vsyncpa [#allocation6 + $0x1], 1 }
 0x2db   :  { %3428 = vsyncpa [#allocation4], 1 }
 0x2dc   :  { %3430 = vsyncpa [#allocation4 + $0x1], 1 }
 0x2dd   :  { %3431 = vsyncpa [#allocation10], 1 }
 0x2de   :  { %3433 = vsyncpa [#allocation10 + $0x1], 1 }

// kernel: up_forward.6
= control target key start
LH: loop header
LB: loop body
LE: loop exit
PB: predicated region body
PF: predicated region fallthrough
CT: control target
= control target key end

     0   :  { %s7202_s0 = inlined_call_operand.hbm [shape: f32[2,18,18,8], index: 0, kind: input, shape index: {}]   ;;  %s7203_s1 = inlined_call_operand.hbm [shape: f32[2,1,2,18,8], index: 1, kind: input, shape index: {}]   ;;  %s7204_s2 = inlined_call_operand.hbm [shape: f32[9,8,32], index: 2, kind: input, shape index: {}]   ;;  %s7205_s3 = inlined_call_operand.hbm [shape: f32[1,8], index: 3, kind: input, shape index: {}]   ;;  %s7206_s4 = inlined_call_operand.hbm [shape: f32[1,8], index: 4, kind: input, shape index: {}]   ;;  %s7207_s5 = inlined_call_operand.hbm [shape: f32[2,1,1,32], index: 5, kind: output, shape index: {0}]   ;;  %s7208_s6 = inlined_call_operand.hbm [shape: f32[2,1,1,32], index: 6, kind: output, shape index: {1}]  }
   0x1   :  { %7301 = sst [smem:[#allocation76_spill]] %s7202_s0 }
   0x2   :  { %7302 = sst [smem:[#allocation77_spill]] %s7204_s2 }
   0x3   :  { %7303 = sst [smem:[#allocation78_spill]] %s7205_s3 }
   0x4   :  { %7304 = sst [smem:[#allocation79_spill]] %s7206_s4 }
   0x5   :  { %12 = vsyncpa [#allocation3], 0 }
   0x6   :  { %14 = vsyncpa [#allocation3 + $0x1], 0 }
   0x7   :  { %15 = vsyncpa [#allocation6], 0 }
   0x8   :  { %17 = vsyncpa [#allocation6 + $0x1], 0 }
   0x9   :  { %18 = vsyncpa [#allocation9], 0 }
   0xa   :  { %19 = vsyncpa [#allocation4], 0 }
   0xb   :  { %21 = vsyncpa [#allocation4 + $0x1], 0 }
   0xc   :  { %22 = vsyncpa [#allocation13], 0 }
   0xd   :  { %24 = vsyncpa [#allocation13 + $0x1], 0  ;;  %s5563_s21 = smov 0   ;;  %s5565_s22 = smov 0  }
   0xe   :  { %s5567_s23 = smov 0   ;;  %s5569_s24 = smov 0  }
   0xf   :  { %s5571_s25 = smov 0   ;;  %s5573_s26 = smov 0  }
  0x10 LB: > { %7305 = sst [smem:[#allocation20_spill]] %s5497_s21  ;;  %s5594_s27 = sadd.s32 4294967295, %s5517_s26   ;;  %s5517_s26 = sphi %s5573_s26, %s30_s26   ;;  %s5513_s25 = sphi %s5571_s25, %s7451_s25   ;;  %s5509_s24 = sphi %s5569_s24, %s7450_s24   ;;  %s5505_s23 = sphi %s5567_s23, %s7449_s23   ;;  %s5501_s22 = sphi %s5565_s22, %s7448_s22   ;;  %s5497_s21 = sphi %s5563_s21, %s7447_s21  }
  0x11   : > { %s3822_s28 = sadd.s32 4294967294, %s5517_s26   ;;  %p64_p0 = scmp.ne.s32.totalorder %s5501_s22, %s5497_s21 }
  0x12   : > { %p7209_p1 = scmp.eq.s32.totalorder %s5594_s27, 0  ;;  %p187_p3 = scmp.eq.s32.totalorder %s3822_s28, 1 }
  0x13   : > { %p3823_p5 = scmp.ge.s32.totalorder %s5517_s26, 1  ;;  %p222_p7 = scmp.lt.s32.totalorder %s5517_s26, 3 }
  0x14   : > { %p5603_p4 = por %p7209_p1, %p64_p0  ;;  %p5608_p6 = por %p187_p3, %p64_p0 }
  0x15   : > { %p5613_p8 = pnand %p3823_p5, %p222_p7  ;;  %s5519_s8 = smov [#allocation7]  }
  0x16   : > { %s7306_s29 = scalar_select %p5603_p4, 1, 0 }
  0x17   : > { %s7307_s30 = scalar_select %p5608_p6, 1, 0 }
  0x18   : > { %s7309_s7 = scalar_select %p5613_p8, 1, 0 }
  0x19   : > { %7308 = sst [smem:[#allocation21_spill]] %s7307_s30  ;;  %s234_s9 = sshll.u32 %s5519_s8, 4  ;;  %s5617_s9 = int_to_ptr.vmem [resolvable:$true] %s234_s9 }
  0x1a   : > { %p5159_p9 = pneg %p5613_p8  ;;  %s5520_s11 = smov [#allocation8]  }
  0x1b   : > { %s248_s12 = sshll.u32 %s5520_s11, 4  ;;  %s5521_s13 = smov [#allocation10]   ;;  %s5628_s12 = int_to_ptr.vmem [resolvable:$true] %s248_s12 }
  0x1c   : > { %p5624_p11 = pnand %p5159_p9, %p7209_p1  ;;  %s5630_s14 = sshll.u32 %s5521_s13, 4  ;;  %s260_s14 = int_to_ptr.vmem [resolvable:$true] %s5630_s14 }
  0x1d   : > { %s7311_s2 = sld [smem:[#allocation77_spill]] }
  0x1e   : > { %p5640_p13 = pneg %p5624_p11 }
  0x23   : > { %s5247_s17 = scalar_lea.hbm %s7311_s2, 1152 }
  0x24   : > { %p5248_p12 = scmp.ne.s32.totalorder %s7311_s2, %s5247_s17  ;;  %p5254_p5 = scmp.lt.u32.totalorder %s5247_s17, %s7311_s2 }
  0x26   : > { %p5250_p0 = pnand %p5640_p13, %p5248_p12 }
  0x28   : > { %p5251_p3 = pneg %p5250_p0 }
  0x2a   : > { %p5256_p7 = pnand %p5254_p5, %p5251_p3 }
  0x2c   : > { %5259 = shalt.err (!%p5256_p7)
}
  0x2d   : > { %s5260_s11 = scalar_lea.vmem %s5617_s9, 1152  ;;  %p5268_p2 = scmp.lt.s32.totalorder %s5617_s9, %s5617_s9 }
  0x2e   : > { %p5261_p9 = scmp.ne.s32.totalorder %s5617_s9, %s5260_s11  ;;  %p5269_p6 = scmp.lt.s32.totalorder %s5260_s11, %s5260_s11 }
  0x30   : > { %p5263_p10 = pnand %p5261_p9, %p5640_p13  ;;  %p5270_p12 = por %p5269_p6, %p5268_p2 }
  0x32   : > { %p5264_p1 = pneg %p5263_p10 }
  0x34   : > { %p5271_p0 = pnand %p5270_p12, %p5264_p1 }
  0x36   : > { %5274 = shalt.err (!%p5271_p0)
}
  0x37   : > { %s7214_s13 = smov 128   ;;  %s7216_s15 = smov 8  }
  0x38   : > { %5162 = dma.hbm_to_vmem [thread:$0]  (!%p5624_p11), %s7311_s2, 1152, %s5617_s9, [#allocation6], %s7214_s13, %s7214_s13, %s7216_s15  }
  0x39   : > { %s7313_s3 = sld [smem:[#allocation78_spill]] }
  0x3f   : > { %s5275_s28 = scalar_lea.hbm %s7313_s3, 16 }
  0x40   : > { %p5276_p1 = scmp.ne.s32.totalorder %s7313_s3, %s5275_s28  ;;  %p5282_p10 = scmp.lt.u32.totalorder %s5275_s28, %s7313_s3 }
  0x42   : > { %p5278_p2 = pnand %p5276_p1, %p5640_p13 }
  0x44   : > { %p5279_p6 = pneg %p5278_p2 }
  0x46   : > { %p5284_p3 = pnand %p5282_p10, %p5279_p6 }
  0x48   : > { %5287 = shalt.err (!%p5284_p3)
}
  0x49   : > { %s5288_s9 = scalar_lea.vmem %s5628_s12, 16  ;;  %s5295_s16 = scalar_lea.vmem %s5628_s12, 32 }
  0x4a   : > { %p5289_p5 = scmp.ne.s32.totalorder %s5628_s12, %s5288_s9  ;;  %p5296_p12 = scmp.lt.s32.totalorder %s5628_s12, %s5628_s12 }
  0x4b   : > { %p5297_p0 = scmp.lt.s32.totalorder %s5295_s16, %s5288_s9 }
  0x4c   : > { %p5291_p7 = pnand %p5289_p5, %p5640_p13 }
  0x4d   : > { %p5298_p1 = por %p5297_p0, %p5296_p12 }
  0x4e   : > { %p5292_p9 = pneg %p5291_p7 }
  0x50   : > { %p5299_p2 = pnand %p5298_p1, %p5292_p9 }
  0x52   : > { %5302 = shalt.err (!%p5299_p2)
}
  0x53   : > { %5165 = dma.hbm_to_vmem [thread:$0]  (!%p5624_p11), %s7313_s3, 16, %s5628_s12, [#allocation9]  }
  0x54   : > { %s7314_s4 = sld [smem:[#allocation79_spill]] }
  0x5a   : > { %s5303_s19 = scalar_lea.hbm %s7314_s4, 16 }
  0x5b   : > { %p5304_p6 = scmp.ne.s32.totalorder %s7314_s4, %s5303_s19  ;;  %p5310_p5 = scmp.lt.u32.totalorder %s5303_s19, %s7314_s4 }
  0x5d   : > { %p5306_p10 = pnand %p5304_p6, %p5640_p13 }
  0x5f   : > { %p5307_p3 = pneg %p5306_p10 }
  0x61   : > { %p5312_p7 = pnand %p5310_p5, %p5307_p3 }
  0x63   : > { %5315 = shalt.err (!%p5312_p7)
}
  0x64   : > { %s5316_s16 = scalar_lea.vmem %s260_s14, 16  ;;  %s5323_s12 = scalar_lea.vmem %s260_s14, 32 }
  0x65   : > { %p5317_p9 = scmp.ne.s32.totalorder %s260_s14, %s5316_s16  ;;  %p5324_p1 = scmp.lt.s32.totalorder %s260_s14, %s260_s14 }
  0x66   : > { %p5325_p2 = scmp.lt.s32.totalorder %s5323_s12, %s5316_s16 }
  0x67   : > { %p5319_p12 = pnand %p5317_p9, %p5640_p13 }
  0x68   : > { %p5326_p4 = por %p5325_p2, %p5324_p1 }
  0x69   : > { %p5320_p0 = pneg %p5319_p12 }
  0x6b   : > { %p5327_p8 = pnand %p5326_p4, %p5320_p0 }
  0x6d   : > { %5330 = shalt.err (!%p5327_p8)
}
  0x6e   : > { %5168 = dma.hbm_to_vmem [thread:$0]  (!%p5624_p11), %s7314_s4, 16, %s260_s14, [#allocation9]  }
  0x6f   : > { %s51_s20 = sadd.s32 1, %s5505_s23  ;;  %s42_s17 = sadd.s32 1, %s5513_s25 }
  0x70   : > { %p58_p4 = scmp.ne.s32.totalorder %s5505_s23, %s5501_s22  ;;  %p44_p8 = scmp.ge.s32.totalorder %s42_s17, 2 }
  0x71   : > { %p59_p13 = scmp.eq.s32.totalorder %s5517_s26, 0  ;;  %p7315_p6 = scmp.eq.s32.totalorder %s5594_s27, 1 }
  0x72   : > { %p5186_p3 = scmp.lt.s32.totalorder %s5517_s26, 2  ;;  %s7453_s17 = smov (%p44_p8, %s42_s17), 0 }
  0x73   : > { %p5714_p10 = por %p7315_p6, %p58_p4  ;;  %p60_p5 = por %p59_p13, %p58_p4 }
  0x74   : > { %s5722_s18 = sand.u32 1, %s5505_s23   ;;  %s46_s14 = ssub.s32 %s5513_s25, %s7453_s17 }
  0x75   : > { %p49_p11 = scmp.eq.s32.totalorder %s46_s14, 0  ;;  %s5133_s19 = smul.u32 384, %s5722_s18 }
  0x76   : > { %s5134_s28 = smul.u32 6912, %s5513_s25  ;;  %p5728_p7 = pnand %p5186_p3, %p60_p5 }
  0x77   : > { %s5733_s11 = scalar_select %p49_p11, %s5505_s23, %s51_s20  }
  0x78   : > { %s7318_s0 = sld [smem:[#allocation76_spill]]  ;;  %s274_s21 = scalar_lea.vmem [#allocation2], %s5133_s19 }
  0x79   : > { %s292_s30 = sshll.u32 %s274_s21, 4  ;;  %s271_s13 = scalar_lea.sflag [#allocation3], %s5722_s18  ;;  %s5740_s30 = int_to_ptr.vmem [resolvable:$true] %s292_s30 }
  0x7a   : > { %p5333_p12 = pneg %p5728_p7 }
  0x7e   : > { %s5738_s12 = scalar_lea.hbm %s7318_s0, %s5134_s28  ;;  %s5336_s9 = scalar_lea.hbm %s7318_s0, 13824 }
  0x7f   : > { %s5331_s15 = scalar_lea.hbm %s5738_s12, 6144  ;;  %p5337_p2 = scmp.lt.u32.totalorder %s5738_s12, %s7318_s0 }
  0x80   : > { %p5332_p9 = scmp.ne.s32.totalorder %s5738_s12, %s5331_s15  ;;  %p5338_p4 = scmp.lt.u32.totalorder %s5336_s9, %s5331_s15 }
  0x81   : > { %p5340_p13 = scmp.lt.u32.totalorder %s5331_s15, %s5738_s12 }
  0x82   : > { %p5334_p0 = pnand %p5333_p12, %p5332_p9  ;;  %p5339_p8 = por %p5338_p4, %p5337_p2 }
  0x84   : > { %p5335_p1 = pneg %p5334_p0  ;;  %p5341_p6 = por %p5340_p13, %p5339_p8 }
  0x86   : > { %p5342_p3 = pnand %p5341_p6, %p5335_p1 }
  0x88   : > { %5345 = shalt.err (!%p5342_p3)
}
  0x89   : > { %s5346_s19 = scalar_lea.vmem %s5740_s30, 6144  ;;  %s5524_s21 = smov [#allocation2]  }
  0x8a   : > { %p5347_p5 = scmp.ne.s32.totalorder %s5740_s30, %s5346_s19  ;;  %s5351_s20 = sshll.u32 %s5524_s21, 4  ;;  %s5352_s20 = int_to_ptr.vmem [resolvable:$false] %s5351_s20 }
  0x8b   : > { %s5353_s2 = scalar_lea.vmem %s5352_s20, 12288  ;;  %p5354_p0 = scmp.lt.s32.totalorder %s5740_s30, %s5352_s20 }
  0x8c   : > { %p5349_p11 = pnand %p5347_p5, %p5333_p12  ;;  %p5355_p2 = scmp.lt.s32.totalorder %s5353_s2, %s5346_s19 }
  0x8e   : > { %p5350_p9 = pneg %p5349_p11  ;;  %p5356_p4 = por %p5355_p2, %p5354_p0 }
  0x90   : > { %p5357_p8 = pnand %p5356_p4, %p5350_p9 }
  0x92   : > { %5360 = shalt.err (!%p5357_p8)
}
  0x93   : > { %s7319_s15 = smov 8   ;;  %s7320_s28 = smov 128  }
  0x94   : > { %5172 = dma.hbm_to_vmem [thread:$0]  (!%p5728_p7), %s5738_s12, 6144, %s5740_s30, %s271_s13, %s7320_s28, %s7320_s28, %s7319_s15  }
  0x95   : > { %s5135_s9 = smul.u32 48, %s5722_s18  ;;  %s7321_s0 = sand.u32 1, %s5517_s26  }
  0x96   : > { %s5136_s16 = smul.u32 768, %s5513_s25  ;;  %s5785_s3 = scalar_lea.sflag [#allocation6], %s7321_s0 }
  0x97   : > { %s306_s2 = scalar_lea.vmem [#allocation5], %s5135_s9  ;;  %s5366_s12 = scalar_lea.hbm %s7203_s1, 1536 }
  0x98   : > { %s5779_s20 = scalar_lea.hbm %s7203_s1, %s5136_s16  ;;  %s315_s14 = sshll.u32 %s306_s2, 4  ;;  %s5781_s14 = int_to_ptr.vmem [resolvable:$true] %s315_s14 }
  0x99   : > { %s5361_s4 = scalar_lea.hbm %s5779_s20, 768  ;;  %p5367_p3 = scmp.lt.u32.totalorder %s5779_s20, %s7203_s1 }
  0x9a   : > { %p5362_p1 = scmp.ne.s32.totalorder %s5779_s20, %s5361_s4  ;;  %p5368_p5 = scmp.lt.u32.totalorder %s5366_s12, %s5361_s4 }
  0x9b   : > { %p5370_p9 = scmp.lt.u32.totalorder %s5361_s4, %s5779_s20 }
  0x9c   : > { %p5364_p13 = pnand %p5362_p1, %p5333_p12  ;;  %p5369_p11 = por %p5368_p5, %p5367_p3 }
  0x9e   : > { %p5365_p6 = pneg %p5364_p13  ;;  %p5371_p0 = por %p5370_p9, %p5369_p11 }
  0xa0   : > { %p5372_p2 = pnand %p5371_p0, %p5365_p6 }
  0xa2   : > { %5375 = shalt.err (!%p5372_p2)
}
  0xa3   : > { %s5376_s0 = scalar_lea.vmem %s5781_s14, 768  ;;  %s5525_s9 = smov [#allocation5]  }
  0xa4   : > { %p5377_p4 = scmp.ne.s32.totalorder %s5781_s14, %s5376_s0  ;;  %s5381_s19 = sshll.u32 %s5525_s9, 4  ;;  %s5382_s19 = int_to_ptr.vmem [resolvable:$false] %s5381_s19 }
  0xa5   : > { %s5383_s21 = scalar_lea.vmem %s5382_s19, 1536  ;;  %p5384_p13 = scmp.lt.s32.totalorder %s5781_s14, %s5382_s19 }
  0xa6   : > { %p5379_p8 = pnand %p5377_p4, %p5333_p12  ;;  %p5385_p3 = scmp.lt.s32.totalorder %s5383_s21, %s5376_s0 }
  0xa8   : > { %p5380_p1 = pneg %p5379_p8  ;;  %p5386_p5 = por %p5385_p3, %p5384_p13 }
  0xaa   : > { %p5387_p11 = pnand %p5386_p5, %p5380_p1 }
  0xac   : > { %5390 = shalt.err (!%p5387_p11)
}
  0xad   : > { %5175 = dma.hbm_to_vmem [thread:$0]  (!%p5728_p7), %s5779_s20, 768, %s5781_s14, %s5785_s3, %s7320_s28, %s7320_s28, %s7319_s15  }
  0xae   : > { %p7322_p12 = scmp.ne.s32.totalorder %s7309_s7, 0 }
  0xb0   : > { %327 = sbr.rel (%p7322_p12) target bundleno = 791 (0x317), region = 40 }
  0xb7   : > { %s5817_s4 = sand.u32 1, %s5501_s22   ;;  %p7323_p6 = scmp.ne.s32.totalorder %s7306_s29, 0 }
  0xb8   : > { %s5137_s2 = smul.u32 384, %s5817_s4  ;;  %s330_s13 = scalar_lea.sflag [#allocation3], %s5817_s4 }
  0xba   : > { %s5821_s18 = scalar_lea.vmem [#allocation2], %s5137_s2 }
  0xbb   : > { %5472 = dma.done.wait (%p7323_p6), %s330_s13, 6144  }
  0xbc   : > { %5474 = vsyncadd (%p7323_p6), %s330_s13, 4294961152  ;;  %s338_s3 = sand.u32 1, %s5594_s27   ;;  %s5138_s7 = smul.u32 48, %s5817_s4 }
  0xbd   : > { %s339_s8 = scalar_lea.sflag [#allocation6], %s338_s3 }
  0xbe   : > { %s5829_s14 = scalar_lea.vmem [#allocation5], %s5138_s7 }
  0xbf   : > { %5476 = dma.done.wait (%p7323_p6), %s339_s8, 768  }
  0xc0   : > { %5478 = vsyncadd (%p7323_p6), %s339_s8, 4294966528  ;;  %p7324_p7 = scmp.eq.s32.totalorder %s5594_s27, 0 }
  0xc2   : > { %5480 = dma.done.wait (%p7324_p7), [#allocation6], 1152   ;;  %p7325_p9 = pmov %p7324_p7 }
  0xc3   : > { %p7326_p0 = pmov %p7324_p7 }
  0xc4   : > { %5482 = vsyncadd (%p7325_p9), [#allocation6], 4294966144 }
  0xc5   : > { %5484 = dma.done.wait (%p7326_p0), [#allocation9], 32   ;;  %p7327_p2 = pmov %p7326_p0 }
  0xc6   : > { %v866_v0 = vld [vmem:[#allocation7 + $0x8] sm:$0xff]  ;;  %v2122_v1 = vld [vmem:[#allocation7 + $0x20] sm:$0xff]  ;;  %vm784_vm0 = vcmask 1046528   ;;  %v400_v9 = vld [vmem:[%s5821_s18 + $0x18] sm:$0xff]  ;;  %vm867_vm1 = vcmask 64512   ;;  %s4124_s27 = sshll.u32 %s5509_s24, 4 }
  0xc7   : > { %5486 = vsyncadd (%p7327_p2), [#allocation9], 4294967264  ;;  %v397_v2 = vld [vmem:[%s5821_s18] sm:$0xff]  ;;  %4425 = vmatprep.subr.mxu1 %v866_v0  ;;  %4625 = vmatprep.subr.mxu0 %v2122_v1  ;;  %v398_v3 = vld [vmem:[%s5821_s18 + $0x8] sm:$0xff]  ;;  %s384_s29 = scalar_lea.vmem [#allocation11], %s5817_s4  ;;  %s390_s28 = scalar_lea.vmem [#allocation12], %s5817_s4 }
  0xc8   : > { %v5845_v4 = vld [vmem:[#allocation8] ss:$0 sm:$0xff]  ;;  %v5847_v5 = vld [vmem:[#allocation10] ss:$0 sm:$0xff]  ;;  %4426 = vmatpush3.msra.mxu1 %v866_v0  ;;  %4626 = vmatpush3.msra.mxu0 %v2122_v1  ;;  %v5851_v8 = vld [vmem:[#allocation7] sm:$0xff]  ;;  %s3646_s15 = sshll.u32 %s384_s29, 4  ;;  %s7120_s16 = scalar_lea.hbm %s7207_s5, %s4124_s27  ;;  %s7122_s15 = int_to_ptr.vmem [resolvable:$true] %s3646_s15 }
  0xc9   : > { %v458_v6 = vmul.f32 %v5845_v4, %v397_v2  ;;  %v459_v7 = vmul.f32 %v5845_v4, %v398_v3  ;;  %v401_v10 = vld [vmem:[%s5821_s18 + $0x20] sm:$0xff]  ;;  %4475 = vmatprep.subr.mxu1 %v5851_v8  ;;  %v461_v11 = vmul.f32 %v5845_v4, %v400_v9  ;;  %v5858_v13 = vld [vmem:[#allocation7 + $0x28] sm:$0xff]  ;;  %v399_v14 = vld [vmem:[%s5821_s18 + $0x10] sm:$0x3]  ;;  %s3660_s20 = sshll.u32 %s390_s28, 4  ;;  %s7128_s9 = scalar_lea.hbm %s7208_s6, %s4124_s27  ;;  %s7130_s20 = int_to_ptr.vmem [resolvable:$true] %s3660_s20 }
  0xca   : > { %v462_v12 = vmul.f32 %v5845_v4, %v401_v10  ;;  %v402_v15 = vld [vmem:[%s5821_s18 + $0x28] sm:$0x3]  ;;  %4675 = vmatprep.subr.mxu0 %v5858_v13  ;;  %v460_v18 = vmul.f32 %v5845_v4, %v399_v14  ;;  %v403_v20 = vld [vmem:[%s5821_s18 + $0x30] sm:$0xff]  ;;  %v404_v21 = vld [vmem:[%s5821_s18 + $0x38] sm:$0xff]  ;;  %s3629_s19 = scalar_lea.sflag [#allocation4], %s5817_s4  ;;  %s5391_s21 = scalar_lea.vmem %s7122_s15, 16 }
  0xcb   : > { %v519_v16 = vadd.f32 %v5847_v5, %v458_v6  ;;  %v520_v17 = vadd.f32 %v5847_v5, %v459_v7  ;;  %v463_v19 = vmul.f32 %v5845_v4, %v402_v15  ;;  %v522_v22 = vadd.f32 %v5847_v5, %v461_v11  ;;  %v405_v38 = vld [vmem:[%s5821_s18 + $0x40] sm:$0x3]  ;;  %v406_v49 = vld [vmem:[%s5821_s18 + $0x48] sm:$0xff]  ;;  %v407_v52 = vld [vmem:[%s5821_s18 + $0x50] sm:$0xff]  ;;  %p5392_p4 = scmp.ne.s32.totalorder %s7122_s15, %s5391_s21  ;;  %s5526_s2 = smov [#allocation11]  }
  0xcc   : > { %v523_v23 = vadd.f32 %v5847_v5, %v462_v12  ;;  %v464_v24 = vmul.f32 %v5845_v4, %v403_v20  ;;  %v465_v25 = vmul.f32 %v5845_v4, %v404_v21  ;;  %v521_v32 = vadd.f32 %v5847_v5, %v460_v18  ;;  %v408_v53 = vld [vmem:[%s5821_s18 + $0x58] sm:$0x3]  ;;  %v409_v61 = vld [vmem:[%s5821_s18 + $0x60] sm:$0xff]  ;;  %v410_v2 = vld [vmem:[%s5821_s18 + $0x68] sm:$0xff]  ;;  %s5395_s13 = sshll.u32 %s5526_s2, 4  ;;  %s5396_s13 = int_to_ptr.vmem [resolvable:$false] %s5395_s13 }
  0xcd   : > { %vm573_vm2 = vcmp.ge.f32.partialorder %v519_v16, 0.0  ;;  %vm574_vm3 = vcmp.ge.f32.partialorder %v520_v17, 0.0  ;;  %v627_v26 = vmul.f32 0.01, %v519_v16  ;;  %v628_v27 = vmul.f32 0.01, %v520_v17  ;;  %p5393_p8 = pnand %p5392_p4, %p5714_p10  ;;  %p5398_p13 = scmp.lt.s32.totalorder %s7122_s15, %s5396_s13 }
  0xce   : > { %vm576_vm4 = vcmp.ge.f32.partialorder %v522_v22, 0.0  ;;  %vm577_vm5 = vcmp.ge.f32.partialorder %v523_v23, 0.0  ;;  %v630_v28 = vmul.f32 0.01, %v522_v22  ;;  %v631_v29 = vmul.f32 0.01, %v523_v23 }
  0xcf   : > { %v5873_v30 = vsel %vm573_vm2, %v519_v16, %v627_v26  ;;  %v5875_v31 = vsel %vm574_vm3, %v520_v17, %v628_v27  ;;  %v524_v33 = vadd.f32 %v5847_v5, %v463_v19  ;;  %vm575_vm6 = vcmp.ge.f32.partialorder %v521_v32, 0.0  ;;  %v411_v3 = vld [vmem:[%s5821_s18 + $0x70] sm:$0x3]  ;;  %p5394_p1 = pneg %p5393_p8 }
  0xd0   : > { %v785_v34 = vrot.slane %v5873_v30, 1  ;;  %v786_v35 = vrot.slane %v5875_v31, 1  ;;  %v5881_v36 = vsel %vm576_vm4, %v522_v22, %v630_v28  ;;  %v5883_v37 = vsel %vm577_vm5, %v523_v23, %v631_v29  ;;  %v5917_v6 = vld [vmem:[#allocation7 + $0x30] sm:$0xff] }
  0xd1   : > { %7328 = vst [vmem:[#allocation22_spill] sm:$0xff] %v5881_v36  ;;  %7329 = vst [vmem:[#allocation23_spill] sm:$0xff] %v5883_v37  ;;  %v790_v39 = vrot.slane %v5881_v36, 1  ;;  %v791_v40 = vrot.slane %v5883_v37, 1  ;;  %v629_v41 = vmul.f32 0.01, %v521_v32  ;;  %v525_v44 = vadd.f32 %v5847_v5, %v464_v24 }
  0xd2   : > { %v787_v42 = vsel %vm784_vm0, %v785_v34, %v786_v35  ;;  %vm578_vm7 = vcmp.ge.f32.partialorder %v524_v33, 0.0  ;;  %v632_v43 = vmul.f32 0.01, %v524_v33  ;;  %v526_v47 = vadd.f32 %v5847_v5, %v465_v25 }
  0xd3   : > { %4427 = vmatprep.mubr.msk.f32.mxu1 %vm867_vm1, %v787_v42  ;;  %v792_v45 = vsel %vm784_vm0, %v790_v39, %v791_v40  ;;  %v5892_v46 = vsel %vm575_vm6, %v521_v32, %v629_v41  ;;  %v466_v48 = vmul.f32 %v5845_v4, %v405_v38  ;;  %vm579_vm8 = vcmp.ge.f32.partialorder %v525_v44, 0.0  ;;  %v412_v32 = vld [vmem:[%s5821_s18 + $0x78] sm:$0xff]  ;;  %v413_v39 = vld [vmem:[%s5821_s18 + $0x80] sm:$0xff] }
  0xd4   : > { %4627 = vmatprep.mubr.msk.f32.mxu0 %vm867_vm1, %v792_v45  ;;  %v788_v50 = vrot.slane %v5892_v46, 1  ;;  %v5899_v51 = vsel %vm578_vm7, %v524_v33, %v632_v43  ;;  %vm580_vm9 = vcmp.ge.f32.partialorder %v526_v47, 0.0  ;;  %v633_v56 = vmul.f32 0.01, %v525_v44  ;;  %v5959_v33 = vld [vmem:[#allocation7 + $0x10] sm:$0xff] }
  0xd5   : > { %v793_v54 = vrot.slane %v5899_v51, 1  ;;  %v1455_v55 = vrot.slane %v5899_v51, 2  ;;  %v634_v58 = vmul.f32 0.01, %v526_v47  ;;  %v527_v59 = vadd.f32 %v5847_v5, %v466_v48  ;;  %v414_v43 = vld [vmem:[%s5821_s18 + $0x88] sm:$0x3] }
  0xd6   : > { %v789_v57 = vsel %vm784_vm0, %v786_v35, %v788_v50  ;;  %v467_v60 = vmul.f32 %v5845_v4, %v406_v49  ;;  %v5911_v63 = vsel %vm579_vm8, %v525_v44, %v633_v56  ;;  %v468_v0 = vmul.f32 %v5845_v4, %v407_v52  ;;  %v415_v49 = vld [vmem:[%s5821_s18 + $0x90] sm:$0xff]  ;;  %v416_v50 = vld [vmem:[%s5821_s18 + $0x98] sm:$0xff] }
  0xd7   : > { %4428 = vmatmul.mubr.msk.f32.vlgmr.msra.gmra.mrb[0].mxu1 %vm867_vm1, %v789_v57  ;;  %v794_v62 = vsel %vm784_vm0, %v791_v40, %v793_v54  ;;  %v469_v1 = vmul.f32 %v5845_v4, %v408_v53  ;;  %v5922_v7 = vsel %vm580_vm9, %v526_v47, %v634_v58  ;;  %v795_v9 = vrot.slane %v5911_v63, 1 }
  0xd8   : > { %4476 = vmatpush3.msra.mxu1 %v5851_v8  ;;  %4628 = vmatmul.mubr.msk.f32.vlgmr.msra.gmra.mrb[0].mxu0 %vm867_vm1, %v794_v62  ;;  %vm581_vm10 = vcmp.ge.f32.partialorder %v527_v59, 0.0  ;;  %v635_v10 = vmul.f32 0.01, %v527_v59  ;;  %v796_v11 = vrot.slane %v5922_v7, 1  ;;  %v528_v12 = vadd.f32 %v5847_v5, %v467_v60 }
  0xd9   : > { %4676 = vmatpush3.msra.mxu0 %v5858_v13  ;;  %4430 = vmatprep.mubr.msk.f32.mxu1 %vm867_vm1, %v792_v45  ;;  %v529_v14 = vadd.f32 %v5847_v5, %v468_v0  ;;  %v530_v8 = vadd.f32 %v5847_v5, %v469_v1  ;;  %v470_v16 = vmul.f32 %v5845_v4, %v409_v61  ;;  %v1452_v56 = vrot.slane %v5881_v36, 2 }
  0xda   : > { %v5931_v15 = vsel %vm581_vm10, %v527_v59, %v635_v10  ;;  %v471_v17 = vmul.f32 %v5845_v4, %v410_v2  ;;  %v472_v18 = vmul.f32 %v5845_v4, %v411_v3  ;;  %4725 = vmatprep.subr.mxu0 %v5917_v6  ;;  %v5938_v13 = vsel %vm784_vm0, %v795_v9, %v796_v11 }
  0xdb   : > { %7330 = vst [vmem:[#allocation24_spill] sm:$0xff] %v5938_v13  ;;  %4431 = vmatmul.mubr.msk.f32.gmra.mrb[2].mxu1 %vm867_vm1, %v794_v62  ;;  %v798_v19 = vrot.slane %v5931_v15, 1  ;;  %vm582_vm11 = vcmp.ge.f32.partialorder %v528_v12, 0.0  ;;  %vm583_vm12 = vcmp.ge.f32.partialorder %v529_v14, 0.0  ;;  %4630 = vmatprep.mubr.msk.f32.mxu0 %vm867_vm1, %v5938_v13  ;;  %v636_v20 = vmul.f32 0.01, %v528_v12 }
  0xdc   : > { %4433 = vmatprep.mubr.msk.f32.mxu1 %vm867_vm1, %v5938_v13  ;;  %v637_v21 = vmul.f32 0.01, %v529_v14  ;;  %vm584_vm13 = vcmp.ge.f32.partialorder %v530_v8, 0.0  ;;  %v531_v22 = vadd.f32 %v5847_v5, %v470_v16  ;;  %v638_v24 = vmul.f32 0.01, %v530_v8  ;;  %4525 = vmatprep.subr.mxu1 %v5959_v33 }
  0xdd   : > { %v5948_v23 = vsel %vm784_vm0, %v796_v11, %v798_v19  ;;  %v532_v25 = vadd.f32 %v5847_v5, %v471_v17  ;;  %v533_v26 = vadd.f32 %v5847_v5, %v472_v18  ;;  %v5954_v27 = vsel %vm582_vm11, %v528_v12, %v636_v20  ;;  %v417_v17 = vld [vmem:[%s5821_s18 + $0xa0] sm:$0x3]  ;;  %v418_v18 = vld [vmem:[%s5821_s18 + $0xa8] sm:$0xff] }
  0xde   : > { %7331 = vst [vmem:[#allocation25_spill] sm:$0xff] %v5948_v23  ;;  %4631 = vmatmul.mubr.msk.f32.gmra.mrb[2].mxu0 %vm867_vm1, %v5948_v23  ;;  %v5956_v28 = vsel %vm583_vm12, %v529_v14, %v637_v21  ;;  %vm585_vm14 = vcmp.ge.f32.partialorder %v531_v22, 0.0  ;;  %v639_v29 = vmul.f32 0.01, %v531_v22  ;;  %v800_v34 = vrot.slane %v5954_v27, 1 }
  0xdf   : > { %v801_v35 = vrot.slane %v5956_v28, 1  ;;  %4434 = vmatmul.mubr.msk.f32.gmra.mrb[4].mxu1 %vm867_vm1, %v5948_v23  ;;  %v5966_v38 = vsel %vm584_vm13, %v530_v8, %v638_v24  ;;  %vm586_vm15 = vcmp.ge.f32.partialorder %v532_v25, 0.0  ;;  %v640_v41 = vmul.f32 0.01, %v532_v25 }
  0xe0   : > { %v803_v40 = vrot.slane %v5966_v38, 1  ;;  %v5971_v42 = vsel %vm585_vm14, %v531_v22, %v639_v29  ;;  %vm587_vm2 = vcmp.ge.f32.partialorder %v533_v26, 0.0  ;;  %v641_v47 = vmul.f32 0.01, %v533_v26  ;;  %v419_v22 = vld [vmem:[%s5821_s18 + $0xb0] sm:$0xff] }
  0xe1   : > { %v5975_v44 = vsel %vm784_vm0, %v800_v34, %v801_v35  ;;  %v805_v45 = vrot.slane %v5971_v42, 1  ;;  %v473_v48 = vmul.f32 %v5845_v4, %v412_v32  ;;  %v5989_v53 = vsel %vm586_vm15, %v532_v25, %v640_v41 }
  0xe2   : > { %7332 = vst [vmem:[#allocation26_spill] sm:$0xff] %v5975_v44  ;;  %4633 = vmatprep.mubr.msk.f32.mxu0 %vm867_vm1, %v5975_v44  ;;  %v5984_v52 = vsel %vm784_vm0, %v801_v35, %v803_v40  ;;  %4436 = vmatprep.mubr.msk.f32.mxu1 %vm867_vm1, %v5975_v44  ;;  %v474_v54 = vmul.f32 %v5845_v4, %v413_v39  ;;  %v806_v57 = vrot.slane %v5989_v53, 1  ;;  %v420_v39 = vld [vmem:[%s5821_s18 + $0xb8] sm:$0x3]  ;;  %v421_v40 = vld [vmem:[%s5821_s18 + $0xc0] sm:$0xff]  ;;  %vm1446_vm8 = vcmask 1045504  }
  0xe3   : > { %7333 = vst [vmem:[#allocation27_spill] sm:$0xff] %v5984_v52  ;;  %4634 = vmatmul.mubr.msk.f32.gmra.mrb[4].mxu0 %vm867_vm1, %v5984_v52  ;;  %4437 = vmatmul.mubr.msk.f32.gmra.mrb[6].mxu1 %vm867_vm1, %v5984_v52  ;;  %v5999_v58 = vsel %vm587_vm2, %v533_v26, %v641_v47  ;;  %v534_v59 = vadd.f32 %v5847_v5, %v473_v48 }
  0xe4   : > { %v475_v60 = vmul.f32 %v5845_v4, %v414_v43  ;;  %v808_v61 = vrot.slane %v5999_v58, 1  ;;  %v535_v62 = vadd.f32 %v5847_v5, %v474_v54  ;;  %v476_v0 = vmul.f32 %v5845_v4, %v415_v49 }
  0xe5   : > { %v477_v1 = vmul.f32 %v5845_v4, %v416_v50  ;;  %v6008_v2 = vsel %vm784_vm0, %v805_v45, %v806_v57  ;;  %vm588_vm3 = vcmp.ge.f32.partialorder %v534_v59, 0.0  ;;  %v642_v3 = vmul.f32 0.01, %v534_v59 }
  0xe6   : > { %7334 = vst [vmem:[#allocation28_spill] sm:$0xff] %v6008_v2  ;;  %v536_v9 = vadd.f32 %v5847_v5, %v475_v60  ;;  %4636 = vmatprep.mubr.msk.f32.mxu0 %vm867_vm1, %v6008_v2  ;;  %v6014_v10 = vsel %vm784_vm0, %v806_v57, %v808_v61  ;;  %4439 = vmatprep.mubr.msk.f32.mxu1 %vm867_vm1, %v6008_v2  ;;  %vm589_vm4 = vcmp.ge.f32.partialorder %v535_v62, 0.0  ;;  %v643_v11 = vmul.f32 0.01, %v535_v62  ;;  %v422_v60 = vld [vmem:[%s5821_s18 + $0xc8] sm:$0xff] }
  0xe7   : > { %7335 = vst [vmem:[#allocation29_spill] sm:$0xff] %v6014_v10  ;;  %v537_v12 = vadd.f32 %v5847_v5, %v476_v0  ;;  %4637 = vmatmul.mubr.msk.f32.gmra.mrb[6].mxu0 %vm867_vm1, %v6014_v10  ;;  %v6021_v14 = vsel %vm588_vm3, %v534_v59, %v642_v3  ;;  %4440 = vmatmul.mubr.msk.f32.gmra.mrb[8].mxu1 %vm867_vm1, %v6014_v10  ;;  %v1453_v0 = vrot.slane %v5883_v37, 2 }
  0xe8   : > { %vm590_vm5 = vcmp.ge.f32.partialorder %v536_v9, 0.0  ;;  %v644_v8 = vmul.f32 0.01, %v536_v9  ;;  %v538_v16 = vadd.f32 %v5847_v5, %v477_v1  ;;  %v6028_v19 = vsel %vm589_vm4, %v535_v62, %v643_v11  ;;  %v423_v62 = vld [vmem:[%s5821_s18 + $0xd0] sm:$0x3] }
  0xe9   : > { %v810_v20 = vrot.slane %v6021_v14, 1  ;;  %vm591_vm6 = vcmp.ge.f32.partialorder %v537_v12, 0.0  ;;  %v645_v21 = vmul.f32 0.01, %v537_v12  ;;  %v811_v24 = vrot.slane %v6028_v19, 1 }
  0xea   : > { %v6033_v25 = vsel %vm590_vm5, %v536_v9, %v644_v8  ;;  %vm592_vm7 = vcmp.ge.f32.partialorder %v538_v16, 0.0  ;;  %v646_v26 = vmul.f32 0.01, %v538_v16  ;;  %v478_v34 = vmul.f32 %v5845_v4, %v417_v17 }
  0xeb   : > { %v813_v29 = vrot.slane %v6033_v25, 1  ;;  %v6036_v32 = vsel %vm591_vm6, %v537_v12, %v645_v21  ;;  %v479_v35 = vmul.f32 %v5845_v4, %v418_v18  ;;  %v6043_v41 = vsel %vm784_vm0, %v810_v20, %v811_v24 }
  0xec   : > { %7336 = vst [vmem:[#allocation30_spill] sm:$0xff] %v6043_v41  ;;  %v6045_v43 = vsel %vm592_vm7, %v538_v16, %v646_v26  ;;  %v815_v45 = vrot.slane %v6036_v32, 1  ;;  %v480_v47 = vmul.f32 %v5845_v4, %v419_v22  ;;  %4639 = vmatprep.mubr.msk.f32.mxu0 %vm867_vm1, %v6043_v41  ;;  %4442 = vmatprep.mubr.msk.f32.mxu1 %vm867_vm1, %v6043_v41  ;;  %v436_v41 = vld [vmem:[%s5821_s18 + $0x138] sm:$0xff]  ;;  %v1475_v52 = vrot.slane %v6033_v25, 2 }
  0xed   : > { %v6052_v48 = vsel %vm784_vm0, %v811_v24, %v813_v29  ;;  %v816_v49 = vrot.slane %v6045_v43, 1  ;;  %v539_v50 = vadd.f32 %v5847_v5, %v478_v34  ;;  %v540_v54 = vadd.f32 %v5847_v5, %v479_v35 }
  0xee   : > { %7337 = vst [vmem:[#allocation31_spill] sm:$0xff] %v6052_v48  ;;  %4640 = vmatmul.mubr.msk.f32.gmra.mrb[8].mxu0 %vm867_vm1, %v6052_v48  ;;  %4443 = vmatmul.mubr.msk.f32.gmra.mrb[10].mxu1 %vm867_vm1, %v6052_v48  ;;  %v541_v57 = vadd.f32 %v5847_v5, %v480_v47  ;;  %v481_v59 = vmul.f32 %v5845_v4, %v420_v39 }
  0xef   : > { %v482_v61 = vmul.f32 %v5845_v4, %v421_v40  ;;  %v6070_v1 = vsel %vm784_vm0, %v815_v45, %v816_v49  ;;  %vm593_vm9 = vcmp.ge.f32.partialorder %v539_v50, 0.0  ;;  %v647_v3 = vmul.f32 0.01, %v539_v50 }
  0xf0   : > { %7338 = vst [vmem:[#allocation32_spill] sm:$0xff] %v6070_v1  ;;  %vm594_vm10 = vcmp.ge.f32.partialorder %v540_v54, 0.0  ;;  %4642 = vmatprep.mubr.msk.f32.mxu0 %vm867_vm1, %v6070_v1  ;;  %4445 = vmatprep.mubr.msk.f32.mxu1 %vm867_vm1, %v6070_v1  ;;  %vm595_vm11 = vcmp.ge.f32.partialorder %v541_v57, 0.0  ;;  %v648_v9 = vmul.f32 0.01, %v540_v54  ;;  %v542_v12 = vadd.f32 %v5847_v5, %v481_v59  ;;  %v434_v1 = vld [vmem:[%s5821_s18 + $0x128] sm:$0xff] }
  0xf1   : > { %v649_v11 = vmul.f32 0.01, %v541_v57  ;;  %v6077_v8 = vsel %vm593_vm9, %v539_v50, %v647_v3  ;;  %v483_v16 = vmul.f32 %v5845_v4, %v422_v60  ;;  %v543_v17 = vadd.f32 %v5847_v5, %v482_v61  ;;  %v424_v50 = vld [vmem:[%s5821_s18 + $0xd8] sm:$0xff]  ;;  %v425_v60 = vld [vmem:[%s5821_s18 + $0xe0] sm:$0xff] }
  0xf2   : > { %v484_v18 = vmul.f32 %v5845_v4, %v423_v62  ;;  %v818_v20 = vrot.slane %v6077_v8, 1  ;;  %v6083_v21 = vsel %vm594_vm10, %v540_v54, %v648_v9  ;;  %vm596_vm12 = vcmp.ge.f32.partialorder %v542_v12, 0.0 }
  0xf3   : > { %v6085_v22 = vsel %vm595_vm11, %v541_v57, %v649_v11  ;;  %v820_v24 = vrot.slane %v6083_v21, 1  ;;  %v650_v29 = vmul.f32 0.01, %v542_v12  ;;  %v544_v34 = vadd.f32 %v5847_v5, %v483_v16  ;;  %v426_v11 = vld [vmem:[%s5821_s18 + $0xe8] sm:$0x3] }
  0xf4   : > { %v821_v26 = vrot.slane %v6085_v22, 1  ;;  %v6091_v35 = vsel %vm784_vm0, %v816_v49, %v818_v20  ;;  %vm597_vm13 = vcmp.ge.f32.partialorder %v543_v17, 0.0  ;;  %v651_v39 = vmul.f32 0.01, %v543_v17 }
  0xf5   : > { %7339 = vst [vmem:[#allocation33_spill] sm:$0xff] %v6091_v35  ;;  %v545_v40 = vadd.f32 %v5847_v5, %v484_v18  ;;  %4643 = vmatmul.mubr.msk.f32.gmra.mrb[10].mxu0 %vm867_vm1, %v6091_v35  ;;  %4446 = vmatmul.mubr.msk.f32.gmra.mrb[12].mxu1 %vm867_vm1, %v6091_v35  ;;  %v6101_v47 = vsel %vm596_vm12, %v542_v12, %v650_v29  ;;  %vm598_vm14 = vcmp.ge.f32.partialorder %v544_v34, 0.0  ;;  %v652_v49 = vmul.f32 0.01, %v544_v34  ;;  %v432_v35 = vld [vmem:[%s5821_s18 + $0x118] sm:$0x3] }
  0xf6   : > { %v6097_v45 = vsel %vm784_vm0, %v820_v24, %v821_v26  ;;  %v823_v54 = vrot.slane %v6101_v47, 1  ;;  %v6109_v57 = vsel %vm597_vm13, %v543_v17, %v651_v39  ;;  %v6118_v3 = vsel %vm1446_vm8, %v1452_v56, %v1453_v0  ;;  %v428_v39 = vld [vmem:[%s5821_s18 + $0xf8] sm:$0xff] }
  0xf7   : > { %7340 = vst [vmem:[#allocation34_spill] sm:$0xff] %v6097_v45  ;;  %4645 = vmatprep.mubr.msk.f32.mxu0 %vm867_vm1, %v6097_v45  ;;  %4448 = vmatprep.mubr.msk.f32.mxu1 %vm867_vm1, %v6097_v45  ;;  %vm599_vm15 = vcmp.ge.f32.partialorder %v545_v40, 0.0  ;;  %v653_v59 = vmul.f32 0.01, %v545_v40  ;;  %v6112_v61 = vsel %vm598_vm14, %v544_v34, %v652_v49  ;;  %v825_v62 = vrot.slane %v6109_v57, 1  ;;  %v427_v34 = vld [vmem:[%s5821_s18 + $0xf0] sm:$0xff] }
  0xf8   : > { %v6123_v9 = vsel %vm1446_vm8, %v1453_v0, %v1455_v55  ;;  %v6127_v12 = vsel %vm784_vm0, %v821_v26, %v823_v54  ;;  %v826_v16 = vrot.slane %v6112_v61, 1  ;;  %v485_v18 = vmul.f32 %v5845_v4, %v424_v50 }
  0xf9   : > { %7341 = vst [vmem:[#allocation35_spill] sm:$0xff] %v6127_v12  ;;  %v6130_v17 = vsel %vm599_vm15, %v545_v40, %v653_v59  ;;  %4646 = vmatmul.mubr.msk.f32.gmra.mrb[12].mxu0 %vm867_vm1, %v6127_v12  ;;  %4449 = vmatmul.mubr.msk.f32.gmra.mrb[14].mxu1 %vm867_vm1, %v6127_v12  ;;  %v486_v55 = vmul.f32 %v5845_v4, %v425_v60  ;;  %v1457_v56 = vrot.slane %v5911_v63, 2  ;;  %v1458_v0 = vrot.slane %v5922_v7, 2  ;;  %v431_v12 = vld [vmem:[%s5821_s18 + $0x110] sm:$0xff] }
  0xfa   : > { %v828_v51 = vrot.slane %v6130_v17, 1  ;;  %v6142_v20 = vsel %vm784_vm0, %v825_v62, %v826_v16  ;;  %v546_v24 = vadd.f32 %v5847_v5, %v485_v18  ;;  %v487_v26 = vmul.f32 %v5845_v4, %v426_v11  ;;  %v429_v18 = vld [vmem:[%s5821_s18 + $0x100] sm:$0x3] }
  0xfb   : > { %7342 = vst [vmem:[#allocation36_spill] sm:$0xff] %v6142_v20  ;;  %v1460_v29 = vrot.slane %v5931_v15, 2  ;;  %4648 = vmatprep.mubr.msk.f32.mxu0 %vm867_vm1, %v6142_v20  ;;  %4451 = vmatprep.mubr.msk.f32.mxu1 %vm867_vm1, %v6142_v20  ;;  %v547_v49 = vadd.f32 %v5847_v5, %v486_v55  ;;  %v6158_v50 = vsel %vm1446_vm8, %v1457_v56, %v1458_v0  ;;  %v1462_v54 = vrot.slane %v5954_v27, 2 }
  0xfc   : > { %v6152_v40 = vsel %vm784_vm0, %v826_v16, %v828_v51  ;;  %vm600_vm2 = vcmp.ge.f32.partialorder %v546_v24, 0.0  ;;  %v654_v15 = vmul.f32 0.01, %v546_v24  ;;  %v548_v59 = vadd.f32 %v5847_v5, %v487_v26 }
  0xfd   : > { %7343 = vst [vmem:[#allocation37_spill] sm:$0xff] %v6152_v40  ;;  %v6163_v60 = vsel %vm1446_vm8, %v1458_v0, %v1460_v29  ;;  %4649 = vmatmul.mubr.msk.f32.gmra.mrb[14].mxu0 %vm867_vm1, %v6152_v40  ;;  %4452 = vmatmul.mubr.msk.f32.gmra.mrb[16].mxu1 %vm867_vm1, %v6152_v40  ;;  %vm601_vm3 = vcmp.ge.f32.partialorder %v547_v49, 0.0  ;;  %v655_v62 = vmul.f32 0.01, %v547_v49  ;;  %v488_v11 = vmul.f32 %v5845_v4, %v427_v34 }
  0xfe   : > { %v489_v16 = vmul.f32 %v5845_v4, %v428_v39  ;;  %4677 = vmatprep.mubr.msk.f32.mxu0 %vm867_vm1, %v6118_v3  ;;  %v6174_v51 = vsel %vm600_vm2, %v546_v24, %v654_v15  ;;  %vm602_vm4 = vcmp.ge.f32.partialorder %v548_v59, 0.0  ;;  %v656_v55 = vmul.f32 0.01, %v548_v59  ;;  %v430_v15 = vld [vmem:[%s5821_s18 + $0x108] sm:$0xff] }
  0xff   : > { %v1463_v56 = vrot.slane %v5956_v28, 2  ;;  %v6177_v0 = vsel %vm601_vm3, %v547_v49, %v655_v62  ;;  %v830_v26 = vrot.slane %v6174_v51, 1  ;;  %v549_v29 = vadd.f32 %v5847_v5, %v488_v11  ;;  %v6194_v11 = vld [vmem:[#allocation7 + $0x38] sm:$0xff] }
 0x100   : > { %v550_v34 = vadd.f32 %v5847_v5, %v489_v16  ;;  %v831_v39 = vrot.slane %v6177_v0, 1  ;;  %v6183_v40 = vsel %vm602_vm4, %v548_v59, %v656_v55  ;;  %v490_v24 = vmul.f32 %v5845_v4, %v429_v18 }
 0x101   : > { %v6186_v20 = vsel %vm1446_vm8, %v1462_v54, %v1463_v56  ;;  %4678 = vmatmul.mubr.msk.f32.vlgmr.msra.gmra.mrb[0].mxu0 %vm867_vm1, %v6123_v9  ;;  %v833_v49 = vrot.slane %v6183_v40, 1  ;;  %vm603_vm5 = vcmp.ge.f32.partialorder %v549_v29, 0.0  ;;  %v657_v62 = vmul.f32 0.01, %v549_v29 }
 0x102   : > { %vm604_vm6 = vcmp.ge.f32.partialorder %v550_v34, 0.0  ;;  %4726 = vmatpush3.msra.mxu0 %v5917_v6  ;;  %v6198_v54 = vsel %vm784_vm0, %v830_v26, %v831_v39  ;;  %4680 = vmatprep.mubr.msk.f32.mxu0 %vm867_vm1, %v6158_v50  ;;  %v658_v59 = vmul.f32 0.01, %v550_v34  ;;  %v551_v16 = vadd.f32 %v5847_v5, %v490_v24 }
 0x103   : > { %7344 = vst [vmem:[#allocation38_spill] sm:$0xff] %v6198_v54  ;;  %v1465_v18 = vrot.slane %v5966_v38, 2  ;;  %4454 = vmatprep.mubr.msk.f32.mxu1 %vm867_vm1, %v6198_v54  ;;  %v6207_v55 = vsel %vm784_vm0, %v831_v39, %v833_v49  ;;  %v6209_v45 = vsel %vm603_vm5, %v549_v29, %v657_v62  ;;  %v491_v6 = vmul.f32 %v5845_v4, %v430_v15  ;;  %v433_v54 = vld [vmem:[%s5821_s18 + $0x120] sm:$0xff] }
 0x104   : > { %7345 = vst [vmem:[#allocation39_spill] sm:$0xff] %v6207_v55  ;;  %v492_v26 = vmul.f32 %v5845_v4, %v431_v12  ;;  %4455 = vmatmul.mubr.msk.f32.gmra.mrb[18].mxu1 %vm867_vm1, %v6207_v55  ;;  %v6217_v24 = vsel %vm604_vm6, %v550_v34, %v658_v59  ;;  %v835_v38 = vrot.slane %v6209_v45, 1  ;;  %vm605_vm7 = vcmp.ge.f32.partialorder %v551_v16, 0.0  ;;  %4775 = vmatprep.subr.mxu0 %v6194_v11 }
 0x105   : > { %v659_v39 = vmul.f32 0.01, %v551_v16  ;;  %4681 = vmatmul.mubr.msk.f32.gmra.mrb[2].mxu0 %vm867_vm1, %v6163_v60  ;;  %v836_v12 = vrot.slane %v6217_v24, 1  ;;  %v6225_v29 = vsel %vm1446_vm8, %v1463_v56, %v1465_v18  ;;  %v552_v15 = vadd.f32 %v5847_v5, %v491_v6 }
 0x106   : > { %7346 = vst [vmem:[#allocation40_spill] sm:$0xff] %v6225_v29  ;;  %v553_v34 = vadd.f32 %v5847_v5, %v492_v26  ;;  %4683 = vmatprep.mubr.msk.f32.mxu0 %vm867_vm1, %v6186_v20  ;;  %v1467_v62 = vrot.slane %v5971_v42, 2  ;;  %v1468_v59 = vrot.slane %v5989_v53, 2  ;;  %v493_v55 = vmul.f32 %v5845_v4, %v432_v35 }
 0x107   : > { %v6231_v49 = vsel %vm605_vm7, %v551_v16, %v659_v39  ;;  %v6239_v56 = vsel %vm784_vm0, %v835_v38, %v836_v12  ;;  %vm606_vm9 = vcmp.ge.f32.partialorder %v552_v15, 0.0  ;;  %v660_v16 = vmul.f32 0.01, %v552_v15 }
 0x108   : > { %7347 = vst [vmem:[#allocation41_spill] sm:$0xff] %v6239_v56  ;;  %v838_v18 = vrot.slane %v6231_v49, 1  ;;  %vm607_vm10 = vcmp.ge.f32.partialorder %v553_v34, 0.0  ;;  %4457 = vmatprep.mubr.msk.f32.mxu1 %vm867_vm1, %v6239_v56  ;;  %v661_v6 = vmul.f32 0.01, %v553_v34  ;;  %v6245_v26 = vsel %vm1446_vm8, %v1467_v62, %v1468_v59 }
 0x109   : > { %7348 = vst [vmem:[#allocation42_spill] sm:$0xff] %v6245_v26  ;;  %v554_v39 = vadd.f32 %v5847_v5, %v493_v55  ;;  %4684 = vmatmul.mubr.msk.f32.gmra.mrb[4].mxu0 %vm867_vm1, %v6225_v29  ;;  %v1470_v38 = vrot.slane %v5999_v58, 2  ;;  %v494_v48 = vmul.f32 %v5845_v4, %v433_v54  ;;  %v495_v56 = vmul.f32 %v5845_v4, %v434_v1  ;;  %v444_v29 = vld [vmem:[%s5821_s18 + $0x178] sm:$0x3] }
 0x10a   : > { %v6249_v35 = vsel %vm784_vm0, %v836_v12, %v838_v18  ;;  %v6258_v62 = vsel %vm606_vm9, %v552_v15, %v660_v16  ;;  %v6260_v55 = vsel %vm607_vm10, %v553_v34, %v661_v6  ;;  %4686 = vmatprep.mubr.msk.f32.mxu0 %vm867_vm1, %v6245_v26  ;;  %v1472_v16 = vrot.slane %v6021_v14, 2 }
 0x10b   : > { %7349 = vst [vmem:[#allocation43_spill] sm:$0xff] %v6249_v35  ;;  %4458 = vmatmul.mubr.msk.f32.gmra.mrb[20].mxu1 %vm867_vm1, %v6249_v35  ;;  %vm608_vm11 = vcmp.ge.f32.partialorder %v554_v39, 0.0  ;;  %v662_v12 = vmul.f32 0.01, %v554_v39  ;;  %v840_v58 = vrot.slane %v6258_v62, 1  ;;  %v841_v54 = vrot.slane %v6260_v55, 1 }
 0x10c   : > { %v6267_v1 = vsel %vm1446_vm8, %v1468_v59, %v1470_v38  ;;  %v555_v18 = vadd.f32 %v5847_v5, %v494_v48  ;;  %v435_v35 = vld [vmem:[%s5821_s18 + $0x130] sm:$0x3]  ;;  %v556_v34 = vadd.f32 %v5847_v5, %v495_v56  ;;  %v1473_v6 = vrot.slane %v6028_v19, 2  ;;  %v437_v59 = vld [vmem:[%s5821_s18 + $0x140] sm:$0xff] }
 0x10d   : > { %7350 = vst [vmem:[#allocation44_spill] sm:$0xff] %v6267_v1  ;;  %v6271_v15 = vsel %vm608_vm11, %v554_v39, %v662_v12  ;;  %v6278_v10 = vsel %vm784_vm0, %v840_v58, %v841_v54  ;;  %4687 = vmatmul.mubr.msk.f32.gmra.mrb[6].mxu0 %vm867_vm1, %v6267_v1  ;;  %v496_v38 = vmul.f32 %v5845_v4, %v435_v35 }
 0x10e   : > { %7351 = vst [vmem:[#allocation45_spill] sm:$0xff] %v6278_v10  ;;  %v843_v2 = vrot.slane %v6271_v15, 1  ;;  %vm609_vm12 = vcmp.ge.f32.partialorder %v555_v18, 0.0  ;;  %v663_v48 = vmul.f32 0.01, %v555_v18  ;;  %4460 = vmatprep.mubr.msk.f32.mxu1 %vm867_vm1, %v6278_v10  ;;  %vm610_vm13 = vcmp.ge.f32.partialorder %v556_v34, 0.0 }
 0x10f   : > { %v664_v56 = vmul.f32 0.01, %v556_v34  ;;  %v6287_v39 = vsel %vm1446_vm8, %v1472_v16, %v1473_v6  ;;  %v497_v44 = vmul.f32 %v5845_v4, %v436_v41  ;;  %v557_v35 = vadd.f32 %v5847_v5, %v496_v38 }
 0x110   : > { %7352 = vst [vmem:[#allocation46_spill] sm:$0xff] %v6287_v39  ;;  %v6291_v12 = vsel %vm784_vm0, %v841_v54, %v843_v2  ;;  %v6293_v58 = vsel %vm609_vm12, %v555_v18, %v663_v48  ;;  %4689 = vmatprep.mubr.msk.f32.mxu0 %vm867_vm1, %v6287_v39  ;;  %v498_v2 = vmul.f32 %v5845_v4, %v437_v59  ;;  %v438_v54 = vld [vmem:[%s5821_s18 + $0x148] sm:$0x3]  ;;  %v1477_v48 = vrot.slane %v6036_v32, 2 }
 0x111   : > { %7353 = vst [vmem:[#allocation47_spill] sm:$0xff] %v6291_v12  ;;  %4461 = vmatmul.mubr.msk.f32.gmra.mrb[22].mxu1 %vm867_vm1, %v6291_v12  ;;  %v6301_v10 = vsel %vm610_vm13, %v556_v34, %v664_v56  ;;  %v845_v16 = vrot.slane %v6293_v58, 1  ;;  %v6309_v25 = vsel %vm1446_vm8, %v1473_v6, %v1475_v52  ;;  %v558_v41 = vadd.f32 %v5847_v5, %v497_v44  ;;  %v439_v6 = vld [vmem:[%s5821_s18 + $0x150] sm:$0xff]  ;;  %v440_v44 = vld [vmem:[%s5821_s18 + $0x158] sm:$0xff] }
 0x112   : > { %v846_v18 = vrot.slane %v6301_v10, 1  ;;  %7354 = vst [vmem:[#allocation48_spill] sm:$0xff] %v6309_v25  ;;  %vm611_vm14 = vcmp.ge.f32.partialorder %v557_v35, 0.0  ;;  %v665_v34 = vmul.f32 0.01, %v557_v35  ;;  %4690 = vmatmul.mubr.msk.f32.gmra.mrb[8].mxu0 %vm867_vm1, %v6309_v25  ;;  %v559_v56 = vadd.f32 %v5847_v5, %v498_v2 }
 0x113   : > { %v1478_v59 = vrot.slane %v6045_v43, 2  ;;  %vm612_vm15 = vcmp.ge.f32.partialorder %v558_v41, 0.0  ;;  %v666_v12 = vmul.f32 0.01, %v558_v41  ;;  %v499_v52 = vmul.f32 %v5845_v4, %v438_v54 }
 0x114   : > { %v6318_v38 = vsel %vm784_vm0, %v845_v16, %v846_v18  ;;  %v6325_v23 = vsel %vm611_vm14, %v557_v35, %v665_v34  ;;  %vm613_vm2 = vcmp.ge.f32.partialorder %v559_v56, 0.0  ;;  %v667_v13 = vmul.f32 0.01, %v559_v56 }
 0x115   : > { %7355 = vst [vmem:[#allocation49_spill] sm:$0xff] %v6318_v38  ;;  %4463 = vmatprep.mubr.msk.f32.mxu1 %vm867_vm1, %v6318_v38  ;;  %v6328_v2 = vsel %vm1446_vm8, %v1477_v48, %v1478_v59  ;;  %v848_v16 = vrot.slane %v6325_v23, 1  ;;  %v6331_v25 = vsel %vm612_vm15, %v558_v41, %v666_v12  ;;  %v560_v54 = vadd.f32 %v5847_v5, %v499_v52  ;;  %v441_v38 = vld [vmem:[%s5821_s18 + $0x160] sm:$0x3] }
 0x116   : > { %7356 = vst [vmem:[#allocation50_spill] sm:$0xff] %v6328_v2  ;;  %4692 = vmatprep.mubr.msk.f32.mxu0 %vm867_vm1, %v6328_v2  ;;  %v1480_v39 = vrot.slane %v6077_v8, 2  ;;  %v6337_v1 = vsel %vm613_vm2, %v559_v56, %v667_v13  ;;  %v850_v35 = vrot.slane %v6331_v25, 1  ;;  %v500_v34 = vmul.f32 %v5845_v4, %v439_v6 }
 0x117   : > { %v501_v48 = vmul.f32 %v5845_v4, %v440_v44  ;;  %v6344_v12 = vsel %vm784_vm0, %v846_v18, %v848_v16  ;;  %v851_v41 = vrot.slane %v6337_v1, 1  ;;  %vm614_vm3 = vcmp.ge.f32.partialorder %v560_v54, 0.0 }
 0x118   : > { %7357 = vst [vmem:[#allocation51_spill] sm:$0xff] %v6344_v12  ;;  %v668_v52 = vmul.f32 0.01, %v560_v54  ;;  %4464 = vmatmul.mubr.msk.f32.gmra.mrb[24].mxu1 %vm867_vm1, %v6344_v12  ;;  %v6350_v13 = vsel %vm1446_vm8, %v1478_v59, %v1480_v39  ;;  %v561_v8 = vadd.f32 %v5847_v5, %v500_v34  ;;  %v1482_v6 = vrot.slane %v6083_v21, 2  ;;  %v442_v39 = vld [vmem:[%s5821_s18 + $0x168] sm:$0xff]  ;;  %v443_v59 = vld [vmem:[%s5821_s18 + $0x170] sm:$0xff] }
 0x119   : > { %7358 = vst [vmem:[#allocation52_spill] sm:$0xff] %v6350_v13  ;;  %v562_v56 = vadd.f32 %v5847_v5, %v501_v48  ;;  %v6356_v44 = vsel %vm784_vm0, %v850_v35, %v851_v41  ;;  %4693 = vmatmul.mubr.msk.f32.gmra.mrb[10].mxu0 %vm867_vm1, %v6350_v13  ;;  %v1483_v16 = vrot.slane %v6085_v22, 2  ;;  %v502_v12 = vmul.f32 %v5845_v4, %v441_v38  ;;  %s5397_s18 = scalar_lea.vmem %s5396_s13, 32 }
 0x11a   : > { %7359 = vst [vmem:[#allocation53_spill] sm:$0xff] %v6356_v44  ;;  %v6358_v18 = vsel %vm614_vm3, %v560_v54, %v668_v52  ;;  %4466 = vmatprep.mubr.msk.f32.mxu1 %vm867_vm1, %v6356_v44  ;;  %vm615_vm4 = vcmp.ge.f32.partialorder %v561_v8, 0.0  ;;  %v669_v35 = vmul.f32 0.01, %v561_v8  ;;  %v1485_v13 = vrot.slane %v6101_v47, 2  ;;  %p5399_p3 = scmp.lt.s32.totalorder %s5397_s18, %s5391_s21 }
 0x11b   : > { %v853_v34 = vrot.slane %v6358_v18, 1  ;;  %vm616_vm5 = vcmp.ge.f32.partialorder %v562_v56, 0.0  ;;  %v670_v54 = vmul.f32 0.01, %v562_v56  ;;  %v6370_v48 = vsel %vm1446_vm8, %v1482_v6, %v1483_v16 }
 0x11c   : > { %v563_v52 = vadd.f32 %v5847_v5, %v502_v12  ;;  %v6377_v2 = vsel %vm615_vm4, %v561_v8, %v669_v35  ;;  %4695 = vmatprep.mubr.msk.f32.mxu0 %vm867_vm1, %v6370_v48  ;;  %v503_v44 = vmul.f32 %v5845_v4, %v442_v39  ;;  %v504_v26 = vmul.f32 %v5845_v4, %v443_v59  ;;  %p5400_p5 = por %p5399_p3, %p5398_p13 }
 0x11d   : > { %v6375_v38 = vsel %vm784_vm0, %v851_v41, %v853_v34  ;;  %v6386_v6 = vsel %vm616_vm5, %v562_v56, %v670_v54  ;;  %v855_v47 = vrot.slane %v6377_v2, 1  ;;  %v6391_v8 = vsel %vm1446_vm8, %v1483_v16, %v1485_v13 }
 0x11e   : > { %7360 = vst [vmem:[#allocation54_spill] sm:$0xff] %v6375_v38  ;;  %4467 = vmatmul.mubr.msk.f32.gmra.mrb[26].mxu1 %vm867_vm1, %v6375_v38  ;;  %vm617_vm6 = vcmp.ge.f32.partialorder %v563_v52, 0.0  ;;  %v671_v12 = vmul.f32 0.01, %v563_v52  ;;  %v856_v41 = vrot.slane %v6386_v6, 1  ;;  %v564_v34 = vadd.f32 %v5847_v5, %v503_v44  ;;  %4696 = vmatmul.mubr.msk.f32.gmra.mrb[12].mxu0 %vm867_vm1, %v6391_v8  ;;  %p5401_p11 = pnand %p5400_p5, %p5394_p1 }
 0x11f   : > { %v565_v39 = vadd.f32 %v5847_v5, %v504_v26  ;;  %v1487_v56 = vrot.slane %v6109_v57, 2  ;;  %v1488_v35 = vrot.slane %v6112_v61, 2  ;;  %v505_v54 = vmul.f32 %v5845_v4, %v444_v29 }
 0x120   : > { %v6395_v59 = vsel %vm617_vm6, %v563_v52, %v671_v12  ;;  %v6403_v38 = vsel %vm784_vm0, %v855_v47, %v856_v41  ;;  %vm618_vm7 = vcmp.ge.f32.partialorder %v564_v34, 0.0  ;;  %v672_v26 = vmul.f32 0.01, %v564_v34 }
 0x121   : > { %7361 = vst [vmem:[#allocation55_spill] sm:$0xff] %v6403_v38  ;;  %v858_v13 = vrot.slane %v6395_v59, 1  ;;  %vm619_vm9 = vcmp.ge.f32.partialorder %v565_v39, 0.0  ;;  %4469 = vmatprep.mubr.msk.f32.mxu1 %vm867_vm1, %v6403_v38  ;;  %v673_v44 = vmul.f32 0.01, %v565_v39  ;;  %v6409_v16 = vsel %vm1446_vm8, %v1487_v56, %v1488_v35 }
 0x122   : > { %7362 = vst [vmem:[#allocation56_spill] sm:$0xff] %v6409_v16  ;;  %v566_v52 = vadd.f32 %v5847_v5, %v505_v54  ;;  %4698 = vmatprep.mubr.msk.f32.mxu0 %vm867_vm1, %v6409_v16  ;;  %v1490_v4 = vrot.slane %v6130_v17, 2  ;;  %v1492_v29 = vrot.slane %v6174_v51, 2  ;;  %v1493_v47 = vrot.slane %v6177_v0, 2 }
 0x123   : > { %v6413_v12 = vsel %vm784_vm0, %v856_v41, %v858_v13  ;;  %v6422_v38 = vsel %vm618_vm7, %v564_v34, %v672_v26  ;;  %v6424_v56 = vsel %vm619_vm9, %v565_v39, %v673_v44  ;;  %v1495_v34 = vrot.slane %v6183_v40, 2 }
 0x124   : > { %7363 = vst [vmem:[#allocation57_spill] sm:$0xff] %v6413_v12  ;;  %4470 = vmatmul.mubr.msk.f32.gmra.mrb[28].mxu1 %vm867_vm1, %v6413_v12  ;;  %7364 = vst [vmem:[#allocation58_spill] sm:$0xff] %v6424_v56  ;;  %vm620_vm10 = vcmp.ge.f32.partialorder %v566_v52, 0.0  ;;  %v674_v5 = vmul.f32 0.01, %v566_v52  ;;  %v860_v41 = vrot.slane %v6422_v38, 1  ;;  %v6429_v13 = vsel %vm1446_vm8, %v1488_v35, %v1490_v4 }
 0x125   : > { %v861_v54 = vrot.slane %v6424_v56, 1  ;;  %v6432_v17 = vsel %vm1446_vm8, %v1492_v29, %v1493_v47  ;;  %4699 = vmatmul.mubr.msk.f32.gmra.mrb[14].mxu0 %vm867_vm1, %v6429_v13  ;;  %v1497_v39 = vrot.slane %v6209_v45, 2  ;;  %v1498_v26 = vrot.slane %v6217_v24, 2  ;;  %v6481_v12 = vld [vmem:[#allocation7 + $0x18] sm:$0xff] }
 0x126   : > { %v6434_v16 = vsel %vm620_vm10, %v566_v52, %v674_v5  ;;  %4701 = vmatprep.mubr.msk.f32.mxu0 %vm867_vm1, %v6432_v17  ;;  %v1500_v52 = vrot.slane %v6231_v49, 2  ;;  %v6451_v40 = vsel %vm1446_vm8, %v1493_v47, %v1495_v34  ;;  %v1502_v5 = vrot.slane %v6258_v62, 2 }
 0x127   : > { %v6442_v44 = vsel %vm784_vm0, %v860_v41, %v861_v54  ;;  %v863_v35 = vrot.slane %v6434_v16, 1  ;;  %7366 = vst [vmem:[#allocation60_spill] sm:$0xff] %v6451_v40  ;;  %v6454_v4 = vsel %vm1446_vm8, %v1497_v39, %v1498_v26  ;;  %v1503_v41 = vrot.slane %v6260_v55, 2 }
 0x128   : > { %7365 = vst [vmem:[#allocation59_spill] sm:$0xff] %v6442_v44  ;;  %4472 = vmatprep.mubr.msk.f32.mxu1 %vm867_vm1, %v6442_v44  ;;  %7367 = vst [vmem:[#allocation61_spill] sm:$0xff] %v6454_v4  ;;  %v6470_v49 = vsel %vm1446_vm8, %v1498_v26, %v1500_v52  ;;  %v1505_v47 = vrot.slane %v6271_v15, 2  ;;  %v1507_v34 = vrot.slane %v6293_v58, 2  ;;  %v1508_v39 = vrot.slane %v6301_v10, 2 }
 0x129   : > { %v6457_v29 = vsel %vm784_vm0, %v861_v54, %v863_v35  ;;  %4702 = vmatmul.mubr.msk.f32.gmra.mrb[16].mxu0 %vm867_vm1, %v6451_v40  ;;  %7369 = vst [vmem:[#allocation63_spill] sm:$0xff] %v6470_v49  ;;  %v445_v54 = vld [vmem:[%s5829_s14] sm:$0xff]  ;;  %v446_v35 = vld [vmem:[%s5829_s14 + $0x8] sm:$0xff]  ;;  %v447_v44 = vld [vmem:[%s5829_s14 + $0x10] sm:$0x3] }
 0x12a   : > { %7368 = vst [vmem:[#allocation62_spill] sm:$0xff] %v6457_v29  ;;  %4473 = vmatmul.mubr.msk.f32.gmra.mrb[30].mxu1 %vm867_vm1, %v6457_v29  ;;  %4704 = vmatprep.mubr.msk.f32.mxu0 %vm867_vm1, %v6454_v4  ;;  %v6478_v29 = vsel %vm1446_vm8, %v1502_v5, %v1503_v41  ;;  %v6487_v26 = vld [vmem:[#allocation8] ss:$0 sm:$0xff]  ;;  %v6494_v52 = vsel %vm1446_vm8, %v1503_v41, %v1505_v47  ;;  %v1510_v5 = vrot.slane %v6325_v23, 2  ;;  %v6507_v41 = vld [vmem:[#allocation10] ss:$0 sm:$0xff] }
 0x12b   : > { %4477 = vmatprep.mubr.msk.f32.mxu1 %vm867_vm1, %v5873_v30  ;;  %7370 = vst [vmem:[#allocation64_spill] sm:$0xff] %v6478_v29  ;;  %v506_v15 = vmul.f32 %v6487_v26, %v445_v54  ;;  %7371 = vst [vmem:[#allocation65_spill] sm:$0xff] %v6494_v52  ;;  %v507_v4 = vmul.f32 %v6487_v26, %v446_v35  ;;  %v1512_v54 = vrot.slane %v6331_v25, 2 }
 0x12c   : > { %v508_v40 = vmul.f32 %v6487_v26, %v447_v44  ;;  %v6520_v44 = vsel %vm1446_vm8, %v1508_v39, %v1510_v5  ;;  %v1522_v5 = vrot.slane %v6422_v38, 2 }
 0x12d   : > { %4705 = vmatmul.mubr.msk.f32.gmra.mrb[18].mxu0 %vm867_vm1, %v6470_v49  ;;  %v6501_v49 = vsel %vm1446_vm8, %v1507_v34, %v1508_v39  ;;  %v567_v23 = vadd.f32 %v6507_v41, %v506_v15  ;;  %v568_v47 = vadd.f32 %v6507_v41, %v507_v4  ;;  %7373 = vst [vmem:[#allocation67_spill] sm:$0xff] %v6520_v44  ;;  %v1515_v34 = vrot.slane %v6358_v18, 2 }
 0x12e   : > { %4478 = vmatmul.mubr.msk.f32.vlgmr.msra.gmra.mrb[0].mxu1 %vm867_vm1, %v5875_v31  ;;  %4707 = vmatprep.mubr.msk.f32.mxu0 %vm867_vm1, %v6478_v29  ;;  %7372 = vst [vmem:[#allocation66_spill] sm:$0xff] %v6501_v49  ;;  %v1517_v4 = vrot.slane %v6377_v2, 2  ;;  %v1518_v15 = vrot.slane %v6386_v6, 2 }
 0x12f   : > { %4526 = vmatpush3.msra.mxu1 %v5959_v33  ;;  %4480 = vmatprep.mubr.msk.f32.mxu1 %vm867_vm1, %v5881_v36  ;;  %v1513_v33 = vrot.slane %v6337_v1, 2  ;;  %v675_v36 = vmul.f32 0.01, %v567_v23  ;;  %vm621_vm11 = vcmp.ge.f32.partialorder %v567_v23, 0.0  ;;  %vm622_vm12 = vcmp.ge.f32.partialorder %v568_v47, 0.0 }
 0x130   : > { %4575 = vmatprep.subr.mxu1 %v6481_v12  ;;  %v6542_v39 = vsel %vm1446_vm8, %v1517_v4, %v1518_v15  ;;  %v6603_v4 = vld [vmem:[#allocation7 + $0x40] sm:$0xff] }
 0x131   : > { %4708 = vmatmul.mubr.msk.f32.gmra.mrb[20].mxu0 %vm867_vm1, %v6494_v52  ;;  %v6524_v35 = vsel %vm1446_vm8, %v1512_v54, %v1513_v33  ;;  %v676_v52 = vmul.f32 0.01, %v568_v47  ;;  %v6538_v18 = vsel %vm1446_vm8, %v1513_v33, %v1515_v34  ;;  %7376 = vst [vmem:[#allocation70_spill] sm:$0xff] %v6542_v39  ;;  %v1523_v54 = vrot.slane %v6424_v56, 2 }
 0x132   : > { %4481 = vmatmul.mubr.msk.f32.gmra.mrb[2].mxu1 %vm867_vm1, %v5883_v37  ;;  %4710 = vmatprep.mubr.msk.f32.mxu0 %vm867_vm1, %v6501_v49  ;;  %7374 = vst [vmem:[#allocation68_spill] sm:$0xff] %v6524_v35  ;;  %v569_v37 = vadd.f32 %v6507_v41, %v508_v40  ;;  %7375 = vst [vmem:[#allocation69_spill] sm:$0xff] %v6538_v18  ;;  %v1520_v40 = vrot.slane %v6395_v59, 2  ;;  %v6546_v49 = vsel %vm621_vm11, %v567_v23, %v675_v36 }
 0x133   : > { %4483 = vmatprep.mubr.msk.f32.mxu1 %vm867_vm1, %v5911_v63  ;;  %v6548_v29 = vsel %vm622_vm12, %v568_v47, %v676_v52  ;;  %v1525_v36 = vrot.slane %v6434_v16, 2  ;;  %v6563_v52 = vsel %vm1446_vm8, %v1522_v5, %v1523_v54  ;;  %v2384_v33 = vrot.slane %v6546_v49, 2 }
 0x134   : > { %vm623_vm13 = vcmp.ge.f32.partialorder %v569_v37, 0.0  ;;  %v6559_v59 = vsel %vm1446_vm8, %v1518_v15, %v1520_v40  ;;  %7378 = vst [vmem:[#allocation72_spill] sm:$0xff] %v6563_v52  ;;  %v2385_v23 = vrot.slane %v6548_v29, 2  ;;  %v1448_v15 = vrot.slane %v5875_v31, 2  ;;  %v6691_v31 = vld [vmem:[#allocation7 + $0x20] sm:$0xff] }
 0x135   : > { %4711 = vmatmul.mubr.msk.f32.gmra.mrb[22].mxu0 %vm867_vm1, %v6520_v44  ;;  %v677_v44 = vmul.f32 0.01, %v569_v37  ;;  %7377 = vst [vmem:[#allocation71_spill] sm:$0xff] %v6559_v59  ;;  %v6578_v16 = vsel %vm1446_vm8, %v1523_v54, %v1525_v36  ;;  %v1450_v40 = vrot.slane %v5892_v46, 2  ;;  %v448_v46 = vld [vmem:[%s5829_s14 + $0x18] sm:$0xff]  ;;  %v7382_v36 = vld [vmem:[#allocation40_spill] sm:$0xff] }
 0x136   : > { %4484 = vmatmul.mubr.msk.f32.gmra.mrb[4].mxu1 %vm867_vm1, %v5922_v7  ;;  %4713 = vmatprep.mubr.msk.f32.mxu0 %vm867_vm1, %v6524_v35  ;;  %7379 = vst [vmem:[#allocation73_spill] sm:$0xff] %v6578_v16 }
 0x137   : > { %4486 = vmatprep.mubr.msk.f32.mxu1 %vm867_vm1, %v5954_v27  ;;  %v6567_v47 = vsel %vm623_vm13, %v569_v37, %v677_v44  ;;  %v6582_v37 = vsel %vm1446_vm8, %v2384_v33, %v2385_v23  ;;  %v7383_v33 = vld [vmem:[#allocation42_spill] sm:$0xff] }
 0x138   : > { %v2387_v34 = vrot.slane %v6567_v47, 2  ;;  %7380 = vst [vmem:[#allocation74_spill] sm:$0xff] %v6582_v37 }
 0x139   : > { %4714 = vmatmul.mubr.msk.f32.gmra.mrb[24].mxu0 %vm867_vm1, %v6538_v18 }
 0x13a   : > { %4487 = vmatmul.mubr.msk.f32.gmra.mrb[6].mxu1 %vm867_vm1, %v5956_v28  ;;  %4716 = vmatprep.mubr.msk.f32.mxu0 %vm867_vm1, %v6542_v39  ;;  %v6593_v44 = vsel %vm1446_vm8, %v2385_v23, %v2387_v34 }
 0x13b   : > { %4489 = vmatprep.mubr.msk.f32.mxu1 %vm867_vm1, %v5971_v42  ;;  %7381 = vst [vmem:[#allocation75_spill] sm:$0xff] %v6593_v44 }
 0x13d   : > { %4717 = vmatmul.mubr.msk.f32.gmra.mrb[26].mxu0 %vm867_vm1, %v6559_v59 }
 0x13e   : > { %4490 = vmatmul.mubr.msk.f32.gmra.mrb[8].mxu1 %vm867_vm1, %v5989_v53  ;;  %4719 = vmatprep.mubr.msk.f32.mxu0 %vm867_vm1, %v6563_v52 }
 0x13f   : > { %4492 = vmatprep.mubr.msk.f32.mxu1 %vm867_vm1, %v6021_v14 }
 0x141   : > { %4720 = vmatmul.mubr.msk.f32.gmra.mrb[28].mxu0 %vm867_vm1, %v6578_v16 }
 0x142   : > { %4493 = vmatmul.mubr.msk.f32.gmra.mrb[10].mxu1 %vm867_vm1, %v6028_v19  ;;  %4722 = vmatprep.mubr.msk.f32.mxu0 %vm867_vm1, %v6582_v37  ;;  %v7399_v37 = vld [vmem:[#allocation63_spill] sm:$0xff] }
 0x143   : > { %4495 = vmatprep.mubr.msk.f32.mxu1 %vm867_vm1, %v6036_v32 }
 0x145   : > { %4723 = vmatmul.mubr.msk.f32.gmra.mrb[30].mxu0 %vm867_vm1, %v6593_v44  ;;  %v7396_v44 = vld [vmem:[#allocation29_spill] sm:$0xff] }
 0x146   : > { %4496 = vmatmul.mubr.msk.f32.gmra.mrb[12].mxu1 %vm867_vm1, %v6045_v43  ;;  %4727 = vmatprep.mubr.msk.f32.mxu0 %vm867_vm1, %v5911_v63 }
 0x147   : > { %4498 = vmatprep.mubr.msk.f32.mxu1 %vm867_vm1, %v6083_v21 }
 0x149   : > { %4728 = vmatmul.mubr.msk.f32.vlgmr.msra.gmra.mrb[0].mxu0 %vm867_vm1, %v5922_v7 }
 0x14a   : > { %4499 = vmatmul.mubr.msk.f32.gmra.mrb[14].mxu1 %vm867_vm1, %v6085_v22  ;;  %4776 = vmatpush3.msra.mxu0 %v6194_v11  ;;  %v1447_v11 = vrot.slane %v5873_v30, 2  ;;  %v1451_v30 = vsel %vm1446_vm8, %v1448_v15, %v1450_v40 }
 0x14b   : > { %4501 = vmatprep.mubr.msk.f32.mxu1 %vm867_vm1, %v6109_v57  ;;  %4730 = vmatprep.mubr.msk.f32.mxu0 %vm867_vm1, %v5954_v27 }
 0x14c   : > { %4825 = vmatprep.subr.mxu0 %v6603_v4  ;;  %v1449_v5 = vsel %vm1446_vm8, %v1447_v11, %v1448_v15  ;;  %v7384_v11 = vld [vmem:[#allocation44_spill] sm:$0xff]  ;;  %v7385_v15 = vld [vmem:[#allocation46_spill] sm:$0xff] }
 0x14d   : > { %4731 = vmatmul.mubr.msk.f32.gmra.mrb[2].mxu0 %vm867_vm1, %v5956_v28 }
 0x14e   : > { %4502 = vmatmul.mubr.msk.f32.gmra.mrb[16].mxu1 %vm867_vm1, %v6112_v61  ;;  %4733 = vmatprep.mubr.msk.f32.mxu0 %vm867_vm1, %v5971_v42 }
 0x14f   : > { %4504 = vmatprep.mubr.msk.f32.mxu1 %vm867_vm1, %v6174_v51 }
 0x151   : > { %4734 = vmatmul.mubr.msk.f32.gmra.mrb[4].mxu0 %vm867_vm1, %v5989_v53 }
 0x152   : > { %4505 = vmatmul.mubr.msk.f32.gmra.mrb[18].mxu1 %vm867_vm1, %v6177_v0  ;;  %4736 = vmatprep.mubr.msk.f32.mxu0 %vm867_vm1, %v6021_v14 }
 0x153   : > { %4507 = vmatprep.mubr.msk.f32.mxu1 %vm867_vm1, %v6209_v45 }
 0x155   : > { %4737 = vmatmul.mubr.msk.f32.gmra.mrb[6].mxu0 %vm867_vm1, %v6028_v19 }
 0x156   : > { %4508 = vmatmul.mubr.msk.f32.gmra.mrb[20].mxu1 %vm867_vm1, %v6217_v24  ;;  %4739 = vmatprep.mubr.msk.f32.mxu0 %vm867_vm1, %v6036_v32 }
 0x157   : > { %4510 = vmatprep.mubr.msk.f32.mxu1 %vm867_vm1, %v6258_v62 }
 0x159   : > { %4740 = vmatmul.mubr.msk.f32.gmra.mrb[8].mxu0 %vm867_vm1, %v6045_v43 }
 0x15a   : > { %4511 = vmatmul.mubr.msk.f32.gmra.mrb[22].mxu1 %vm867_vm1, %v6260_v55  ;;  %4742 = vmatprep.mubr.msk.f32.mxu0 %vm867_vm1, %v6083_v21 }
 0x15b   : > { %4513 = vmatprep.mubr.msk.f32.mxu1 %vm867_vm1, %v6293_v58 }
 0x15d   : > { %4743 = vmatmul.mubr.msk.f32.gmra.mrb[10].mxu0 %vm867_vm1, %v6085_v22 }
 0x15e   : > { %4514 = vmatmul.mubr.msk.f32.gmra.mrb[24].mxu1 %vm867_vm1, %v6301_v10  ;;  %4745 = vmatprep.mubr.msk.f32.mxu0 %vm867_vm1, %v6109_v57 }
 0x15f   : > { %4516 = vmatprep.mubr.msk.f32.mxu1 %vm867_vm1, %v6331_v25 }
 0x161   : > { %4746 = vmatmul.mubr.msk.f32.gmra.mrb[12].mxu0 %vm867_vm1, %v6112_v61 }
 0x162   : > { %4517 = vmatmul.mubr.msk.f32.gmra.mrb[26].mxu1 %vm867_vm1, %v6337_v1  ;;  %4748 = vmatprep.mubr.msk.f32.mxu0 %vm867_vm1, %v6174_v51 }
 0x163   : > { %4519 = vmatprep.mubr.msk.f32.mxu1 %vm867_vm1, %v6377_v2 }
 0x165   : > { %4749 = vmatmul.mubr.msk.f32.gmra.mrb[14].mxu0 %vm867_vm1, %v6177_v0 }
 0x166   : > { %4520 = vmatmul.mubr.msk.f32.gmra.mrb[28].mxu1 %vm867_vm1, %v6386_v6  ;;  %4751 = vmatprep.mubr.msk.f32.mxu0 %vm867_vm1, %v6209_v45 }
 0x167   : > { %4522 = vmatprep.mubr.msk.f32.mxu1 %vm867_vm1, %v6422_v38 }
 0x169   : > { %4752 = vmatmul.mubr.msk.f32.gmra.mrb[16].mxu0 %vm867_vm1, %v6217_v24 }
 0x16a   : > { %4523 = vmatmul.mubr.msk.f32.gmra.mrb[30].mxu1 %vm867_vm1, %v6424_v56  ;;  %4754 = vmatprep.mubr.msk.f32.mxu0 %vm867_vm1, %v6258_v62 }
 0x16b   : > { %4527 = vmatprep.mubr.msk.f32.mxu1 %vm867_vm1, %v1449_v5 }
 0x16d   : > { %4755 = vmatmul.mubr.msk.f32.gmra.mrb[18].mxu0 %vm867_vm1, %v6260_v55 }
 0x16e   : > { %4528 = vmatmul.mubr.msk.f32.vlgmr.msra.gmra.mrb[0].mxu1 %vm867_vm1, %v1451_v30  ;;  %4757 = vmatprep.mubr.msk.f32.mxu0 %vm867_vm1, %v6293_v58  ;;  %v7386_v30 = vld [vmem:[#allocation48_spill] sm:$0xff] }
 0x16f   : > { %4576 = vmatpush3.msra.mxu1 %v6481_v12  ;;  %4530 = vmatprep.mubr.msk.f32.mxu1 %vm867_vm1, %v6118_v3  ;;  %v509_v3 = vmul.f32 %v6487_v26, %v448_v46  ;;  %v449_v12 = vld [vmem:[%s5829_s14 + $0x20] sm:$0xff] }
 0x170   : > { %4875 = vmatprep.subr.mxu1 %v6691_v31  ;;  %v7387_v46 = vld [vmem:[#allocation50_spill] sm:$0xff] }
 0x171   : > { %4758 = vmatmul.mubr.msk.f32.gmra.mrb[20].mxu0 %vm867_vm1, %v6301_v10  ;;  %v570_v54 = vadd.f32 %v6507_v41, %v509_v3 }
 0x172   : > { %4531 = vmatmul.mubr.msk.f32.gmra.mrb[2].mxu1 %vm867_vm1, %v6123_v9  ;;  %4760 = vmatprep.mubr.msk.f32.mxu0 %vm867_vm1, %v6331_v25  ;;  %v510_v9 = vmul.f32 %v6487_v26, %v449_v12  ;;  %v7388_v12 = vld [vmem:[#allocation52_spill] sm:$0xff] }
 0x173   : > { %4533 = vmatprep.mubr.msk.f32.mxu1 %vm867_vm1, %v6158_v50  ;;  %v678_v34 = vmul.f32 0.01, %v570_v54  ;;  %vm624_vm14 = vcmp.ge.f32.partialorder %v570_v54, 0.0 }
 0x174   : > { %v571_v23 = vadd.f32 %v6507_v41, %v510_v9  ;;  %v7389_v9 = vld [vmem:[#allocation24_spill] sm:$0xff] }
 0x175   : > { %4761 = vmatmul.mubr.msk.f32.gmra.mrb[22].mxu0 %vm867_vm1, %v6337_v1  ;;  %v6732_v5 = vsel %vm624_vm14, %v570_v54, %v678_v34  ;;  %v7390_v54 = vld [vmem:[#allocation25_spill] sm:$0xff]  ;;  %v7392_v34 = vld [vmem:[#allocation26_spill] sm:$0xff] }
 0x176   : > { %4534 = vmatmul.mubr.msk.f32.gmra.mrb[4].mxu1 %vm867_vm1, %v6163_v60  ;;  %4763 = vmatprep.mubr.msk.f32.mxu0 %vm867_vm1, %v6377_v2  ;;  %v679_v40 = vmul.f32 0.01, %v571_v23  ;;  %vm625_vm15 = vcmp.ge.f32.partialorder %v571_v23, 0.0 }
 0x177   : > { %4536 = vmatprep.mubr.msk.f32.mxu1 %vm867_vm1, %v6186_v20 }
 0x178   : > { %v6742_v3 = vsel %vm625_vm15, %v571_v23, %v679_v40  ;;  %v7391_v23 = vld [vmem:[#allocation56_spill] sm:$0xff]  ;;  %v7393_v40 = vld [vmem:[#allocation27_spill] sm:$0xff] }
 0x179   : > { %4764 = vmatmul.mubr.msk.f32.gmra.mrb[24].mxu0 %vm867_vm1, %v6386_v6 }
 0x17a   : > { %4537 = vmatmul.mubr.msk.f32.gmra.mrb[6].mxu1 %vm867_vm1, %v7382_v36  ;;  %4766 = vmatprep.mubr.msk.f32.mxu0 %vm867_vm1, %v6422_v38 }
 0x17b   : > { %4539 = vmatprep.mubr.msk.f32.mxu1 %vm867_vm1, %v7383_v33 }
 0x17d   : > { %4767 = vmatmul.mubr.msk.f32.gmra.mrb[26].mxu0 %vm867_vm1, %v6424_v56  ;;  %v7401_v56 = vld [vmem:[#allocation64_spill] sm:$0xff] }
 0x17e   : > { %4540 = vmatmul.mubr.msk.f32.gmra.mrb[8].mxu1 %vm867_vm1, %v7384_v11  ;;  %4769 = vmatprep.mubr.msk.f32.mxu0 %vm867_vm1, %v6546_v49 }
 0x17f   : > { %4542 = vmatprep.mubr.msk.f32.mxu1 %vm867_vm1, %v7385_v15 }
 0x181   : > { %4770 = vmatmul.mubr.msk.f32.gmra.mrb[28].mxu0 %vm867_vm1, %v6548_v29 }
 0x182   : > { %4543 = vmatmul.mubr.msk.f32.gmra.mrb[10].mxu1 %vm867_vm1, %v7386_v30  ;;  %4772 = vmatprep.mubr.msk.f32.mxu0 %vm867_vm1, %v6732_v5 }
 0x183   : > { %4545 = vmatprep.mubr.msk.f32.mxu1 %vm867_vm1, %v7387_v46 }
 0x185   : > { %4773 = vmatmul.mubr.msk.f32.gmra.mrb[30].mxu0 %vm867_vm1, %v6742_v3 }
 0x186   : > { %4546 = vmatmul.mubr.msk.f32.gmra.mrb[12].mxu1 %vm867_vm1, %v7388_v12  ;;  %4777 = vmatprep.mubr.msk.f32.mxu0 %vm867_vm1, %v7389_v9  ;;  %v7394_v9 = vld [vmem:[#allocation28_spill] sm:$0xff] }
 0x187   : > { %4548 = vmatprep.mubr.msk.f32.mxu1 %vm867_vm1, %v6370_v48 }
 0x189   : > { %4778 = vmatmul.mubr.msk.f32.vlgmr.msra.gmra.mrb[0].mxu0 %vm867_vm1, %v7390_v54  ;;  %v7395_v54 = vld [vmem:[#allocation60_spill] sm:$0xff] }
 0x18a   : > { %4549 = vmatmul.mubr.msk.f32.gmra.mrb[14].mxu1 %vm867_vm1, %v6391_v8  ;;  %4826 = vmatpush3.msra.mxu0 %v6603_v4  ;;  %v7397_v4 = vld [vmem:[#allocation61_spill] sm:$0xff] }
 0x18b   : > { %4551 = vmatprep.mubr.msk.f32.mxu1 %vm867_vm1, %v7391_v23  ;;  %4780 = vmatprep.mubr.msk.f32.mxu0 %vm867_vm1, %v7392_v34  ;;  %v7398_v34 = vld [vmem:[#allocation30_spill] sm:$0xff] }
 0x18d   : > { %4781 = vmatmul.mubr.msk.f32.gmra.mrb[2].mxu0 %vm867_vm1, %v7393_v40  ;;  %v7400_v40 = vld [vmem:[#allocation31_spill] sm:$0xff] }
 0x18e   : > { %4552 = vmatmul.mubr.msk.f32.gmra.mrb[16].mxu1 %vm867_vm1, %v6429_v13  ;;  %4783 = vmatprep.mubr.msk.f32.mxu0 %vm867_vm1, %v7394_v9  ;;  %v7402_v9 = vld [vmem:[#allocation32_spill] sm:$0xff] }
 0x18f   : > { %4554 = vmatprep.mubr.msk.f32.mxu1 %vm867_vm1, %v6432_v17 }
 0x191   : > { %4784 = vmatmul.mubr.msk.f32.gmra.mrb[4].mxu0 %vm867_vm1, %v7396_v44  ;;  %v7404_v44 = vld [vmem:[#allocation33_spill] sm:$0xff] }
 0x192   : > { %4555 = vmatmul.mubr.msk.f32.gmra.mrb[18].mxu1 %vm867_vm1, %v7395_v54  ;;  %4786 = vmatprep.mubr.msk.f32.mxu0 %vm867_vm1, %v7398_v34  ;;  %v7403_v54 = vld [vmem:[#allocation65_spill] sm:$0xff]  ;;  %v7406_v34 = vld [vmem:[#allocation34_spill] sm:$0xff] }
 0x193   : > { %4557 = vmatprep.mubr.msk.f32.mxu1 %vm867_vm1, %v7397_v4  ;;  %v7405_v4 = vld [vmem:[#allocation66_spill] sm:$0xff] }
 0x195   : > { %4787 = vmatmul.mubr.msk.f32.gmra.mrb[6].mxu0 %vm867_vm1, %v7400_v40  ;;  %v7408_v40 = vld [vmem:[#allocation35_spill] sm:$0xff] }
 0x196   : > { %4558 = vmatmul.mubr.msk.f32.gmra.mrb[20].mxu1 %vm867_vm1, %v7399_v37  ;;  %4789 = vmatprep.mubr.msk.f32.mxu0 %vm867_vm1, %v7402_v9  ;;  %v7407_v37 = vld [vmem:[#allocation67_spill] sm:$0xff]  ;;  %v7409_v9 = vld [vmem:[#allocation36_spill] sm:$0xff] }
 0x197   : > { %4560 = vmatprep.mubr.msk.f32.mxu1 %vm867_vm1, %v7401_v56 }
 0x199   : > { %4790 = vmatmul.mubr.msk.f32.gmra.mrb[8].mxu0 %vm867_vm1, %v7404_v44  ;;  %v7410_v44 = vld [vmem:[#allocation37_spill] sm:$0xff] }
 0x19a   : > { %4561 = vmatmul.mubr.msk.f32.gmra.mrb[22].mxu1 %vm867_vm1, %v7403_v54  ;;  %4792 = vmatprep.mubr.msk.f32.mxu0 %vm867_vm1, %v7406_v34  ;;  %v7411_v34 = vld [vmem:[#allocation38_spill] sm:$0xff] }
 0x19b   : > { %4563 = vmatprep.mubr.msk.f32.mxu1 %vm867_vm1, %v7405_v4 }
 0x19d   : > { %4793 = vmatmul.mubr.msk.f32.gmra.mrb[10].mxu0 %vm867_vm1, %v7408_v40  ;;  %v7412_v40 = vld [vmem:[#allocation39_spill] sm:$0xff] }
 0x19e   : > { %4564 = vmatmul.mubr.msk.f32.gmra.mrb[24].mxu1 %vm867_vm1, %v7407_v37  ;;  %4795 = vmatprep.mubr.msk.f32.mxu0 %vm867_vm1, %v7409_v9  ;;  %v7413_v9 = vld [vmem:[#allocation41_spill] sm:$0xff] }
 0x19f   : > { %4566 = vmatprep.mubr.msk.f32.mxu1 %vm867_vm1, %v6524_v35  ;;  %v7417_v35 = vld [vmem:[#allocation23_spill] sm:$0xff] }
 0x1a1   : > { %4796 = vmatmul.mubr.msk.f32.gmra.mrb[12].mxu0 %vm867_vm1, %v7410_v44  ;;  %v7414_v44 = vld [vmem:[#allocation43_spill] sm:$0xff] }
 0x1a2   : > { %4567 = vmatmul.mubr.msk.f32.gmra.mrb[26].mxu1 %vm867_vm1, %v6538_v18  ;;  %4798 = vmatprep.mubr.msk.f32.mxu0 %vm867_vm1, %v7411_v34  ;;  %v7416_v18 = vld [vmem:[#allocation45_spill] sm:$0xff] }
 0x1a3   : > { %4569 = vmatprep.mubr.msk.f32.mxu1 %vm867_vm1, %v6542_v39  ;;  %v7415_v39 = vld [vmem:[#allocation22_spill] sm:$0xff] }
 0x1a5   : > { %4799 = vmatmul.mubr.msk.f32.gmra.mrb[14].mxu0 %vm867_vm1, %v7412_v40 }
 0x1a6   : > { %4570 = vmatmul.mubr.msk.f32.gmra.mrb[28].mxu1 %vm867_vm1, %v6559_v59  ;;  %4801 = vmatprep.mubr.msk.f32.mxu0 %vm867_vm1, %v7413_v9  ;;  %v450_v59 = vld [vmem:[%s5829_s14 + $0x28] sm:$0x3] }
 0x1a7   : > { %4572 = vmatprep.mubr.msk.f32.mxu1 %vm867_vm1, %v6563_v52  ;;  %v7418_v52 = vld [vmem:[#allocation47_spill] sm:$0xff] }
 0x1a9   : > { %4802 = vmatmul.mubr.msk.f32.gmra.mrb[16].mxu0 %vm867_vm1, %v7414_v44 }
 0x1aa   : > { %4573 = vmatmul.mubr.msk.f32.gmra.mrb[30].mxu1 %vm867_vm1, %v6578_v16  ;;  %4804 = vmatprep.mubr.msk.f32.mxu0 %vm867_vm1, %v7416_v18  ;;  %v7419_v16 = vld [vmem:[#allocation49_spill] sm:$0xff]  ;;  %v7420_v18 = vld [vmem:[#allocation51_spill] sm:$0xff] }
 0x1ab   : > { %4577 = vmatprep.mubr.msk.f32.mxu1 %vm867_vm1, %v7415_v39  ;;  %v511_v39 = vmul.f32 %v6487_v26, %v450_v59  ;;  %v2116_v26 = vrot.slane %v6546_v49, 1 }
 0x1ad   : > { %4805 = vmatmul.mubr.msk.f32.gmra.mrb[18].mxu0 %vm867_vm1, %v7418_v52 }
 0x1ae   : > { %4578 = vmatmul.mubr.msk.f32.vlgmr.msra.gmra.mrb[0].mxu1 %vm867_vm1, %v7417_v35  ;;  %4807 = vmatprep.mubr.msk.f32.mxu0 %vm867_vm1, %v7419_v16  ;;  %v7421_v35 = vld [vmem:[#allocation53_spill] sm:$0xff] }
 0x1af   : > { %4876 = vmatpush3.msra.mxu1 %v6691_v31  ;;  %4580 = vmatprep.mubr.msk.f32.mxu1 %vm867_vm1, %v5911_v63  ;;  %v572_v31 = vadd.f32 %v6507_v41, %v511_v39  ;;  %v7422_v63 = vld [vmem:[#allocation54_spill] sm:$0xff]  ;;  %v7424_v41 = vld [vmem:[#allocation57_spill] sm:$0xff]  ;;  %v2918_v39 = vrot.slane %v6732_v5, 1 }
 0x1b1   : > { %4808 = vmatmul.mubr.msk.f32.gmra.mrb[20].mxu0 %vm867_vm1, %v7420_v18  ;;  %v680_v59 = vmul.f32 0.01, %v572_v31  ;;  %vm626_vm2 = vcmp.ge.f32.partialorder %v572_v31, 0.0 }
 0x1b2   : > { %4581 = vmatmul.mubr.msk.f32.gmra.mrb[2].mxu1 %vm867_vm1, %v5922_v7  ;;  %4810 = vmatprep.mubr.msk.f32.mxu0 %vm867_vm1, %v7421_v35  ;;  %v7423_v7 = vld [vmem:[#allocation55_spill] sm:$0xff] }
 0x1b3   : > { %4583 = vmatprep.mubr.msk.f32.mxu1 %vm867_vm1, %v5954_v27  ;;  %v2117_v27 = vrot.slane %v6548_v29, 1  ;;  %v6869_v35 = vsel %vm626_vm2, %v572_v31, %v680_v59 }
 0x1b5   : > { %4811 = vmatmul.mubr.msk.f32.gmra.mrb[22].mxu0 %vm867_vm1, %v7422_v63  ;;  %v6867_v63 = vsel %vm784_vm0, %v2116_v26, %v2117_v27 }
 0x1b6   : > { %4584 = vmatmul.mubr.msk.f32.gmra.mrb[4].mxu1 %vm867_vm1, %v5956_v28  ;;  %4813 = vmatprep.mubr.msk.f32.mxu0 %vm867_vm1, %v7423_v7  ;;  %v7425_v28 = vld [vmem:[#allocation59_spill] sm:$0xff]  ;;  %v2919_v7 = vrot.slane %v6742_v3, 1 }
 0x1b7   : > { %4586 = vmatprep.mubr.msk.f32.mxu1 %vm867_vm1, %v5971_v42  ;;  %v2119_v42 = vrot.slane %v6567_v47, 1  ;;  %v2921_v47 = vrot.slane %v6869_v35, 1 }
 0x1b8   : > { %v2920_v31 = vsel %vm784_vm0, %v2918_v39, %v2919_v7 }
 0x1b9   : > { %4814 = vmatmul.mubr.msk.f32.gmra.mrb[24].mxu0 %vm867_vm1, %v7424_v41 }
 0x1ba   : > { %4587 = vmatmul.mubr.msk.f32.gmra.mrb[6].mxu1 %vm867_vm1, %v5989_v53  ;;  %4816 = vmatprep.mubr.msk.f32.mxu0 %vm867_vm1, %v7425_v28  ;;  %v7426_v53 = vld [vmem:[#allocation62_spill] sm:$0xff] }
 0x1bb   : > { %4589 = vmatprep.mubr.msk.f32.mxu1 %vm867_vm1, %v6021_v14  ;;  %v6880_v14 = vsel %vm784_vm0, %v2117_v27, %v2119_v42 }
 0x1bd   : > { %4817 = vmatmul.mubr.msk.f32.gmra.mrb[26].mxu0 %vm867_vm1, %v7426_v53 }
 0x1be   : > { %4590 = vmatmul.mubr.msk.f32.gmra.mrb[8].mxu1 %vm867_vm1, %v6028_v19  ;;  %4819 = vmatprep.mubr.msk.f32.mxu0 %vm867_vm1, %v6867_v63  ;;  %v2922_v19 = vsel %vm784_vm0, %v2919_v7, %v2921_v47  ;;  %vm3454_vm0 = vcmask 261120  }
 0x1bf   : > { %4592 = vmatprep.mubr.msk.f32.mxu1 %vm867_vm1, %v6036_v32  ;;  %v7428_v32 = vld [vmem:[#allocation60_spill] sm:$0xff] }
 0x1c1   : > { %4820 = vmatmul.mubr.msk.f32.gmra.mrb[28].mxu0 %vm867_vm1, %v6880_v14 }
 0x1c2   : > { %4593 = vmatmul.mubr.msk.f32.gmra.mrb[10].mxu1 %vm867_vm1, %v6045_v43  ;;  %4822 = vmatprep.mubr.msk.f32.mxu0 %vm867_vm1, %v2920_v31  ;;  %v7429_v43 = vld [vmem:[#allocation61_spill] sm:$0xff] }
 0x1c3   : > { %4595 = vmatprep.mubr.msk.f32.mxu1 %vm867_vm1, %v6083_v21  ;;  %v7430_v21 = vld [vmem:[#allocation63_spill] sm:$0xff] }
 0x1c5   : > { %4823 = vmatmul.mubr.msk.f32.gmra.mrb[30].mxu0 %vm867_vm1, %v2922_v19 }
 0x1c6   : > { %4596 = vmatmul.mubr.msk.f32.gmra.mrb[12].mxu1 %vm867_vm1, %v6085_v22  ;;  %4827 = vmatprep.mubr.msk.f32.mxu0 %vm867_vm1, %v6158_v50  ;;  %v7431_v22 = vld [vmem:[#allocation45_spill] sm:$0xff] }
 0x1c7   : > { %4598 = vmatprep.mubr.msk.f32.mxu1 %vm867_vm1, %v6109_v57  ;;  %v7433_v57 = vld [vmem:[#allocation69_spill] sm:$0xff] }
 0x1c8   : > { %v7436_v50 = vld [vmem:[#allocation53_spill] sm:$0xff] }
 0x1c9   : > { %4828 = vmatmul.mubr.msk.f32.vlgmr.msra.gmra.mrb[0].mxu0 %vm867_vm1, %v6163_v60  ;;  %v7437_v60 = vld [vmem:[#allocation72_spill] sm:$0xff] }
 0x1ca   : > { %4599 = vmatmul.mubr.msk.f32.gmra.mrb[14].mxu1 %vm867_vm1, %v6112_v61  ;;  %4830 = vmatprep.mubr.msk.f32.mxu0 %vm867_vm1, %v6186_v20  ;;  %v7434_v61 = vld [vmem:[#allocation70_spill] sm:$0xff]  ;;  %v7435_v20 = vld [vmem:[#allocation71_spill] sm:$0xff] }
 0x1cb   : > { %4601 = vmatprep.mubr.msk.f32.mxu1 %vm867_vm1, %v6174_v51  ;;  %v3186_v51 = vrot.slane %v6732_v5, 2 }
 0x1cd   : > { %4831 = vmatmul.mubr.msk.f32.gmra.mrb[2].mxu0 %vm867_vm1, %v7382_v36 }
 0x1ce   : > { %4602 = vmatmul.mubr.msk.f32.gmra.mrb[16].mxu1 %vm867_vm1, %v6177_v0  ;;  %4833 = vmatprep.mubr.msk.f32.mxu0 %vm867_vm1, %v7383_v33  ;;  %v3187_v0 = vrot.slane %v6742_v3, 2 }
 0x1cf   : > { %4604 = vmatprep.mubr.msk.f32.mxu1 %vm867_vm1, %v6209_v45  ;;  %v7432_v45 = vld [vmem:[#allocation68_spill] sm:$0xff] }
 0x1d1   : > { %4834 = vmatmul.mubr.msk.f32.gmra.mrb[4].mxu0 %vm867_vm1, %v7384_v11 }
 0x1d2   : > { %4605 = vmatmul.mubr.msk.f32.gmra.mrb[18].mxu1 %vm867_vm1, %v6217_v24  ;;  %4836 = vmatprep.mubr.msk.f32.mxu0 %vm867_vm1, %v7385_v15  ;;  %v7438_v24 = vld [vmem:[#allocation54_spill] sm:$0xff] }
 0x1d3   : > { %4607 = vmatprep.mubr.msk.f32.mxu1 %vm867_vm1, %v6258_v62  ;;  %v7439_v62 = vld [vmem:[#allocation73_spill] sm:$0xff] }
 0x1d5   : > { %4837 = vmatmul.mubr.msk.f32.gmra.mrb[6].mxu0 %vm867_vm1, %v7386_v30 }
 0x1d6   : > { %4608 = vmatmul.mubr.msk.f32.gmra.mrb[20].mxu1 %vm867_vm1, %v6260_v55  ;;  %4839 = vmatprep.mubr.msk.f32.mxu0 %vm867_vm1, %v7387_v46  ;;  %v7440_v55 = vld [vmem:[#allocation55_spill] sm:$0xff] }
 0x1d7   : > { %4610 = vmatprep.mubr.msk.f32.mxu1 %vm867_vm1, %v6293_v58  ;;  %v3189_v58 = vrot.slane %v6869_v35, 2 }
 0x1d9   : > { %4840 = vmatmul.mubr.msk.f32.gmra.mrb[8].mxu0 %vm867_vm1, %v7388_v12 }
 0x1da   : > { %4611 = vmatmul.mubr.msk.f32.gmra.mrb[22].mxu1 %vm867_vm1, %v6301_v10  ;;  %4842 = vmatprep.mubr.msk.f32.mxu0 %vm867_vm1, %v6370_v48  ;;  %v7427_v10 = vld [vmem:[#allocation58_spill] sm:$0xff]  ;;  %v3190_v48 = vsel %vm1446_vm8, %v3187_v0, %v3189_v58 }
 0x1db   : > { %4613 = vmatprep.mubr.msk.f32.mxu1 %vm867_vm1, %v6331_v25  ;;  %v3188_v25 = vsel %vm1446_vm8, %v3186_v51, %v3187_v0 }
 0x1dd   : > { %4843 = vmatmul.mubr.msk.f32.gmra.mrb[10].mxu0 %vm867_vm1, %v6391_v8 }
 0x1de   : > { %4614 = vmatmul.mubr.msk.f32.gmra.mrb[24].mxu1 %vm867_vm1, %v6337_v1  ;;  %4845 = vmatprep.mubr.msk.f32.mxu0 %vm867_vm1, %v7391_v23  ;;  %v7441_v1 = vld [vmem:[#allocation74_spill] sm:$0xff] }
 0x1df   : > { %4616 = vmatprep.mubr.msk.f32.mxu1 %vm867_vm1, %v6377_v2  ;;  %v7442_v2 = vld [vmem:[#allocation75_spill] sm:$0xff] }
 0x1e1   : > { %4846 = vmatmul.mubr.msk.f32.gmra.mrb[12].mxu0 %vm867_vm1, %v6429_v13 }
 0x1e2   : > { %4617 = vmatmul.mubr.msk.f32.gmra.mrb[26].mxu1 %vm867_vm1, %v6386_v6  ;;  %4848 = vmatprep.mubr.msk.f32.mxu0 %vm867_vm1, %v6432_v17 }
 0x1e3   : > { %4619 = vmatprep.mubr.msk.f32.mxu1 %vm867_vm1, %v6422_v38 }
 0x1e5   : > { %4849 = vmatmul.mubr.msk.f32.gmra.mrb[14].mxu0 %vm867_vm1, %v7428_v32 }
 0x1e6   : > { %4620 = vmatmul.mubr.msk.f32.gmra.mrb[28].mxu1 %vm867_vm1, %v7427_v10  ;;  %4851 = vmatprep.mubr.msk.f32.mxu0 %vm867_vm1, %v7429_v43 }
 0x1e7   : > { %4622 = vmatprep.mubr.msk.f32.mxu1 %vm867_vm1, %v6546_v49 }
 0x1e9   : > { %4852 = vmatmul.mubr.msk.f32.gmra.mrb[16].mxu0 %vm867_vm1, %v7430_v21 }
 0x1ea   : > { %4623 = vmatmul.mubr.msk.f32.gmra.mrb[30].mxu1 %vm867_vm1, %v6548_v29  ;;  %4854 = vmatprep.mubr.msk.f32.mxu0 %vm867_vm1, %v7401_v56 }
 0x1eb   : > { %4651 = vmatprep.mubr.msk.f32.mxu1 %vm867_vm1, %v7411_v34 }
 0x1ed   : > { %4855 = vmatmul.mubr.msk.f32.gmra.mrb[18].mxu0 %vm867_vm1, %v7403_v54 }
 0x1ee   : > { %4652 = vmatmul.mubr.msk.f32.vlgmr.msra.gmra.mrb[16].mxu1 %vm867_vm1, %v7412_v40  ;;  %4857 = vmatprep.mubr.msk.f32.mxu0 %vm867_vm1, %v7405_v4 }
 0x1ef   : > { %4654 = vmatprep.mubr.msk.f32.mxu1 %vm867_vm1, %v7413_v9 }
 0x1f1   : > { %4858 = vmatmul.mubr.msk.f32.gmra.mrb[20].mxu0 %vm867_vm1, %v7407_v37 }
 0x1f2   : > { %4655 = vmatmul.mubr.msk.f32.gmra.mrb[18].mxu1 %vm867_vm1, %v7414_v44  ;;  %4860 = vmatprep.mubr.msk.f32.mxu0 %vm867_vm1, %v7432_v45 }
 0x1f3   : > { %4657 = vmatprep.mubr.msk.f32.mxu1 %vm867_vm1, %v7431_v22 }
 0x1f5   : > { %4861 = vmatmul.mubr.msk.f32.gmra.mrb[22].mxu0 %vm867_vm1, %v7433_v57 }
 0x1f6   : > { %4658 = vmatmul.mubr.msk.f32.gmra.mrb[20].mxu1 %vm867_vm1, %v7418_v52  ;;  %4863 = vmatprep.mubr.msk.f32.mxu0 %vm867_vm1, %v7434_v61 }
 0x1f7   : > { %4660 = vmatprep.mubr.msk.f32.mxu1 %vm867_vm1, %v7419_v16 }
 0x1f9   : > { %4864 = vmatmul.mubr.msk.f32.gmra.mrb[24].mxu0 %vm867_vm1, %v7435_v20 }
 0x1fa   : > { %4661 = vmatmul.mubr.msk.f32.gmra.mrb[22].mxu1 %vm867_vm1, %v7420_v18  ;;  %4866 = vmatprep.mubr.msk.f32.mxu0 %vm867_vm1, %v7437_v60 }
 0x1fb   : > { %4663 = vmatprep.mubr.msk.f32.mxu1 %vm867_vm1, %v7436_v50 }
 0x1fd   : > { %4867 = vmatmul.mubr.msk.f32.gmra.mrb[26].mxu0 %vm867_vm1, %v7439_v62 }
 0x1fe   : > { %4664 = vmatmul.mubr.msk.f32.gmra.mrb[24].mxu1 %vm867_vm1, %v7438_v24  ;;  %4869 = vmatprep.mubr.msk.f32.mxu0 %vm867_vm1, %v7441_v1 }
 0x1ff   : > { %4666 = vmatprep.mubr.msk.f32.mxu1 %vm867_vm1, %v7440_v55 }
 0x201   : > { %4870 = vmatmul.mubr.msk.f32.gmra.mrb[28].mxu0 %vm867_vm1, %v7442_v2 }
 0x202   : > { %4667 = vmatmul.mubr.msk.f32.gmra.mrb[26].mxu1 %vm867_vm1, %v7424_v41  ;;  %4872 = vmatprep.mubr.msk.f32.mxu0 %vm867_vm1, %v3188_v25 }
 0x203   : > { %4669 = vmatprep.mubr.msk.f32.mxu1 %vm867_vm1, %v7425_v28 }
 0x205   : > { %4873 = vmatmul.mubr.msk.f32.gmra.mrb[30].mxu0 %vm867_vm1, %v3190_v48 }
 0x206   : > { %4670 = vmatmul.mubr.msk.f32.gmra.mrb[28].mxu1 %vm867_vm1, %v7426_v53 }
 0x207   : > { %4672 = vmatprep.mubr.msk.f32.mxu1 %vm867_vm1, %v6867_v63 }
 0x20a   : > { %4673 = vmatmul.mubr.msk.f32.gmra.mrb[30].mxu1 %vm867_vm1, %v6880_v14  ;;  %vm3524_vm1 = vcmask 253952  }
 0x281   : > { %v4579_v38 = vpop.f32.mrb[0].mxu1 }
 0x282   : > { %v1924_v6 = vpop.f32.mrb[1].mxu1 }
 0x285   : > { %v4582_v8 = vpop.f32.mrb[2].mxu1 }
 0x286   : > { %v1934_v56 = vpop.f32.mrb[3].mxu1 }
 0x289   : > { %v4585_v13 = vpop.f32.mrb[4].mxu1 }
 0x28a   : > { %v1944_v17 = vpop.f32.mrb[5].mxu1 }
 0x28d   : > { %v4588_v29 = vpop.f32.mrb[6].mxu1 }
 0x28e   : > { %v1954_v49 = vpop.f32.mrb[7].mxu1 }
 0x291   : > { %v4591_v18 = vpop.f32.mrb[8].mxu1 }
 0x292   : > { %v1964_v52 = vpop.f32.mrb[9].mxu1 }
 0x295   : > { %v7030_v16 = vpop.f32.mrb[10].mxu1 }
 0x296   : > { %v7032_v37 = vpop.f32.mrb[11].mxu1 }
 0x299   : > { %v7034_v36 = vpop.f32.mrb[12].mxu1 }
 0x29a   : > { %v7036_v33 = vpop.f32.mrb[13].mxu1 }
 0x29c   : > { %v4829_v15 = vpop.f32.mrb[0].mxu0 }
 0x29d   : > { %v7038_v11 = vpop.f32.mrb[14].mxu1  ;;  %v4877_v30 = vadd.f32 %v4829_v15, %v4579_v38  ;;  %v3263_v46 = vpop.f32.mrb[1].mxu0 }
 0x29e   : > { %v7040_v5 = vpop.f32.mrb[15].mxu1  ;;  %v4878_v3 = vadd.f32 %v3263_v46, %v1924_v6 }
 0x29f   : > { %v3456_v12 = vsel %vm3454_vm0, %v4877_v30, 0.0  ;;  %v3527_v23 = vmul.f32 %v4877_v30, %v4877_v30 }
 0x2a0   : > { %v3455_v54 = vsel %vm3454_vm0, %v4878_v3, 0.0  ;;  %v3526_v4 = vmul.f32 %v4878_v3, %v4878_v3  ;;  %v4832_v34 = vpop.f32.mrb[2].mxu0 }
 0x2a1   : > { %v3559_v40 = vsel %vm3454_vm0, %v3527_v23, 0.0  ;;  %v3457_v9 = vadd.f32 %v3456_v12, %v3455_v54  ;;  %v4879_v44 = vadd.f32 %v4832_v34, %v4582_v8  ;;  %v3273_v35 = vpop.f32.mrb[3].mxu0 }
 0x2a2   : > { %v3558_v63 = vsel %vm3454_vm0, %v3526_v4, 0.0  ;;  %v4880_v7 = vadd.f32 %v3273_v35, %v1934_v56 }
 0x2a3   : > { %v3560_v26 = vadd.f32 %v3559_v40, %v3558_v63  ;;  %v3529_v27 = vmul.f32 %v4879_v44, %v4879_v44  ;;  %v3460_v14 = vsel %vm3454_vm0, %v4879_v44, 0.0 }
 0x2a4   : > { %v3458_v59 = vsel %vm3454_vm0, %v4880_v7, 0.0  ;;  %v3528_v41 = vmul.f32 %v4880_v7, %v4880_v7  ;;  %v4835_v28 = vpop.f32.mrb[4].mxu0 }
 0x2a5   : > { %v3459_v42 = vadd.f32 %v3458_v59, %v3457_v9  ;;  %v4881_v39 = vadd.f32 %v4835_v28, %v4585_v13  ;;  %v3283_v53 = vpop.f32.mrb[5].mxu0  ;;  %v3563_v32 = vsel %vm3454_vm0, %v3529_v27, 0.0 }
 0x2a6   : > { %v3561_v47 = vsel %vm3454_vm0, %v3528_v41, 0.0  ;;  %v4882_v31 = vadd.f32 %v3283_v53, %v1944_v17 }
 0x2a7   : > { %v3562_v19 = vadd.f32 %v3561_v47, %v3560_v26  ;;  %v3461_v10 = vadd.f32 %v3460_v14, %v3459_v42  ;;  %v3531_v43 = vmul.f32 %v4881_v39, %v4881_v39  ;;  %v3464_v60 = vsel %vm3454_vm0, %v4881_v39, 0.0 }
 0x2a8   : > { %v3462_v21 = vsel %vm3454_vm0, %v4882_v31, 0.0  ;;  %v3530_v22 = vmul.f32 %v4882_v31, %v4882_v31  ;;  %v4838_v45 = vpop.f32.mrb[6].mxu0 }
 0x2a9   : > { %v3463_v57 = vadd.f32 %v3462_v21, %v3461_v10  ;;  %v3564_v61 = vadd.f32 %v3563_v32, %v3562_v19  ;;  %v4883_v20 = vadd.f32 %v4838_v45, %v4588_v29  ;;  %v3293_v50 = vpop.f32.mrb[7].mxu0  ;;  %v3567_v55 = vsel %vm3454_vm0, %v3531_v43, 0.0 }
 0x2aa   : > { %v3565_v51 = vsel %vm3454_vm0, %v3530_v22, 0.0  ;;  %v4884_v0 = vadd.f32 %v3293_v50, %v1954_v49 }
 0x2ab   : > { %v3566_v24 = vadd.f32 %v3565_v51, %v3564_v61  ;;  %v3465_v62 = vadd.f32 %v3464_v60, %v3463_v57  ;;  %v3533_v1 = vmul.f32 %v4883_v20, %v4883_v20  ;;  %v3468_v56 = vsel %vm3454_vm0, %v4883_v20, 0.0 }
 0x2ac   : > { %v3466_v58 = vsel %vm3454_vm0, %v4884_v0, 0.0  ;;  %v3532_v25 = vmul.f32 %v4884_v0, %v4884_v0  ;;  %v4841_v2 = vpop.f32.mrb[8].mxu0 }
 0x2ad   : > { %v3467_v48 = vadd.f32 %v3466_v58, %v3465_v62  ;;  %v3568_v38 = vadd.f32 %v3567_v55, %v3566_v24  ;;  %v4885_v6 = vadd.f32 %v4841_v2, %v4591_v18  ;;  %v3303_v8 = vpop.f32.mrb[9].mxu0  ;;  %v3571_v15 = vsel %vm3454_vm0, %v3533_v1, 0.0 }
 0x2ae   : > { %v3569_v13 = vsel %vm3454_vm0, %v3532_v25, 0.0  ;;  %v4886_v17 = vadd.f32 %v3303_v8, %v1964_v52 }
 0x2af   : > { %v3570_v29 = vadd.f32 %v3569_v13, %v3568_v38  ;;  %v3469_v49 = vadd.f32 %v3468_v56, %v3467_v48  ;;  %v3535_v30 = vmul.f32 %v4885_v6, %v4885_v6  ;;  %v3472_v34 = vsel %vm3454_vm0, %v4885_v6, 0.0 }
 0x2b0   : > { %v3470_v46 = vsel %vm3454_vm0, %v4886_v17, 0.0  ;;  %v3534_v3 = vmul.f32 %v4886_v17, %v4886_v17  ;;  %v4844_v12 = vpop.f32.mrb[10].mxu0 }
 0x2b1   : > { %v3471_v23 = vadd.f32 %v3470_v46, %v3469_v49  ;;  %v3572_v54 = vadd.f32 %v3571_v15, %v3570_v29  ;;  %v4887_v4 = vadd.f32 %v4844_v12, %v7030_v16  ;;  %v3313_v18 = vpop.f32.mrb[11].mxu0  ;;  %v3575_v35 = vsel %vm3454_vm0, %v3535_v30, 0.0 }
 0x2b2   : > { %v3573_v40 = vsel %vm3454_vm0, %v3534_v3, 0.0  ;;  %v4888_v52 = vadd.f32 %v3313_v18, %v7032_v37 }
 0x2b3   : > { %v3574_v9 = vadd.f32 %v3573_v40, %v3572_v54  ;;  %v3473_v44 = vadd.f32 %v3472_v34, %v3471_v23  ;;  %v3537_v63 = vmul.f32 %v4887_v4, %v4887_v4  ;;  %v3476_v42 = vsel %vm3454_vm0, %v4887_v4, 0.0 }
 0x2b4   : > { %v3474_v7 = vsel %vm3454_vm0, %v4888_v52, 0.0  ;;  %v3536_v26 = vmul.f32 %v4888_v52, %v4888_v52  ;;  %v4847_v27 = vpop.f32.mrb[12].mxu0 }
 0x2b5   : > { %v3475_v59 = vadd.f32 %v3474_v7, %v3473_v44  ;;  %v3576_v41 = vadd.f32 %v3575_v35, %v3574_v9  ;;  %v4889_v16 = vadd.f32 %v4847_v27, %v7034_v36  ;;  %v3323_v28 = vpop.f32.mrb[13].mxu0  ;;  %v3579_v47 = vsel %vm3454_vm0, %v3537_v63, 0.0 }
 0x2b6   : > { %v3577_v39 = vsel %vm3454_vm0, %v3536_v26, 0.0  ;;  %v4890_v37 = vadd.f32 %v3323_v28, %v7036_v33 }
 0x2b7   : > { %v3578_v53 = vadd.f32 %v3577_v39, %v3576_v41  ;;  %v3477_v14 = vadd.f32 %v3476_v42, %v3475_v59  ;;  %v3539_v31 = vmul.f32 %v4889_v16, %v4889_v16  ;;  %v3480_v45 = vsel %vm3454_vm0, %v4889_v16, 0.0 }
 0x2b8   : > { %v3478_v19 = vsel %vm3454_vm0, %v4890_v37, 0.0  ;;  %v3538_v10 = vmul.f32 %v4890_v37, %v4890_v37  ;;  %v4850_v32 = vpop.f32.mrb[14].mxu0 }
 0x2b9   : > { %v3479_v43 = vadd.f32 %v3478_v19, %v3477_v14  ;;  %v3580_v21 = vadd.f32 %v3579_v47, %v3578_v53  ;;  %v4891_v36 = vadd.f32 %v4850_v32, %v7038_v11  ;;  %v3333_v22 = vpop.f32.mrb[15].mxu0  ;;  %v3583_v50 = vsel %vm3454_vm0, %v3539_v31, 0.0 }
 0x2ba   : > { %v3581_v57 = vsel %vm3454_vm0, %v3538_v10, 0.0  ;;  %v4892_v33 = vadd.f32 %v3333_v22, %v7040_v5 }
 0x2bb   : > { %v3582_v61 = vadd.f32 %v3581_v57, %v3580_v21  ;;  %v3481_v20 = vadd.f32 %v3480_v45, %v3479_v43  ;;  %v3541_v60 = vmul.f32 %v4891_v36, %v4891_v36  ;;  %v3484_v11 = vsel %vm3454_vm0, %v4891_v36, 0.0 }
 0x2bc   : > { %v3482_v51 = vsel %vm3454_vm0, %v4892_v33, 0.0  ;;  %v3540_v0 = vmul.f32 %v4892_v33, %v4892_v33  ;;  %v4853_v24 = vpop.f32.mrb[16].mxu0 }
 0x2bd   : > { %v3483_v62 = vadd.f32 %v3482_v51, %v3481_v20  ;;  %v3584_v55 = vadd.f32 %v3583_v50, %v3582_v61  ;;  %v3343_v1 = vpop.f32.mrb[17].mxu0  ;;  %v3587_v5 = vsel %vm3454_vm0, %v3541_v60, 0.0 }
 0x2be   : > { %v3585_v58 = vsel %vm3454_vm0, %v3540_v0, 0.0 }
 0x2bf   : > { %v3586_v25 = vadd.f32 %v3585_v58, %v3584_v55  ;;  %v3485_v2 = vadd.f32 %v3484_v11, %v3483_v62 }
 0x2c0   : > { %v4856_v38 = vpop.f32.mrb[18].mxu0 }
 0x2c1   : > { %v4653_v48 = vpop.f32.mrb[16].mxu1  ;;  %v3588_v56 = vadd.f32 %v3587_v5, %v3586_v25  ;;  %v3353_v13 = vpop.f32.mrb[19].mxu0 }
 0x2c2   : > { %v4893_v6 = vadd.f32 %v4853_v24, %v4653_v48  ;;  %v2273_v8 = vpop.f32.mrb[17].mxu1 }
 0x2c3   : > { %v4894_v17 = vadd.f32 %v3343_v1, %v2273_v8 }
 0x2c4   : > { %v3543_v29 = vmul.f32 %v4893_v6, %v4893_v6  ;;  %v4859_v46 = vpop.f32.mrb[20].mxu0  ;;  %v3488_v4 = vsel %vm3454_vm0, %v4893_v6, 0.0 }
 0x2c5   : > { %v3486_v49 = vsel %vm3454_vm0, %v4894_v17, 0.0  ;;  %v3542_v15 = vmul.f32 %v4894_v17, %v4894_v17  ;;  %v4656_v30 = vpop.f32.mrb[18].mxu1  ;;  %v3363_v54 = vpop.f32.mrb[21].mxu0 }
 0x2c6   : > { %v3487_v3 = vadd.f32 %v3486_v49, %v3485_v2  ;;  %v4895_v12 = vadd.f32 %v4856_v38, %v4656_v30  ;;  %v2283_v23 = vpop.f32.mrb[19].mxu1  ;;  %v3591_v9 = vsel %vm3454_vm0, %v3543_v29, 0.0 }
 0x2c7   : > { %v3589_v18 = vsel %vm3454_vm0, %v3542_v15, 0.0  ;;  %v4896_v34 = vadd.f32 %v3353_v13, %v2283_v23 }
 0x2c8   : > { %v3590_v40 = vadd.f32 %v3589_v18, %v3588_v56  ;;  %v3489_v52 = vadd.f32 %v3488_v4, %v3487_v3  ;;  %v3545_v44 = vmul.f32 %v4895_v12, %v4895_v12  ;;  %v4862_v26 = vpop.f32.mrb[22].mxu0  ;;  %v3492_v42 = vsel %vm3454_vm0, %v4895_v12, 0.0 }
 0x2c9   : > { %v3490_v35 = vsel %vm3454_vm0, %v4896_v34, 0.0  ;;  %v3544_v63 = vmul.f32 %v4896_v34, %v4896_v34  ;;  %v4659_v7 = vpop.f32.mrb[20].mxu1  ;;  %v3373_v28 = vpop.f32.mrb[23].mxu0 }
 0x2ca   : > { %v3491_v27 = vadd.f32 %v3490_v35, %v3489_v52  ;;  %v3592_v59 = vadd.f32 %v3591_v9, %v3590_v40  ;;  %v4897_v41 = vadd.f32 %v4859_v46, %v4659_v7  ;;  %v2293_v16 = vpop.f32.mrb[21].mxu1  ;;  %v3595_v47 = vsel %vm3454_vm0, %v3545_v44, 0.0 }
 0x2cb   : > { %v3593_v39 = vsel %vm3454_vm0, %v3544_v63, 0.0  ;;  %v4898_v37 = vadd.f32 %v3363_v54, %v2293_v16 }
 0x2cc   : > { %v3594_v53 = vadd.f32 %v3593_v39, %v3592_v59  ;;  %v3493_v14 = vadd.f32 %v3492_v42, %v3491_v27  ;;  %v3547_v31 = vmul.f32 %v4897_v41, %v4897_v41  ;;  %v4865_v43 = vpop.f32.mrb[24].mxu0  ;;  %v3496_v33 = vsel %vm3454_vm0, %v4897_v41, 0.0 }
 0x2cd   : > { %v3494_v19 = vsel %vm3454_vm0, %v4898_v37, 0.0  ;;  %v3546_v10 = vmul.f32 %v4898_v37, %v4898_v37  ;;  %v4662_v32 = vpop.f32.mrb[22].mxu1  ;;  %v3383_v57 = vpop.f32.mrb[25].mxu0 }
 0x2ce   : > { %v3495_v21 = vadd.f32 %v3494_v19, %v3493_v14  ;;  %v3596_v36 = vadd.f32 %v3595_v47, %v3594_v53  ;;  %v4899_v22 = vadd.f32 %v4862_v26, %v4662_v32  ;;  %v2303_v45 = vpop.f32.mrb[23].mxu1  ;;  %v3599_v51 = vsel %vm3454_vm0, %v3547_v31, 0.0 }
 0x2cf   : > { %v3597_v61 = vsel %vm3454_vm0, %v3546_v10, 0.0  ;;  %v4900_v20 = vadd.f32 %v3373_v28, %v2303_v45 }
 0x2d0   : > { %v3598_v50 = vadd.f32 %v3597_v61, %v3596_v36  ;;  %v3497_v60 = vadd.f32 %v3496_v33, %v3495_v21  ;;  %v3549_v0 = vmul.f32 %v4899_v22, %v4899_v22  ;;  %v4868_v1 = vpop.f32.mrb[26].mxu0  ;;  %v3500_v48 = vsel %vm3454_vm0, %v4899_v22, 0.0 }
 0x2d1   : > { %v3498_v24 = vsel %vm3454_vm0, %v4900_v20, 0.0  ;;  %v3548_v62 = vmul.f32 %v4900_v20, %v4900_v20  ;;  %v4665_v55 = vpop.f32.mrb[24].mxu1  ;;  %v3393_v5 = vpop.f32.mrb[27].mxu0 }
 0x2d2   : > { %v3499_v11 = vadd.f32 %v3498_v24, %v3497_v60  ;;  %v3600_v58 = vadd.f32 %v3599_v51, %v3598_v50  ;;  %v4901_v25 = vadd.f32 %v4865_v43, %v4665_v55  ;;  %v2313_v2 = vpop.f32.mrb[25].mxu1  ;;  %v3603_v13 = vsel %vm3454_vm0, %v3549_v0, 0.0 }
 0x2d3   : > { %v3601_v38 = vsel %vm3454_vm0, %v3548_v62, 0.0  ;;  %v4902_v6 = vadd.f32 %v3383_v57, %v2313_v2 }
 0x2d4   : > { %v3602_v8 = vadd.f32 %v3601_v38, %v3600_v58  ;;  %v3501_v56 = vadd.f32 %v3500_v48, %v3499_v11  ;;  %v3551_v17 = vmul.f32 %v4901_v25, %v4901_v25  ;;  %v4871_v30 = vpop.f32.mrb[28].mxu0  ;;  %v3504_v4 = vsel %vm3454_vm0, %v4901_v25, 0.0 }
 0x2d5   : > { %v3502_v29 = vsel %vm3454_vm0, %v4902_v6, 0.0  ;;  %v3550_v49 = vmul.f32 %v4902_v6, %v4902_v6  ;;  %v4668_v15 = vpop.f32.mrb[26].mxu1  ;;  %v3403_v54 = vpop.f32.mrb[29].mxu0 }
 0x2d6   : > { %v3503_v46 = vadd.f32 %v3502_v29, %v3501_v56  ;;  %v3604_v3 = vadd.f32 %v3603_v13, %v3602_v8  ;;  %v4903_v12 = vadd.f32 %v4868_v1, %v4668_v15  ;;  %v2323_v23 = vpop.f32.mrb[27].mxu1  ;;  %v3607_v9 = vsel %vm3454_vm0, %v3551_v17, 0.0 }
 0x2d7   : > { %v3605_v18 = vsel %vm3454_vm0, %v3550_v49, 0.0  ;;  %v4904_v34 = vadd.f32 %v3393_v5, %v2323_v23 }
 0x2d8   : > { %v3606_v40 = vadd.f32 %v3605_v18, %v3604_v3  ;;  %v3505_v52 = vadd.f32 %v3504_v4, %v3503_v46  ;;  %v3553_v44 = vmul.f32 %v4903_v12, %v4903_v12  ;;  %v4874_v26 = vpop.f32.mrb[30].mxu0  ;;  %v3508_v42 = vsel %vm3454_vm0, %v4903_v12, 0.0 }
 0x2d9   : > { %v3506_v35 = vsel %vm3454_vm0, %v4904_v34, 0.0  ;;  %v3552_v63 = vmul.f32 %v4904_v34, %v4904_v34  ;;  %v4671_v7 = vpop.f32.mrb[28].mxu1  ;;  %v3413_v28 = vpop.f32.mrb[31].mxu0 }
 0x2da   : > { %v3507_v27 = vadd.f32 %v3506_v35, %v3505_v52  ;;  %v3608_v59 = vadd.f32 %v3607_v9, %v3606_v40  ;;  %v4905_v41 = vadd.f32 %v4871_v30, %v4671_v7  ;;  %v2333_v16 = vpop.f32.mrb[29].mxu1  ;;  %v3611_v47 = vsel %vm3454_vm0, %v3553_v44, 0.0 }
 0x2db   : > { %v3609_v39 = vsel %vm3454_vm0, %v3552_v63, 0.0  ;;  %v4906_v37 = vadd.f32 %v3403_v54, %v2333_v16 }
 0x2dc   : > { %v3610_v53 = vadd.f32 %v3609_v39, %v3608_v59  ;;  %v3509_v14 = vadd.f32 %v3508_v42, %v3507_v27  ;;  %v3555_v31 = vmul.f32 %v4905_v41, %v4905_v41  ;;  %v3512_v45 = vsel %vm3454_vm0, %v4905_v41, 0.0 }
 0x2dd   : > { %v3510_v19 = vsel %vm3454_vm0, %v4906_v37, 0.0  ;;  %v3554_v10 = vmul.f32 %v4906_v37, %v4906_v37  ;;  %v4674_v32 = vpop.f32.mrb[30].mxu1 }
 0x2de   : > { %v3511_v43 = vadd.f32 %v3510_v19, %v3509_v14  ;;  %v3612_v21 = vadd.f32 %v3611_v47, %v3610_v53  ;;  %v4907_v36 = vadd.f32 %v4874_v26, %v4674_v32  ;;  %v2343_v22 = vpop.f32.mrb[31].mxu1  ;;  %v3615_v50 = vsel %vm3454_vm0, %v3555_v31, 0.0 }
 0x2df   : > { %v3613_v57 = vsel %vm3454_vm0, %v3554_v10, 0.0  ;;  %v4908_v33 = vadd.f32 %v3413_v28, %v2343_v22 }
 0x2e0   : > { %v3614_v61 = vadd.f32 %v3613_v57, %v3612_v21  ;;  %v3513_v20 = vadd.f32 %v3512_v45, %v3511_v43  ;;  %v3557_v60 = vmul.f32 %v4907_v36, %v4907_v36  ;;  %v3516_v55 = vsel %vm3454_vm0, %v4907_v36, 0.0 }
 0x2e1   : > { %v3514_v51 = vsel %vm3454_vm0, %v4908_v33, 0.0  ;;  %v3556_v0 = vmul.f32 %v4908_v33, %v4908_v33 }
 0x2e2   : > { %v3515_v24 = vadd.f32 %v3514_v51, %v3513_v20  ;;  %v3616_v62 = vadd.f32 %v3615_v50, %v3614_v61  ;;  %v3619_v25 = vsel %vm3454_vm0, %v3557_v60, 0.0 }
 0x2e3   : > { %v3617_v1 = vsel %vm3454_vm0, %v3556_v0, 0.0 }
 0x2e4   : > { %v3517_v11 = vadd.f32 %v3516_v55, %v3515_v24  ;;  %v3618_v58 = vadd.f32 %v3617_v1, %v3616_v62 }
 0x2e6   : > { %v3518_v2 = vrot.slane %v3517_v11, 4  ;;  %v3620_v5 = vadd.f32 %v3619_v25, %v3618_v58 }
 0x2e8   : > { %v3519_v48 = vadd.f32 %v3518_v2, %v3517_v11  ;;  %v3621_v38 = vrot.slane %v3620_v5, 4 }
 0x2ea   : > { %v3520_v6 = vrot.slane %v3519_v48, 2  ;;  %v3622_v8 = vadd.f32 %v3621_v38, %v3620_v5 }
 0x2ec   : > { %v3521_v56 = vadd.f32 %v3520_v6, %v3519_v48  ;;  %v3623_v13 = vrot.slane %v3622_v8, 2 }
 0x2ee   : > { %v3522_v17 = vrot.slane %v3521_v56, 1  ;;  %v3624_v29 = vadd.f32 %v3623_v13, %v3622_v8 }
 0x2f0   : > { %v3523_v49 = vadd.f32 %v3522_v17, %v3521_v56  ;;  %v3625_v15 = vrot.slane %v3624_v29, 1 }
 0x2f2   : > { %v3626_v30 = vadd.f32 %v3625_v15, %v3624_v29  ;;  %3525 = vst.msk [vmem:[%s384_s29] sm:$0x1] %vm3524_vm1, %v3523_v49 }
 0x2f3   : > { %5404 = shalt.err (!%p5401_p11)
}
 0x2f4   : > { %s5405_s3 = scalar_lea.hbm %s7120_s16, 16  ;;  %s5409_s14 = scalar_lea.hbm %s7207_s5, 32 }
 0x2f5   : > { %p5406_p12 = scmp.ne.s32.totalorder %s7120_s16, %s5405_s3  ;;  %p5410_p9 = scmp.lt.u32.totalorder %s7120_s16, %s7207_s5 }
 0x2f6   : > { %p5411_p0 = scmp.lt.u32.totalorder %s5409_s14, %s5405_s3  ;;  %p5413_p4 = scmp.lt.u32.totalorder %s5405_s3, %s7120_s16 }
 0x2f7   : > { %p5407_p6 = pnand %p5406_p12, %p5714_p10 }
 0x2f8   : > { %p5412_p2 = por %p5411_p0, %p5410_p9 }
 0x2f9   : > { %p5408_p7 = pneg %p5407_p6 }
 0x2fa   : > { %p5414_p8 = por %p5413_p4, %p5412_p2 }
 0x2fc   : > { %p5415_p1 = pnand %p5414_p8, %p5408_p7 }
 0x2fe   : > { %5418 = shalt.err (!%p5415_p1)
}
 0x2ff   : > { %5155 = dma.vmem_to_hbm [thread:$0]  (%p5714_p10), %s7122_s15, 16, %s7120_s16, %s3629_s19   ;;  %3627 = vst.msk [vmem:[%s390_s28] sm:$0x1] %vm3524_vm1, %v3626_v30 }
 0x300   : > { %s3633_s12 = scalar_lea.sflag [#allocation13], %s5817_s4  ;;  %s5419_s30 = scalar_lea.vmem %s7130_s20, 16 }
 0x301   : > { %p5420_p13 = scmp.ne.s32.totalorder %s7130_s20, %s5419_s30  ;;  %s5527_s24 = smov [#allocation12]  }
 0x302   : > { %s5423_s0 = sshll.u32 %s5527_s24, 4  ;;  %s5424_s0 = int_to_ptr.vmem [resolvable:$false] %s5423_s0 }
 0x303   : > { %p5421_p3 = pnand %p5420_p13, %p5714_p10  ;;  %s5425_s21 = scalar_lea.vmem %s5424_s0, 32 }
 0x304   : > { %p5426_p11 = scmp.lt.s32.totalorder %s7130_s20, %s5424_s0  ;;  %p5427_p12 = scmp.lt.s32.totalorder %s5425_s21, %s5419_s30 }
 0x305   : > { %p5422_p5 = pneg %p5421_p3 }
 0x306   : > { %p5428_p6 = por %p5427_p12, %p5426_p11 }
 0x308   : > { %p5429_p7 = pnand %p5428_p6, %p5422_p5 }
 0x30a   : > { %5432 = shalt.err (!%p5429_p7)
}
 0x30b   : > { %s5433_s4 = scalar_lea.hbm %s7128_s9, 16  ;;  %s5437_s16 = scalar_lea.hbm %s7208_s6, 32 }
 0x30c   : > { %p5434_p9 = scmp.ne.s32.totalorder %s7128_s9, %s5433_s4  ;;  %p5438_p4 = scmp.lt.u32.totalorder %s7128_s9, %s7208_s6 }
 0x30d   : > { %p5439_p8 = scmp.lt.u32.totalorder %s5437_s16, %s5433_s4  ;;  %p5441_p13 = scmp.lt.u32.totalorder %s5433_s4, %s7128_s9 }
 0x30e   : > { %p5435_p0 = pnand %p5434_p9, %p5714_p10 }
 0x30f   : > { %p5440_p1 = por %p5439_p8, %p5438_p4 }
 0x310   : > { %p5436_p2 = pneg %p5435_p0 }
 0x311   : > { %p5442_p3 = por %p5441_p13, %p5440_p1 }
 0x313   : > { %p5443_p5 = pnand %p5442_p3, %p5436_p2 }
 0x315   : > { %5446 = shalt.err (!%p5443_p5)
}
 0x316   : > { %5156 = dma.vmem_to_hbm [thread:$0]  (%p5714_p10), %s7130_s20, 16, %s7128_s9, %s3633_s12  }
 0x317 PF: > { %s7443_s13 = sld [smem:[#allocation20_spill]]  ;;  %s7444_s18 = sld [smem:[#allocation21_spill]] }
 0x318   : > { %p7446_p12 = scmp.ge.s32.totalorder %s5517_s26, 2 }
 0x31d   : > { %s3672_s3 = sand.u32 1, %s7443_s13   ;;  %p7445_p11 = scmp.ne.s32.totalorder %s7444_s18, 0 }
 0x31e   : > { %s3673_s7 = scalar_lea.sflag [#allocation4], %s3672_s3 }
 0x31f   : > { %p5177_p6 = pnand %p7446_p12, %p7445_p11 }
 0x321   : > { %5488 = dma.done.wait (!%p5177_p6), %s3673_s7, 16  }
 0x322   : > { %5490 = vsyncadd (!%p5177_p6), %s3673_s7, 4294967280  ;;  %s3681_s8 = scalar_lea.sflag [#allocation13], %s3672_s3 }
 0x323   : > { %5492 = dma.done.wait (!%p5177_p6), %s3681_s8, 16  }
 0x324   : > { %5494 = vsyncadd (!%p5177_p6), %s3681_s8, 4294967280  ;;  %s30_s26 = sadd.s32 1, %s5517_s26   ;;  %s7447_s21 = smov %s5501_s22 }
 0x325   : > { %p27_p7 = scmp.ge.s32.totalorder %s30_s26, 4   ;;  %s7448_s22 = smov %s5505_s23 }
 0x326   : > { %s7449_s23 = smov %s5733_s11  ;;  %s7450_s24 = smov %s5513_s25 }
 0x327   : > { %s7451_s25 = smov %s7453_s17  ;;  %29 = sbr.rel (!%p27_p7) target bundleno = 16 (0x10), region = 135 }
 0x32e   :  { %3685 = vsyncpa [#allocation3], 1 }
 0x32f   :  { %3687 = vsyncpa [#allocation3 + $0x1], 1 }
 0x330   :  { %3688 = vsyncpa [#allocation6], 1 }
 0x331   :  { %3690 = vsyncpa [#allocation6 + $0x1], 1 }
 0x332   :  { %3691 = vsyncpa [#allocation9], 1 }
 0x333   :  { %3692 = vsyncpa [#allocation4], 1 }
 0x334   :  { %3694 = vsyncpa [#allocation4 + $0x1], 1 }
 0x335   :  { %3695 = vsyncpa [#allocation13], 1 }
 0x336   :  { %3697 = vsyncpa [#allocation13 + $0x1], 1 }

// kernel: up_forward.7
= control target key start
LH: loop header
LB: loop body
LE: loop exit
PB: predicated region body
PF: predicated region fallthrough
CT: control target
= control target key end

     0   :  { %s7409_s0 = inlined_call_operand.hbm [shape: f32[2,18,18,8], index: 0, kind: input, shape index: {}]   ;;  %s7410_s1 = inlined_call_operand.hbm [shape: f32[2,1,2,18,8], index: 1, kind: input, shape index: {}]   ;;  %s7411_s2 = inlined_call_operand.hbm [shape: f32[9,8,32], index: 2, kind: input, shape index: {}]   ;;  %s7412_s3 = inlined_call_operand.hbm [shape: f32[1,8], index: 3, kind: input, shape index: {}]   ;;  %s7413_s4 = inlined_call_operand.hbm [shape: f32[1,8], index: 4, kind: input, shape index: {}]   ;;  %s7414_s5 = inlined_call_operand.hbm [shape: f32[1,32], index: 5, kind: input, shape index: {}]   ;;  %s7415_s6 = inlined_call_operand.hbm [shape: f32[1,32], index: 6, kind: input, shape index: {}]   ;;  %s7416_s7 = inlined_call_operand.hbm [shape: f32[2,256,32], index: 7, kind: output, shape index: {}]  }
   0x1   :  { %7508 = sst [smem:[#allocation75_spill]] %s7409_s0 }
   0x2   :  { %7509 = sst [smem:[#allocation76_spill]] %s7411_s2 }
   0x3   :  { %7510 = sst [smem:[#allocation77_spill]] %s7412_s3 }
   0x4   :  { %7511 = sst [smem:[#allocation78_spill]] %s7413_s4 }
   0x5   :  { %7512 = sst [smem:[#allocation79_spill]] %s7414_s5 }
   0x6   :  { %7513 = sst [smem:[#allocation80_spill]] %s7415_s6 }
   0x7   :  { %7514 = sst [smem:[#allocation81_spill]] %s7416_s7 }
   0x8   :  { %12 = vsyncpa [#allocation3], 0 }
   0x9   :  { %14 = vsyncpa [#allocation3 + $0x1], 0 }
   0xa   :  { %15 = vsyncpa [#allocation6], 0 }
   0xb   :  { %17 = vsyncpa [#allocation6 + $0x1], 0 }
   0xc   :  { %18 = vsyncpa [#allocation9], 0 }
   0xd   :  { %19 = vsyncpa [#allocation12], 0 }
   0xe   :  { %20 = vsyncpa [#allocation4], 0 }
   0xf   :  { %22 = vsyncpa [#allocation4 + $0x1], 0  ;;  %s5683_s24 = smov 0   ;;  %s5685_s25 = smov 0  }
  0x10   :  { %s5687_s26 = smov 0   ;;  %s5689_s27 = smov 0  }
  0x11   :  { %s5691_s28 = smov 0   ;;  %s5693_s29 = smov 0  }
  0x12 LB: > { %s5714_s30 = sadd.s32 4294967295, %s5629_s29   ;;  %p3881_p0 = scmp.ge.s32.totalorder %s5629_s29, 1  ;;  %s5629_s29 = sphi %s5693_s29, %s28_s29   ;;  %s5625_s28 = sphi %s5691_s28, %s7663_s28   ;;  %s5621_s27 = sphi %s5689_s27, %s7662_s27   ;;  %s5617_s26 = sphi %s5687_s26, %s7661_s26   ;;  %s5613_s25 = sphi %s5685_s25, %s7660_s25   ;;  %s5609_s24 = sphi %s5683_s24, %s7659_s24  }
  0x13   : > { %p7418_p1 = scmp.eq.s32.totalorder %s5714_s30, 0  ;;  %p234_p2 = scmp.lt.s32.totalorder %s5629_s29, 3 }
  0x14   : > { %s5631_s9 = smov [#allocation7]   ;;  %s5632_s12 = smov [#allocation8]  }
  0x15   : > { %p5719_p3 = pnand %p3881_p0, %p234_p2  ;;  %s246_s10 = sshll.u32 %s5631_s9, 4  ;;  %s5723_s10 = int_to_ptr.vmem [resolvable:$true] %s246_s10 }
  0x16   : > { %s260_s13 = sshll.u32 %s5632_s12, 4  ;;  %s5633_s14 = smov [#allocation11]   ;;  %s5734_s13 = int_to_ptr.vmem [resolvable:$true] %s260_s13 }
  0x17   : > { %s7515_s8 = scalar_select %p5719_p3, 1, 0 }
  0x18   : > { %p5232_p4 = pneg %p5719_p3  ;;  %s5736_s15 = sshll.u32 %s5633_s14, 4  ;;  %s283_s15 = int_to_ptr.vmem [resolvable:$true] %s5736_s15 }
  0x19   : > { %s7517_s2 = sld [smem:[#allocation76_spill]] }
  0x1a   : > { %p5730_p6 = pnand %p5232_p4, %p7418_p1 }
  0x1c   : > { %p5746_p8 = pneg %p5730_p6 }
  0x1f   : > { %s5331_s18 = scalar_lea.hbm %s7517_s2, 1152 }
  0x20   : > { %p5332_p7 = scmp.ne.s32.totalorder %s7517_s2, %s5331_s18  ;;  %p5338_p11 = scmp.lt.u32.totalorder %s5331_s18, %s7517_s2 }
  0x22   : > { %p5334_p9 = pnand %p5746_p8, %p5332_p7 }
  0x24   : > { %p5335_p10 = pneg %p5334_p9 }
  0x26   : > { %p5340_p12 = pnand %p5338_p11, %p5335_p10 }
  0x28   : > { %5343 = shalt.err (!%p5340_p12)
}
  0x29   : > { %s5344_s9 = scalar_lea.vmem %s5723_s10, 1152  ;;  %p5352_p4 = scmp.lt.s32.totalorder %s5723_s10, %s5723_s10 }
  0x2a   : > { %p5345_p13 = scmp.ne.s32.totalorder %s5723_s10, %s5344_s9  ;;  %p5353_p5 = scmp.lt.s32.totalorder %s5344_s9, %s5344_s9 }
  0x2c   : > { %p5347_p0 = pnand %p5345_p13, %p5746_p8  ;;  %p5354_p7 = por %p5353_p5, %p5352_p4 }
  0x2e   : > { %p5348_p2 = pneg %p5347_p0 }
  0x30   : > { %p5355_p9 = pnand %p5354_p7, %p5348_p2 }
  0x32   : > { %5358 = shalt.err (!%p5355_p9)
}
  0x33   : > { %s7420_s12 = smov 128   ;;  %s7422_s14 = smov 8  }
  0x34   : > { %5235 = dma.hbm_to_vmem [thread:$0]  (!%p5730_p6), %s7517_s2, 1152, %s5723_s10, [#allocation6], %s7420_s12, %s7420_s12, %s7422_s14  }
  0x35   : > { %s7519_s3 = sld [smem:[#allocation77_spill]] }
  0x3b   : > { %s5359_s20 = scalar_lea.hbm %s7519_s3, 16 }
  0x3c   : > { %p5360_p5 = scmp.ne.s32.totalorder %s7519_s3, %s5359_s20  ;;  %p5366_p12 = scmp.lt.u32.totalorder %s5359_s20, %s7519_s3 }
  0x3e   : > { %p5362_p10 = pnand %p5360_p5, %p5746_p8 }
  0x40   : > { %p5363_p11 = pneg %p5362_p10 }
  0x42   : > { %p5368_p13 = pnand %p5366_p12, %p5363_p11 }
  0x44   : > { %5371 = shalt.err (!%p5368_p13)
}
  0x45   : > { %s5372_s10 = scalar_lea.vmem %s5734_s13, 16  ;;  %s5379_s16 = scalar_lea.vmem %s5734_s13, 32 }
  0x46   : > { %p5373_p0 = scmp.ne.s32.totalorder %s5734_s13, %s5372_s10  ;;  %p5380_p7 = scmp.lt.s32.totalorder %s5734_s13, %s5734_s13 }
  0x47   : > { %p5381_p9 = scmp.lt.s32.totalorder %s5379_s16, %s5372_s10 }
  0x48   : > { %p5375_p2 = pnand %p5373_p0, %p5746_p8 }
  0x49   : > { %p5382_p5 = por %p5381_p9, %p5380_p7 }
  0x4a   : > { %p5376_p4 = pneg %p5375_p2 }
  0x4c   : > { %p5383_p10 = pnand %p5382_p5, %p5376_p4 }
  0x4e   : > { %5386 = shalt.err (!%p5383_p10)
}
  0x4f   : > { %5238 = dma.hbm_to_vmem [thread:$0]  (!%p5730_p6), %s7519_s3, 16, %s5734_s13, [#allocation9]  }
  0x50   : > { %s7520_s5 = sld [smem:[#allocation79_spill]] }
  0x56   : > { %s5387_s20 = scalar_lea.hbm %s7520_s5, 16 }
  0x57   : > { %p5388_p11 = scmp.ne.s32.totalorder %s7520_s5, %s5387_s20  ;;  %p5394_p0 = scmp.lt.u32.totalorder %s5387_s20, %s7520_s5 }
  0x59   : > { %p5390_p12 = pnand %p5388_p11, %p5746_p8 }
  0x5b   : > { %p5391_p13 = pneg %p5390_p12 }
  0x5d   : > { %p5396_p2 = pnand %p5394_p0, %p5391_p13 }
  0x5f   : > { %5399 = shalt.err (!%p5396_p2)
}
  0x60   : > { %s5400_s16 = scalar_lea.vmem %s283_s15, 16  ;;  %s5407_s13 = scalar_lea.vmem %s283_s15, 32 }
  0x61   : > { %p5401_p4 = scmp.ne.s32.totalorder %s283_s15, %s5400_s16  ;;  %p5408_p5 = scmp.lt.s32.totalorder %s283_s15, %s283_s15 }
  0x62   : > { %p5409_p10 = scmp.lt.s32.totalorder %s5407_s13, %s5400_s16 }
  0x63   : > { %p5403_p7 = pnand %p5401_p4, %p5746_p8 }
  0x64   : > { %p5410_p1 = por %p5409_p10, %p5408_p5 }
  0x65   : > { %p5404_p9 = pneg %p5403_p7 }
  0x67   : > { %p5411_p3 = pnand %p5410_p1, %p5404_p9 }
  0x69   : > { %5414 = shalt.err (!%p5411_p3)
}
  0x6a   : > { %5244 = dma.hbm_to_vmem [thread:$0]  (!%p5730_p6), %s7520_s5, 16, %s283_s15, [#allocation12]  }
  0x6b   : > { %s5636_s18 = smov [#allocation10]   ;;  %s5637_s20 = smov [#allocation13]  }
  0x6c   : > { %s271_s19 = sshll.u32 %s5636_s18, 4  ;;  %s293_s22 = sshll.u32 %s5637_s20, 4  ;;  %s272_s19 = int_to_ptr.vmem [resolvable:$true] %s271_s19  ;;  %s294_s22 = int_to_ptr.vmem [resolvable:$true] %s293_s22 }
  0x6d   : > { %s7521_s4 = sld [smem:[#allocation78_spill]] }
  0x73   : > { %s5415_s10 = scalar_lea.hbm %s7521_s4, 16 }
  0x74   : > { %p5416_p1 = scmp.ne.s32.totalorder %s7521_s4, %s5415_s10  ;;  %p5422_p12 = scmp.lt.u32.totalorder %s5415_s10, %s7521_s4 }
  0x76   : > { %p5418_p3 = pnand %p5416_p1, %p5746_p8 }
  0x78   : > { %p5419_p11 = pneg %p5418_p3 }
  0x7a   : > { %p5424_p13 = pnand %p5422_p12, %p5419_p11 }
  0x7c   : > { %5427 = shalt.err (!%p5424_p13)
}
  0x7d   : > { %s5428_s15 = scalar_lea.vmem %s272_s19, 16  ;;  %s5435_s17 = scalar_lea.vmem %s272_s19, 32 }
  0x7e   : > { %p5429_p0 = scmp.ne.s32.totalorder %s272_s19, %s5428_s15  ;;  %p5436_p7 = scmp.lt.s32.totalorder %s272_s19, %s272_s19 }
  0x7f   : > { %p5437_p9 = scmp.lt.s32.totalorder %s5435_s17, %s5428_s15 }
  0x80   : > { %p5431_p2 = pnand %p5429_p0, %p5746_p8 }
  0x81   : > { %p5438_p5 = por %p5437_p9, %p5436_p7 }
  0x82   : > { %p5432_p4 = pneg %p5431_p2 }
  0x84   : > { %p5439_p10 = pnand %p5438_p5, %p5432_p4 }
  0x86   : > { %5442 = shalt.err (!%p5439_p10)
}
  0x87   : > { %5241 = dma.hbm_to_vmem [thread:$0]  (!%p5730_p6), %s7521_s4, 16, %s272_s19, [#allocation9]  }
  0x88   : > { %s7522_s6 = sld [smem:[#allocation80_spill]] }
  0x8e   : > { %s5443_s9 = scalar_lea.hbm %s7522_s6, 16 }
  0x8f   : > { %p5444_p1 = scmp.ne.s32.totalorder %s7522_s6, %s5443_s9  ;;  %p5450_p12 = scmp.lt.u32.totalorder %s5443_s9, %s7522_s6 }
  0x91   : > { %p5446_p3 = pnand %p5444_p1, %p5746_p8 }
  0x93   : > { %p5447_p11 = pneg %p5446_p3 }
  0x95   : > { %p5452_p13 = pnand %p5450_p12, %p5447_p11 }
  0x97   : > { %5455 = shalt.err (!%p5452_p13)
}
  0x98   : > { %s5456_s15 = scalar_lea.vmem %s294_s22, 16  ;;  %s5463_s19 = scalar_lea.vmem %s294_s22, 32 }
  0x99   : > { %p5457_p0 = scmp.ne.s32.totalorder %s294_s22, %s5456_s15  ;;  %p5464_p7 = scmp.lt.s32.totalorder %s294_s22, %s294_s22 }
  0x9a   : > { %p5465_p9 = scmp.lt.s32.totalorder %s5463_s19, %s5456_s15 }
  0x9b   : > { %p5459_p2 = pnand %p5457_p0, %p5746_p8 }
  0x9c   : > { %p5466_p5 = por %p5465_p9, %p5464_p7 }
  0x9d   : > { %p5460_p4 = pneg %p5459_p2 }
  0x9f   : > { %p5467_p10 = pnand %p5466_p5, %p5460_p4 }
  0xa1   : > { %5470 = shalt.err (!%p5467_p10)
}
  0xa2   : > { %5247 = dma.hbm_to_vmem [thread:$0]  (!%p5730_p6), %s7522_s6, 16, %s294_s22, [#allocation12]  }
  0xa3   : > { %s3880_s21 = sadd.s32 4294967294, %s5629_s29   ;;  %s40_s20 = sadd.s32 1, %s5625_s28 }
  0xa4   : > { %s49_s11 = sadd.s32 1, %s5617_s26  ;;  %p42_p8 = scmp.ge.s32.totalorder %s40_s20, 2 }
  0xa5   : > { %p56_p1 = scmp.ne.s32.totalorder %s5617_s26, %s5613_s25  ;;  %p57_p3 = scmp.eq.s32.totalorder %s5629_s29, 0 }
  0xa6   : > { %p62_p11 = scmp.ne.s32.totalorder %s5613_s25, %s5609_s24  ;;  %s7665_s20 = smov (%p42_p8, %s40_s20), 0 }
  0xa7   : > { %p5859_p12 = por %p57_p3, %p56_p1  ;;  %p7524_p6 = scmp.eq.s32.totalorder %s5714_s30, 0 }
  0xa8   : > { %s44_s23 = ssub.s32 %s5625_s28, %s7665_s20  ;;  %p221_p0 = scmp.eq.s32.totalorder %s5714_s30, 1 }
  0xa9   : > { %p5865_p13 = por %p7524_p6, %p62_p11  ;;  %p47_p2 = scmp.eq.s32.totalorder %s44_s23, 0 }
  0xaa   : > { %p227_p4 = scmp.eq.s32.totalorder %s3880_s21, 1  ;;  %p5872_p7 = por %p221_p0, %p56_p1 }
  0xab   : > { %p5264_p9 = scmp.lt.s32.totalorder %s5629_s29, 2  ;;  %s5885_s13 = sand.u32 1, %s5617_s26  }
  0xac   : > { %s7526_s9 = scalar_select %p5872_p7, 1, 0 }
  0xad   : > { %s5878_s10 = scalar_select %p47_p2, %s5617_s26, %s49_s11  }
  0xae   : > { %p5880_p5 = por %p227_p4, %p62_p11  ;;  %s5200_s7 = smul.u32 384, %s5885_s13 }
  0xaf   : > { %s5201_s15 = smul.u32 6912, %s5625_s28  ;;  %p5891_p10 = pnand %p5264_p9, %p5859_p12 }
  0xb0   : > { %s7527_s16 = scalar_select %p5880_p5, 1, 0 }
  0xb1   : > { %s7529_s0 = sld [smem:[#allocation75_spill]]  ;;  %s308_s23 = scalar_lea.vmem [#allocation2], %s5200_s7 }
  0xb2   : > { %s326_s14 = sshll.u32 %s308_s23, 4  ;;  %s305_s12 = scalar_lea.sflag [#allocation3], %s5885_s13  ;;  %s5901_s14 = int_to_ptr.vmem [resolvable:$true] %s326_s14 }
  0xb3   : > { %p5473_p1 = pneg %p5891_p10 }
  0xb7   : > { %s5899_s11 = scalar_lea.hbm %s7529_s0, %s5201_s15  ;;  %s5476_s21 = scalar_lea.hbm %s7529_s0, 13824 }
  0xb8   : > { %s5471_s2 = scalar_lea.hbm %s5899_s11, 6144  ;;  %p5477_p12 = scmp.lt.u32.totalorder %s5899_s11, %s7529_s0 }
  0xb9   : > { %p5472_p8 = scmp.ne.s32.totalorder %s5899_s11, %s5471_s2  ;;  %p5478_p6 = scmp.lt.u32.totalorder %s5476_s21, %s5471_s2 }
  0xba   : > { %p5480_p2 = scmp.lt.u32.totalorder %s5471_s2, %s5899_s11 }
  0xbb   : > { %p5474_p3 = pnand %p5473_p1, %p5472_p8  ;;  %p5479_p0 = por %p5478_p6, %p5477_p12 }
  0xbd   : > { %p5475_p11 = pneg %p5474_p3  ;;  %p5481_p4 = por %p5480_p2, %p5479_p0 }
  0xbf   : > { %p5482_p9 = pnand %p5481_p4, %p5475_p11 }
  0xc1   : > { %5485 = shalt.err (!%p5482_p9)
}
  0xc2   : > { %s5486_s7 = scalar_lea.vmem %s5901_s14, 6144  ;;  %s5638_s23 = smov [#allocation2]  }
  0xc3   : > { %p5487_p8 = scmp.ne.s32.totalorder %s5901_s14, %s5486_s7  ;;  %s5491_s18 = sshll.u32 %s5638_s23, 4  ;;  %s5492_s18 = int_to_ptr.vmem [resolvable:$false] %s5491_s18 }
  0xc4   : > { %s5493_s3 = scalar_lea.vmem %s5492_s18, 12288  ;;  %p5494_p7 = scmp.lt.s32.totalorder %s5901_s14, %s5492_s18 }
  0xc5   : > { %p5489_p3 = pnand %p5487_p8, %p5473_p1  ;;  %p5495_p12 = scmp.lt.s32.totalorder %s5493_s3, %s5486_s7 }
  0xc7   : > { %p5490_p5 = pneg %p5489_p3  ;;  %p5496_p6 = por %p5495_p12, %p5494_p7 }
  0xc9   : > { %p5497_p0 = pnand %p5496_p6, %p5490_p5 }
  0xcb   : > { %5500 = shalt.err (!%p5497_p0)
}
  0xcc   : > { %s7530_s2 = smov 8   ;;  %s7531_s17 = smov 128  }
  0xcd   : > { %5251 = dma.hbm_to_vmem [thread:$0]  (!%p5891_p10), %s5899_s11, 6144, %s5901_s14, %s305_s12, %s7531_s17, %s7531_s17, %s7530_s2  }
  0xce   : > { %s5202_s15 = smul.u32 48, %s5885_s13  ;;  %s7532_s4 = sand.u32 1, %s5629_s29  }
  0xcf   : > { %s5203_s21 = smul.u32 768, %s5625_s28  ;;  %s5945_s5 = scalar_lea.sflag [#allocation6], %s7532_s4 }
  0xd0   : > { %s340_s3 = scalar_lea.vmem [#allocation5], %s5202_s15  ;;  %s5506_s11 = scalar_lea.hbm %s7410_s1, 1536 }
  0xd1   : > { %s5939_s18 = scalar_lea.hbm %s7410_s1, %s5203_s21  ;;  %s349_s0 = sshll.u32 %s340_s3, 4  ;;  %s5941_s0 = int_to_ptr.vmem [resolvable:$true] %s349_s0 }
  0xd2   : > { %s5501_s6 = scalar_lea.hbm %s5939_s18, 768  ;;  %p5507_p2 = scmp.lt.u32.totalorder %s5939_s18, %s7410_s1 }
  0xd3   : > { %p5502_p7 = scmp.ne.s32.totalorder %s5939_s18, %s5501_s6  ;;  %p5508_p4 = scmp.lt.u32.totalorder %s5506_s11, %s5501_s6 }
  0xd4   : > { %p5510_p8 = scmp.lt.u32.totalorder %s5501_s6, %s5939_s18 }
  0xd5   : > { %p5504_p5 = pnand %p5502_p7, %p5473_p1  ;;  %p5509_p9 = por %p5508_p4, %p5507_p2 }
  0xd7   : > { %p5505_p11 = pneg %p5504_p5  ;;  %p5511_p3 = por %p5510_p8, %p5509_p9 }
  0xd9   : > { %p5512_p12 = pnand %p5511_p3, %p5505_p11 }
  0xdb   : > { %5515 = shalt.err (!%p5512_p12)
}
  0xdc   : > { %s5516_s4 = scalar_lea.vmem %s5941_s0, 768  ;;  %s5639_s15 = smov [#allocation5]  }
  0xdd   : > { %p5517_p6 = scmp.ne.s32.totalorder %s5941_s0, %s5516_s4  ;;  %s5521_s7 = sshll.u32 %s5639_s15, 4  ;;  %s5522_s7 = int_to_ptr.vmem [resolvable:$false] %s5521_s7 }
  0xde   : > { %s5523_s23 = scalar_lea.vmem %s5522_s7, 1536  ;;  %p5524_p5 = scmp.lt.s32.totalorder %s5941_s0, %s5522_s7 }
  0xdf   : > { %p5519_p0 = pnand %p5517_p6, %p5473_p1  ;;  %p5525_p2 = scmp.lt.s32.totalorder %s5523_s23, %s5516_s4 }
  0xe1   : > { %p5520_p7 = pneg %p5519_p0  ;;  %p5526_p4 = por %p5525_p2, %p5524_p5 }
  0xe3   : > { %p5527_p9 = pnand %p5526_p4, %p5520_p7 }
  0xe5   : > { %5530 = shalt.err (!%p5527_p9)
}
  0xe6   : > { %5254 = dma.hbm_to_vmem [thread:$0]  (!%p5891_p10), %s5939_s18, 768, %s5941_s0, %s5945_s5, %s7531_s17, %s7531_s17, %s7530_s2  }
  0xe7   : > { %p7533_p1 = scmp.ne.s32.totalorder %s7515_s8, 0 }
  0xe9   : > { %361 = sbr.rel (%p7533_p1) target bundleno = 820 (0x334), region = 48 }
  0xf0   : > { %s5977_s6 = sand.u32 1, %s5613_s25  }
  0xf1   : > { %s5204_s3 = smul.u32 384, %s5977_s6  ;;  %s364_s14 = scalar_lea.sflag [#allocation3], %s5977_s6 }
  0xf3   : > { %s5981_s13 = scalar_lea.vmem [#allocation2], %s5204_s3 }
  0xf4   : > { %5584 = dma.done.wait (%p5865_p13), %s364_s14, 6144  }
  0xf5   : > { %5586 = vsyncadd (%p5865_p13), %s364_s14, 4294961152  ;;  %s372_s0 = sand.u32 1, %s5714_s30   ;;  %s5205_s5 = smul.u32 48, %s5977_s6 }
  0xf6   : > { %s373_s8 = scalar_lea.sflag [#allocation6], %s372_s0 }
  0xf7   : > { %s5989_s19 = scalar_lea.vmem [#allocation5], %s5205_s5 }
  0xf8   : > { %5588 = dma.done.wait (%p5865_p13), %s373_s8, 768  }
  0xf9   : > { %5590 = vsyncadd (%p5865_p13), %s373_s8, 4294966528  ;;  %p7534_p10 = scmp.eq.s32.totalorder %s5714_s30, 0 }
  0xfb   : > { %5592 = dma.done.wait (%p7534_p10), [#allocation6], 1152   ;;  %p7535_p11 = pmov %p7534_p10 }
  0xfc   : > { %p7536_p8 = pmov %p7534_p10 }
  0xfd   : > { %5594 = vsyncadd (%p7535_p11), [#allocation6], 4294966144 }
  0xfe   : > { %5596 = dma.done.wait (%p7536_p8), [#allocation9], 32   ;;  %p7537_p3 = pmov %p7536_p8 }
 0x100   : > { %5598 = vsyncadd (%p7537_p3), [#allocation9], 4294967264  ;;  %p7538_p12 = pmov %p7537_p3 }
 0x101   : > { %p7539_p6 = pmov %p7537_p3 }
 0x102   : > { %5600 = dma.done.wait (%p7538_p12), [#allocation12], 32  }
 0x103   : > { %5602 = vsyncadd (%p7539_p6), [#allocation12], 4294967264  ;;  %v908_v0 = vld [vmem:[#allocation7 + $0x8] sm:$0xff]  ;;  %v2164_v1 = vld [vmem:[#allocation7 + $0x20] sm:$0xff]  ;;  %vm826_vm0 = vcmask 1046528   ;;  %vm909_vm1 = vcmask 64512  }
 0x104   : > { %v439_v2 = vld [vmem:[%s5981_s13] sm:$0xff]  ;;  %4492 = vmatprep.subr.mxu1 %v908_v0  ;;  %4692 = vmatprep.subr.mxu0 %v2164_v1  ;;  %v440_v3 = vld [vmem:[%s5981_s13 + $0x8] sm:$0xff]  ;;  %v442_v9 = vld [vmem:[%s5981_s13 + $0x18] sm:$0xff]  ;;  %s3896_s30 = sshll.u32 %s5977_s6, 8  ;;  %s4194_s2 = sshll.u32 %s5621_s27, 12 }
 0x105   : > { %v6009_v4 = vld [vmem:[#allocation8] ss:$0 sm:$0xff]  ;;  %v6011_v5 = vld [vmem:[#allocation10] ss:$0 sm:$0xff]  ;;  %4493 = vmatpush3.msra.mxu1 %v908_v0  ;;  %4693 = vmatpush3.msra.mxu0 %v2164_v1  ;;  %v6015_v8 = vld [vmem:[#allocation7] sm:$0xff]  ;;  %s7222_s22 = scalar_lea.vmem [#allocation14], %s3896_s30 }
 0x106   : > { %v500_v6 = vmul.f32 %v6009_v4, %v439_v2  ;;  %v501_v7 = vmul.f32 %v6009_v4, %v440_v3  ;;  %v443_v10 = vld [vmem:[%s5981_s13 + $0x20] sm:$0xff]  ;;  %4542 = vmatprep.subr.mxu1 %v6015_v8  ;;  %v503_v11 = vmul.f32 %v6009_v4, %v442_v9  ;;  %v6022_v13 = vld [vmem:[#allocation7 + $0x28] sm:$0xff]  ;;  %v441_v14 = vld [vmem:[%s5981_s13 + $0x10] sm:$0x3]  ;;  %s3719_s17 = sshll.u32 %s7222_s22, 4  ;;  %s7655_s12 = sld [smem:[#allocation81_spill]]  ;;  %s7356_s17 = int_to_ptr.vmem [resolvable:$true] %s3719_s17 }
 0x107   : > { %v504_v12 = vmul.f32 %v6009_v4, %v443_v10  ;;  %v444_v15 = vld [vmem:[%s5981_s13 + $0x28] sm:$0x3]  ;;  %4742 = vmatprep.subr.mxu0 %v6022_v13  ;;  %v502_v18 = vmul.f32 %v6009_v4, %v441_v14  ;;  %v445_v20 = vld [vmem:[%s5981_s13 + $0x30] sm:$0xff]  ;;  %v446_v21 = vld [vmem:[%s5981_s13 + $0x38] sm:$0xff]  ;;  %s3704_s27 = scalar_lea.sflag [#allocation4], %s5977_s6  ;;  %s5531_s4 = scalar_lea.vmem %s7356_s17, 4096 }
 0x108   : > { %v561_v16 = vadd.f32 %v6011_v5, %v500_v6  ;;  %v562_v17 = vadd.f32 %v6011_v5, %v501_v7  ;;  %v505_v19 = vmul.f32 %v6009_v4, %v444_v15  ;;  %v564_v22 = vadd.f32 %v6011_v5, %v503_v11  ;;  %v447_v38 = vld [vmem:[%s5981_s13 + $0x40] sm:$0x3]  ;;  %v448_v49 = vld [vmem:[%s5981_s13 + $0x48] sm:$0xff]  ;;  %v449_v52 = vld [vmem:[%s5981_s13 + $0x50] sm:$0xff]  ;;  %p5532_p13 = scmp.ne.s32.totalorder %s7356_s17, %s5531_s4  ;;  %p7656_p0 = scmp.ne.s32.totalorder %s7526_s9, 0 }
 0x109   : > { %v565_v23 = vadd.f32 %v6011_v5, %v504_v12  ;;  %v506_v24 = vmul.f32 %v6009_v4, %v445_v20  ;;  %v507_v25 = vmul.f32 %v6009_v4, %v446_v21  ;;  %v563_v32 = vadd.f32 %v6011_v5, %v502_v18  ;;  %v450_v53 = vld [vmem:[%s5981_s13 + $0x58] sm:$0x3]  ;;  %v451_v61 = vld [vmem:[%s5981_s13 + $0x60] sm:$0xff]  ;;  %v452_v2 = vld [vmem:[%s5981_s13 + $0x68] sm:$0xff]  ;;  %s5640_s15 = smov [#allocation14]  }
 0x10a   : > { %vm615_vm2 = vcmp.ge.f32.partialorder %v561_v16, 0.0  ;;  %vm616_vm3 = vcmp.ge.f32.partialorder %v562_v17, 0.0  ;;  %v669_v26 = vmul.f32 0.01, %v561_v16  ;;  %v670_v27 = vmul.f32 0.01, %v562_v17  ;;  %p5533_p7 = pnand %p5532_p13, %p7656_p0 }
 0x10b   : > { %vm618_vm4 = vcmp.ge.f32.partialorder %v564_v22, 0.0  ;;  %vm619_vm5 = vcmp.ge.f32.partialorder %v565_v23, 0.0  ;;  %v672_v28 = vmul.f32 0.01, %v564_v22  ;;  %v673_v29 = vmul.f32 0.01, %v565_v23 }
 0x10c   : > { %v6037_v30 = vsel %vm615_vm2, %v561_v16, %v669_v26  ;;  %v6039_v31 = vsel %vm616_vm3, %v562_v17, %v670_v27  ;;  %v566_v33 = vadd.f32 %v6011_v5, %v505_v19  ;;  %vm617_vm6 = vcmp.ge.f32.partialorder %v563_v32, 0.0  ;;  %v453_v3 = vld [vmem:[%s5981_s13 + $0x70] sm:$0x3]  ;;  %s7354_s21 = scalar_lea.hbm %s7655_s12, %s4194_s2  ;;  %p5534_p5 = pneg %p5533_p7 }
 0x10d   : > { %v827_v34 = vrot.slane %v6037_v30, 1  ;;  %v828_v35 = vrot.slane %v6039_v31, 1  ;;  %v6045_v36 = vsel %vm618_vm4, %v564_v22, %v672_v28  ;;  %v6047_v37 = vsel %vm619_vm5, %v565_v23, %v673_v29  ;;  %v6081_v6 = vld [vmem:[#allocation7 + $0x30] sm:$0xff]  ;;  %s5535_s7 = sshll.u32 %s5640_s15, 4  ;;  %s5536_s7 = int_to_ptr.vmem [resolvable:$false] %s5535_s7 }
 0x10e   : > { %7540 = vst [vmem:[#allocation21_spill] sm:$0xff] %v6045_v36  ;;  %7541 = vst [vmem:[#allocation22_spill] sm:$0xff] %v6047_v37  ;;  %v832_v39 = vrot.slane %v6045_v36, 1  ;;  %v833_v40 = vrot.slane %v6047_v37, 1  ;;  %v671_v41 = vmul.f32 0.01, %v563_v32  ;;  %v567_v44 = vadd.f32 %v6011_v5, %v506_v24  ;;  %p5538_p2 = scmp.lt.s32.totalorder %s7356_s17, %s5536_s7 }
 0x10f   : > { %v829_v42 = vsel %vm826_vm0, %v827_v34, %v828_v35  ;;  %vm620_vm7 = vcmp.ge.f32.partialorder %v566_v33, 0.0  ;;  %v674_v43 = vmul.f32 0.01, %v566_v33  ;;  %v568_v47 = vadd.f32 %v6011_v5, %v507_v25  ;;  %s5537_s23 = scalar_lea.vmem %s5536_s7, 8192 }
 0x110   : > { %4494 = vmatprep.mubr.msk.f32.mxu1 %vm909_vm1, %v829_v42  ;;  %v834_v45 = vsel %vm826_vm0, %v832_v39, %v833_v40  ;;  %v6056_v46 = vsel %vm617_vm6, %v563_v32, %v671_v41  ;;  %v508_v48 = vmul.f32 %v6009_v4, %v447_v38  ;;  %vm621_vm8 = vcmp.ge.f32.partialorder %v567_v44, 0.0  ;;  %v454_v32 = vld [vmem:[%s5981_s13 + $0x78] sm:$0xff]  ;;  %v455_v39 = vld [vmem:[%s5981_s13 + $0x80] sm:$0xff]  ;;  %p5539_p4 = scmp.lt.s32.totalorder %s5537_s23, %s5531_s4 }
 0x111   : > { %4694 = vmatprep.mubr.msk.f32.mxu0 %vm909_vm1, %v834_v45  ;;  %v830_v50 = vrot.slane %v6056_v46, 1  ;;  %v6063_v51 = vsel %vm620_vm7, %v566_v33, %v674_v43  ;;  %vm622_vm9 = vcmp.ge.f32.partialorder %v568_v47, 0.0  ;;  %v675_v56 = vmul.f32 0.01, %v567_v44  ;;  %v6123_v33 = vld [vmem:[#allocation7 + $0x10] sm:$0xff] }
 0x112   : > { %v835_v54 = vrot.slane %v6063_v51, 1  ;;  %v1497_v55 = vrot.slane %v6063_v51, 2  ;;  %v676_v58 = vmul.f32 0.01, %v568_v47  ;;  %v569_v59 = vadd.f32 %v6011_v5, %v508_v48  ;;  %v456_v43 = vld [vmem:[%s5981_s13 + $0x88] sm:$0x3]  ;;  %p5540_p9 = por %p5539_p4, %p5538_p2 }
 0x113   : > { %v831_v57 = vsel %vm826_vm0, %v828_v35, %v830_v50  ;;  %v509_v60 = vmul.f32 %v6009_v4, %v448_v49  ;;  %v6075_v63 = vsel %vm621_vm8, %v567_v44, %v675_v56  ;;  %v510_v0 = vmul.f32 %v6009_v4, %v449_v52  ;;  %v457_v49 = vld [vmem:[%s5981_s13 + $0x90] sm:$0xff]  ;;  %v458_v50 = vld [vmem:[%s5981_s13 + $0x98] sm:$0xff] }
 0x114   : > { %4495 = vmatmul.mubr.msk.f32.vlgmr.msra.gmra.mrb[0].mxu1 %vm909_vm1, %v831_v57  ;;  %v836_v62 = vsel %vm826_vm0, %v833_v40, %v835_v54  ;;  %v511_v1 = vmul.f32 %v6009_v4, %v450_v53  ;;  %v6086_v7 = vsel %vm622_vm9, %v568_v47, %v676_v58  ;;  %v837_v9 = vrot.slane %v6075_v63, 1  ;;  %p5541_p1 = pnand %p5540_p9, %p5534_p5 }
 0x115   : > { %4543 = vmatpush3.msra.mxu1 %v6015_v8  ;;  %4695 = vmatmul.mubr.msk.f32.vlgmr.msra.gmra.mrb[0].mxu0 %vm909_vm1, %v836_v62  ;;  %vm623_vm10 = vcmp.ge.f32.partialorder %v569_v59, 0.0  ;;  %v677_v10 = vmul.f32 0.01, %v569_v59  ;;  %v838_v11 = vrot.slane %v6086_v7, 1  ;;  %v570_v12 = vadd.f32 %v6011_v5, %v509_v60 }
 0x116   : > { %4743 = vmatpush3.msra.mxu0 %v6022_v13  ;;  %4497 = vmatprep.mubr.msk.f32.mxu1 %vm909_vm1, %v834_v45  ;;  %v571_v14 = vadd.f32 %v6011_v5, %v510_v0  ;;  %v572_v8 = vadd.f32 %v6011_v5, %v511_v1  ;;  %v512_v16 = vmul.f32 %v6009_v4, %v451_v61  ;;  %v1494_v56 = vrot.slane %v6045_v36, 2 }
 0x117   : > { %v6095_v15 = vsel %vm623_vm10, %v569_v59, %v677_v10  ;;  %v513_v17 = vmul.f32 %v6009_v4, %v452_v2  ;;  %v514_v18 = vmul.f32 %v6009_v4, %v453_v3  ;;  %4792 = vmatprep.subr.mxu0 %v6081_v6  ;;  %v6102_v13 = vsel %vm826_vm0, %v837_v9, %v838_v11 }
 0x118   : > { %7542 = vst [vmem:[#allocation23_spill] sm:$0xff] %v6102_v13  ;;  %4498 = vmatmul.mubr.msk.f32.gmra.mrb[2].mxu1 %vm909_vm1, %v836_v62  ;;  %v840_v19 = vrot.slane %v6095_v15, 1  ;;  %vm624_vm11 = vcmp.ge.f32.partialorder %v570_v12, 0.0  ;;  %vm625_vm12 = vcmp.ge.f32.partialorder %v571_v14, 0.0  ;;  %4697 = vmatprep.mubr.msk.f32.mxu0 %vm909_vm1, %v6102_v13  ;;  %v678_v20 = vmul.f32 0.01, %v570_v12 }
 0x119   : > { %4500 = vmatprep.mubr.msk.f32.mxu1 %vm909_vm1, %v6102_v13  ;;  %v679_v21 = vmul.f32 0.01, %v571_v14  ;;  %vm626_vm13 = vcmp.ge.f32.partialorder %v572_v8, 0.0  ;;  %v573_v22 = vadd.f32 %v6011_v5, %v512_v16  ;;  %v680_v24 = vmul.f32 0.01, %v572_v8  ;;  %4592 = vmatprep.subr.mxu1 %v6123_v33 }
 0x11a   : > { %v6112_v23 = vsel %vm826_vm0, %v838_v11, %v840_v19  ;;  %v574_v25 = vadd.f32 %v6011_v5, %v513_v17  ;;  %v575_v26 = vadd.f32 %v6011_v5, %v514_v18  ;;  %v6118_v27 = vsel %vm624_vm11, %v570_v12, %v678_v20  ;;  %v459_v17 = vld [vmem:[%s5981_s13 + $0xa0] sm:$0x3]  ;;  %v460_v18 = vld [vmem:[%s5981_s13 + $0xa8] sm:$0xff] }
 0x11b   : > { %7543 = vst [vmem:[#allocation24_spill] sm:$0xff] %v6112_v23  ;;  %4698 = vmatmul.mubr.msk.f32.gmra.mrb[2].mxu0 %vm909_vm1, %v6112_v23  ;;  %v6120_v28 = vsel %vm625_vm12, %v571_v14, %v679_v21  ;;  %vm627_vm14 = vcmp.ge.f32.partialorder %v573_v22, 0.0  ;;  %v681_v29 = vmul.f32 0.01, %v573_v22  ;;  %v842_v34 = vrot.slane %v6118_v27, 1 }
 0x11c   : > { %v843_v35 = vrot.slane %v6120_v28, 1  ;;  %4501 = vmatmul.mubr.msk.f32.gmra.mrb[4].mxu1 %vm909_vm1, %v6112_v23  ;;  %v6130_v38 = vsel %vm626_vm13, %v572_v8, %v680_v24  ;;  %vm628_vm15 = vcmp.ge.f32.partialorder %v574_v25, 0.0  ;;  %v682_v41 = vmul.f32 0.01, %v574_v25 }
 0x11d   : > { %v845_v40 = vrot.slane %v6130_v38, 1  ;;  %v6135_v42 = vsel %vm627_vm14, %v573_v22, %v681_v29  ;;  %vm629_vm2 = vcmp.ge.f32.partialorder %v575_v26, 0.0  ;;  %v683_v47 = vmul.f32 0.01, %v575_v26  ;;  %v461_v22 = vld [vmem:[%s5981_s13 + $0xb0] sm:$0xff] }
 0x11e   : > { %v6139_v44 = vsel %vm826_vm0, %v842_v34, %v843_v35  ;;  %v847_v45 = vrot.slane %v6135_v42, 1  ;;  %v515_v48 = vmul.f32 %v6009_v4, %v454_v32  ;;  %v6153_v53 = vsel %vm628_vm15, %v574_v25, %v682_v41 }
 0x11f   : > { %7544 = vst [vmem:[#allocation25_spill] sm:$0xff] %v6139_v44  ;;  %4700 = vmatprep.mubr.msk.f32.mxu0 %vm909_vm1, %v6139_v44  ;;  %v6148_v52 = vsel %vm826_vm0, %v843_v35, %v845_v40  ;;  %4503 = vmatprep.mubr.msk.f32.mxu1 %vm909_vm1, %v6139_v44  ;;  %v516_v54 = vmul.f32 %v6009_v4, %v455_v39  ;;  %v848_v57 = vrot.slane %v6153_v53, 1  ;;  %v462_v39 = vld [vmem:[%s5981_s13 + $0xb8] sm:$0x3]  ;;  %v463_v40 = vld [vmem:[%s5981_s13 + $0xc0] sm:$0xff]  ;;  %vm1488_vm8 = vcmask 1045504  }
 0x120   : > { %7545 = vst [vmem:[#allocation26_spill] sm:$0xff] %v6148_v52  ;;  %4701 = vmatmul.mubr.msk.f32.gmra.mrb[4].mxu0 %vm909_vm1, %v6148_v52  ;;  %4504 = vmatmul.mubr.msk.f32.gmra.mrb[6].mxu1 %vm909_vm1, %v6148_v52  ;;  %v6163_v58 = vsel %vm629_vm2, %v575_v26, %v683_v47  ;;  %v576_v59 = vadd.f32 %v6011_v5, %v515_v48 }
 0x121   : > { %v517_v60 = vmul.f32 %v6009_v4, %v456_v43  ;;  %v850_v61 = vrot.slane %v6163_v58, 1  ;;  %v577_v62 = vadd.f32 %v6011_v5, %v516_v54  ;;  %v518_v0 = vmul.f32 %v6009_v4, %v457_v49 }
 0x122   : > { %v519_v1 = vmul.f32 %v6009_v4, %v458_v50  ;;  %v6172_v2 = vsel %vm826_vm0, %v847_v45, %v848_v57  ;;  %vm630_vm3 = vcmp.ge.f32.partialorder %v576_v59, 0.0  ;;  %v684_v3 = vmul.f32 0.01, %v576_v59 }
 0x123   : > { %7546 = vst [vmem:[#allocation27_spill] sm:$0xff] %v6172_v2  ;;  %v578_v9 = vadd.f32 %v6011_v5, %v517_v60  ;;  %4703 = vmatprep.mubr.msk.f32.mxu0 %vm909_vm1, %v6172_v2  ;;  %v6178_v10 = vsel %vm826_vm0, %v848_v57, %v850_v61  ;;  %4506 = vmatprep.mubr.msk.f32.mxu1 %vm909_vm1, %v6172_v2  ;;  %vm631_vm4 = vcmp.ge.f32.partialorder %v577_v62, 0.0  ;;  %v685_v11 = vmul.f32 0.01, %v577_v62  ;;  %v464_v60 = vld [vmem:[%s5981_s13 + $0xc8] sm:$0xff] }
 0x124   : > { %7547 = vst [vmem:[#allocation28_spill] sm:$0xff] %v6178_v10  ;;  %v579_v12 = vadd.f32 %v6011_v5, %v518_v0  ;;  %4704 = vmatmul.mubr.msk.f32.gmra.mrb[6].mxu0 %vm909_vm1, %v6178_v10  ;;  %v6185_v14 = vsel %vm630_vm3, %v576_v59, %v684_v3  ;;  %4507 = vmatmul.mubr.msk.f32.gmra.mrb[8].mxu1 %vm909_vm1, %v6178_v10  ;;  %v1495_v0 = vrot.slane %v6047_v37, 2 }
 0x125   : > { %vm632_vm5 = vcmp.ge.f32.partialorder %v578_v9, 0.0  ;;  %v686_v8 = vmul.f32 0.01, %v578_v9  ;;  %v580_v16 = vadd.f32 %v6011_v5, %v519_v1  ;;  %v6192_v19 = vsel %vm631_vm4, %v577_v62, %v685_v11  ;;  %v465_v62 = vld [vmem:[%s5981_s13 + $0xd0] sm:$0x3] }
 0x126   : > { %v852_v20 = vrot.slane %v6185_v14, 1  ;;  %vm633_vm6 = vcmp.ge.f32.partialorder %v579_v12, 0.0  ;;  %v687_v21 = vmul.f32 0.01, %v579_v12  ;;  %v853_v24 = vrot.slane %v6192_v19, 1 }
 0x127   : > { %v6197_v25 = vsel %vm632_vm5, %v578_v9, %v686_v8  ;;  %vm634_vm7 = vcmp.ge.f32.partialorder %v580_v16, 0.0  ;;  %v688_v26 = vmul.f32 0.01, %v580_v16  ;;  %v520_v34 = vmul.f32 %v6009_v4, %v459_v17 }
 0x128   : > { %v855_v29 = vrot.slane %v6197_v25, 1  ;;  %v6200_v32 = vsel %vm633_vm6, %v579_v12, %v687_v21  ;;  %v521_v35 = vmul.f32 %v6009_v4, %v460_v18  ;;  %v6207_v41 = vsel %vm826_vm0, %v852_v20, %v853_v24 }
 0x129   : > { %7548 = vst [vmem:[#allocation29_spill] sm:$0xff] %v6207_v41  ;;  %v6209_v43 = vsel %vm634_vm7, %v580_v16, %v688_v26  ;;  %v857_v45 = vrot.slane %v6200_v32, 1  ;;  %v522_v47 = vmul.f32 %v6009_v4, %v461_v22  ;;  %4706 = vmatprep.mubr.msk.f32.mxu0 %vm909_vm1, %v6207_v41  ;;  %4509 = vmatprep.mubr.msk.f32.mxu1 %vm909_vm1, %v6207_v41  ;;  %v478_v41 = vld [vmem:[%s5981_s13 + $0x138] sm:$0xff]  ;;  %v1517_v52 = vrot.slane %v6197_v25, 2 }
 0x12a   : > { %v6216_v48 = vsel %vm826_vm0, %v853_v24, %v855_v29  ;;  %v858_v49 = vrot.slane %v6209_v43, 1  ;;  %v581_v50 = vadd.f32 %v6011_v5, %v520_v34  ;;  %v582_v54 = vadd.f32 %v6011_v5, %v521_v35 }
 0x12b   : > { %7549 = vst [vmem:[#allocation30_spill] sm:$0xff] %v6216_v48  ;;  %4707 = vmatmul.mubr.msk.f32.gmra.mrb[8].mxu0 %vm909_vm1, %v6216_v48  ;;  %4510 = vmatmul.mubr.msk.f32.gmra.mrb[10].mxu1 %vm909_vm1, %v6216_v48  ;;  %v583_v57 = vadd.f32 %v6011_v5, %v522_v47  ;;  %v523_v59 = vmul.f32 %v6009_v4, %v462_v39 }
 0x12c   : > { %v524_v61 = vmul.f32 %v6009_v4, %v463_v40  ;;  %v6234_v1 = vsel %vm826_vm0, %v857_v45, %v858_v49  ;;  %vm635_vm9 = vcmp.ge.f32.partialorder %v581_v50, 0.0  ;;  %v689_v3 = vmul.f32 0.01, %v581_v50 }
 0x12d   : > { %7550 = vst [vmem:[#allocation31_spill] sm:$0xff] %v6234_v1  ;;  %vm636_vm10 = vcmp.ge.f32.partialorder %v582_v54, 0.0  ;;  %4709 = vmatprep.mubr.msk.f32.mxu0 %vm909_vm1, %v6234_v1  ;;  %4512 = vmatprep.mubr.msk.f32.mxu1 %vm909_vm1, %v6234_v1  ;;  %vm637_vm11 = vcmp.ge.f32.partialorder %v583_v57, 0.0  ;;  %v690_v9 = vmul.f32 0.01, %v582_v54  ;;  %v584_v12 = vadd.f32 %v6011_v5, %v523_v59  ;;  %v476_v1 = vld [vmem:[%s5981_s13 + $0x128] sm:$0xff] }
 0x12e   : > { %v691_v11 = vmul.f32 0.01, %v583_v57  ;;  %v6241_v8 = vsel %vm635_vm9, %v581_v50, %v689_v3  ;;  %v525_v16 = vmul.f32 %v6009_v4, %v464_v60  ;;  %v585_v17 = vadd.f32 %v6011_v5, %v524_v61  ;;  %v466_v50 = vld [vmem:[%s5981_s13 + $0xd8] sm:$0xff]  ;;  %v467_v60 = vld [vmem:[%s5981_s13 + $0xe0] sm:$0xff] }
 0x12f   : > { %v526_v18 = vmul.f32 %v6009_v4, %v465_v62  ;;  %v860_v20 = vrot.slane %v6241_v8, 1  ;;  %v6247_v21 = vsel %vm636_vm10, %v582_v54, %v690_v9  ;;  %vm638_vm12 = vcmp.ge.f32.partialorder %v584_v12, 0.0 }
 0x130   : > { %v6249_v22 = vsel %vm637_vm11, %v583_v57, %v691_v11  ;;  %v862_v24 = vrot.slane %v6247_v21, 1  ;;  %v692_v29 = vmul.f32 0.01, %v584_v12  ;;  %v586_v34 = vadd.f32 %v6011_v5, %v525_v16  ;;  %v468_v11 = vld [vmem:[%s5981_s13 + $0xe8] sm:$0x3] }
 0x131   : > { %v863_v26 = vrot.slane %v6249_v22, 1  ;;  %v6255_v35 = vsel %vm826_vm0, %v858_v49, %v860_v20  ;;  %vm639_vm13 = vcmp.ge.f32.partialorder %v585_v17, 0.0  ;;  %v693_v39 = vmul.f32 0.01, %v585_v17 }
 0x132   : > { %7551 = vst [vmem:[#allocation32_spill] sm:$0xff] %v6255_v35  ;;  %v587_v40 = vadd.f32 %v6011_v5, %v526_v18  ;;  %4710 = vmatmul.mubr.msk.f32.gmra.mrb[10].mxu0 %vm909_vm1, %v6255_v35  ;;  %4513 = vmatmul.mubr.msk.f32.gmra.mrb[12].mxu1 %vm909_vm1, %v6255_v35  ;;  %v6265_v47 = vsel %vm638_vm12, %v584_v12, %v692_v29  ;;  %vm640_vm14 = vcmp.ge.f32.partialorder %v586_v34, 0.0  ;;  %v694_v49 = vmul.f32 0.01, %v586_v34  ;;  %v474_v35 = vld [vmem:[%s5981_s13 + $0x118] sm:$0x3] }
 0x133   : > { %v6261_v45 = vsel %vm826_vm0, %v862_v24, %v863_v26  ;;  %v865_v54 = vrot.slane %v6265_v47, 1  ;;  %v6273_v57 = vsel %vm639_vm13, %v585_v17, %v693_v39  ;;  %v6282_v3 = vsel %vm1488_vm8, %v1494_v56, %v1495_v0  ;;  %v470_v39 = vld [vmem:[%s5981_s13 + $0xf8] sm:$0xff] }
 0x134   : > { %7552 = vst [vmem:[#allocation33_spill] sm:$0xff] %v6261_v45  ;;  %4712 = vmatprep.mubr.msk.f32.mxu0 %vm909_vm1, %v6261_v45  ;;  %4515 = vmatprep.mubr.msk.f32.mxu1 %vm909_vm1, %v6261_v45  ;;  %vm641_vm15 = vcmp.ge.f32.partialorder %v587_v40, 0.0  ;;  %v695_v59 = vmul.f32 0.01, %v587_v40  ;;  %v6276_v61 = vsel %vm640_vm14, %v586_v34, %v694_v49  ;;  %v867_v62 = vrot.slane %v6273_v57, 1  ;;  %v469_v34 = vld [vmem:[%s5981_s13 + $0xf0] sm:$0xff] }
 0x135   : > { %v6287_v9 = vsel %vm1488_vm8, %v1495_v0, %v1497_v55  ;;  %v6291_v12 = vsel %vm826_vm0, %v863_v26, %v865_v54  ;;  %v868_v16 = vrot.slane %v6276_v61, 1  ;;  %v527_v18 = vmul.f32 %v6009_v4, %v466_v50 }
 0x136   : > { %7553 = vst [vmem:[#allocation34_spill] sm:$0xff] %v6291_v12  ;;  %v6294_v17 = vsel %vm641_vm15, %v587_v40, %v695_v59  ;;  %4713 = vmatmul.mubr.msk.f32.gmra.mrb[12].mxu0 %vm909_vm1, %v6291_v12  ;;  %4516 = vmatmul.mubr.msk.f32.gmra.mrb[14].mxu1 %vm909_vm1, %v6291_v12  ;;  %v528_v55 = vmul.f32 %v6009_v4, %v467_v60  ;;  %v1499_v56 = vrot.slane %v6075_v63, 2  ;;  %v1500_v0 = vrot.slane %v6086_v7, 2  ;;  %v473_v12 = vld [vmem:[%s5981_s13 + $0x110] sm:$0xff] }
 0x137   : > { %v870_v51 = vrot.slane %v6294_v17, 1  ;;  %v6306_v20 = vsel %vm826_vm0, %v867_v62, %v868_v16  ;;  %v588_v24 = vadd.f32 %v6011_v5, %v527_v18  ;;  %v529_v26 = vmul.f32 %v6009_v4, %v468_v11  ;;  %v471_v18 = vld [vmem:[%s5981_s13 + $0x100] sm:$0x3] }
 0x138   : > { %7554 = vst [vmem:[#allocation35_spill] sm:$0xff] %v6306_v20  ;;  %v1502_v29 = vrot.slane %v6095_v15, 2  ;;  %4715 = vmatprep.mubr.msk.f32.mxu0 %vm909_vm1, %v6306_v20  ;;  %4518 = vmatprep.mubr.msk.f32.mxu1 %vm909_vm1, %v6306_v20  ;;  %v589_v49 = vadd.f32 %v6011_v5, %v528_v55  ;;  %v6322_v50 = vsel %vm1488_vm8, %v1499_v56, %v1500_v0  ;;  %v1504_v54 = vrot.slane %v6118_v27, 2 }
 0x139   : > { %v6316_v40 = vsel %vm826_vm0, %v868_v16, %v870_v51  ;;  %vm642_vm2 = vcmp.ge.f32.partialorder %v588_v24, 0.0  ;;  %v696_v15 = vmul.f32 0.01, %v588_v24  ;;  %v590_v59 = vadd.f32 %v6011_v5, %v529_v26 }
 0x13a   : > { %7555 = vst [vmem:[#allocation36_spill] sm:$0xff] %v6316_v40  ;;  %v6327_v60 = vsel %vm1488_vm8, %v1500_v0, %v1502_v29  ;;  %4716 = vmatmul.mubr.msk.f32.gmra.mrb[14].mxu0 %vm909_vm1, %v6316_v40  ;;  %4519 = vmatmul.mubr.msk.f32.gmra.mrb[16].mxu1 %vm909_vm1, %v6316_v40  ;;  %vm643_vm3 = vcmp.ge.f32.partialorder %v589_v49, 0.0  ;;  %v697_v62 = vmul.f32 0.01, %v589_v49  ;;  %v530_v11 = vmul.f32 %v6009_v4, %v469_v34 }
 0x13b   : > { %v531_v16 = vmul.f32 %v6009_v4, %v470_v39  ;;  %4744 = vmatprep.mubr.msk.f32.mxu0 %vm909_vm1, %v6282_v3  ;;  %v6338_v51 = vsel %vm642_vm2, %v588_v24, %v696_v15  ;;  %vm644_vm4 = vcmp.ge.f32.partialorder %v590_v59, 0.0  ;;  %v698_v55 = vmul.f32 0.01, %v590_v59  ;;  %v472_v15 = vld [vmem:[%s5981_s13 + $0x108] sm:$0xff] }
 0x13c   : > { %v1505_v56 = vrot.slane %v6120_v28, 2  ;;  %v6341_v0 = vsel %vm643_vm3, %v589_v49, %v697_v62  ;;  %v872_v26 = vrot.slane %v6338_v51, 1  ;;  %v591_v29 = vadd.f32 %v6011_v5, %v530_v11  ;;  %v6358_v11 = vld [vmem:[#allocation7 + $0x38] sm:$0xff] }
 0x13d   : > { %v592_v34 = vadd.f32 %v6011_v5, %v531_v16  ;;  %v873_v39 = vrot.slane %v6341_v0, 1  ;;  %v6347_v40 = vsel %vm644_vm4, %v590_v59, %v698_v55  ;;  %v532_v24 = vmul.f32 %v6009_v4, %v471_v18 }
 0x13e   : > { %v6350_v20 = vsel %vm1488_vm8, %v1504_v54, %v1505_v56  ;;  %4745 = vmatmul.mubr.msk.f32.vlgmr.msra.gmra.mrb[0].mxu0 %vm909_vm1, %v6287_v9  ;;  %v875_v49 = vrot.slane %v6347_v40, 1  ;;  %vm645_vm5 = vcmp.ge.f32.partialorder %v591_v29, 0.0  ;;  %v699_v62 = vmul.f32 0.01, %v591_v29 }
 0x13f   : > { %vm646_vm6 = vcmp.ge.f32.partialorder %v592_v34, 0.0  ;;  %4793 = vmatpush3.msra.mxu0 %v6081_v6  ;;  %v6362_v54 = vsel %vm826_vm0, %v872_v26, %v873_v39  ;;  %4747 = vmatprep.mubr.msk.f32.mxu0 %vm909_vm1, %v6322_v50  ;;  %v700_v59 = vmul.f32 0.01, %v592_v34  ;;  %v593_v16 = vadd.f32 %v6011_v5, %v532_v24 }
 0x140   : > { %7556 = vst [vmem:[#allocation37_spill] sm:$0xff] %v6362_v54  ;;  %v1507_v18 = vrot.slane %v6130_v38, 2  ;;  %4521 = vmatprep.mubr.msk.f32.mxu1 %vm909_vm1, %v6362_v54  ;;  %v6371_v55 = vsel %vm826_vm0, %v873_v39, %v875_v49  ;;  %v6373_v45 = vsel %vm645_vm5, %v591_v29, %v699_v62  ;;  %v533_v6 = vmul.f32 %v6009_v4, %v472_v15  ;;  %v475_v54 = vld [vmem:[%s5981_s13 + $0x120] sm:$0xff] }
 0x141   : > { %7557 = vst [vmem:[#allocation38_spill] sm:$0xff] %v6371_v55  ;;  %v534_v26 = vmul.f32 %v6009_v4, %v473_v12  ;;  %4522 = vmatmul.mubr.msk.f32.gmra.mrb[18].mxu1 %vm909_vm1, %v6371_v55  ;;  %v6381_v24 = vsel %vm646_vm6, %v592_v34, %v700_v59  ;;  %v877_v38 = vrot.slane %v6373_v45, 1  ;;  %vm647_vm7 = vcmp.ge.f32.partialorder %v593_v16, 0.0  ;;  %4842 = vmatprep.subr.mxu0 %v6358_v11 }
 0x142   : > { %v701_v39 = vmul.f32 0.01, %v593_v16  ;;  %4748 = vmatmul.mubr.msk.f32.gmra.mrb[2].mxu0 %vm909_vm1, %v6327_v60  ;;  %v878_v12 = vrot.slane %v6381_v24, 1  ;;  %v6389_v29 = vsel %vm1488_vm8, %v1505_v56, %v1507_v18  ;;  %v594_v15 = vadd.f32 %v6011_v5, %v533_v6 }
 0x143   : > { %7558 = vst [vmem:[#allocation39_spill] sm:$0xff] %v6389_v29  ;;  %v595_v34 = vadd.f32 %v6011_v5, %v534_v26  ;;  %4750 = vmatprep.mubr.msk.f32.mxu0 %vm909_vm1, %v6350_v20  ;;  %v1509_v62 = vrot.slane %v6135_v42, 2  ;;  %v1510_v59 = vrot.slane %v6153_v53, 2  ;;  %v535_v55 = vmul.f32 %v6009_v4, %v474_v35 }
 0x144   : > { %v6395_v49 = vsel %vm647_vm7, %v593_v16, %v701_v39  ;;  %v6403_v56 = vsel %vm826_vm0, %v877_v38, %v878_v12  ;;  %vm648_vm9 = vcmp.ge.f32.partialorder %v594_v15, 0.0  ;;  %v702_v16 = vmul.f32 0.01, %v594_v15 }
 0x145   : > { %7559 = vst [vmem:[#allocation40_spill] sm:$0xff] %v6403_v56  ;;  %v880_v18 = vrot.slane %v6395_v49, 1  ;;  %vm649_vm10 = vcmp.ge.f32.partialorder %v595_v34, 0.0  ;;  %4524 = vmatprep.mubr.msk.f32.mxu1 %vm909_vm1, %v6403_v56  ;;  %v703_v6 = vmul.f32 0.01, %v595_v34  ;;  %v6409_v26 = vsel %vm1488_vm8, %v1509_v62, %v1510_v59 }
 0x146   : > { %7560 = vst [vmem:[#allocation41_spill] sm:$0xff] %v6409_v26  ;;  %v596_v39 = vadd.f32 %v6011_v5, %v535_v55  ;;  %4751 = vmatmul.mubr.msk.f32.gmra.mrb[4].mxu0 %vm909_vm1, %v6389_v29  ;;  %v1512_v38 = vrot.slane %v6163_v58, 2  ;;  %v536_v48 = vmul.f32 %v6009_v4, %v475_v54  ;;  %v537_v56 = vmul.f32 %v6009_v4, %v476_v1  ;;  %v486_v29 = vld [vmem:[%s5981_s13 + $0x178] sm:$0x3] }
 0x147   : > { %v6413_v35 = vsel %vm826_vm0, %v878_v12, %v880_v18  ;;  %v6422_v62 = vsel %vm648_vm9, %v594_v15, %v702_v16  ;;  %v6424_v55 = vsel %vm649_vm10, %v595_v34, %v703_v6  ;;  %4753 = vmatprep.mubr.msk.f32.mxu0 %vm909_vm1, %v6409_v26  ;;  %v1514_v16 = vrot.slane %v6185_v14, 2 }
 0x148   : > { %7561 = vst [vmem:[#allocation42_spill] sm:$0xff] %v6413_v35  ;;  %4525 = vmatmul.mubr.msk.f32.gmra.mrb[20].mxu1 %vm909_vm1, %v6413_v35  ;;  %vm650_vm11 = vcmp.ge.f32.partialorder %v596_v39, 0.0  ;;  %v704_v12 = vmul.f32 0.01, %v596_v39  ;;  %v882_v58 = vrot.slane %v6422_v62, 1  ;;  %v883_v54 = vrot.slane %v6424_v55, 1 }
 0x149   : > { %v6431_v1 = vsel %vm1488_vm8, %v1510_v59, %v1512_v38  ;;  %v597_v18 = vadd.f32 %v6011_v5, %v536_v48  ;;  %v477_v35 = vld [vmem:[%s5981_s13 + $0x130] sm:$0x3]  ;;  %v598_v34 = vadd.f32 %v6011_v5, %v537_v56  ;;  %v1515_v6 = vrot.slane %v6192_v19, 2  ;;  %v479_v59 = vld [vmem:[%s5981_s13 + $0x140] sm:$0xff] }
 0x14a   : > { %7562 = vst [vmem:[#allocation43_spill] sm:$0xff] %v6431_v1  ;;  %v6435_v15 = vsel %vm650_vm11, %v596_v39, %v704_v12  ;;  %v6442_v10 = vsel %vm826_vm0, %v882_v58, %v883_v54  ;;  %4754 = vmatmul.mubr.msk.f32.gmra.mrb[6].mxu0 %vm909_vm1, %v6431_v1  ;;  %v538_v38 = vmul.f32 %v6009_v4, %v477_v35 }
 0x14b   : > { %7563 = vst [vmem:[#allocation44_spill] sm:$0xff] %v6442_v10  ;;  %v885_v2 = vrot.slane %v6435_v15, 1  ;;  %vm651_vm12 = vcmp.ge.f32.partialorder %v597_v18, 0.0  ;;  %v705_v48 = vmul.f32 0.01, %v597_v18  ;;  %4527 = vmatprep.mubr.msk.f32.mxu1 %vm909_vm1, %v6442_v10  ;;  %vm652_vm13 = vcmp.ge.f32.partialorder %v598_v34, 0.0 }
 0x14c   : > { %v706_v56 = vmul.f32 0.01, %v598_v34  ;;  %v6451_v39 = vsel %vm1488_vm8, %v1514_v16, %v1515_v6  ;;  %v539_v44 = vmul.f32 %v6009_v4, %v478_v41  ;;  %v599_v35 = vadd.f32 %v6011_v5, %v538_v38 }
 0x14d   : > { %7564 = vst [vmem:[#allocation45_spill] sm:$0xff] %v6451_v39  ;;  %v6455_v12 = vsel %vm826_vm0, %v883_v54, %v885_v2  ;;  %v6457_v58 = vsel %vm651_vm12, %v597_v18, %v705_v48  ;;  %4756 = vmatprep.mubr.msk.f32.mxu0 %vm909_vm1, %v6451_v39  ;;  %v540_v2 = vmul.f32 %v6009_v4, %v479_v59  ;;  %v480_v54 = vld [vmem:[%s5981_s13 + $0x148] sm:$0x3]  ;;  %v1519_v48 = vrot.slane %v6200_v32, 2 }
 0x14e   : > { %7565 = vst [vmem:[#allocation46_spill] sm:$0xff] %v6455_v12  ;;  %4528 = vmatmul.mubr.msk.f32.gmra.mrb[22].mxu1 %vm909_vm1, %v6455_v12  ;;  %v6465_v10 = vsel %vm652_vm13, %v598_v34, %v706_v56  ;;  %v887_v16 = vrot.slane %v6457_v58, 1  ;;  %v6473_v25 = vsel %vm1488_vm8, %v1515_v6, %v1517_v52  ;;  %v600_v41 = vadd.f32 %v6011_v5, %v539_v44  ;;  %v481_v6 = vld [vmem:[%s5981_s13 + $0x150] sm:$0xff]  ;;  %v482_v44 = vld [vmem:[%s5981_s13 + $0x158] sm:$0xff] }
 0x14f   : > { %v888_v18 = vrot.slane %v6465_v10, 1  ;;  %7566 = vst [vmem:[#allocation47_spill] sm:$0xff] %v6473_v25  ;;  %vm653_vm14 = vcmp.ge.f32.partialorder %v599_v35, 0.0  ;;  %v707_v34 = vmul.f32 0.01, %v599_v35  ;;  %4757 = vmatmul.mubr.msk.f32.gmra.mrb[8].mxu0 %vm909_vm1, %v6473_v25  ;;  %v601_v56 = vadd.f32 %v6011_v5, %v540_v2 }
 0x150   : > { %v1520_v59 = vrot.slane %v6209_v43, 2  ;;  %vm654_vm15 = vcmp.ge.f32.partialorder %v600_v41, 0.0  ;;  %v708_v12 = vmul.f32 0.01, %v600_v41  ;;  %v541_v52 = vmul.f32 %v6009_v4, %v480_v54 }
 0x151   : > { %v6482_v38 = vsel %vm826_vm0, %v887_v16, %v888_v18  ;;  %v6489_v23 = vsel %vm653_vm14, %v599_v35, %v707_v34  ;;  %vm655_vm2 = vcmp.ge.f32.partialorder %v601_v56, 0.0  ;;  %v709_v13 = vmul.f32 0.01, %v601_v56 }
 0x152   : > { %7567 = vst [vmem:[#allocation48_spill] sm:$0xff] %v6482_v38  ;;  %4530 = vmatprep.mubr.msk.f32.mxu1 %vm909_vm1, %v6482_v38  ;;  %v6492_v2 = vsel %vm1488_vm8, %v1519_v48, %v1520_v59  ;;  %v890_v16 = vrot.slane %v6489_v23, 1  ;;  %v6495_v25 = vsel %vm654_vm15, %v600_v41, %v708_v12  ;;  %v602_v54 = vadd.f32 %v6011_v5, %v541_v52  ;;  %v483_v38 = vld [vmem:[%s5981_s13 + $0x160] sm:$0x3] }
 0x153   : > { %7568 = vst [vmem:[#allocation49_spill] sm:$0xff] %v6492_v2  ;;  %4759 = vmatprep.mubr.msk.f32.mxu0 %vm909_vm1, %v6492_v2  ;;  %v1522_v39 = vrot.slane %v6241_v8, 2  ;;  %v6501_v1 = vsel %vm655_vm2, %v601_v56, %v709_v13  ;;  %v892_v35 = vrot.slane %v6495_v25, 1  ;;  %v542_v34 = vmul.f32 %v6009_v4, %v481_v6 }
 0x154   : > { %v543_v48 = vmul.f32 %v6009_v4, %v482_v44  ;;  %v6508_v12 = vsel %vm826_vm0, %v888_v18, %v890_v16  ;;  %v893_v41 = vrot.slane %v6501_v1, 1  ;;  %vm656_vm3 = vcmp.ge.f32.partialorder %v602_v54, 0.0 }
 0x155   : > { %7569 = vst [vmem:[#allocation50_spill] sm:$0xff] %v6508_v12  ;;  %v710_v52 = vmul.f32 0.01, %v602_v54  ;;  %4531 = vmatmul.mubr.msk.f32.gmra.mrb[24].mxu1 %vm909_vm1, %v6508_v12  ;;  %v6514_v13 = vsel %vm1488_vm8, %v1520_v59, %v1522_v39  ;;  %v603_v8 = vadd.f32 %v6011_v5, %v542_v34  ;;  %v1524_v6 = vrot.slane %v6247_v21, 2  ;;  %v484_v39 = vld [vmem:[%s5981_s13 + $0x168] sm:$0xff]  ;;  %v485_v59 = vld [vmem:[%s5981_s13 + $0x170] sm:$0xff] }
 0x156   : > { %7570 = vst [vmem:[#allocation51_spill] sm:$0xff] %v6514_v13  ;;  %v604_v56 = vadd.f32 %v6011_v5, %v543_v48  ;;  %v6520_v44 = vsel %vm826_vm0, %v892_v35, %v893_v41  ;;  %4760 = vmatmul.mubr.msk.f32.gmra.mrb[10].mxu0 %vm909_vm1, %v6514_v13  ;;  %v1525_v16 = vrot.slane %v6249_v22, 2  ;;  %v544_v12 = vmul.f32 %v6009_v4, %v483_v38 }
 0x157   : > { %7571 = vst [vmem:[#allocation52_spill] sm:$0xff] %v6520_v44  ;;  %v6522_v18 = vsel %vm656_vm3, %v602_v54, %v710_v52  ;;  %4533 = vmatprep.mubr.msk.f32.mxu1 %vm909_vm1, %v6520_v44  ;;  %vm657_vm4 = vcmp.ge.f32.partialorder %v603_v8, 0.0  ;;  %v711_v35 = vmul.f32 0.01, %v603_v8  ;;  %v1527_v13 = vrot.slane %v6265_v47, 2 }
 0x158   : > { %v895_v34 = vrot.slane %v6522_v18, 1  ;;  %vm658_vm5 = vcmp.ge.f32.partialorder %v604_v56, 0.0  ;;  %v712_v54 = vmul.f32 0.01, %v604_v56  ;;  %v6534_v48 = vsel %vm1488_vm8, %v1524_v6, %v1525_v16 }
 0x159   : > { %v605_v52 = vadd.f32 %v6011_v5, %v544_v12  ;;  %v6541_v2 = vsel %vm657_vm4, %v603_v8, %v711_v35  ;;  %4762 = vmatprep.mubr.msk.f32.mxu0 %vm909_vm1, %v6534_v48  ;;  %v545_v44 = vmul.f32 %v6009_v4, %v484_v39  ;;  %v546_v26 = vmul.f32 %v6009_v4, %v485_v59 }
 0x15a   : > { %v6539_v38 = vsel %vm826_vm0, %v893_v41, %v895_v34  ;;  %v6550_v6 = vsel %vm658_vm5, %v604_v56, %v712_v54  ;;  %v897_v47 = vrot.slane %v6541_v2, 1  ;;  %v6555_v8 = vsel %vm1488_vm8, %v1525_v16, %v1527_v13 }
 0x15b   : > { %7572 = vst [vmem:[#allocation53_spill] sm:$0xff] %v6539_v38  ;;  %4534 = vmatmul.mubr.msk.f32.gmra.mrb[26].mxu1 %vm909_vm1, %v6539_v38  ;;  %vm659_vm6 = vcmp.ge.f32.partialorder %v605_v52, 0.0  ;;  %v713_v12 = vmul.f32 0.01, %v605_v52  ;;  %v898_v41 = vrot.slane %v6550_v6, 1  ;;  %v606_v34 = vadd.f32 %v6011_v5, %v545_v44  ;;  %4763 = vmatmul.mubr.msk.f32.gmra.mrb[12].mxu0 %vm909_vm1, %v6555_v8 }
 0x15c   : > { %v607_v39 = vadd.f32 %v6011_v5, %v546_v26  ;;  %v1529_v56 = vrot.slane %v6273_v57, 2  ;;  %v1530_v35 = vrot.slane %v6276_v61, 2  ;;  %v547_v54 = vmul.f32 %v6009_v4, %v486_v29 }
 0x15d   : > { %v6559_v59 = vsel %vm659_vm6, %v605_v52, %v713_v12  ;;  %v6567_v38 = vsel %vm826_vm0, %v897_v47, %v898_v41  ;;  %vm660_vm7 = vcmp.ge.f32.partialorder %v606_v34, 0.0  ;;  %v714_v26 = vmul.f32 0.01, %v606_v34 }
 0x15e   : > { %7573 = vst [vmem:[#allocation54_spill] sm:$0xff] %v6567_v38  ;;  %v900_v13 = vrot.slane %v6559_v59, 1  ;;  %vm661_vm9 = vcmp.ge.f32.partialorder %v607_v39, 0.0  ;;  %4536 = vmatprep.mubr.msk.f32.mxu1 %vm909_vm1, %v6567_v38  ;;  %v715_v44 = vmul.f32 0.01, %v607_v39  ;;  %v6573_v16 = vsel %vm1488_vm8, %v1529_v56, %v1530_v35 }
 0x15f   : > { %7574 = vst [vmem:[#allocation55_spill] sm:$0xff] %v6573_v16  ;;  %v608_v52 = vadd.f32 %v6011_v5, %v547_v54  ;;  %4765 = vmatprep.mubr.msk.f32.mxu0 %vm909_vm1, %v6573_v16  ;;  %v1532_v4 = vrot.slane %v6294_v17, 2  ;;  %v1534_v29 = vrot.slane %v6338_v51, 2  ;;  %v1535_v47 = vrot.slane %v6341_v0, 2 }
 0x160   : > { %v6577_v12 = vsel %vm826_vm0, %v898_v41, %v900_v13  ;;  %v6586_v38 = vsel %vm660_vm7, %v606_v34, %v714_v26  ;;  %v6588_v56 = vsel %vm661_vm9, %v607_v39, %v715_v44  ;;  %v1537_v34 = vrot.slane %v6347_v40, 2 }
 0x161   : > { %7575 = vst [vmem:[#allocation56_spill] sm:$0xff] %v6577_v12  ;;  %4537 = vmatmul.mubr.msk.f32.gmra.mrb[28].mxu1 %vm909_vm1, %v6577_v12  ;;  %7576 = vst [vmem:[#allocation57_spill] sm:$0xff] %v6588_v56  ;;  %vm662_vm10 = vcmp.ge.f32.partialorder %v608_v52, 0.0  ;;  %v716_v5 = vmul.f32 0.01, %v608_v52  ;;  %v902_v41 = vrot.slane %v6586_v38, 1  ;;  %v6593_v13 = vsel %vm1488_vm8, %v1530_v35, %v1532_v4 }
 0x162   : > { %v903_v54 = vrot.slane %v6588_v56, 1  ;;  %v6596_v17 = vsel %vm1488_vm8, %v1534_v29, %v1535_v47  ;;  %4766 = vmatmul.mubr.msk.f32.gmra.mrb[14].mxu0 %vm909_vm1, %v6593_v13  ;;  %v1539_v39 = vrot.slane %v6373_v45, 2  ;;  %v1540_v26 = vrot.slane %v6381_v24, 2  ;;  %v6645_v12 = vld [vmem:[#allocation7 + $0x18] sm:$0xff] }
 0x163   : > { %v6598_v16 = vsel %vm662_vm10, %v608_v52, %v716_v5  ;;  %4768 = vmatprep.mubr.msk.f32.mxu0 %vm909_vm1, %v6596_v17  ;;  %v1542_v52 = vrot.slane %v6395_v49, 2  ;;  %v6615_v40 = vsel %vm1488_vm8, %v1535_v47, %v1537_v34  ;;  %v1544_v5 = vrot.slane %v6422_v62, 2 }
 0x164   : > { %v6606_v44 = vsel %vm826_vm0, %v902_v41, %v903_v54  ;;  %v905_v35 = vrot.slane %v6598_v16, 1  ;;  %7578 = vst [vmem:[#allocation59_spill] sm:$0xff] %v6615_v40  ;;  %v6618_v4 = vsel %vm1488_vm8, %v1539_v39, %v1540_v26  ;;  %v1545_v41 = vrot.slane %v6424_v55, 2 }
 0x165   : > { %7577 = vst [vmem:[#allocation58_spill] sm:$0xff] %v6606_v44  ;;  %4539 = vmatprep.mubr.msk.f32.mxu1 %vm909_vm1, %v6606_v44  ;;  %7579 = vst [vmem:[#allocation60_spill] sm:$0xff] %v6618_v4  ;;  %v6634_v49 = vsel %vm1488_vm8, %v1540_v26, %v1542_v52  ;;  %v1547_v47 = vrot.slane %v6435_v15, 2  ;;  %v1549_v34 = vrot.slane %v6457_v58, 2  ;;  %v1550_v39 = vrot.slane %v6465_v10, 2 }
 0x166   : > { %v6621_v29 = vsel %vm826_vm0, %v903_v54, %v905_v35  ;;  %4769 = vmatmul.mubr.msk.f32.gmra.mrb[16].mxu0 %vm909_vm1, %v6615_v40  ;;  %7581 = vst [vmem:[#allocation62_spill] sm:$0xff] %v6634_v49  ;;  %v487_v54 = vld [vmem:[%s5989_s19] sm:$0xff]  ;;  %v488_v35 = vld [vmem:[%s5989_s19 + $0x8] sm:$0xff]  ;;  %v489_v44 = vld [vmem:[%s5989_s19 + $0x10] sm:$0x3] }
 0x167   : > { %7580 = vst [vmem:[#allocation61_spill] sm:$0xff] %v6621_v29  ;;  %4540 = vmatmul.mubr.msk.f32.gmra.mrb[30].mxu1 %vm909_vm1, %v6621_v29  ;;  %4771 = vmatprep.mubr.msk.f32.mxu0 %vm909_vm1, %v6618_v4  ;;  %v6642_v29 = vsel %vm1488_vm8, %v1544_v5, %v1545_v41  ;;  %v6651_v26 = vld [vmem:[#allocation8] ss:$0 sm:$0xff]  ;;  %v6658_v52 = vsel %vm1488_vm8, %v1545_v41, %v1547_v47  ;;  %v1552_v5 = vrot.slane %v6489_v23, 2  ;;  %v6671_v41 = vld [vmem:[#allocation10] ss:$0 sm:$0xff] }
 0x168   : > { %4544 = vmatprep.mubr.msk.f32.mxu1 %vm909_vm1, %v6037_v30  ;;  %7582 = vst [vmem:[#allocation63_spill] sm:$0xff] %v6642_v29  ;;  %v548_v15 = vmul.f32 %v6651_v26, %v487_v54  ;;  %7583 = vst [vmem:[#allocation64_spill] sm:$0xff] %v6658_v52  ;;  %v549_v4 = vmul.f32 %v6651_v26, %v488_v35  ;;  %v1554_v54 = vrot.slane %v6495_v25, 2 }
 0x169   : > { %v550_v40 = vmul.f32 %v6651_v26, %v489_v44  ;;  %v6684_v44 = vsel %vm1488_vm8, %v1550_v39, %v1552_v5  ;;  %v1564_v5 = vrot.slane %v6586_v38, 2 }
 0x16a   : > { %4772 = vmatmul.mubr.msk.f32.gmra.mrb[18].mxu0 %vm909_vm1, %v6634_v49  ;;  %v6665_v49 = vsel %vm1488_vm8, %v1549_v34, %v1550_v39  ;;  %v609_v23 = vadd.f32 %v6671_v41, %v548_v15  ;;  %v610_v47 = vadd.f32 %v6671_v41, %v549_v4  ;;  %7585 = vst [vmem:[#allocation66_spill] sm:$0xff] %v6684_v44  ;;  %v1557_v34 = vrot.slane %v6522_v18, 2 }
 0x16b   : > { %4545 = vmatmul.mubr.msk.f32.vlgmr.msra.gmra.mrb[0].mxu1 %vm909_vm1, %v6039_v31  ;;  %4774 = vmatprep.mubr.msk.f32.mxu0 %vm909_vm1, %v6642_v29  ;;  %7584 = vst [vmem:[#allocation65_spill] sm:$0xff] %v6665_v49  ;;  %v1559_v4 = vrot.slane %v6541_v2, 2  ;;  %v1560_v15 = vrot.slane %v6550_v6, 2 }
 0x16c   : > { %4593 = vmatpush3.msra.mxu1 %v6123_v33  ;;  %4547 = vmatprep.mubr.msk.f32.mxu1 %vm909_vm1, %v6045_v36  ;;  %v1555_v33 = vrot.slane %v6501_v1, 2  ;;  %v717_v36 = vmul.f32 0.01, %v609_v23  ;;  %vm663_vm11 = vcmp.ge.f32.partialorder %v609_v23, 0.0  ;;  %vm664_vm12 = vcmp.ge.f32.partialorder %v610_v47, 0.0 }
 0x16d   : > { %4642 = vmatprep.subr.mxu1 %v6645_v12  ;;  %v6706_v39 = vsel %vm1488_vm8, %v1559_v4, %v1560_v15  ;;  %v6767_v4 = vld [vmem:[#allocation7 + $0x40] sm:$0xff] }
 0x16e   : > { %4775 = vmatmul.mubr.msk.f32.gmra.mrb[20].mxu0 %vm909_vm1, %v6658_v52  ;;  %v6688_v35 = vsel %vm1488_vm8, %v1554_v54, %v1555_v33  ;;  %v718_v52 = vmul.f32 0.01, %v610_v47  ;;  %v6702_v18 = vsel %vm1488_vm8, %v1555_v33, %v1557_v34  ;;  %7588 = vst [vmem:[#allocation69_spill] sm:$0xff] %v6706_v39  ;;  %v1565_v54 = vrot.slane %v6588_v56, 2 }
 0x16f   : > { %4548 = vmatmul.mubr.msk.f32.gmra.mrb[2].mxu1 %vm909_vm1, %v6047_v37  ;;  %4777 = vmatprep.mubr.msk.f32.mxu0 %vm909_vm1, %v6665_v49  ;;  %7586 = vst [vmem:[#allocation67_spill] sm:$0xff] %v6688_v35  ;;  %v611_v37 = vadd.f32 %v6671_v41, %v550_v40  ;;  %7587 = vst [vmem:[#allocation68_spill] sm:$0xff] %v6702_v18  ;;  %v1562_v40 = vrot.slane %v6559_v59, 2  ;;  %v6710_v49 = vsel %vm663_vm11, %v609_v23, %v717_v36 }
 0x170   : > { %4550 = vmatprep.mubr.msk.f32.mxu1 %vm909_vm1, %v6075_v63  ;;  %v6712_v29 = vsel %vm664_vm12, %v610_v47, %v718_v52  ;;  %v1567_v36 = vrot.slane %v6598_v16, 2  ;;  %v6727_v52 = vsel %vm1488_vm8, %v1564_v5, %v1565_v54  ;;  %v2426_v33 = vrot.slane %v6710_v49, 2 }
 0x171   : > { %vm665_vm13 = vcmp.ge.f32.partialorder %v611_v37, 0.0  ;;  %v6723_v59 = vsel %vm1488_vm8, %v1560_v15, %v1562_v40  ;;  %7590 = vst [vmem:[#allocation71_spill] sm:$0xff] %v6727_v52  ;;  %v2427_v23 = vrot.slane %v6712_v29, 2  ;;  %v1490_v15 = vrot.slane %v6039_v31, 2  ;;  %v6855_v31 = vld [vmem:[#allocation7 + $0x20] sm:$0xff] }
 0x172   : > { %4778 = vmatmul.mubr.msk.f32.gmra.mrb[22].mxu0 %vm909_vm1, %v6684_v44  ;;  %v719_v44 = vmul.f32 0.01, %v611_v37  ;;  %7589 = vst [vmem:[#allocation70_spill] sm:$0xff] %v6723_v59  ;;  %v6742_v16 = vsel %vm1488_vm8, %v1565_v54, %v1567_v36  ;;  %v1492_v40 = vrot.slane %v6056_v46, 2  ;;  %v490_v46 = vld [vmem:[%s5989_s19 + $0x18] sm:$0xff]  ;;  %v7594_v36 = vld [vmem:[#allocation39_spill] sm:$0xff] }
 0x173   : > { %4551 = vmatmul.mubr.msk.f32.gmra.mrb[4].mxu1 %vm909_vm1, %v6086_v7  ;;  %4780 = vmatprep.mubr.msk.f32.mxu0 %vm909_vm1, %v6688_v35  ;;  %7591 = vst [vmem:[#allocation72_spill] sm:$0xff] %v6742_v16 }
 0x174   : > { %4553 = vmatprep.mubr.msk.f32.mxu1 %vm909_vm1, %v6118_v27  ;;  %v6731_v47 = vsel %vm665_vm13, %v611_v37, %v719_v44  ;;  %v6746_v37 = vsel %vm1488_vm8, %v2426_v33, %v2427_v23  ;;  %v7595_v33 = vld [vmem:[#allocation41_spill] sm:$0xff] }
 0x175   : > { %v2429_v34 = vrot.slane %v6731_v47, 2  ;;  %7592 = vst [vmem:[#allocation73_spill] sm:$0xff] %v6746_v37 }
 0x176   : > { %4781 = vmatmul.mubr.msk.f32.gmra.mrb[24].mxu0 %vm909_vm1, %v6702_v18 }
 0x177   : > { %4554 = vmatmul.mubr.msk.f32.gmra.mrb[6].mxu1 %vm909_vm1, %v6120_v28  ;;  %4783 = vmatprep.mubr.msk.f32.mxu0 %vm909_vm1, %v6706_v39  ;;  %v6757_v44 = vsel %vm1488_vm8, %v2427_v23, %v2429_v34 }
 0x178   : > { %4556 = vmatprep.mubr.msk.f32.mxu1 %vm909_vm1, %v6135_v42  ;;  %7593 = vst [vmem:[#allocation74_spill] sm:$0xff] %v6757_v44 }
 0x17a   : > { %4784 = vmatmul.mubr.msk.f32.gmra.mrb[26].mxu0 %vm909_vm1, %v6723_v59 }
 0x17b   : > { %4557 = vmatmul.mubr.msk.f32.gmra.mrb[8].mxu1 %vm909_vm1, %v6153_v53  ;;  %4786 = vmatprep.mubr.msk.f32.mxu0 %vm909_vm1, %v6727_v52 }
 0x17c   : > { %4559 = vmatprep.mubr.msk.f32.mxu1 %vm909_vm1, %v6185_v14 }
 0x17e   : > { %4787 = vmatmul.mubr.msk.f32.gmra.mrb[28].mxu0 %vm909_vm1, %v6742_v16 }
 0x17f   : > { %4560 = vmatmul.mubr.msk.f32.gmra.mrb[10].mxu1 %vm909_vm1, %v6192_v19  ;;  %4789 = vmatprep.mubr.msk.f32.mxu0 %vm909_vm1, %v6746_v37  ;;  %v7611_v37 = vld [vmem:[#allocation62_spill] sm:$0xff] }
 0x180   : > { %4562 = vmatprep.mubr.msk.f32.mxu1 %vm909_vm1, %v6200_v32 }
 0x182   : > { %4790 = vmatmul.mubr.msk.f32.gmra.mrb[30].mxu0 %vm909_vm1, %v6757_v44  ;;  %v7608_v44 = vld [vmem:[#allocation28_spill] sm:$0xff] }
 0x183   : > { %4563 = vmatmul.mubr.msk.f32.gmra.mrb[12].mxu1 %vm909_vm1, %v6209_v43  ;;  %4794 = vmatprep.mubr.msk.f32.mxu0 %vm909_vm1, %v6075_v63 }
 0x184   : > { %4565 = vmatprep.mubr.msk.f32.mxu1 %vm909_vm1, %v6247_v21 }
 0x186   : > { %4795 = vmatmul.mubr.msk.f32.vlgmr.msra.gmra.mrb[0].mxu0 %vm909_vm1, %v6086_v7 }
 0x187   : > { %4566 = vmatmul.mubr.msk.f32.gmra.mrb[14].mxu1 %vm909_vm1, %v6249_v22  ;;  %4843 = vmatpush3.msra.mxu0 %v6358_v11  ;;  %v1489_v11 = vrot.slane %v6037_v30, 2  ;;  %v1493_v30 = vsel %vm1488_vm8, %v1490_v15, %v1492_v40 }
 0x188   : > { %4568 = vmatprep.mubr.msk.f32.mxu1 %vm909_vm1, %v6273_v57  ;;  %4797 = vmatprep.mubr.msk.f32.mxu0 %vm909_vm1, %v6118_v27 }
 0x189   : > { %4892 = vmatprep.subr.mxu0 %v6767_v4  ;;  %v1491_v5 = vsel %vm1488_vm8, %v1489_v11, %v1490_v15  ;;  %v7596_v11 = vld [vmem:[#allocation43_spill] sm:$0xff]  ;;  %v7597_v15 = vld [vmem:[#allocation45_spill] sm:$0xff] }
 0x18a   : > { %4798 = vmatmul.mubr.msk.f32.gmra.mrb[2].mxu0 %vm909_vm1, %v6120_v28 }
 0x18b   : > { %4569 = vmatmul.mubr.msk.f32.gmra.mrb[16].mxu1 %vm909_vm1, %v6276_v61  ;;  %4800 = vmatprep.mubr.msk.f32.mxu0 %vm909_vm1, %v6135_v42 }
 0x18c   : > { %4571 = vmatprep.mubr.msk.f32.mxu1 %vm909_vm1, %v6338_v51 }
 0x18e   : > { %4801 = vmatmul.mubr.msk.f32.gmra.mrb[4].mxu0 %vm909_vm1, %v6153_v53 }
 0x18f   : > { %4572 = vmatmul.mubr.msk.f32.gmra.mrb[18].mxu1 %vm909_vm1, %v6341_v0  ;;  %4803 = vmatprep.mubr.msk.f32.mxu0 %vm909_vm1, %v6185_v14 }
 0x190   : > { %4574 = vmatprep.mubr.msk.f32.mxu1 %vm909_vm1, %v6373_v45 }
 0x192   : > { %4804 = vmatmul.mubr.msk.f32.gmra.mrb[6].mxu0 %vm909_vm1, %v6192_v19 }
 0x193   : > { %4575 = vmatmul.mubr.msk.f32.gmra.mrb[20].mxu1 %vm909_vm1, %v6381_v24  ;;  %4806 = vmatprep.mubr.msk.f32.mxu0 %vm909_vm1, %v6200_v32 }
 0x194   : > { %4577 = vmatprep.mubr.msk.f32.mxu1 %vm909_vm1, %v6422_v62 }
 0x196   : > { %4807 = vmatmul.mubr.msk.f32.gmra.mrb[8].mxu0 %vm909_vm1, %v6209_v43 }
 0x197   : > { %4578 = vmatmul.mubr.msk.f32.gmra.mrb[22].mxu1 %vm909_vm1, %v6424_v55  ;;  %4809 = vmatprep.mubr.msk.f32.mxu0 %vm909_vm1, %v6247_v21 }
 0x198   : > { %4580 = vmatprep.mubr.msk.f32.mxu1 %vm909_vm1, %v6457_v58 }
 0x19a   : > { %4810 = vmatmul.mubr.msk.f32.gmra.mrb[10].mxu0 %vm909_vm1, %v6249_v22 }
 0x19b   : > { %4581 = vmatmul.mubr.msk.f32.gmra.mrb[24].mxu1 %vm909_vm1, %v6465_v10  ;;  %4812 = vmatprep.mubr.msk.f32.mxu0 %vm909_vm1, %v6273_v57 }
 0x19c   : > { %4583 = vmatprep.mubr.msk.f32.mxu1 %vm909_vm1, %v6495_v25 }
 0x19e   : > { %4813 = vmatmul.mubr.msk.f32.gmra.mrb[12].mxu0 %vm909_vm1, %v6276_v61 }
 0x19f   : > { %4584 = vmatmul.mubr.msk.f32.gmra.mrb[26].mxu1 %vm909_vm1, %v6501_v1  ;;  %4815 = vmatprep.mubr.msk.f32.mxu0 %vm909_vm1, %v6338_v51 }
 0x1a0   : > { %4586 = vmatprep.mubr.msk.f32.mxu1 %vm909_vm1, %v6541_v2 }
 0x1a2   : > { %4816 = vmatmul.mubr.msk.f32.gmra.mrb[14].mxu0 %vm909_vm1, %v6341_v0 }
 0x1a3   : > { %4587 = vmatmul.mubr.msk.f32.gmra.mrb[28].mxu1 %vm909_vm1, %v6550_v6  ;;  %4818 = vmatprep.mubr.msk.f32.mxu0 %vm909_vm1, %v6373_v45 }
 0x1a4   : > { %4589 = vmatprep.mubr.msk.f32.mxu1 %vm909_vm1, %v6586_v38 }
 0x1a6   : > { %4819 = vmatmul.mubr.msk.f32.gmra.mrb[16].mxu0 %vm909_vm1, %v6381_v24 }
 0x1a7   : > { %4590 = vmatmul.mubr.msk.f32.gmra.mrb[30].mxu1 %vm909_vm1, %v6588_v56  ;;  %4821 = vmatprep.mubr.msk.f32.mxu0 %vm909_vm1, %v6422_v62 }
 0x1a8   : > { %4594 = vmatprep.mubr.msk.f32.mxu1 %vm909_vm1, %v1491_v5 }
 0x1aa   : > { %4822 = vmatmul.mubr.msk.f32.gmra.mrb[18].mxu0 %vm909_vm1, %v6424_v55 }
 0x1ab   : > { %4595 = vmatmul.mubr.msk.f32.vlgmr.msra.gmra.mrb[0].mxu1 %vm909_vm1, %v1493_v30  ;;  %4824 = vmatprep.mubr.msk.f32.mxu0 %vm909_vm1, %v6457_v58  ;;  %v7598_v30 = vld [vmem:[#allocation47_spill] sm:$0xff] }
 0x1ac   : > { %4643 = vmatpush3.msra.mxu1 %v6645_v12  ;;  %4597 = vmatprep.mubr.msk.f32.mxu1 %vm909_vm1, %v6282_v3  ;;  %v551_v3 = vmul.f32 %v6651_v26, %v490_v46  ;;  %v491_v12 = vld [vmem:[%s5989_s19 + $0x20] sm:$0xff] }
 0x1ad   : > { %4942 = vmatprep.subr.mxu1 %v6855_v31  ;;  %v7599_v46 = vld [vmem:[#allocation49_spill] sm:$0xff] }
 0x1ae   : > { %4825 = vmatmul.mubr.msk.f32.gmra.mrb[20].mxu0 %vm909_vm1, %v6465_v10  ;;  %v612_v54 = vadd.f32 %v6671_v41, %v551_v3 }
 0x1af   : > { %4598 = vmatmul.mubr.msk.f32.gmra.mrb[2].mxu1 %vm909_vm1, %v6287_v9  ;;  %4827 = vmatprep.mubr.msk.f32.mxu0 %vm909_vm1, %v6495_v25  ;;  %v552_v9 = vmul.f32 %v6651_v26, %v491_v12  ;;  %v7600_v12 = vld [vmem:[#allocation51_spill] sm:$0xff] }
 0x1b0   : > { %4600 = vmatprep.mubr.msk.f32.mxu1 %vm909_vm1, %v6322_v50  ;;  %v720_v34 = vmul.f32 0.01, %v612_v54  ;;  %vm666_vm14 = vcmp.ge.f32.partialorder %v612_v54, 0.0 }
 0x1b1   : > { %v613_v23 = vadd.f32 %v6671_v41, %v552_v9  ;;  %v7601_v9 = vld [vmem:[#allocation23_spill] sm:$0xff] }
 0x1b2   : > { %4828 = vmatmul.mubr.msk.f32.gmra.mrb[22].mxu0 %vm909_vm1, %v6501_v1  ;;  %v6896_v5 = vsel %vm666_vm14, %v612_v54, %v720_v34  ;;  %v7602_v54 = vld [vmem:[#allocation24_spill] sm:$0xff]  ;;  %v7604_v34 = vld [vmem:[#allocation25_spill] sm:$0xff] }
 0x1b3   : > { %4601 = vmatmul.mubr.msk.f32.gmra.mrb[4].mxu1 %vm909_vm1, %v6327_v60  ;;  %4830 = vmatprep.mubr.msk.f32.mxu0 %vm909_vm1, %v6541_v2  ;;  %v721_v40 = vmul.f32 0.01, %v613_v23  ;;  %vm667_vm15 = vcmp.ge.f32.partialorder %v613_v23, 0.0 }
 0x1b4   : > { %4603 = vmatprep.mubr.msk.f32.mxu1 %vm909_vm1, %v6350_v20 }
 0x1b5   : > { %v6906_v3 = vsel %vm667_vm15, %v613_v23, %v721_v40  ;;  %v7603_v23 = vld [vmem:[#allocation55_spill] sm:$0xff]  ;;  %v7605_v40 = vld [vmem:[#allocation26_spill] sm:$0xff] }
 0x1b6   : > { %4831 = vmatmul.mubr.msk.f32.gmra.mrb[24].mxu0 %vm909_vm1, %v6550_v6 }
 0x1b7   : > { %4604 = vmatmul.mubr.msk.f32.gmra.mrb[6].mxu1 %vm909_vm1, %v7594_v36  ;;  %4833 = vmatprep.mubr.msk.f32.mxu0 %vm909_vm1, %v6586_v38 }
 0x1b8   : > { %4606 = vmatprep.mubr.msk.f32.mxu1 %vm909_vm1, %v7595_v33 }
 0x1ba   : > { %4834 = vmatmul.mubr.msk.f32.gmra.mrb[26].mxu0 %vm909_vm1, %v6588_v56  ;;  %v7613_v56 = vld [vmem:[#allocation63_spill] sm:$0xff] }
 0x1bb   : > { %4607 = vmatmul.mubr.msk.f32.gmra.mrb[8].mxu1 %vm909_vm1, %v7596_v11  ;;  %4836 = vmatprep.mubr.msk.f32.mxu0 %vm909_vm1, %v6710_v49 }
 0x1bc   : > { %4609 = vmatprep.mubr.msk.f32.mxu1 %vm909_vm1, %v7597_v15 }
 0x1be   : > { %4837 = vmatmul.mubr.msk.f32.gmra.mrb[28].mxu0 %vm909_vm1, %v6712_v29 }
 0x1bf   : > { %4610 = vmatmul.mubr.msk.f32.gmra.mrb[10].mxu1 %vm909_vm1, %v7598_v30  ;;  %4839 = vmatprep.mubr.msk.f32.mxu0 %vm909_vm1, %v6896_v5 }
 0x1c0   : > { %4612 = vmatprep.mubr.msk.f32.mxu1 %vm909_vm1, %v7599_v46 }
 0x1c2   : > { %4840 = vmatmul.mubr.msk.f32.gmra.mrb[30].mxu0 %vm909_vm1, %v6906_v3 }
 0x1c3   : > { %4613 = vmatmul.mubr.msk.f32.gmra.mrb[12].mxu1 %vm909_vm1, %v7600_v12  ;;  %4844 = vmatprep.mubr.msk.f32.mxu0 %vm909_vm1, %v7601_v9  ;;  %v7606_v9 = vld [vmem:[#allocation27_spill] sm:$0xff] }
 0x1c4   : > { %4615 = vmatprep.mubr.msk.f32.mxu1 %vm909_vm1, %v6534_v48 }
 0x1c6   : > { %4845 = vmatmul.mubr.msk.f32.vlgmr.msra.gmra.mrb[0].mxu0 %vm909_vm1, %v7602_v54  ;;  %v7607_v54 = vld [vmem:[#allocation59_spill] sm:$0xff] }
 0x1c7   : > { %4616 = vmatmul.mubr.msk.f32.gmra.mrb[14].mxu1 %vm909_vm1, %v6555_v8  ;;  %4893 = vmatpush3.msra.mxu0 %v6767_v4  ;;  %v7609_v4 = vld [vmem:[#allocation60_spill] sm:$0xff] }
 0x1c8   : > { %4618 = vmatprep.mubr.msk.f32.mxu1 %vm909_vm1, %v7603_v23  ;;  %4847 = vmatprep.mubr.msk.f32.mxu0 %vm909_vm1, %v7604_v34  ;;  %v7610_v34 = vld [vmem:[#allocation29_spill] sm:$0xff] }
 0x1ca   : > { %4848 = vmatmul.mubr.msk.f32.gmra.mrb[2].mxu0 %vm909_vm1, %v7605_v40  ;;  %v7612_v40 = vld [vmem:[#allocation30_spill] sm:$0xff] }
 0x1cb   : > { %4619 = vmatmul.mubr.msk.f32.gmra.mrb[16].mxu1 %vm909_vm1, %v6593_v13  ;;  %4850 = vmatprep.mubr.msk.f32.mxu0 %vm909_vm1, %v7606_v9  ;;  %v7614_v9 = vld [vmem:[#allocation31_spill] sm:$0xff] }
 0x1cc   : > { %4621 = vmatprep.mubr.msk.f32.mxu1 %vm909_vm1, %v6596_v17 }
 0x1ce   : > { %4851 = vmatmul.mubr.msk.f32.gmra.mrb[4].mxu0 %vm909_vm1, %v7608_v44  ;;  %v7616_v44 = vld [vmem:[#allocation32_spill] sm:$0xff] }
 0x1cf   : > { %4622 = vmatmul.mubr.msk.f32.gmra.mrb[18].mxu1 %vm909_vm1, %v7607_v54  ;;  %4853 = vmatprep.mubr.msk.f32.mxu0 %vm909_vm1, %v7610_v34  ;;  %v7615_v54 = vld [vmem:[#allocation64_spill] sm:$0xff]  ;;  %v7618_v34 = vld [vmem:[#allocation33_spill] sm:$0xff] }
 0x1d0   : > { %4624 = vmatprep.mubr.msk.f32.mxu1 %vm909_vm1, %v7609_v4  ;;  %v7617_v4 = vld [vmem:[#allocation65_spill] sm:$0xff] }
 0x1d2   : > { %4854 = vmatmul.mubr.msk.f32.gmra.mrb[6].mxu0 %vm909_vm1, %v7612_v40  ;;  %v7620_v40 = vld [vmem:[#allocation34_spill] sm:$0xff] }
 0x1d3   : > { %4625 = vmatmul.mubr.msk.f32.gmra.mrb[20].mxu1 %vm909_vm1, %v7611_v37  ;;  %4856 = vmatprep.mubr.msk.f32.mxu0 %vm909_vm1, %v7614_v9  ;;  %v7619_v37 = vld [vmem:[#allocation66_spill] sm:$0xff]  ;;  %v7621_v9 = vld [vmem:[#allocation35_spill] sm:$0xff] }
 0x1d4   : > { %4627 = vmatprep.mubr.msk.f32.mxu1 %vm909_vm1, %v7613_v56 }
 0x1d6   : > { %4857 = vmatmul.mubr.msk.f32.gmra.mrb[8].mxu0 %vm909_vm1, %v7616_v44  ;;  %v7622_v44 = vld [vmem:[#allocation36_spill] sm:$0xff] }
 0x1d7   : > { %4628 = vmatmul.mubr.msk.f32.gmra.mrb[22].mxu1 %vm909_vm1, %v7615_v54  ;;  %4859 = vmatprep.mubr.msk.f32.mxu0 %vm909_vm1, %v7618_v34  ;;  %v7623_v34 = vld [vmem:[#allocation37_spill] sm:$0xff] }
 0x1d8   : > { %4630 = vmatprep.mubr.msk.f32.mxu1 %vm909_vm1, %v7617_v4 }
 0x1da   : > { %4860 = vmatmul.mubr.msk.f32.gmra.mrb[10].mxu0 %vm909_vm1, %v7620_v40  ;;  %v7624_v40 = vld [vmem:[#allocation38_spill] sm:$0xff] }
 0x1db   : > { %4631 = vmatmul.mubr.msk.f32.gmra.mrb[24].mxu1 %vm909_vm1, %v7619_v37  ;;  %4862 = vmatprep.mubr.msk.f32.mxu0 %vm909_vm1, %v7621_v9  ;;  %v7625_v9 = vld [vmem:[#allocation40_spill] sm:$0xff] }
 0x1dc   : > { %4633 = vmatprep.mubr.msk.f32.mxu1 %vm909_vm1, %v6688_v35  ;;  %v7629_v35 = vld [vmem:[#allocation22_spill] sm:$0xff] }
 0x1de   : > { %4863 = vmatmul.mubr.msk.f32.gmra.mrb[12].mxu0 %vm909_vm1, %v7622_v44  ;;  %v7626_v44 = vld [vmem:[#allocation42_spill] sm:$0xff] }
 0x1df   : > { %4634 = vmatmul.mubr.msk.f32.gmra.mrb[26].mxu1 %vm909_vm1, %v6702_v18  ;;  %4865 = vmatprep.mubr.msk.f32.mxu0 %vm909_vm1, %v7623_v34  ;;  %v7628_v18 = vld [vmem:[#allocation44_spill] sm:$0xff] }
 0x1e0   : > { %4636 = vmatprep.mubr.msk.f32.mxu1 %vm909_vm1, %v6706_v39  ;;  %v7627_v39 = vld [vmem:[#allocation21_spill] sm:$0xff] }
 0x1e2   : > { %4866 = vmatmul.mubr.msk.f32.gmra.mrb[14].mxu0 %vm909_vm1, %v7624_v40 }
 0x1e3   : > { %4637 = vmatmul.mubr.msk.f32.gmra.mrb[28].mxu1 %vm909_vm1, %v6723_v59  ;;  %4868 = vmatprep.mubr.msk.f32.mxu0 %vm909_vm1, %v7625_v9  ;;  %v492_v59 = vld [vmem:[%s5989_s19 + $0x28] sm:$0x3] }
 0x1e4   : > { %4639 = vmatprep.mubr.msk.f32.mxu1 %vm909_vm1, %v6727_v52  ;;  %v7630_v52 = vld [vmem:[#allocation46_spill] sm:$0xff] }
 0x1e6   : > { %4869 = vmatmul.mubr.msk.f32.gmra.mrb[16].mxu0 %vm909_vm1, %v7626_v44 }
 0x1e7   : > { %4640 = vmatmul.mubr.msk.f32.gmra.mrb[30].mxu1 %vm909_vm1, %v6742_v16  ;;  %4871 = vmatprep.mubr.msk.f32.mxu0 %vm909_vm1, %v7628_v18  ;;  %v7631_v16 = vld [vmem:[#allocation48_spill] sm:$0xff]  ;;  %v7632_v18 = vld [vmem:[#allocation50_spill] sm:$0xff] }
 0x1e8   : > { %4644 = vmatprep.mubr.msk.f32.mxu1 %vm909_vm1, %v7627_v39  ;;  %v553_v39 = vmul.f32 %v6651_v26, %v492_v59  ;;  %v2158_v26 = vrot.slane %v6710_v49, 1 }
 0x1ea   : > { %4872 = vmatmul.mubr.msk.f32.gmra.mrb[18].mxu0 %vm909_vm1, %v7630_v52 }
 0x1eb   : > { %4645 = vmatmul.mubr.msk.f32.vlgmr.msra.gmra.mrb[0].mxu1 %vm909_vm1, %v7629_v35  ;;  %4874 = vmatprep.mubr.msk.f32.mxu0 %vm909_vm1, %v7631_v16  ;;  %v7633_v35 = vld [vmem:[#allocation52_spill] sm:$0xff] }
 0x1ec   : > { %4943 = vmatpush3.msra.mxu1 %v6855_v31  ;;  %4647 = vmatprep.mubr.msk.f32.mxu1 %vm909_vm1, %v6075_v63  ;;  %v614_v31 = vadd.f32 %v6671_v41, %v553_v39  ;;  %v7634_v63 = vld [vmem:[#allocation53_spill] sm:$0xff]  ;;  %v7636_v41 = vld [vmem:[#allocation56_spill] sm:$0xff]  ;;  %v2960_v39 = vrot.slane %v6896_v5, 1 }
 0x1ee   : > { %4875 = vmatmul.mubr.msk.f32.gmra.mrb[20].mxu0 %vm909_vm1, %v7632_v18  ;;  %v722_v59 = vmul.f32 0.01, %v614_v31  ;;  %vm668_vm2 = vcmp.ge.f32.partialorder %v614_v31, 0.0 }
 0x1ef   : > { %4648 = vmatmul.mubr.msk.f32.gmra.mrb[2].mxu1 %vm909_vm1, %v6086_v7  ;;  %4877 = vmatprep.mubr.msk.f32.mxu0 %vm909_vm1, %v7633_v35  ;;  %v7635_v7 = vld [vmem:[#allocation54_spill] sm:$0xff] }
 0x1f0   : > { %4650 = vmatprep.mubr.msk.f32.mxu1 %vm909_vm1, %v6118_v27  ;;  %v2159_v27 = vrot.slane %v6712_v29, 1  ;;  %v7033_v35 = vsel %vm668_vm2, %v614_v31, %v722_v59 }
 0x1f2   : > { %4878 = vmatmul.mubr.msk.f32.gmra.mrb[22].mxu0 %vm909_vm1, %v7634_v63  ;;  %v7031_v63 = vsel %vm826_vm0, %v2158_v26, %v2159_v27 }
 0x1f3   : > { %4651 = vmatmul.mubr.msk.f32.gmra.mrb[4].mxu1 %vm909_vm1, %v6120_v28  ;;  %4880 = vmatprep.mubr.msk.f32.mxu0 %vm909_vm1, %v7635_v7  ;;  %v7637_v28 = vld [vmem:[#allocation58_spill] sm:$0xff]  ;;  %v2961_v7 = vrot.slane %v6906_v3, 1 }
 0x1f4   : > { %4653 = vmatprep.mubr.msk.f32.mxu1 %vm909_vm1, %v6135_v42  ;;  %v2161_v42 = vrot.slane %v6731_v47, 1  ;;  %v2963_v47 = vrot.slane %v7033_v35, 1 }
 0x1f5   : > { %v2962_v31 = vsel %vm826_vm0, %v2960_v39, %v2961_v7 }
 0x1f6   : > { %4881 = vmatmul.mubr.msk.f32.gmra.mrb[24].mxu0 %vm909_vm1, %v7636_v41 }
 0x1f7   : > { %4654 = vmatmul.mubr.msk.f32.gmra.mrb[6].mxu1 %vm909_vm1, %v6153_v53  ;;  %4883 = vmatprep.mubr.msk.f32.mxu0 %vm909_vm1, %v7637_v28  ;;  %v7638_v53 = vld [vmem:[#allocation61_spill] sm:$0xff] }
 0x1f8   : > { %4656 = vmatprep.mubr.msk.f32.mxu1 %vm909_vm1, %v6185_v14  ;;  %v7044_v14 = vsel %vm826_vm0, %v2159_v27, %v2161_v42 }
 0x1fa   : > { %4884 = vmatmul.mubr.msk.f32.gmra.mrb[26].mxu0 %vm909_vm1, %v7638_v53 }
 0x1fb   : > { %4657 = vmatmul.mubr.msk.f32.gmra.mrb[8].mxu1 %vm909_vm1, %v6192_v19  ;;  %4886 = vmatprep.mubr.msk.f32.mxu0 %vm909_vm1, %v7031_v63  ;;  %v2964_v19 = vsel %vm826_vm0, %v2961_v7, %v2963_v47 }
 0x1fc   : > { %4659 = vmatprep.mubr.msk.f32.mxu1 %vm909_vm1, %v6200_v32  ;;  %v7640_v32 = vld [vmem:[#allocation59_spill] sm:$0xff] }
 0x1fe   : > { %4887 = vmatmul.mubr.msk.f32.gmra.mrb[28].mxu0 %vm909_vm1, %v7044_v14 }
 0x1ff   : > { %4660 = vmatmul.mubr.msk.f32.gmra.mrb[10].mxu1 %vm909_vm1, %v6209_v43  ;;  %4889 = vmatprep.mubr.msk.f32.mxu0 %vm909_vm1, %v2962_v31  ;;  %v7641_v43 = vld [vmem:[#allocation60_spill] sm:$0xff] }
 0x200   : > { %4662 = vmatprep.mubr.msk.f32.mxu1 %vm909_vm1, %v6247_v21  ;;  %v7642_v21 = vld [vmem:[#allocation62_spill] sm:$0xff] }
 0x202   : > { %4890 = vmatmul.mubr.msk.f32.gmra.mrb[30].mxu0 %vm909_vm1, %v2964_v19 }
 0x203   : > { %4663 = vmatmul.mubr.msk.f32.gmra.mrb[12].mxu1 %vm909_vm1, %v6249_v22  ;;  %4894 = vmatprep.mubr.msk.f32.mxu0 %vm909_vm1, %v6322_v50  ;;  %v7643_v22 = vld [vmem:[#allocation44_spill] sm:$0xff] }
 0x204   : > { %4665 = vmatprep.mubr.msk.f32.mxu1 %vm909_vm1, %v6273_v57  ;;  %v7645_v57 = vld [vmem:[#allocation68_spill] sm:$0xff] }
 0x205   : > { %v7648_v50 = vld [vmem:[#allocation52_spill] sm:$0xff] }
 0x206   : > { %4895 = vmatmul.mubr.msk.f32.vlgmr.msra.gmra.mrb[0].mxu0 %vm909_vm1, %v6327_v60  ;;  %v7649_v60 = vld [vmem:[#allocation71_spill] sm:$0xff] }
 0x207   : > { %4666 = vmatmul.mubr.msk.f32.gmra.mrb[14].mxu1 %vm909_vm1, %v6276_v61  ;;  %4897 = vmatprep.mubr.msk.f32.mxu0 %vm909_vm1, %v6350_v20  ;;  %v7646_v61 = vld [vmem:[#allocation69_spill] sm:$0xff]  ;;  %v7647_v20 = vld [vmem:[#allocation70_spill] sm:$0xff] }
 0x208   : > { %4668 = vmatprep.mubr.msk.f32.mxu1 %vm909_vm1, %v6338_v51  ;;  %v3228_v51 = vrot.slane %v6896_v5, 2  ;;  %v7208_v5 = vld [vmem:[#allocation11] ss:$0 sm:$0xff] }
 0x20a   : > { %4898 = vmatmul.mubr.msk.f32.gmra.mrb[2].mxu0 %vm909_vm1, %v7594_v36 }
 0x20b   : > { %4669 = vmatmul.mubr.msk.f32.gmra.mrb[16].mxu1 %vm909_vm1, %v6341_v0  ;;  %4900 = vmatprep.mubr.msk.f32.mxu0 %vm909_vm1, %v7595_v33  ;;  %v3229_v0 = vrot.slane %v6906_v3, 2 }
 0x20c   : > { %4671 = vmatprep.mubr.msk.f32.mxu1 %vm909_vm1, %v6373_v45  ;;  %v7644_v45 = vld [vmem:[#allocation67_spill] sm:$0xff] }
 0x20e   : > { %4901 = vmatmul.mubr.msk.f32.gmra.mrb[4].mxu0 %vm909_vm1, %v7596_v11 }
 0x20f   : > { %4672 = vmatmul.mubr.msk.f32.gmra.mrb[18].mxu1 %vm909_vm1, %v6381_v24  ;;  %4903 = vmatprep.mubr.msk.f32.mxu0 %vm909_vm1, %v7597_v15  ;;  %v7650_v24 = vld [vmem:[#allocation53_spill] sm:$0xff] }
 0x210   : > { %4674 = vmatprep.mubr.msk.f32.mxu1 %vm909_vm1, %v6422_v62  ;;  %v7651_v62 = vld [vmem:[#allocation72_spill] sm:$0xff] }
 0x212   : > { %4904 = vmatmul.mubr.msk.f32.gmra.mrb[6].mxu0 %vm909_vm1, %v7598_v30 }
 0x213   : > { %4675 = vmatmul.mubr.msk.f32.gmra.mrb[20].mxu1 %vm909_vm1, %v6424_v55  ;;  %4906 = vmatprep.mubr.msk.f32.mxu0 %vm909_vm1, %v7599_v46  ;;  %v7652_v55 = vld [vmem:[#allocation54_spill] sm:$0xff] }
 0x214   : > { %4677 = vmatprep.mubr.msk.f32.mxu1 %vm909_vm1, %v6457_v58  ;;  %v3231_v58 = vrot.slane %v7033_v35, 2 }
 0x216   : > { %4907 = vmatmul.mubr.msk.f32.gmra.mrb[8].mxu0 %vm909_vm1, %v7600_v12  ;;  %v7212_v12 = vld [vmem:[#allocation13] ss:$0 sm:$0xff] }
 0x217   : > { %4678 = vmatmul.mubr.msk.f32.gmra.mrb[22].mxu1 %vm909_vm1, %v6465_v10  ;;  %4909 = vmatprep.mubr.msk.f32.mxu0 %vm909_vm1, %v6534_v48  ;;  %v7639_v10 = vld [vmem:[#allocation57_spill] sm:$0xff]  ;;  %v3232_v48 = vsel %vm1488_vm8, %v3229_v0, %v3231_v58 }
 0x218   : > { %4680 = vmatprep.mubr.msk.f32.mxu1 %vm909_vm1, %v6495_v25  ;;  %v3230_v25 = vsel %vm1488_vm8, %v3228_v51, %v3229_v0 }
 0x21a   : > { %4910 = vmatmul.mubr.msk.f32.gmra.mrb[10].mxu0 %vm909_vm1, %v6555_v8 }
 0x21b   : > { %4681 = vmatmul.mubr.msk.f32.gmra.mrb[24].mxu1 %vm909_vm1, %v6501_v1  ;;  %4912 = vmatprep.mubr.msk.f32.mxu0 %vm909_vm1, %v7603_v23  ;;  %v7653_v1 = vld [vmem:[#allocation73_spill] sm:$0xff] }
 0x21c   : > { %4683 = vmatprep.mubr.msk.f32.mxu1 %vm909_vm1, %v6541_v2  ;;  %v7654_v2 = vld [vmem:[#allocation74_spill] sm:$0xff] }
 0x21e   : > { %4913 = vmatmul.mubr.msk.f32.gmra.mrb[12].mxu0 %vm909_vm1, %v6593_v13 }
 0x21f   : > { %4684 = vmatmul.mubr.msk.f32.gmra.mrb[26].mxu1 %vm909_vm1, %v6550_v6  ;;  %4915 = vmatprep.mubr.msk.f32.mxu0 %vm909_vm1, %v6596_v17 }
 0x220   : > { %4686 = vmatprep.mubr.msk.f32.mxu1 %vm909_vm1, %v6586_v38 }
 0x222   : > { %4916 = vmatmul.mubr.msk.f32.gmra.mrb[14].mxu0 %vm909_vm1, %v7640_v32 }
 0x223   : > { %4687 = vmatmul.mubr.msk.f32.gmra.mrb[28].mxu1 %vm909_vm1, %v7639_v10  ;;  %4918 = vmatprep.mubr.msk.f32.mxu0 %vm909_vm1, %v7641_v43 }
 0x224   : > { %4689 = vmatprep.mubr.msk.f32.mxu1 %vm909_vm1, %v6710_v49 }
 0x226   : > { %4919 = vmatmul.mubr.msk.f32.gmra.mrb[16].mxu0 %vm909_vm1, %v7642_v21 }
 0x227   : > { %4690 = vmatmul.mubr.msk.f32.gmra.mrb[30].mxu1 %vm909_vm1, %v6712_v29  ;;  %4921 = vmatprep.mubr.msk.f32.mxu0 %vm909_vm1, %v7613_v56 }
 0x228   : > { %4718 = vmatprep.mubr.msk.f32.mxu1 %vm909_vm1, %v7623_v34 }
 0x22a   : > { %4922 = vmatmul.mubr.msk.f32.gmra.mrb[18].mxu0 %vm909_vm1, %v7615_v54 }
 0x22b   : > { %4719 = vmatmul.mubr.msk.f32.vlgmr.msra.gmra.mrb[16].mxu1 %vm909_vm1, %v7624_v40  ;;  %4924 = vmatprep.mubr.msk.f32.mxu0 %vm909_vm1, %v7617_v4 }
 0x22c   : > { %4721 = vmatprep.mubr.msk.f32.mxu1 %vm909_vm1, %v7625_v9 }
 0x22e   : > { %4925 = vmatmul.mubr.msk.f32.gmra.mrb[20].mxu0 %vm909_vm1, %v7619_v37 }
 0x22f   : > { %4722 = vmatmul.mubr.msk.f32.gmra.mrb[18].mxu1 %vm909_vm1, %v7626_v44  ;;  %4927 = vmatprep.mubr.msk.f32.mxu0 %vm909_vm1, %v7644_v45 }
 0x230   : > { %4724 = vmatprep.mubr.msk.f32.mxu1 %vm909_vm1, %v7643_v22 }
 0x232   : > { %4928 = vmatmul.mubr.msk.f32.gmra.mrb[22].mxu0 %vm909_vm1, %v7645_v57 }
 0x233   : > { %4725 = vmatmul.mubr.msk.f32.gmra.mrb[20].mxu1 %vm909_vm1, %v7630_v52  ;;  %4930 = vmatprep.mubr.msk.f32.mxu0 %vm909_vm1, %v7646_v61 }
 0x234   : > { %4727 = vmatprep.mubr.msk.f32.mxu1 %vm909_vm1, %v7631_v16 }
 0x236   : > { %4931 = vmatmul.mubr.msk.f32.gmra.mrb[24].mxu0 %vm909_vm1, %v7647_v20 }
 0x237   : > { %4728 = vmatmul.mubr.msk.f32.gmra.mrb[22].mxu1 %vm909_vm1, %v7632_v18  ;;  %4933 = vmatprep.mubr.msk.f32.mxu0 %vm909_vm1, %v7649_v60 }
 0x238   : > { %4730 = vmatprep.mubr.msk.f32.mxu1 %vm909_vm1, %v7648_v50 }
 0x23a   : > { %4934 = vmatmul.mubr.msk.f32.gmra.mrb[26].mxu0 %vm909_vm1, %v7651_v62 }
 0x23b   : > { %4731 = vmatmul.mubr.msk.f32.gmra.mrb[24].mxu1 %vm909_vm1, %v7650_v24  ;;  %4936 = vmatprep.mubr.msk.f32.mxu0 %vm909_vm1, %v7653_v1 }
 0x23c   : > { %4733 = vmatprep.mubr.msk.f32.mxu1 %vm909_vm1, %v7652_v55 }
 0x23e   : > { %4937 = vmatmul.mubr.msk.f32.gmra.mrb[28].mxu0 %vm909_vm1, %v7654_v2 }
 0x23f   : > { %4734 = vmatmul.mubr.msk.f32.gmra.mrb[26].mxu1 %vm909_vm1, %v7636_v41  ;;  %4939 = vmatprep.mubr.msk.f32.mxu0 %vm909_vm1, %v3230_v25 }
 0x240   : > { %4736 = vmatprep.mubr.msk.f32.mxu1 %vm909_vm1, %v7637_v28 }
 0x242   : > { %4940 = vmatmul.mubr.msk.f32.gmra.mrb[30].mxu0 %vm909_vm1, %v3232_v48 }
 0x243   : > { %4737 = vmatmul.mubr.msk.f32.gmra.mrb[28].mxu1 %vm909_vm1, %v7638_v53 }
 0x244   : > { %4739 = vmatprep.mubr.msk.f32.mxu1 %vm909_vm1, %v7031_v63 }
 0x247   : > { %4740 = vmatmul.mubr.msk.f32.gmra.mrb[30].mxu1 %vm909_vm1, %v7044_v14  ;;  %vm3670_vm1 = vcmask 261120  }
 0x2be   : > { %v4646_v38 = vpop.f32.mrb[0].mxu1 }
 0x2bf   : > { %v1966_v6 = vpop.f32.mrb[1].mxu1 }
 0x2c2   : > { %v4649_v8 = vpop.f32.mrb[2].mxu1 }
 0x2c3   : > { %v1976_v56 = vpop.f32.mrb[3].mxu1 }
 0x2c6   : > { %v4652_v13 = vpop.f32.mrb[4].mxu1 }
 0x2c7   : > { %v1986_v17 = vpop.f32.mrb[5].mxu1 }
 0x2ca   : > { %v4655_v29 = vpop.f32.mrb[6].mxu1 }
 0x2cb   : > { %v1996_v49 = vpop.f32.mrb[7].mxu1 }
 0x2ce   : > { %v7194_v18 = vpop.f32.mrb[8].mxu1 }
 0x2cf   : > { %v7196_v52 = vpop.f32.mrb[9].mxu1 }
 0x2d2   : > { %v7198_v16 = vpop.f32.mrb[10].mxu1 }
 0x2d3   : > { %v7200_v37 = vpop.f32.mrb[11].mxu1 }
 0x2d6   : > { %v7202_v36 = vpop.f32.mrb[12].mxu1 }
 0x2d7   : > { %v7204_v33 = vpop.f32.mrb[13].mxu1 }
 0x2d9   : > { %v4896_v15 = vpop.f32.mrb[0].mxu0 }
 0x2da   : > { %v7206_v11 = vpop.f32.mrb[14].mxu1  ;;  %v4944_v46 = vadd.f32 %v4896_v15, %v4646_v38  ;;  %v3305_v3 = vpop.f32.mrb[1].mxu0 }
 0x2db   : > { %v7210_v30 = vpop.f32.mrb[15].mxu1  ;;  %v4945_v23 = vadd.f32 %v3305_v3, %v1966_v6 }
 0x2dc   : > { %v3504_v54 = vmul.f32 %v4944_v46, %v7208_v5 }
 0x2dd   : > { %v3503_v4 = vmul.f32 %v4945_v23, %v7208_v5  ;;  %v4899_v34 = vpop.f32.mrb[2].mxu0 }
 0x2de   : > { %v3543_v40 = vadd.f32 %v7212_v12, %v3504_v54  ;;  %v4946_v9 = vadd.f32 %v4899_v34, %v4649_v8  ;;  %v3315_v44 = vpop.f32.mrb[3].mxu0 }
 0x2df   : > { %v3542_v35 = vadd.f32 %v7212_v12, %v3503_v4  ;;  %v4947_v63 = vadd.f32 %v3315_v44, %v1976_v56 }
 0x2e0   : > { %vm3575_vm0 = vcmp.ge.f32.partialorder %v3543_v40, 0.0  ;;  %v3607_v7 = vmul.f32 0.01, %v3543_v40  ;;  %v3506_v26 = vmul.f32 %v4946_v9, %v7208_v5 }
 0x2e1   : > { %vm3574_vm8 = vcmp.ge.f32.partialorder %v3542_v35, 0.0  ;;  %v3606_v27 = vmul.f32 0.01, %v3542_v35  ;;  %v3505_v59 = vmul.f32 %v4947_v63, %v7208_v5  ;;  %v4902_v41 = vpop.f32.mrb[4].mxu0 }
 0x2e2   : > { %v3639_v28 = vsel %vm3575_vm0, %v3543_v40, %v3607_v7  ;;  %v3545_v42 = vadd.f32 %v7212_v12, %v3506_v26  ;;  %v4948_v39 = vadd.f32 %v4902_v41, %v4652_v13  ;;  %v3325_v53 = vpop.f32.mrb[5].mxu0 }
 0x2e3   : > { %3672 = vst.msk [vmem:[%s7222_s22 + $0x8] sm:$0xff] %vm3670_vm1, %v3639_v28  ;;  %v3638_v14 = vsel %vm3574_vm8, %v3542_v35, %v3606_v27  ;;  %v3544_v47 = vadd.f32 %v7212_v12, %v3505_v59  ;;  %v4949_v31 = vadd.f32 %v3325_v53, %v1986_v17 }
 0x2e4   : > { %3671 = vst.msk [vmem:[%s7222_s22] sm:$0xff] %vm3670_vm1, %v3638_v14  ;;  %vm3577_vm3 = vcmp.ge.f32.partialorder %v3545_v42, 0.0  ;;  %v3609_v19 = vmul.f32 0.01, %v3545_v42  ;;  %v3508_v10 = vmul.f32 %v4948_v39, %v7208_v5 }
 0x2e5   : > { %vm3576_vm4 = vcmp.ge.f32.partialorder %v3544_v47, 0.0  ;;  %v3608_v32 = vmul.f32 0.01, %v3544_v47  ;;  %v3507_v43 = vmul.f32 %v4949_v31, %v7208_v5  ;;  %v4905_v21 = vpop.f32.mrb[6].mxu0 }
 0x2e6   : > { %v3641_v22 = vsel %vm3577_vm3, %v3545_v42, %v3609_v19  ;;  %v3547_v45 = vadd.f32 %v7212_v12, %v3508_v10  ;;  %v4950_v57 = vadd.f32 %v4905_v21, %v4655_v29  ;;  %v3335_v61 = vpop.f32.mrb[7].mxu0 }
 0x2e7   : > { %3674 = vst.msk [vmem:[%s7222_s22 + $0x18] sm:$0xff] %vm3670_vm1, %v3641_v22  ;;  %v3640_v20 = vsel %vm3576_vm4, %v3544_v47, %v3608_v32  ;;  %v3546_v50 = vadd.f32 %v7212_v12, %v3507_v43  ;;  %v4951_v60 = vadd.f32 %v3335_v61, %v1996_v49 }
 0x2e8   : > { %3673 = vst.msk [vmem:[%s7222_s22 + $0x10] sm:$0xff] %vm3670_vm1, %v3640_v20  ;;  %vm3579_vm5 = vcmp.ge.f32.partialorder %v3547_v45, 0.0  ;;  %v3611_v51 = vmul.f32 0.01, %v3547_v45  ;;  %v3510_v0 = vmul.f32 %v4950_v57, %v7208_v5 }
 0x2e9   : > { %vm3578_vm6 = vcmp.ge.f32.partialorder %v3546_v50, 0.0  ;;  %v3610_v24 = vmul.f32 0.01, %v3546_v50  ;;  %v3509_v62 = vmul.f32 %v4951_v60, %v7208_v5  ;;  %v4908_v55 = vpop.f32.mrb[8].mxu0 }
 0x2ea   : > { %v3643_v1 = vsel %vm3579_vm5, %v3547_v45, %v3611_v51  ;;  %v3549_v58 = vadd.f32 %v7212_v12, %v3510_v0  ;;  %v4952_v25 = vadd.f32 %v4908_v55, %v7194_v18  ;;  %v3345_v2 = vpop.f32.mrb[9].mxu0 }
 0x2eb   : > { %3676 = vst.msk [vmem:[%s7222_s22 + $0x28] sm:$0xff] %vm3670_vm1, %v3643_v1  ;;  %v3642_v48 = vsel %vm3578_vm6, %v3546_v50, %v3610_v24  ;;  %v3548_v38 = vadd.f32 %v7212_v12, %v3509_v62  ;;  %v4953_v6 = vadd.f32 %v3345_v2, %v7196_v52 }
 0x2ec   : > { %3675 = vst.msk [vmem:[%s7222_s22 + $0x20] sm:$0xff] %vm3670_vm1, %v3642_v48  ;;  %vm3581_vm7 = vcmp.ge.f32.partialorder %v3549_v58, 0.0  ;;  %v3613_v8 = vmul.f32 0.01, %v3549_v58  ;;  %v3512_v56 = vmul.f32 %v4952_v25, %v7208_v5 }
 0x2ed   : > { %vm3580_vm9 = vcmp.ge.f32.partialorder %v3548_v38, 0.0  ;;  %v3612_v13 = vmul.f32 0.01, %v3548_v38  ;;  %v3511_v17 = vmul.f32 %v4953_v6, %v7208_v5  ;;  %v4911_v29 = vpop.f32.mrb[10].mxu0 }
 0x2ee   : > { %v3645_v49 = vsel %vm3581_vm7, %v3549_v58, %v3613_v8  ;;  %v3551_v18 = vadd.f32 %v7212_v12, %v3512_v56  ;;  %v4954_v15 = vadd.f32 %v4911_v29, %v7198_v16  ;;  %v3355_v46 = vpop.f32.mrb[11].mxu0 }
 0x2ef   : > { %3678 = vst.msk [vmem:[%s7222_s22 + $0x38] sm:$0xff] %vm3670_vm1, %v3645_v49  ;;  %v3644_v52 = vsel %vm3580_vm9, %v3548_v38, %v3612_v13  ;;  %v3550_v3 = vadd.f32 %v7212_v12, %v3511_v17  ;;  %v4955_v23 = vadd.f32 %v3355_v46, %v7200_v37 }
 0x2f0   : > { %3677 = vst.msk [vmem:[%s7222_s22 + $0x30] sm:$0xff] %vm3670_vm1, %v3644_v52  ;;  %vm3583_vm10 = vcmp.ge.f32.partialorder %v3551_v18, 0.0  ;;  %v3615_v54 = vmul.f32 0.01, %v3551_v18  ;;  %v3514_v4 = vmul.f32 %v4954_v15, %v7208_v5 }
 0x2f1   : > { %vm3582_vm11 = vcmp.ge.f32.partialorder %v3550_v3, 0.0  ;;  %v3614_v34 = vmul.f32 0.01, %v3550_v3  ;;  %v3513_v16 = vmul.f32 %v4955_v23, %v7208_v5  ;;  %v4914_v40 = vpop.f32.mrb[12].mxu0 }
 0x2f2   : > { %v3647_v9 = vsel %vm3583_vm10, %v3551_v18, %v3615_v54  ;;  %v3553_v44 = vadd.f32 %v7212_v12, %v3514_v4  ;;  %v4956_v35 = vadd.f32 %v4914_v40, %v7202_v36  ;;  %v3365_v63 = vpop.f32.mrb[13].mxu0 }
 0x2f3   : > { %3680 = vst.msk [vmem:[%s7222_s22 + $0x48] sm:$0xff] %vm3670_vm1, %v3647_v9  ;;  %v3646_v37 = vsel %vm3582_vm11, %v3550_v3, %v3614_v34  ;;  %v3552_v7 = vadd.f32 %v7212_v12, %v3513_v16  ;;  %v4957_v26 = vadd.f32 %v3365_v63, %v7204_v33 }
 0x2f4   : > { %3679 = vst.msk [vmem:[%s7222_s22 + $0x40] sm:$0xff] %vm3670_vm1, %v3646_v37  ;;  %vm3585_vm12 = vcmp.ge.f32.partialorder %v3553_v44, 0.0  ;;  %v3617_v27 = vmul.f32 0.01, %v3553_v44  ;;  %v3516_v59 = vmul.f32 %v4956_v35, %v7208_v5 }
 0x2f5   : > { %vm3584_vm13 = vcmp.ge.f32.partialorder %v3552_v7, 0.0  ;;  %v3616_v41 = vmul.f32 0.01, %v3552_v7  ;;  %v3515_v36 = vmul.f32 %v4957_v26, %v7208_v5  ;;  %v4917_v28 = vpop.f32.mrb[14].mxu0 }
 0x2f6   : > { %v3649_v42 = vsel %vm3585_vm12, %v3553_v44, %v3617_v27  ;;  %v3555_v39 = vadd.f32 %v7212_v12, %v3516_v59  ;;  %v4958_v53 = vadd.f32 %v4917_v28, %v7206_v11  ;;  %v3375_v14 = vpop.f32.mrb[15].mxu0 }
 0x2f7   : > { %3682 = vst.msk [vmem:[%s7222_s22 + $0x58] sm:$0xff] %vm3670_vm1, %v3649_v42  ;;  %v3648_v33 = vsel %vm3584_vm13, %v3552_v7, %v3616_v41  ;;  %v3554_v47 = vadd.f32 %v7212_v12, %v3515_v36  ;;  %v4959_v31 = vadd.f32 %v3375_v14, %v7210_v30 }
 0x2f8   : > { %3681 = vst.msk [vmem:[%s7222_s22 + $0x50] sm:$0xff] %vm3670_vm1, %v3648_v33  ;;  %vm3587_vm14 = vcmp.ge.f32.partialorder %v3555_v39, 0.0  ;;  %v3619_v19 = vmul.f32 0.01, %v3555_v39  ;;  %v3518_v10 = vmul.f32 %v4958_v53, %v7208_v5 }
 0x2f9   : > { %vm3586_vm15 = vcmp.ge.f32.partialorder %v3554_v47, 0.0  ;;  %v3618_v32 = vmul.f32 0.01, %v3554_v47  ;;  %v3517_v11 = vmul.f32 %v4959_v31, %v7208_v5  ;;  %v4920_v43 = vpop.f32.mrb[16].mxu0 }
 0x2fa   : > { %v3651_v21 = vsel %vm3587_vm14, %v3555_v39, %v3619_v19  ;;  %v3557_v22 = vadd.f32 %v7212_v12, %v3518_v10  ;;  %v3385_v45 = vpop.f32.mrb[17].mxu0 }
 0x2fb   : > { %3684 = vst.msk [vmem:[%s7222_s22 + $0x68] sm:$0xff] %vm3670_vm1, %v3651_v21  ;;  %v3650_v57 = vsel %vm3586_vm15, %v3554_v47, %v3618_v32  ;;  %v3556_v30 = vadd.f32 %v7212_v12, %v3517_v11 }
 0x2fc   : > { %3683 = vst.msk [vmem:[%s7222_s22 + $0x60] sm:$0xff] %vm3670_vm1, %v3650_v57  ;;  %vm3589_vm2 = vcmp.ge.f32.partialorder %v3557_v22, 0.0  ;;  %v3621_v61 = vmul.f32 0.01, %v3557_v22 }
 0x2fd   : > { %vm3588_vm0 = vcmp.ge.f32.partialorder %v3556_v30, 0.0  ;;  %v3620_v20 = vmul.f32 0.01, %v3556_v30  ;;  %v4923_v60 = vpop.f32.mrb[18].mxu0 }
 0x2fe   : > { %v4720_v50 = vpop.f32.mrb[16].mxu1  ;;  %v3653_v51 = vsel %vm3589_vm2, %v3557_v22, %v3621_v61  ;;  %v3395_v62 = vpop.f32.mrb[19].mxu0 }
 0x2ff   : > { %v4960_v0 = vadd.f32 %v4920_v43, %v4720_v50  ;;  %v2315_v24 = vpop.f32.mrb[17].mxu1  ;;  %3686 = vst.msk [vmem:[%s7222_s22 + $0x78] sm:$0xff] %vm3670_vm1, %v3653_v51  ;;  %v3652_v55 = vsel %vm3588_vm0, %v3556_v30, %v3620_v20 }
 0x300   : > { %v4961_v1 = vadd.f32 %v3385_v45, %v2315_v24  ;;  %3685 = vst.msk [vmem:[%s7222_s22 + $0x70] sm:$0xff] %vm3670_vm1, %v3652_v55 }
 0x301   : > { %v3520_v58 = vmul.f32 %v4960_v0, %v7208_v5  ;;  %v4926_v48 = vpop.f32.mrb[20].mxu0 }
 0x302   : > { %v3519_v25 = vmul.f32 %v4961_v1, %v7208_v5  ;;  %v4723_v2 = vpop.f32.mrb[18].mxu1  ;;  %v3405_v56 = vpop.f32.mrb[21].mxu0 }
 0x303   : > { %v3559_v38 = vadd.f32 %v7212_v12, %v3520_v58  ;;  %v4962_v6 = vadd.f32 %v4923_v60, %v4723_v2  ;;  %v2325_v8 = vpop.f32.mrb[19].mxu1 }
 0x304   : > { %v3558_v13 = vadd.f32 %v7212_v12, %v3519_v25  ;;  %v4963_v17 = vadd.f32 %v3395_v62, %v2325_v8 }
 0x305   : > { %vm3591_vm8 = vcmp.ge.f32.partialorder %v3559_v38, 0.0  ;;  %v3623_v29 = vmul.f32 0.01, %v3559_v38  ;;  %v3522_v49 = vmul.f32 %v4962_v6, %v7208_v5  ;;  %v4929_v52 = vpop.f32.mrb[22].mxu0 }
 0x306   : > { %vm3590_vm3 = vcmp.ge.f32.partialorder %v3558_v13, 0.0  ;;  %v3622_v18 = vmul.f32 0.01, %v3558_v13  ;;  %v3521_v15 = vmul.f32 %v4963_v17, %v7208_v5  ;;  %v4726_v46 = vpop.f32.mrb[20].mxu1  ;;  %v3415_v34 = vpop.f32.mrb[23].mxu0 }
 0x307   : > { %v3655_v3 = vsel %vm3591_vm8, %v3559_v38, %v3623_v29  ;;  %v3561_v23 = vadd.f32 %v7212_v12, %v3522_v49  ;;  %v4964_v54 = vadd.f32 %v4926_v48, %v4726_v46  ;;  %v2335_v4 = vpop.f32.mrb[21].mxu1 }
 0x308   : > { %3688 = vst.msk [vmem:[%s7222_s22 + $0x88] sm:$0xff] %vm3670_vm1, %v3655_v3  ;;  %v3654_v16 = vsel %vm3590_vm3, %v3558_v13, %v3622_v18  ;;  %v3560_v40 = vadd.f32 %v7212_v12, %v3521_v15  ;;  %v4965_v9 = vadd.f32 %v3405_v56, %v2335_v4 }
 0x309   : > { %3687 = vst.msk [vmem:[%s7222_s22 + $0x80] sm:$0xff] %vm3670_vm1, %v3654_v16  ;;  %vm3593_vm4 = vcmp.ge.f32.partialorder %v3561_v23, 0.0  ;;  %v3625_v44 = vmul.f32 0.01, %v3561_v23  ;;  %v3524_v35 = vmul.f32 %v4964_v54, %v7208_v5  ;;  %v4932_v26 = vpop.f32.mrb[24].mxu0 }
 0x30a   : > { %vm3592_vm5 = vcmp.ge.f32.partialorder %v3560_v40, 0.0  ;;  %v3624_v63 = vmul.f32 0.01, %v3560_v40  ;;  %v3523_v37 = vmul.f32 %v4965_v9, %v7208_v5  ;;  %v4729_v7 = vpop.f32.mrb[22].mxu1  ;;  %v3425_v28 = vpop.f32.mrb[25].mxu0 }
 0x30b   : > { %v3657_v27 = vsel %vm3593_vm4, %v3561_v23, %v3625_v44  ;;  %v3563_v59 = vadd.f32 %v7212_v12, %v3524_v35  ;;  %v4966_v41 = vadd.f32 %v4929_v52, %v4729_v7  ;;  %v2345_v36 = vpop.f32.mrb[23].mxu1 }
 0x30c   : > { %3690 = vst.msk [vmem:[%s7222_s22 + $0x98] sm:$0xff] %vm3670_vm1, %v3657_v27  ;;  %v3656_v42 = vsel %vm3592_vm5, %v3560_v40, %v3624_v63  ;;  %v3562_v39 = vadd.f32 %v7212_v12, %v3523_v37  ;;  %v4967_v53 = vadd.f32 %v3415_v34, %v2345_v36 }
 0x30d   : > { %3689 = vst.msk [vmem:[%s7222_s22 + $0x90] sm:$0xff] %vm3670_vm1, %v3656_v42  ;;  %vm3595_vm6 = vcmp.ge.f32.partialorder %v3563_v59, 0.0  ;;  %v3627_v14 = vmul.f32 0.01, %v3563_v59  ;;  %v3526_v33 = vmul.f32 %v4966_v41, %v7208_v5  ;;  %v4935_v10 = vpop.f32.mrb[26].mxu0 }
 0x30e   : > { %vm3594_vm7 = vcmp.ge.f32.partialorder %v3562_v39, 0.0  ;;  %v3626_v47 = vmul.f32 0.01, %v3562_v39  ;;  %v3525_v31 = vmul.f32 %v4967_v53, %v7208_v5  ;;  %v4732_v19 = vpop.f32.mrb[24].mxu1  ;;  %v3435_v22 = vpop.f32.mrb[27].mxu0 }
 0x30f   : > { %v3659_v32 = vsel %vm3595_vm6, %v3563_v59, %v3627_v14  ;;  %v3565_v11 = vadd.f32 %v7212_v12, %v3526_v33  ;;  %v4968_v43 = vadd.f32 %v4932_v26, %v4732_v19  ;;  %v2355_v21 = vpop.f32.mrb[25].mxu1 }
 0x310   : > { %3692 = vst.msk [vmem:[%s7222_s22 + $0xa8] sm:$0xff] %vm3670_vm1, %v3659_v32  ;;  %v3658_v45 = vsel %vm3594_vm7, %v3562_v39, %v3626_v47  ;;  %v3564_v57 = vadd.f32 %v7212_v12, %v3525_v31  ;;  %v4969_v30 = vadd.f32 %v3425_v28, %v2355_v21 }
 0x311   : > { %3691 = vst.msk [vmem:[%s7222_s22 + $0xa0] sm:$0xff] %vm3670_vm1, %v3658_v45  ;;  %vm3597_vm9 = vcmp.ge.f32.partialorder %v3565_v11, 0.0  ;;  %v3629_v61 = vmul.f32 0.01, %v3565_v11  ;;  %v3528_v20 = vmul.f32 %v4968_v43, %v7208_v5  ;;  %v4938_v0 = vpop.f32.mrb[28].mxu0 }
 0x312   : > { %vm3596_vm10 = vcmp.ge.f32.partialorder %v3564_v57, 0.0  ;;  %v3628_v50 = vmul.f32 0.01, %v3564_v57  ;;  %v3527_v60 = vmul.f32 %v4969_v30, %v7208_v5  ;;  %v4735_v51 = vpop.f32.mrb[26].mxu1  ;;  %v3445_v58 = vpop.f32.mrb[29].mxu0 }
 0x313   : > { %v3661_v24 = vsel %vm3597_vm9, %v3565_v11, %v3629_v61  ;;  %v3567_v62 = vadd.f32 %v7212_v12, %v3528_v20  ;;  %v4970_v55 = vadd.f32 %v4935_v10, %v4735_v51  ;;  %v2365_v1 = vpop.f32.mrb[27].mxu1 }
 0x314   : > { %3694 = vst.msk [vmem:[%s7222_s22 + $0xb8] sm:$0xff] %vm3670_vm1, %v3661_v24  ;;  %v3660_v25 = vsel %vm3596_vm10, %v3564_v57, %v3628_v50  ;;  %v3566_v2 = vadd.f32 %v7212_v12, %v3527_v60  ;;  %v4971_v48 = vadd.f32 %v3435_v22, %v2365_v1 }
 0x315   : > { %3693 = vst.msk [vmem:[%s7222_s22 + $0xb0] sm:$0xff] %vm3670_vm1, %v3660_v25  ;;  %vm3599_vm11 = vcmp.ge.f32.partialorder %v3567_v62, 0.0  ;;  %v3631_v38 = vmul.f32 0.01, %v3567_v62  ;;  %v3530_v6 = vmul.f32 %v4970_v55, %v7208_v5  ;;  %v4941_v17 = vpop.f32.mrb[30].mxu0 }
 0x316   : > { %vm3598_vm12 = vcmp.ge.f32.partialorder %v3566_v2, 0.0  ;;  %v3630_v8 = vmul.f32 0.01, %v3566_v2  ;;  %v3529_v56 = vmul.f32 %v4971_v48, %v7208_v5  ;;  %v4738_v13 = vpop.f32.mrb[28].mxu1  ;;  %v3455_v46 = vpop.f32.mrb[31].mxu0 }
 0x317   : > { %v3663_v29 = vsel %vm3599_vm11, %v3567_v62, %v3631_v38  ;;  %v3569_v49 = vadd.f32 %v7212_v12, %v3530_v6  ;;  %v4972_v18 = vadd.f32 %v4938_v0, %v4738_v13  ;;  %v2375_v15 = vpop.f32.mrb[29].mxu1 }
 0x318   : > { %3696 = vst.msk [vmem:[%s7222_s22 + $0xc8] sm:$0xff] %vm3670_vm1, %v3663_v29  ;;  %v3662_v52 = vsel %vm3598_vm12, %v3566_v2, %v3630_v8  ;;  %v3568_v3 = vadd.f32 %v7212_v12, %v3529_v56  ;;  %v4973_v23 = vadd.f32 %v3445_v58, %v2375_v15 }
 0x319   : > { %3695 = vst.msk [vmem:[%s7222_s22 + $0xc0] sm:$0xff] %vm3670_vm1, %v3662_v52  ;;  %vm3601_vm13 = vcmp.ge.f32.partialorder %v3569_v49, 0.0  ;;  %v3633_v54 = vmul.f32 0.01, %v3569_v49  ;;  %v3532_v4 = vmul.f32 %v4972_v18, %v7208_v5 }
 0x31a   : > { %vm3600_vm14 = vcmp.ge.f32.partialorder %v3568_v3, 0.0  ;;  %v3632_v34 = vmul.f32 0.01, %v3568_v3  ;;  %v3531_v16 = vmul.f32 %v4973_v23, %v7208_v5  ;;  %v4741_v40 = vpop.f32.mrb[30].mxu1 }
 0x31b   : > { %v3665_v9 = vsel %vm3601_vm13, %v3569_v49, %v3633_v54  ;;  %v3571_v44 = vadd.f32 %v7212_v12, %v3532_v4  ;;  %v4974_v35 = vadd.f32 %v4941_v17, %v4741_v40  ;;  %v2385_v63 = vpop.f32.mrb[31].mxu1 }
 0x31c   : > { %3698 = vst.msk [vmem:[%s7222_s22 + $0xd8] sm:$0xff] %vm3670_vm1, %v3665_v9  ;;  %v3664_v37 = vsel %vm3600_vm14, %v3568_v3, %v3632_v34  ;;  %v3570_v7 = vadd.f32 %v7212_v12, %v3531_v16  ;;  %v4975_v26 = vadd.f32 %v3455_v46, %v2385_v63 }
 0x31d   : > { %3697 = vst.msk [vmem:[%s7222_s22 + $0xd0] sm:$0xff] %vm3670_vm1, %v3664_v37  ;;  %vm3603_vm15 = vcmp.ge.f32.partialorder %v3571_v44, 0.0  ;;  %v3635_v27 = vmul.f32 0.01, %v3571_v44  ;;  %v3534_v59 = vmul.f32 %v4974_v35, %v7208_v5 }
 0x31e   : > { %vm3602_vm2 = vcmp.ge.f32.partialorder %v3570_v7, 0.0  ;;  %v3634_v41 = vmul.f32 0.01, %v3570_v7  ;;  %v3533_v36 = vmul.f32 %v4975_v26, %v7208_v5 }
 0x31f   : > { %v3667_v28 = vsel %vm3603_vm15, %v3571_v44, %v3635_v27  ;;  %v3573_v42 = vadd.f32 %v7212_v12, %v3534_v59 }
 0x320   : > { %3700 = vst.msk [vmem:[%s7222_s22 + $0xe8] sm:$0xff] %vm3670_vm1, %v3667_v28  ;;  %v3666_v39 = vsel %vm3602_vm2, %v3570_v7, %v3634_v41  ;;  %v3572_v53 = vadd.f32 %v7212_v12, %v3533_v36 }
 0x321   : > { %3699 = vst.msk [vmem:[%s7222_s22 + $0xe0] sm:$0xff] %vm3670_vm1, %v3666_v39  ;;  %vm3605_vm0 = vcmp.ge.f32.partialorder %v3573_v42, 0.0  ;;  %v3637_v14 = vmul.f32 0.01, %v3573_v42 }
 0x322   : > { %vm3604_vm8 = vcmp.ge.f32.partialorder %v3572_v53, 0.0  ;;  %v3636_v5 = vmul.f32 0.01, %v3572_v53 }
 0x323   : > { %v3669_v33 = vsel %vm3605_vm0, %v3573_v42, %v3637_v14 }
 0x324   : > { %3702 = vst.msk [vmem:[%s7222_s22 + $0xf8] sm:$0xff] %vm3670_vm1, %v3669_v33  ;;  %v3668_v12 = vsel %vm3604_vm8, %v3572_v53, %v3636_v5 }
 0x325   : > { %3701 = vst.msk [vmem:[%s7222_s22 + $0xf0] sm:$0xff] %vm3670_vm1, %v3668_v12 }
 0x326   : > { %5544 = shalt.err (!%p5541_p1)
}
 0x327   : > { %s5545_s3 = scalar_lea.hbm %s7354_s21, 4096  ;;  %s5549_s0 = scalar_lea.hbm %s7655_s12, 8192 }
 0x328   : > { %p5546_p10 = scmp.ne.s32.totalorder %s7354_s21, %s5545_s3  ;;  %p5550_p3 = scmp.lt.u32.totalorder %s7354_s21, %s7655_s12 }
 0x329   : > { %p5551_p12 = scmp.lt.u32.totalorder %s5549_s0, %s5545_s3  ;;  %p5553_p13 = scmp.lt.u32.totalorder %s5545_s3, %s7354_s21 }
 0x32a   : > { %p5547_p11 = pnand %p5546_p10, %p7656_p0 }
 0x32b   : > { %p5552_p6 = por %p5551_p12, %p5550_p3 }
 0x32c   : > { %p5548_p8 = pneg %p5547_p11 }
 0x32d   : > { %p5554_p7 = por %p5553_p13, %p5552_p6 }
 0x32f   : > { %p5555_p5 = pnand %p5554_p7, %p5548_p8 }
 0x331   : > { %5558 = shalt.err (!%p5555_p5)
}
 0x332   : > { %s5641_s19 = smov 128   ;;  %s5642_s30 = smov 8  }
 0x333   : > { %5230 = dma.vmem_to_hbm [thread:$0]  (%p7656_p0), %s7356_s17, 4096, %s7354_s21, %s3704_s27, %s5641_s19, %s5641_s19, %s5642_s30  }
 0x334 PF: > { %s3734_s22 = sand.u32 1, %s5609_s24   ;;  %p7657_p2 = scmp.ne.s32.totalorder %s7527_s16, 0 }
 0x335   : > { %p7658_p4 = scmp.ge.s32.totalorder %s5629_s29, 2  ;;  %s3735_s2 = scalar_lea.sflag [#allocation4], %s3734_s22 }
 0x337   : > { %p5256_p9 = pnand %p7658_p4, %p7657_p2 }
 0x339   : > { %5604 = dma.done.wait (!%p5256_p9), %s3735_s2, 4096  }
 0x33a   : > { %5606 = vsyncadd (!%p5256_p9), %s3735_s2, 4294963200  ;;  %s28_s29 = sadd.s32 1, %s5629_s29   ;;  %s7659_s24 = smov %s5613_s25 }
 0x33b   : > { %p25_p1 = scmp.ge.s32.totalorder %s28_s29, 4   ;;  %s7660_s25 = smov %s5617_s26 }
 0x33c   : > { %s7661_s26 = smov %s5878_s10  ;;  %s7662_s27 = smov %s5625_s28 }
 0x33d   : > { %s7663_s28 = smov %s7665_s20  ;;  %27 = sbr.rel (!%p25_p1) target bundleno = 18 (0x12), region = 134 }
 0x344   :  { %3740 = vsyncpa [#allocation3], 1 }
 0x345   :  { %3742 = vsyncpa [#allocation3 + $0x1], 1 }
 0x346   :  { %3743 = vsyncpa [#allocation6], 1 }
 0x347   :  { %3745 = vsyncpa [#allocation6 + $0x1], 1 }
 0x348   :  { %3746 = vsyncpa [#allocation9], 1 }
 0x349   :  { %3747 = vsyncpa [#allocation12], 1 }
 0x34a   :  { %3748 = vsyncpa [#allocation4], 1 }
 0x34b   :  { %3750 = vsyncpa [#allocation4 + $0x1], 1 }

</bundles_post_ra>
